<compile_context>
chip_gen: v6e
topology: v6e:2x2x1
jax: 0.10.0
libtpu: 0.0.40
codegen_flags: <defaults>
</compile_context>

<pallas_src>
import functools

import jax
import jax.numpy as jnp
from jax.experimental import pallas as pl
from jax.experimental.pallas import tpu as pltpu

CHAR_SEQ_SET_LEN = 21 + 4 + 7   # 32
CHAR_SMI_SET_LEN = 64

_SMEM_SPEC = pl.BlockSpec(memory_space=pltpu.MemorySpace.SMEM)
_VMEM_SPEC = pl.BlockSpec(memory_space=pltpu.MemorySpace.VMEM)


def _const_spec(arr):
    """Full-array block, same block every grid step (weights stay resident)."""
    rank = arr.ndim
    return pl.BlockSpec(arr.shape, lambda b, _r=rank: (0,) * _r)


# ----------------------------------------------------------------------------
# Pallas kernels (one fused kernel per branch + one head kernel)
# ----------------------------------------------------------------------------

def _residual_branch_kernel(*refs, blocks, has_embed, pad):
    """Fused [embed Linear] + N residual blocks + global maxpool (one batch el).

    refs = [x] (+ [embed_w, embed_b]) +
           per block: w1 (Cin,n), b1 (1,n), wbig (S*n,Cout), scale2, shift2 +
           alphas (SMEM (2*N,)) ; out (1,1,Cout) ; ypad VMEM scratch.
    `blocks` is static metadata: tuple of (shifts_tuple, add_flag).
    """
    idx = 0
    x_ref = refs[idx]; idx += 1
    if has_embed:
        we_ref = refs[idx]; be_ref = refs[idx + 1]; idx += 2
    blk_refs = []
    for _ in blocks:
        blk_refs.append(refs[idx:idx + 5]); idx += 5
    alpha_ref = refs[idx]
    o_ref = refs[idx + 1]
    ypad_ref = refs[idx + 2]                        # (L + 2*pad, n_max) scratch

    x = x_ref[0]                                    # (L, Cin)
    L = x.shape[0]
    if has_embed:
        x = jnp.dot(x, we_ref[...], preferred_element_type=jnp.float32) + be_ref[...]

    # Zero the padded staging buffer once; only rows [pad, pad+L) are ever
    # rewritten below, so the zero pad bands persist for every block.
    ypad_ref[...] = jnp.zeros_like(ypad_ref)

    for bi, ((shifts, add), (w1_ref, b1_ref, wbig_ref, sc2_ref, sh2_ref)) in (
            enumerate(zip(blocks, blk_refs))):
        a1 = alpha_ref[2 * bi]
        a2 = alpha_ref[2 * bi + 1]

        # 1x1 conv (+bias) with BatchNorm1 folded into the weights, then PReLU.
        y = jnp.dot(x, w1_ref[...], preferred_element_type=jnp.float32) + b1_ref[...]
        y = jnp.where(y >= 0, y, y * a1)
        n = y.shape[-1]

        # Pad once for the largest dilation; all branches read shifted windows.
        ypad_ref[pad:pad + L, 0:n] = y

        # All dilated branches + the cumulative-sum combine, as |shifts|
        # matmuls against the pre-folded block-structured weight; the result
        # is the full lane-dense (L, Cout) tile.
        comb = jnp.zeros((L, wbig_ref.shape[-1]), jnp.float32)
        for si, s in enumerate(shifts):
            win = ypad_ref[pad + s:pad + s + L, 0:n]
            comb = comb + jnp.dot(win, wbig_ref[si * n:(si + 1) * n, :],
                                  preferred_element_type=jnp.float32)

        if add:                                      # residual (nIn == nOut)
            comb = comb + x
        comb = comb * sc2_ref[...] + sh2_ref[...]    # folded BatchNorm2
        x = jnp.where(comb >= 0, comb, comb * a2)    # PReLU2

    o_ref[0] = jnp.max(x, axis=0, keepdims=True)     # AdaptiveMaxPool1d(1)


def _pkt_branch_kernel(*refs, n_layers):
    """Fused embed Linear + n x (Conv1d(k=3, valid) + BN + PReLU) + maxpool."""
    x_ref, we_ref, be_ref = refs[0], refs[1], refs[2]
    layer_refs = [(refs[3 + 2 * i], refs[4 + 2 * i]) for i in range(n_layers)]
    alpha_ref = refs[3 + 2 * n_layers]
    o_ref = refs[4 + 2 * n_layers]

    x = x_ref[0]                                     # (L, F)
    x = jnp.dot(x, we_ref[...], preferred_element_type=jnp.float32) + be_ref[...]
    for li, (w_ref, b_ref) in enumerate(layer_refs):
        ic = x.shape[-1]
        lo = x.shape[0] - 2                          # valid conv, k=3
        acc = jnp.zeros((lo, w_ref.shape[-1]), jnp.float32)
        for k in range(3):                           # 3 shifted-window matmuls
            acc = acc + jnp.dot(x[k:k + lo, :], w_ref[k * ic:(k + 1) * ic, :],
                                preferred_element_type=jnp.float32)
        z = acc + b_ref[...]                         # bias with BN folded in
        a = alpha_ref[li]
        x = jnp.where(z >= 0, z, z * a)              # PReLU
    o_ref[0] = jnp.max(x, axis=0, keepdims=True)


def _head_kernel(s_ref, p_ref, m_ref, w1_ref, b1_ref, w2_ref, b2_ref,
                 w3_ref, b3_ref, alpha_ref, o_ref):
    """Fused classifier: concat(seq,pkt,smi) -> Linear+PReLU x3.

    The concat is realized as a row-split of w1 (3 matmuls summed), avoiding
    any lane reshuffle of the pooled vectors."""
    c = s_ref.shape[-1]
    h = (jnp.dot(s_ref[...], w1_ref[0:c, :], preferred_element_type=jnp.float32)
         + jnp.dot(p_ref[...], w1_ref[c:2 * c, :], preferred_element_type=jnp.float32)
         + jnp.dot(m_ref[...], w1_ref[2 * c:3 * c, :], preferred_element_type=jnp.float32)
         + b1_ref[...])
    h = jnp.where(h >= 0, h, h * alpha_ref[0])
    h = jnp.dot(h, w2_ref[...], preferred_element_type=jnp.float32) + b2_ref[...]
    h = jnp.where(h >= 0, h, h * alpha_ref[1])
    h = jnp.dot(h, w3_ref[...], preferred_element_type=jnp.float32) + b3_ref[...]
    o_ref[...] = jnp.where(h >= 0, h, h * alpha_ref[2])


# ----------------------------------------------------------------------------
# Wrappers (pallas_call plumbing)
# ----------------------------------------------------------------------------

def run_residual_branch(x, embed, blocks, alphas):
    """x: (B, L, Cin).  embed: (W, b) or None.  Returns pooled (B, Cout)."""
    B, L, Cin = x.shape
    cout = int(blocks[-1]['wbig'].shape[-1])
    pad = max(max(abs(s) for s in blk['shifts']) for blk in blocks)
    n_max = max(int(blk['w1'].shape[-1]) for blk in blocks)

    inputs = [x]
    specs = [pl.BlockSpec((1, L, Cin), lambda b: (b, 0, 0))]
    if embed is not None:
        we, be = embed
        inputs += [we, be]
        specs += [_const_spec(we), _const_spec(be)]
    meta = []
    for blk in blocks:
        inputs += [blk['w1'], blk['b1'], blk['wbig'], blk['scale2'], blk['shift2']]
        specs += [_const_spec(blk['w1']), _const_spec(blk['b1']),
                  _const_spec(blk['wbig']), _const_spec(blk['scale2']),
                  _const_spec(blk['shift2'])]
        meta.append((blk['shifts'], blk['add']))
    inputs.append(alphas)
    specs.append(_SMEM_SPEC)

    kernel = functools.partial(_residual_branch_kernel, blocks=tuple(meta),
                               has_embed=embed is not None, pad=pad)
    out = pl.pallas_call(
        kernel,
        grid=(B,),
        in_specs=specs,
        out_specs=pl.BlockSpec((1, 1, cout), lambda b: (b, 0, 0)),
        out_shape=jax.ShapeDtypeStruct((B, 1, cout), jnp.float32),
        scratch_shapes=[pltpu.VMEM((L + 2 * pad, n_max), jnp.float32)],
        compiler_params=pltpu.CompilerParams(
            dimension_semantics=("parallel",)),
    )(*inputs)
    return out.reshape(B, cout)


def run_pkt_branch(pkt, embed, layers, alphas):
    B, L, F = pkt.shape
    we, be = embed
    cout = int(layers[-1]['w'].shape[-1])
    inputs = [pkt, we, be]
    specs = [pl.BlockSpec((1, L, F), lambda b: (b, 0, 0)),
             _const_spec(we), _const_spec(be)]
    for lyr in layers:
        inputs += [lyr['w'], lyr['b']]
        specs += [_const_spec(lyr['w']), _const_spec(lyr['b'])]
    inputs.append(alphas)
    specs.append(_SMEM_SPEC)

    kernel = functools.partial(_pkt_branch_kernel, n_layers=len(layers))
    out = pl.pallas_call(
        kernel,
        grid=(B,),
        in_specs=specs,
        out_specs=pl.BlockSpec((1, 1, cout), lambda b: (b, 0, 0)),
        out_shape=jax.ShapeDtypeStruct((B, 1, cout), jnp.float32),
        compiler_params=pltpu.CompilerParams(
            dimension_semantics=("parallel",)),
    )(*inputs)
    return out.reshape(B, cout)


def run_head(seq_conv, pkt_conv, smi_conv, head, alphas):
    B = seq_conv.shape[0]
    return pl.pallas_call(
        _head_kernel,
        in_specs=[_VMEM_SPEC] * 9 + [_SMEM_SPEC],
        out_specs=_VMEM_SPEC,
        out_shape=jax.ShapeDtypeStruct((B, 1), jnp.float32),
    )(seq_conv, pkt_conv, smi_conv, head['w1'], head['b1'],
      head['w2'], head['b2'], head['w3'], head['b3'], alphas)


# ----------------------------------------------------------------------------
# Parameter initialization (deterministic, synthetic, mirrors the nn.Module)
# ----------------------------------------------------------------------------

def init_params(key):
    keys = iter(jax.random.split(key, 512))

    def nk():
        return next(keys)

    def rnd(shape, s=0.1):
        return (s * jax.random.normal(nk(), shape)).astype(jnp.float32)

    def bn(c):
        gamma = jax.random.uniform(nk(), (c,), jnp.float32, 0.5, 1.5)
        beta = 0.1 * jax.random.normal(nk(), (c,), jnp.float32)
        mean = 0.1 * jax.random.normal(nk(), (c,), jnp.float32)
        var = jax.random.uniform(nk(), (c,), jnp.float32, 0.5, 1.5)
        scale = gamma * jax.lax.rsqrt(var + 1e-5)
        shift = beta - mean * scale
        return scale.astype(jnp.float32), shift.astype(jnp.float32)

    def block_a(nIn, nOut):
        n = nOut // 5
        n1 = nOut - 4 * n
        s1, h1 = bn(n)
        s2, h2 = bn(nOut)
        return dict(
            c1_w=rnd((1, nIn, n)), c1_b=rnd((n,)),
            bn1_scale=s1, bn1_shift=h1, prelu1=0.25,
            d_ws=[rnd((3, n, n1)), rnd((3, n, n)), rnd((3, n, n)),
                  rnd((3, n, n)), rnd((3, n, n))],
            dils=[1, 2, 4, 8, 16],
            bn2_scale=s2, bn2_shift=h2, prelu2=0.25,
            add=(nIn == nOut))

    def block_b(nIn, nOut):
        n = nOut // 4
        n1 = nOut - 3 * n
        s1, h1 = bn(n)
        s2, h2 = bn(nOut)
        return dict(
            c1_w=rnd((1, nIn, n)), c1_b=rnd((n,)),
            bn1_scale=s1, bn1_shift=h1, prelu1=0.25,
            d_ws=[rnd((3, n, n1)), rnd((3, n, n)), rnd((3, n, n)),
                  rnd((3, n, n))],
            dils=[1, 2, 4, 8],
            bn2_scale=s2, bn2_shift=h2, prelu2=0.25,
            add=(nIn == nOut))

    p = {}
    p['seq_embed_w'] = rnd((CHAR_SEQ_SET_LEN, 128))
    p['seq_embed_b'] = rnd((128,))
    p['smi_embed'] = rnd((CHAR_SMI_SET_LEN + 1, 128))

    blocks, ic = [], 128
    for oc in [32, 64, 64, 128]:
        blocks.append(block_a(ic, oc))
        ic = oc
    p['conv_seq'] = blocks

    pkt_layers, ic = [], 128
    for oc in [32, 64, 128]:
        s, h = bn(oc)
        pkt_layers.append(dict(w=rnd((3, ic, oc)), b=rnd((oc,)),
                               scale=s, shift=h, alpha=0.25))
        ic = oc
    p['conv_pkt'] = pkt_layers

    blocks, ic = [], 128
    for oc in [32, 64, 128]:
        blocks.append(block_b(ic, oc))
        ic = oc
    p['conv_smi'] = blocks

    fc = []
    for cin, cout in [(384, 128), (128, 64), (64, 1)]:
        fc.append(dict(w=rnd((cin, cout)), b=rnd((cout,)), alpha=0.25))
    p['fc'] = fc
    return p


# ----------------------------------------------------------------------------
# Parameter folding for the fused kernels (runs once, outside the hot path)
# ----------------------------------------------------------------------------

def prepare_params(p):
    """Fold BatchNorm into conv weights and fold every residual block's
    dilated branches + cumulative-sum combine into one block-structured weight
    matrix keyed by the (static) tap shift."""

    def fold_block(blk):
        s1, h1 = blk['bn1_scale'], blk['bn1_shift']
        w1 = blk['c1_w'][0] * s1[None, :]                    # (Cin, n)
        b1 = (blk['c1_b'] * s1 + h1).reshape(1, -1)
        d_ws, dils = blk['d_ws'], blk['dils']
        n = int(d_ws[0].shape[1])
        widths = [int(w.shape[2]) for w in d_ws]             # [n1, n, n, ...]
        nb = len(dils)
        nout = sum(widths)
        shifts = tuple(sorted({(k - 1) * d for d in dils for k in range(3)}))
        sidx = {s: i for i, s in enumerate(shifts)}
        seg_start = [0] + [widths[0] + (j - 1) * widths[1] for j in range(1, nb)]
        wbig = jnp.zeros((len(shifts) * n, nout), jnp.float32)
        for i, (d, w) in enumerate(zip(dils, d_ws)):
            # branch 0 -> segment 0 only; branch i>=1 -> every segment j >= i
            # (segment j = d2 + d4 + ... cumulative sum).
            if i == 0:
                cols = [(0, widths[0])]
            else:
                cols = [(seg_start[j], widths[j]) for j in range(i, nb)]
            for k in range(3):
                r0 = sidx[(k - 1) * d] * n
                for c0, cw in cols:
                    wbig = wbig.at[r0:r0 + n, c0:c0 + cw].add(w[k])
        return dict(w1=w1, b1=b1, wbig=wbig,
                    scale2=blk['bn2_scale'].reshape(1, nout),
                    shift2=blk['bn2_shift'].reshape(1, nout),
                    shifts=shifts, add=bool(blk['add']),
                    alphas=(float(blk['prelu1']), float(blk['prelu2'])))

    def fold_pkt(lyr):
        w = lyr['w']                                         # (3, ic, oc)
        ic, oc = int(w.shape[1]), int(w.shape[2])
        wf = w.reshape(3 * ic, oc) * lyr['scale'][None, :]
        bf = (lyr['b'] * lyr['scale'] + lyr['shift']).reshape(1, oc)
        return dict(w=wf, b=bf, alpha=float(lyr['alpha']))

    seq_blocks = [fold_block(b) for b in p['conv_seq']]
    smi_blocks = [fold_block(b) for b in p['conv_smi']]
    pkt_layers = [fold_pkt(l) for l in p['conv_pkt']]

    return dict(
        embed=(p['seq_embed_w'], p['seq_embed_b'].reshape(1, -1)),
        smi_embed=p['smi_embed'],
        seq_blocks=seq_blocks,
        seq_alphas=jnp.array([a for b in seq_blocks for a in b['alphas']],
                             jnp.float32),
        smi_blocks=smi_blocks,
        smi_alphas=jnp.array([a for b in smi_blocks for a in b['alphas']],
                             jnp.float32),
        pkt_layers=pkt_layers,
        pkt_alphas=jnp.array([l['alpha'] for l in pkt_layers], jnp.float32),
        head=dict(w1=p['fc'][0]['w'], b1=p['fc'][0]['b'].reshape(1, -1),
                  w2=p['fc'][1]['w'], b2=p['fc'][1]['b'].reshape(1, -1),
                  w3=p['fc'][2]['w'], b3=p['fc'][2]['b'].reshape(1, -1)),
        head_alphas=jnp.array([l['alpha'] for l in p['fc']], jnp.float32),
    )


# ----------------------------------------------------------------------------
# Model forward (4 pallas_calls + one embedding gather)
# ----------------------------------------------------------------------------

def deepdtaf_forward(fp, seq, pkt, smi):
    seq_conv = run_residual_branch(seq, fp['embed'], fp['seq_blocks'],
                                   fp['seq_alphas'])                 # (B, 128)
    pkt_conv = run_pkt_branch(pkt, fp['embed'], fp['pkt_layers'],
                              fp['pkt_alphas'])                      # (B, 128)
    smi_e = jnp.take(fp['smi_embed'], smi, axis=0)   # embedding gather = glue
    smi_conv = run_residual_branch(smi_e, None, fp['smi_blocks'],
                                   fp['smi_alphas'])                 # (B, 128)
    # TODO(synk): cat_dropout / classifier dropouts are identity (eval mode).
    return run_head(seq_conv, pkt_conv, smi_conv, fp['head'],
                    fp['head_alphas'])                               # (B, 1)


# ----------------------------------------------------------------------------
# Pure-JAX reference (mirrors the PyTorch module, unfused) for self-check
# ----------------------------------------------------------------------------

_PREC = jax.lax.Precision.HIGHEST


def _ref_forward(params, seq, pkt, smi):
    def prelu(x, a):
        return jnp.where(x >= 0, x, a * x)

    def bn(x, scale, shift):
        return x * scale + shift

    def conv1d_ref(x, w, b=None, d=1, pad=0):
        B, L, Cin = x.shape
        K, _, Co = w.shape
        xp = jnp.pad(x, ((0, 0), (pad, pad), (0, 0)))
        Lo = L + 2 * pad - (K - 1) * d
        out = jnp.zeros((B, Lo, Co), jnp.float32)
        for k in range(K):
            out = out + jnp.einsum('blc,cd->bld', xp[:, k * d:k * d + Lo, :],
                                   w[k], precision=_PREC)
        if b is not None:
            out = out + b
        return out

    def res_block_ref(x, blk):
        y = conv1d_ref(x, blk['c1_w'], blk['c1_b'])
        y = prelu(bn(y, blk['bn1_scale'], blk['bn1_shift']), blk['prelu1'])
        branches = [conv1d_ref(y, w, None, d, d)
                    for w, d in zip(blk['d_ws'], blk['dils'])]
        segs = [branches[0], branches[1]]
        acc = branches[1]
        for br in branches[2:]:
            acc = acc + br
            segs.append(acc)
        comb = jnp.concatenate(segs, axis=-1)
        if blk['add']:
            comb = comb + x
        return prelu(bn(comb, blk['bn2_scale'], blk['bn2_shift']), blk['prelu2'])

    x = jnp.einsum('blf,fe->ble', seq, params['seq_embed_w'],
                   precision=_PREC) + params['seq_embed_b']
    for blk in params['conv_seq']:
        x = res_block_ref(x, blk)
    seq_conv = jnp.max(x, axis=1)

    x = jnp.einsum('blf,fe->ble', pkt, params['seq_embed_w'],
                   precision=_PREC) + params['seq_embed_b']
    for lyr in params['conv_pkt']:
        x = conv1d_ref(x, lyr['w'], lyr['b'])
        x = prelu(bn(x, lyr['scale'], lyr['shift']), lyr['alpha'])
    pkt_conv = jnp.max(x, axis=1)

    x = jnp.take(params['smi_embed'], smi, axis=0)
    for blk in params['conv_smi']:
        x = res_block_ref(x, blk)
    smi_conv = jnp.max(x, axis=1)

    h = jnp.concatenate([seq_conv, pkt_conv, smi_conv], axis=1)
    for lyr in params['fc']:
        h = prelu(jnp.dot(h, lyr['w'], precision=_PREC) + lyr['b'], lyr['alpha'])
    return h


# ----------------------------------------------------------------------------

if __name__ == "__main__":
    key = jax.random.PRNGKey(0)
    kp, k1, k2, k3 = jax.random.split(key, 4)

    params = init_params(kp)
    fused = prepare_params(params)

    B, Ls, Lp, Lm = 2, 16, 16, 16
    seq = jax.random.uniform(k1, (B, Ls, CHAR_SEQ_SET_LEN), jnp.float32)
    pkt = jax.random.uniform(k2, (B, Lp, CHAR_SEQ_SET_LEN), jnp.float32)
    smi = jax.random.randint(k3, (B, Lm), 0, CHAR_SMI_SET_LEN + 1,
                             dtype=jnp.int32)

    fwd = jax.jit(functools.partial(deepdtaf_forward, fused))
    out = jax.block_until_ready(fwd(seq, pkt, smi))

    assert out.shape == (B, 1), out.shape
    assert bool(jnp.all(jnp.isfinite(out)))

    ref_out = jax.block_until_ready(
        jax.jit(functools.partial(_ref_forward, params))(seq, pkt, smi))
    assert jnp.allclose(out, ref_out, rtol=5e-2, atol=5e-2), (
        float(jnp.max(jnp.abs(out - ref_out))))

    print("KERNEL_OK")
</pallas_src>

<mosaic_0001>
module attributes {stable_mosaic.version = 11 : i64} {
  func.func @_pkt_branch_kernel(%arg0: i32, %arg1: memref<1x16x32xf32, #tpu.memory_space<vmem>>, %arg2: memref<32x128xf32, #tpu.memory_space<vmem>>, %arg3: memref<1x128xf32, #tpu.memory_space<vmem>>, %arg4: memref<384x32xf32, #tpu.memory_space<vmem>>, %arg5: memref<1x32xf32, #tpu.memory_space<vmem>>, %arg6: memref<96x64xf32, #tpu.memory_space<vmem>>, %arg7: memref<1x64xf32, #tpu.memory_space<vmem>>, %arg8: memref<192x128xf32, #tpu.memory_space<vmem>>, %arg9: memref<1x128xf32, #tpu.memory_space<vmem>>, %arg10: memref<3xf32, #tpu.memory_space<smem>>, %arg11: memref<1x1x128xf32, #tpu.memory_space<vmem>>) attributes {dimension_semantics = [#tpu.dimension_semantics<parallel>], iteration_bounds = array<i64: 2>, scalar_prefetch = 0 : i64, scratch_operands = 0 : i64, tpu.core_type = #tpu.core_type<tc>, window_params = [{transform_indices = @transform_0, window_bounds = array<i64: 1, 16, 32>}, {pipeline_mode = #tpu.pipeline_mode<synchronous>, transform_indices = @transform_1, window_bounds = array<i64: 32, 128>}, {pipeline_mode = #tpu.pipeline_mode<synchronous>, transform_indices = @transform_2, window_bounds = array<i64: 1, 128>}, {pipeline_mode = #tpu.pipeline_mode<synchronous>, transform_indices = @transform_3, window_bounds = array<i64: 384, 32>}, {pipeline_mode = #tpu.pipeline_mode<synchronous>, transform_indices = @transform_4, window_bounds = array<i64: 1, 32>}, {pipeline_mode = #tpu.pipeline_mode<synchronous>, transform_indices = @transform_5, window_bounds = array<i64: 96, 64>}, {pipeline_mode = #tpu.pipeline_mode<synchronous>, transform_indices = @transform_6, window_bounds = array<i64: 1, 64>}, {pipeline_mode = #tpu.pipeline_mode<synchronous>, transform_indices = @transform_7, window_bounds = array<i64: 192, 128>}, {pipeline_mode = #tpu.pipeline_mode<synchronous>, transform_indices = @transform_8, window_bounds = array<i64: 1, 128>}, {transform_indices = @transform_9, window_bounds = array<i64: 3>}, {transform_indices = @transform_10, window_bounds = array<i64: 1, 1, 128>}]} {
    %c0 = arith.constant 0 : index
    %c0_0 = arith.constant 0 : index
    %c0_1 = arith.constant 0 : index
    %0 = vector.load %arg1[%c0, %c0_0, %c0_1] : memref<1x16x32xf32, #tpu.memory_space<vmem>>, vector<1x16x32xf32>
    %1 = vector.shape_cast %0 : vector<1x16x32xf32> to vector<16x32xf32>
    %c0_2 = arith.constant 0 : index
    %c0_3 = arith.constant 0 : index
    %2 = vector.load %arg2[%c0_2, %c0_3] : memref<32x128xf32, #tpu.memory_space<vmem>>, vector<32x128xf32>
    %cst = arith.constant dense<0.000000e+00> : vector<16x128xf32>
    %3 = tpu.matmul %1, %2, %cst {dimension_numbers = #tpu.dot_dimension_numbers<[1], [0], [0], [1], [0, 0, 1, 1], [], []>} : vector<16x32xf32>, vector<32x128xf32>, vector<16x128xf32> -> vector<16x128xf32>
    %c0_4 = arith.constant 0 : index
    %c0_5 = arith.constant 0 : index
    %4 = vector.load %arg3[%c0_4, %c0_5] : memref<1x128xf32, #tpu.memory_space<vmem>>, vector<1x128xf32>
    %5 = vector.broadcast %4 : vector<1x128xf32> to vector<16x128xf32>
    %6 = arith.addf %3, %5 : vector<16x128xf32>
    %cst_6 = arith.constant 0.000000e+00 : f32
    %7 = vector.broadcast %cst_6 : f32 to vector<14x32xf32>
    %8 = vector.extract_strided_slice %6 {offsets = [0, 0], sizes = [14, 128], strides = [1, 1]} : vector<16x128xf32> to vector<14x128xf32>
    %c0_7 = arith.constant 0 : index
    %c0_8 = arith.constant 0 : index
    %9 = vector.load %arg4[%c0_7, %c0_8] : memref<384x32xf32, #tpu.memory_space<vmem>>, vector<128x32xf32>
    %cst_9 = arith.constant dense<0.000000e+00> : vector<14x32xf32>
    %10 = tpu.matmul %8, %9, %cst_9 {dimension_numbers = #tpu.dot_dimension_numbers<[1], [0], [0], [1], [0, 0, 1, 1], [], []>} : vector<14x128xf32>, vector<128x32xf32>, vector<14x32xf32> -> vector<14x32xf32>
    %11 = arith.addf %7, %10 : vector<14x32xf32>
    %12 = vector.extract_strided_slice %6 {offsets = [1, 0], sizes = [14, 128], strides = [1, 1]} : vector<16x128xf32> to vector<14x128xf32>
    %c128 = arith.constant 128 : index
    %c0_10 = arith.constant 0 : index
    %13 = vector.load %arg4[%c128, %c0_10] : memref<384x32xf32, #tpu.memory_space<vmem>>, vector<128x32xf32>
    %cst_11 = arith.constant dense<0.000000e+00> : vector<14x32xf32>
    %14 = tpu.matmul %12, %13, %cst_11 {dimension_numbers = #tpu.dot_dimension_numbers<[1], [0], [0], [1], [0, 0, 1, 1], [], []>} : vector<14x128xf32>, vector<128x32xf32>, vector<14x32xf32> -> vector<14x32xf32>
    %15 = arith.addf %11, %14 : vector<14x32xf32>
    %16 = vector.extract_strided_slice %6 {offsets = [2, 0], sizes = [14, 128], strides = [1, 1]} : vector<16x128xf32> to vector<14x128xf32>
    %c256 = arith.constant 256 : index
    %c0_12 = arith.constant 0 : index
    %17 = vector.load %arg4[%c256, %c0_12] : memref<384x32xf32, #tpu.memory_space<vmem>>, vector<128x32xf32>
    %cst_13 = arith.constant dense<0.000000e+00> : vector<14x32xf32>
    %18 = tpu.matmul %16, %17, %cst_13 {dimension_numbers = #tpu.dot_dimension_numbers<[1], [0], [0], [1], [0, 0, 1, 1], [], []>} : vector<14x128xf32>, vector<128x32xf32>, vector<14x32xf32> -> vector<14x32xf32>
    %19 = arith.addf %15, %18 : vector<14x32xf32>
    %c0_14 = arith.constant 0 : index
    %c0_15 = arith.constant 0 : index
    %20 = vector.load %arg5[%c0_14, %c0_15] : memref<1x32xf32, #tpu.memory_space<vmem>>, vector<1x32xf32>
    %21 = vector.broadcast %20 : vector<1x32xf32> to vector<14x32xf32>
    %22 = arith.addf %19, %21 : vector<14x32xf32>
    %c0_16 = arith.constant 0 : index
    %23 = memref.load %arg10[%c0_16] : memref<3xf32, #tpu.memory_space<smem>>
    %cst_17 = arith.constant 0.000000e+00 : f32
    %24 = vector.broadcast %cst_17 : f32 to vector<14x32xf32>
    %25 = arith.cmpf oge, %22, %24 : vector<14x32xf32>
    %26 = vector.broadcast %23 : f32 to vector<14x32xf32>
    %27 = arith.mulf %22, %26 : vector<14x32xf32>
    %28 = arith.select %25, %22, %27 : vector<14x32xi1>, vector<14x32xf32>
    %cst_18 = arith.constant 0.000000e+00 : f32
    %29 = vector.broadcast %cst_18 : f32 to vector<12x64xf32>
    %30 = vector.extract_strided_slice %28 {offsets = [0, 0], sizes = [12, 32], strides = [1, 1]} : vector<14x32xf32> to vector<12x32xf32>
    %c0_19 = arith.constant 0 : index
    %c0_20 = arith.constant 0 : index
    %31 = vector.load %arg6[%c0_19, %c0_20] : memref<96x64xf32, #tpu.memory_space<vmem>>, vector<32x64xf32>
    %cst_21 = arith.constant dense<0.000000e+00> : vector<12x64xf32>
    %32 = tpu.matmul %30, %31, %cst_21 {dimension_numbers = #tpu.dot_dimension_numbers<[1], [0], [0], [1], [0, 0, 1, 1], [], []>} : vector<12x32xf32>, vector<32x64xf32>, vector<12x64xf32> -> vector<12x64xf32>
    %33 = arith.addf %29, %32 : vector<12x64xf32>
    %34 = vector.extract_strided_slice %28 {offsets = [1, 0], sizes = [12, 32], strides = [1, 1]} : vector<14x32xf32> to vector<12x32xf32>
    %c32 = arith.constant 32 : index
    %c0_22 = arith.constant 0 : index
    %35 = vector.load %arg6[%c32, %c0_22] : memref<96x64xf32, #tpu.memory_space<vmem>>, vector<32x64xf32>
    %cst_23 = arith.constant dense<0.000000e+00> : vector<12x64xf32>
    %36 = tpu.matmul %34, %35, %cst_23 {dimension_numbers = #tpu.dot_dimension_numbers<[1], [0], [0], [1], [0, 0, 1, 1], [], []>} : vector<12x32xf32>, vector<32x64xf32>, vector<12x64xf32> -> vector<12x64xf32>
    %37 = arith.addf %33, %36 : vector<12x64xf32>
    %38 = vector.extract_strided_slice %28 {offsets = [2, 0], sizes = [12, 32], strides = [1, 1]} : vector<14x32xf32> to vector<12x32xf32>
    %c64 = arith.constant 64 : index
    %c0_24 = arith.constant 0 : index
    %39 = vector.load %arg6[%c64, %c0_24] : memref<96x64xf32, #tpu.memory_space<vmem>>, vector<32x64xf32>
    %cst_25 = arith.constant dense<0.000000e+00> : vector<12x64xf32>
    %40 = tpu.matmul %38, %39, %cst_25 {dimension_numbers = #tpu.dot_dimension_numbers<[1], [0], [0], [1], [0, 0, 1, 1], [], []>} : vector<12x32xf32>, vector<32x64xf32>, vector<12x64xf32> -> vector<12x64xf32>
    %41 = arith.addf %37, %40 : vector<12x64xf32>
    %c0_26 = arith.constant 0 : index
    %c0_27 = arith.constant 0 : index
    %42 = vector.load %arg7[%c0_26, %c0_27] : memref<1x64xf32, #tpu.memory_space<vmem>>, vector<1x64xf32>
    %43 = vector.broadcast %42 : vector<1x64xf32> to vector<12x64xf32>
    %44 = arith.addf %41, %43 : vector<12x64xf32>
    %c1 = arith.constant 1 : index
    %45 = memref.load %arg10[%c1] : memref<3xf32, #tpu.memory_space<smem>>
    %cst_28 = arith.constant 0.000000e+00 : f32
    %46 = vector.broadcast %cst_28 : f32 to vector<12x64xf32>
    %47 = arith.cmpf oge, %44, %46 : vector<12x64xf32>
    %48 = vector.broadcast %45 : f32 to vector<12x64xf32>
    %49 = arith.mulf %44, %48 : vector<12x64xf32>
    %50 = arith.select %47, %44, %49 : vector<12x64xi1>, vector<12x64xf32>
    %cst_29 = arith.constant 0.000000e+00 : f32
    %51 = vector.broadcast %cst_29 : f32 to vector<10x128xf32>
    %52 = vector.extract_strided_slice %50 {offsets = [0, 0], sizes = [10, 64], strides = [1, 1]} : vector<12x64xf32> to vector<10x64xf32>
    %c0_30 = arith.constant 0 : index
    %c0_31 = arith.constant 0 : index
    %53 = vector.load %arg8[%c0_30, %c0_31] : memref<192x128xf32, #tpu.memory_space<vmem>>, vector<64x128xf32>
    %cst_32 = arith.constant dense<0.000000e+00> : vector<10x128xf32>
    %54 = tpu.matmul %52, %53, %cst_32 {dimension_numbers = #tpu.dot_dimension_numbers<[1], [0], [0], [1], [0, 0, 1, 1], [], []>} : vector<10x64xf32>, vector<64x128xf32>, vector<10x128xf32> -> vector<10x128xf32>
    %55 = arith.addf %51, %54 : vector<10x128xf32>
    %56 = vector.extract_strided_slice %50 {offsets = [1, 0], sizes = [10, 64], strides = [1, 1]} : vector<12x64xf32> to vector<10x64xf32>
    %c64_33 = arith.constant 64 : index
    %c0_34 = arith.constant 0 : index
    %57 = vector.load %arg8[%c64_33, %c0_34] : memref<192x128xf32, #tpu.memory_space<vmem>>, vector<64x128xf32>
    %cst_35 = arith.constant dense<0.000000e+00> : vector<10x128xf32>
    %58 = tpu.matmul %56, %57, %cst_35 {dimension_numbers = #tpu.dot_dimension_numbers<[1], [0], [0], [1], [0, 0, 1, 1], [], []>} : vector<10x64xf32>, vector<64x128xf32>, vector<10x128xf32> -> vector<10x128xf32>
    %59 = arith.addf %55, %58 : vector<10x128xf32>
    %60 = vector.extract_strided_slice %50 {offsets = [2, 0], sizes = [10, 64], strides = [1, 1]} : vector<12x64xf32> to vector<10x64xf32>
    %c128_36 = arith.constant 128 : index
    %c0_37 = arith.constant 0 : index
    %61 = vector.load %arg8[%c128_36, %c0_37] : memref<192x128xf32, #tpu.memory_space<vmem>>, vector<64x128xf32>
    %cst_38 = arith.constant dense<0.000000e+00> : vector<10x128xf32>
    %62 = tpu.matmul %60, %61, %cst_38 {dimension_numbers = #tpu.dot_dimension_numbers<[1], [0], [0], [1], [0, 0, 1, 1], [], []>} : vector<10x64xf32>, vector<64x128xf32>, vector<10x128xf32> -> vector<10x128xf32>
    %63 = arith.addf %59, %62 : vector<10x128xf32>
    %c0_39 = arith.constant 0 : index
    %c0_40 = arith.constant 0 : index
    %64 = vector.load %arg9[%c0_39, %c0_40] : memref<1x128xf32, #tpu.memory_space<vmem>>, vector<1x128xf32>
    %65 = vector.broadcast %64 : vector<1x128xf32> to vector<10x128xf32>
    %66 = arith.addf %63, %65 : vector<10x128xf32>
    %c2 = arith.constant 2 : index
    %67 = memref.load %arg10[%c2] : memref<3xf32, #tpu.memory_space<smem>>
    %cst_41 = arith.constant 0.000000e+00 : f32
    %68 = vector.broadcast %cst_41 : f32 to vector<10x128xf32>
    %69 = arith.cmpf oge, %66, %68 : vector<10x128xf32>
    %70 = vector.broadcast %67 : f32 to vector<10x128xf32>
    %71 = arith.mulf %66, %70 : vector<10x128xf32>
    %72 = arith.select %69, %66, %71 : vector<10x128xi1>, vector<10x128xf32>
    %cst_42 = arith.constant dense<0xFF800000> : vector<128xf32>
    %73 = vector.multi_reduction <maximumf>, %72, %cst_42 [0] : vector<10x128xf32> to vector<128xf32>
    %74 = vector.shape_cast %73 : vector<128xf32> to vector<1x128xf32>
    %c0_43 = arith.constant 0 : index
    %c0_44 = arith.constant 0 : index
    %c0_45 = arith.constant 0 : index
    %75 = vector.load %arg11[%c0_43, %c0_44, %c0_45] : memref<1x1x128xf32, #tpu.memory_space<vmem>>, vector<1x1x128xf32>
    %76 = vector.shape_cast %75 : vector<1x1x128xf32> to vector<1x128xf32>
    %77 = vector.shape_cast %74 : vector<1x128xf32> to vector<1x1x128xf32>
    tpu.vector_store %arg11[%c0_43, %c0_44, %c0_45], %77 {strides = array<i32>} : memref<1x1x128xf32, #tpu.memory_space<vmem>>, vector<1x1x128xf32>,
    return
  }
  func.func @transform_0(%arg0: i32) -> (i32, i32, i32) {
    %c0_i32 = arith.constant 0 : i32
    %c0_i32_0 = arith.constant 0 : i32
    %c0_i32_1 = arith.constant 0 : i32
    return %arg0, %c0_i32, %c0_i32_0 : i32, i32, i32
  }
  func.func @transform_1(%arg0: i32) -> (i32, i32) {
    %c0_i32 = arith.constant 0 : i32
    %c0_i32_0 = arith.constant 0 : i32
    %c0_i32_1 = arith.constant 0 : i32
    return %c0_i32, %c0_i32_0 : i32, i32
  }
  func.func @transform_2(%arg0: i32) -> (i32, i32) {
    %c0_i32 = arith.constant 0 : i32
    %c0_i32_0 = arith.constant 0 : i32
    %c0_i32_1 = arith.constant 0 : i32
    return %c0_i32, %c0_i32_0 : i32, i32
  }
  func.func @transform_3(%arg0: i32) -> (i32, i32) {
    %c0_i32 = arith.constant 0 : i32
    %c0_i32_0 = arith.constant 0 : i32
    %c0_i32_1 = arith.constant 0 : i32
    return %c0_i32, %c0_i32_0 : i32, i32
  }
  func.func @transform_4(%arg0: i32) -> (i32, i32) {
    %c0_i32 = arith.constant 0 : i32
    %c0_i32_0 = arith.constant 0 : i32
    %c0_i32_1 = arith.constant 0 : i32
    return %c0_i32, %c0_i32_0 : i32, i32
  }
  func.func @transform_5(%arg0: i32) -> (i32, i32) {
    %c0_i32 = arith.constant 0 : i32
    %c0_i32_0 = arith.constant 0 : i32
    %c0_i32_1 = arith.constant 0 : i32
    return %c0_i32, %c0_i32_0 : i32, i32
  }
  func.func @transform_6(%arg0: i32) -> (i32, i32) {
    %c0_i32 = arith.constant 0 : i32
    %c0_i32_0 = arith.constant 0 : i32
    %c0_i32_1 = arith.constant 0 : i32
    return %c0_i32, %c0_i32_0 : i32, i32
  }
  func.func @transform_7(%arg0: i32) -> (i32, i32) {
    %c0_i32 = arith.constant 0 : i32
    %c0_i32_0 = arith.constant 0 : i32
    %c0_i32_1 = arith.constant 0 : i32
    return %c0_i32, %c0_i32_0 : i32, i32
  }
  func.func @transform_8(%arg0: i32) -> (i32, i32) {
    %c0_i32 = arith.constant 0 : i32
    %c0_i32_0 = arith.constant 0 : i32
    %c0_i32_1 = arith.constant 0 : i32
    return %c0_i32, %c0_i32_0 : i32, i32
  }
  func.func @transform_9(%arg0: i32) -> i32 {
    %c0_i32 = arith.constant 0 : i32
    %c0_i32_0 = arith.constant 0 : i32
    return %c0_i32 : i32
  }
  func.func @transform_10(%arg0: i32) -> (i32, i32, i32) {
    %c0_i32 = arith.constant 0 : i32
    %c0_i32_0 = arith.constant 0 : i32
    %c0_i32_1 = arith.constant 0 : i32
    return %arg0, %c0_i32, %c0_i32_0 : i32, i32, i32
  }
}

module attributes {stable_mosaic.version = 11 : i64} {
  func.func @_head_kernel(%arg0: memref<2x128xf32, #tpu.memory_space<vmem>>, %arg1: memref<2x128xf32, #tpu.memory_space<vmem>>, %arg2: memref<2x128xf32, #tpu.memory_space<vmem>>, %arg3: memref<384x128xf32, #tpu.memory_space<vmem>>, %arg4: memref<1x128xf32, #tpu.memory_space<vmem>>, %arg5: memref<128x64xf32, #tpu.memory_space<vmem>>, %arg6: memref<1x64xf32, #tpu.memory_space<vmem>>, %arg7: memref<64x1xf32, #tpu.memory_space<vmem>>, %arg8: memref<1x1xf32, #tpu.memory_space<vmem>>, %arg9: memref<3xf32, #tpu.memory_space<smem>>, %arg10: memref<2x1xf32, #tpu.memory_space<vmem>>) attributes {dimension_semantics = [], scalar_prefetch = 0 : i64, scratch_operands = 0 : i64, tpu.core_type = #tpu.core_type<tc>} {
    %c0 = arith.constant 0 : index
    %c0_0 = arith.constant 0 : index
    %0 = vector.load %arg0[%c0, %c0_0] : memref<2x128xf32, #tpu.memory_space<vmem>>, vector<2x128xf32>
    %c0_1 = arith.constant 0 : index
    %c0_2 = arith.constant 0 : index
    %1 = vector.load %arg3[%c0_1, %c0_2] : memref<384x128xf32, #tpu.memory_space<vmem>>, vector<128x128xf32>
    %cst = arith.constant dense<0.000000e+00> : vector<2x128xf32>
    %2 = tpu.matmul %0, %1, %cst {dimension_numbers = #tpu.dot_dimension_numbers<[1], [0], [0], [1], [0, 0, 1, 1], [], []>} : vector<2x128xf32>, vector<128x128xf32>, vector<2x128xf32> -> vector<2x128xf32>
    %c0_3 = arith.constant 0 : index
    %c0_4 = arith.constant 0 : index
    %3 = vector.load %arg1[%c0_3, %c0_4] : memref<2x128xf32, #tpu.memory_space<vmem>>, vector<2x128xf32>
    %c128 = arith.constant 128 : index
    %c0_5 = arith.constant 0 : index
    %4 = vector.load %arg3[%c128, %c0_5] : memref<384x128xf32, #tpu.memory_space<vmem>>, vector<128x128xf32>
    %cst_6 = arith.constant dense<0.000000e+00> : vector<2x128xf32>
    %5 = tpu.matmul %3, %4, %cst_6 {dimension_numbers = #tpu.dot_dimension_numbers<[1], [0], [0], [1], [0, 0, 1, 1], [], []>} : vector<2x128xf32>, vector<128x128xf32>, vector<2x128xf32> -> vector<2x128xf32>
    %6 = arith.addf %2, %5 : vector<2x128xf32>
    %c0_7 = arith.constant 0 : index
    %c0_8 = arith.constant 0 : index
    %7 = vector.load %arg2[%c0_7, %c0_8] : memref<2x128xf32, #tpu.memory_space<vmem>>, vector<2x128xf32>
    %c256 = arith.constant 256 : index
    %c0_9 = arith.constant 0 : index
    %8 = vector.load %arg3[%c256, %c0_9] : memref<384x128xf32, #tpu.memory_space<vmem>>, vector<128x128xf32>
    %cst_10 = arith.constant dense<0.000000e+00> : vector<2x128xf32>
    %9 = tpu.matmul %7, %8, %cst_10 {dimension_numbers = #tpu.dot_dimension_numbers<[1], [0], [0], [1], [0, 0, 1, 1], [], []>} : vector<2x128xf32>, vector<128x128xf32>, vector<2x128xf32> -> vector<2x128xf32>
    %10 = arith.addf %6, %9 : vector<2x128xf32>
    %c0_11 = arith.constant 0 : index
    %c0_12 = arith.constant 0 : index
    %11 = vector.load %arg4[%c0_11, %c0_12] : memref<1x128xf32, #tpu.memory_space<vmem>>, vector<1x128xf32>
    %12 = vector.broadcast %11 : vector<1x128xf32> to vector<2x128xf32>
    %13 = arith.addf %10, %12 : vector<2x128xf32>
    %cst_13 = arith.constant 0.000000e+00 : f32
    %14 = vector.broadcast %cst_13 : f32 to vector<2x128xf32>
    %15 = arith.cmpf oge, %13, %14 : vector<2x128xf32>
    %c0_14 = arith.constant 0 : index
    %16 = memref.load %arg9[%c0_14] : memref<3xf32, #tpu.memory_space<smem>>
    %17 = vector.broadcast %16 : f32 to vector<2x128xf32>
    %18 = arith.mulf %13, %17 : vector<2x128xf32>
    %19 = arith.select %15, %13, %18 : vector<2x128xi1>, vector<2x128xf32>
    %c0_15 = arith.constant 0 : index
    %c0_16 = arith.constant 0 : index
    %20 = vector.load %arg5[%c0_15, %c0_16] : memref<128x64xf32, #tpu.memory_space<vmem>>, vector<128x64xf32>
    %cst_17 = arith.constant dense<0.000000e+00> : vector<2x64xf32>
    %21 = tpu.matmul %19, %20, %cst_17 {dimension_numbers = #tpu.dot_dimension_numbers<[1], [0], [0], [1], [0, 0, 1, 1], [], []>} : vector<2x128xf32>, vector<128x64xf32>, vector<2x64xf32> -> vector<2x64xf32>
    %c0_18 = arith.constant 0 : index
    %c0_19 = arith.constant 0 : index
    %22 = vector.load %arg6[%c0_18, %c0_19] : memref<1x64xf32, #tpu.memory_space<vmem>>, vector<1x64xf32>
    %23 = vector.broadcast %22 : vector<1x64xf32> to vector<2x64xf32>
    %24 = arith.addf %21, %23 : vector<2x64xf32>
    %cst_20 = arith.constant 0.000000e+00 : f32
    %25 = vector.broadcast %cst_20 : f32 to vector<2x64xf32>
    %26 = arith.cmpf oge, %24, %25 : vector<2x64xf32>
    %c1 = arith.constant 1 : index
    %27 = memref.load %arg9[%c1] : memref<3xf32, #tpu.memory_space<smem>>
    %28 = vector.broadcast %27 : f32 to vector<2x64xf32>
    %29 = arith.mulf %24, %28 : vector<2x64xf32>
    %30 = arith.select %26, %24, %29 : vector<2x64xi1>, vector<2x64xf32>
    %c0_21 = arith.constant 0 : index
    %c0_22 = arith.constant 0 : index
    %31 = vector.load %arg7[%c0_21, %c0_22] : memref<64x1xf32, #tpu.memory_space<vmem>>, vector<64x1xf32>
    %cst_23 = arith.constant dense<0.000000e+00> : vector<2x1xf32>
    %32 = tpu.matmul %30, %31, %cst_23 {dimension_numbers = #tpu.dot_dimension_numbers<[1], [0], [0], [1], [0, 0, 1, 1], [], []>} : vector<2x64xf32>, vector<64x1xf32>, vector<2x1xf32> -> vector<2x1xf32>
    %c0_24 = arith.constant 0 : index
    %c0_25 = arith.constant 0 : index
    %33 = vector.load %arg8[%c0_24, %c0_25] : memref<1x1xf32, #tpu.memory_space<vmem>>, vector<1x1xf32>
    %34 = vector.broadcast %33 : vector<1x1xf32> to vector<2x1xf32>
    %35 = arith.addf %32, %34 : vector<2x1xf32>
    %cst_26 = arith.constant 0.000000e+00 : f32
    %36 = vector.broadcast %cst_26 : f32 to vector<2x1xf32>
    %37 = arith.cmpf oge, %35, %36 : vector<2x1xf32>
    %c2 = arith.constant 2 : index
    %38 = memref.load %arg9[%c2] : memref<3xf32, #tpu.memory_space<smem>>
    %39 = vector.broadcast %38 : f32 to vector<2x1xf32>
    %40 = arith.mulf %35, %39 : vector<2x1xf32>
    %41 = arith.select %37, %35, %40 : vector<2x1xi1>, vector<2x1xf32>
    %c0_27 = arith.constant 0 : index
    %c0_28 = arith.constant 0 : index
    %42 = vector.load %arg10[%c0_27, %c0_28] : memref<2x1xf32, #tpu.memory_space<vmem>>, vector<2x1xf32>
    tpu.vector_store %arg10[%c0_27, %c0_28], %41 {strides = array<i32>} : memref<2x1xf32, #tpu.memory_space<vmem>>, vector<2x1xf32>,
    return
  }
}

module attributes {stable_mosaic.version = 11 : i64} {
  func.func @_residual_branch_kernel(%arg0: i32, %arg1: memref<1x16x32xf32, #tpu.memory_space<vmem>>, %arg2: memref<32x128xf32, #tpu.memory_space<vmem>>, %arg3: memref<1x128xf32, #tpu.memory_space<vmem>>, %arg4: memref<128x6xf32, #tpu.memory_space<vmem>>, %arg5: memref<1x6xf32, #tpu.memory_space<vmem>>, %arg6: memref<66x32xf32, #tpu.memory_space<vmem>>, %arg7: memref<1x32xf32, #tpu.memory_space<vmem>>, %arg8: memref<1x32xf32, #tpu.memory_space<vmem>>, %arg9: memref<32x12xf32, #tpu.memory_space<vmem>>, %arg10: memref<1x12xf32, #tpu.memory_space<vmem>>, %arg11: memref<132x64xf32, #tpu.memory_space<vmem>>, %arg12: memref<1x64xf32, #tpu.memory_space<vmem>>, %arg13: memref<1x64xf32, #tpu.memory_space<vmem>>, %arg14: memref<64x12xf32, #tpu.memory_space<vmem>>, %arg15: memref<1x12xf32, #tpu.memory_space<vmem>>, %arg16: memref<132x64xf32, #tpu.memory_space<vmem>>, %arg17: memref<1x64xf32, #tpu.memory_space<vmem>>, %arg18: memref<1x64xf32, #tpu.memory_space<vmem>>, %arg19: memref<64x25xf32, #tpu.memory_space<vmem>>, %arg20: memref<1x25xf32, #tpu.memory_space<vmem>>, %arg21: memref<275x128xf32, #tpu.memory_space<vmem>>, %arg22: memref<1x128xf32, #tpu.memory_space<vmem>>, %arg23: memref<1x128xf32, #tpu.memory_space<vmem>>, %arg24: memref<8xf32, #tpu.memory_space<smem>>, %arg25: memref<1x1x128xf32, #tpu.memory_space<vmem>>, %arg26: memref<48x25xf32, #tpu.memory_space<vmem>>) attributes {dimension_semantics = [#tpu.dimension_semantics<parallel>], iteration_bounds = array<i64: 2>, scalar_prefetch = 0 : i64, scratch_operands = 1 : i64, tpu.core_type = #tpu.core_type<tc>, window_params = [{transform_indices = @transform_0, window_bounds = array<i64: 1, 16, 32>}, {pipeline_mode = #tpu.pipeline_mode<synchronous>, transform_indices = @transform_1, window_bounds = array<i64: 32, 128>}, {pipeline_mode = #tpu.pipeline_mode<synchronous>, transform_indices = @transform_2, window_bounds = array<i64: 1, 128>}, {pipeline_mode = #tpu.pipeline_mode<synchronous>, transform_indices = @transform_3, window_bounds = array<i64: 128, 6>}, {pipeline_mode = #tpu.pipeline_mode<synchronous>, transform_indices = @transform_4, window_bounds = array<i64: 1, 6>}, {pipeline_mode = #tpu.pipeline_mode<synchronous>, transform_indices = @transform_5, window_bounds = array<i64: 66, 32>}, {pipeline_mode = #tpu.pipeline_mode<synchronous>, transform_indices = @transform_6, window_bounds = array<i64: 1, 32>}, {pipeline_mode = #tpu.pipeline_mode<synchronous>, transform_indices = @transform_7, window_bounds = array<i64: 1, 32>}, {pipeline_mode = #tpu.pipeline_mode<synchronous>, transform_indices = @transform_8, window_bounds = array<i64: 32, 12>}, {pipeline_mode = #tpu.pipeline_mode<synchronous>, transform_indices = @transform_9, window_bounds = array<i64: 1, 12>}, {pipeline_mode = #tpu.pipeline_mode<synchronous>, transform_indices = @transform_10, window_bounds = array<i64: 132, 64>}, {pipeline_mode = #tpu.pipeline_mode<synchronous>, transform_indices = @transform_11, window_bounds = array<i64: 1, 64>}, {pipeline_mode = #tpu.pipeline_mode<synchronous>, transform_indices = @transform_12, window_bounds = array<i64: 1, 64>}, {pipeline_mode = #tpu.pipeline_mode<synchronous>, transform_indices = @transform_13, window_bounds = array<i64: 64, 12>}, {pipeline_mode = #tpu.pipeline_mode<synchronous>, transform_indices = @transform_14, window_bounds = array<i64: 1, 12>}, {pipeline_mode = #tpu.pipeline_mode<synchronous>, transform_indices = @transform_15, window_bounds = array<i64: 132, 64>}, {pipeline_mode = #tpu.pipeline_mode<synchronous>, transform_indices = @transform_16, window_bounds = array<i64: 1, 64>}, {pipeline_mode = #tpu.pipeline_mode<synchronous>, transform_indices = @transform_17, window_bounds = array<i64: 1, 64>}, {pipeline_mode = #tpu.pipeline_mode<synchronous>, transform_indices = @transform_18, window_bounds = array<i64: 64, 25>}, {pipeline_mode = #tpu.pipeline_mode<synchronous>, transform_indices = @transform_19, window_bounds = array<i64: 1, 25>}, {pipeline_mode = #tpu.pipeline_mode<synchronous>, transform_indices = @transform_20, window_bounds = array<i64: 275, 128>}, {pipeline_mode = #tpu.pipeline_mode<synchronous>, transform_indices = @transform_21, window_bounds = array<i64: 1, 128>}, {pipeline_mode = #tpu.pipeline_mode<synchronous>, transform_indices = @transform_22, window_bounds = array<i64: 1, 128>}, {transform_indices = @transform_23, window_bounds = array<i64: 8>}, {transform_indices = @transform_24, window_bounds = array<i64: 1, 1, 128>}]} {
    %c0 = arith.constant 0 : index
    %c0_0 = arith.constant 0 : index
    %c0_1 = arith.constant 0 : index
    %0 = vector.load %arg1[%c0, %c0_0, %c0_1] : memref<1x16x32xf32, #tpu.memory_space<vmem>>, vector<1x16x32xf32>
    %1 = vector.shape_cast %0 : vector<1x16x32xf32> to vector<16x32xf32>
    %c0_2 = arith.constant 0 : index
    %c0_3 = arith.constant 0 : index
    %2 = vector.load %arg2[%c0_2, %c0_3] : memref<32x128xf32, #tpu.memory_space<vmem>>, vector<32x128xf32>
    %cst = arith.constant dense<0.000000e+00> : vector<16x128xf32>
    %3 = tpu.matmul %1, %2, %cst {dimension_numbers = #tpu.dot_dimension_numbers<[1], [0], [0], [1], [0, 0, 1, 1], [], []>} : vector<16x32xf32>, vector<32x128xf32>, vector<16x128xf32> -> vector<16x128xf32>
    %c0_4 = arith.constant 0 : index
    %c0_5 = arith.constant 0 : index
    %4 = vector.load %arg3[%c0_4, %c0_5] : memref<1x128xf32, #tpu.memory_space<vmem>>, vector<1x128xf32>
    %5 = vector.broadcast %4 : vector<1x128xf32> to vector<16x128xf32>
    %6 = arith.addf %3, %5 : vector<16x128xf32>
    %cst_6 = arith.constant 0.000000e+00 : f32
    %7 = vector.broadcast %cst_6 : f32 to vector<48x25xf32>
    %c0_7 = arith.constant 0 : index
    %c0_8 = arith.constant 0 : index
    %8 = vector.load %arg26[%c0_7, %c0_8] : memref<48x25xf32, #tpu.memory_space<vmem>>, vector<48x25xf32>
    tpu.vector_store %arg26[%c0_7, %c0_8], %7 {strides = array<i32>} : memref<48x25xf32, #tpu.memory_space<vmem>>, vector<48x25xf32>,
    %c0_9 = arith.constant 0 : index
    %9 = memref.load %arg24[%c0_9] : memref<8xf32, #tpu.memory_space<smem>>
    %c1 = arith.constant 1 : index
    %10 = memref.load %arg24[%c1] : memref<8xf32, #tpu.memory_space<smem>>
    %c0_10 = arith.constant 0 : index
    %c0_11 = arith.constant 0 : index
    %11 = vector.load %arg4[%c0_10, %c0_11] : memref<128x6xf32, #tpu.memory_space<vmem>>, vector<128x6xf32>
    %cst_12 = arith.constant dense<0.000000e+00> : vector<16x6xf32>
    %12 = tpu.matmul %6, %11, %cst_12 {dimension_numbers = #tpu.dot_dimension_numbers<[1], [0], [0], [1], [0, 0, 1, 1], [], []>} : vector<16x128xf32>, vector<128x6xf32>, vector<16x6xf32> -> vector<16x6xf32>
    %c0_13 = arith.constant 0 : index
    %c0_14 = arith.constant 0 : index
    %13 = vector.load %arg5[%c0_13, %c0_14] : memref<1x6xf32, #tpu.memory_space<vmem>>, vector<1x6xf32>
    %14 = vector.broadcast %13 : vector<1x6xf32> to vector<16x6xf32>
    %15 = arith.addf %12, %14 : vector<16x6xf32>
    %cst_15 = arith.constant 0.000000e+00 : f32
    %16 = vector.broadcast %cst_15 : f32 to vector<16x6xf32>
    %17 = arith.cmpf oge, %15, %16 : vector<16x6xf32>
    %18 = vector.broadcast %9 : f32 to vector<16x6xf32>
    %19 = arith.mulf %15, %18 : vector<16x6xf32>
    %20 = arith.select %17, %15, %19 : vector<16x6xi1>, vector<16x6xf32>
    %c16 = arith.constant 16 : index
    %c0_16 = arith.constant 0 : index
    %21 = vector.load %arg26[%c16, %c0_16] : memref<48x25xf32, #tpu.memory_space<vmem>>, vector<16x6xf32>
    tpu.vector_store %arg26[%c16, %c0_16], %20 {strides = array<i32>} : memref<48x25xf32, #tpu.memory_space<vmem>>, vector<16x6xf32>,
    %cst_17 = arith.constant 0.000000e+00 : f32
    %22 = vector.broadcast %cst_17 : f32 to vector<16x32xf32>
    %c0_18 = arith.constant 0 : index
    %c0_19 = arith.constant 0 : index
    %23 = vector.load %arg26[%c0_18, %c0_19] : memref<48x25xf32, #tpu.memory_space<vmem>>, vector<16x6xf32>
    %c0_20 = arith.constant 0 : index
    %c0_21 = arith.constant 0 : index
    %24 = vector.load %arg6[%c0_20, %c0_21] : memref<66x32xf32, #tpu.memory_space<vmem>>, vector<6x32xf32>
    %cst_22 = arith.constant dense<0.000000e+00> : vector<16x32xf32>
    %25 = tpu.matmul %23, %24, %cst_22 {dimension_numbers = #tpu.dot_dimension_numbers<[1], [0], [0], [1], [0, 0, 1, 1], [], []>} : vector<16x6xf32>, vector<6x32xf32>, vector<16x32xf32> -> vector<16x32xf32>
    %26 = arith.addf %22, %25 : vector<16x32xf32>
    %c8 = arith.constant 8 : index
    %c0_23 = arith.constant 0 : index
    %27 = vector.load %arg26[%c8, %c0_23] : memref<48x25xf32, #tpu.memory_space<vmem>>, vector<16x6xf32>
    %c6 = arith.constant 6 : index
    %c0_24 = arith.constant 0 : index
    %28 = vector.load %arg6[%c6, %c0_24] : memref<66x32xf32, #tpu.memory_space<vmem>>, vector<6x32xf32>
    %cst_25 = arith.constant dense<0.000000e+00> : vector<16x32xf32>
    %29 = tpu.matmul %27, %28, %cst_25 {dimension_numbers = #tpu.dot_dimension_numbers<[1], [0], [0], [1], [0, 0, 1, 1], [], []>} : vector<16x6xf32>, vector<6x32xf32>, vector<16x32xf32> -> vector<16x32xf32>
    %30 = arith.addf %26, %29 : vector<16x32xf32>
    %c12 = arith.constant 12 : index
    %c0_26 = arith.constant 0 : index
    %31 = vector.load %arg26[%c12, %c0_26] : memref<48x25xf32, #tpu.memory_space<vmem>>, vector<16x6xf32>
    %c12_27 = arith.constant 12 : index
    %c0_28 = arith.constant 0 : index
    %32 = vector.load %arg6[%c12_27, %c0_28] : memref<66x32xf32, #tpu.memory_space<vmem>>, vector<6x32xf32>
    %cst_29 = arith.constant dense<0.000000e+00> : vector<16x32xf32>
    %33 = tpu.matmul %31, %32, %cst_29 {dimension_numbers = #tpu.dot_dimension_numbers<[1], [0], [0], [1], [0, 0, 1, 1], [], []>} : vector<16x6xf32>, vector<6x32xf32>, vector<16x32xf32> -> vector<16x32xf32>
    %34 = arith.addf %30, %33 : vector<16x32xf32>
    %c14 = arith.constant 14 : index
    %c0_30 = arith.constant 0 : index
    %35 = vector.load %arg26[%c14, %c0_30] : memref<48x25xf32, #tpu.memory_space<vmem>>, vector<16x6xf32>
    %c18 = arith.constant 18 : index
    %c0_31 = arith.constant 0 : index
    %36 = vector.load %arg6[%c18, %c0_31] : memref<66x32xf32, #tpu.memory_space<vmem>>, vector<6x32xf32>
    %cst_32 = arith.constant dense<0.000000e+00> : vector<16x32xf32>
    %37 = tpu.matmul %35, %36, %cst_32 {dimension_numbers = #tpu.dot_dimension_numbers<[1], [0], [0], [1], [0, 0, 1, 1], [], []>} : vector<16x6xf32>, vector<6x32xf32>, vector<16x32xf32> -> vector<16x32xf32>
    %38 = arith.addf %34, %37 : vector<16x32xf32>
    %c15 = arith.constant 15 : index
    %c0_33 = arith.constant 0 : index
    %39 = vector.load %arg26[%c15, %c0_33] : memref<48x25xf32, #tpu.memory_space<vmem>>, vector<16x6xf32>
    %c24 = arith.constant 24 : index
    %c0_34 = arith.constant 0 : index
    %40 = vector.load %arg6[%c24, %c0_34] : memref<66x32xf32, #tpu.memory_space<vmem>>, vector<6x32xf32>
    %cst_35 = arith.constant dense<0.000000e+00> : vector<16x32xf32>
    %41 = tpu.matmul %39, %40, %cst_35 {dimension_numbers = #tpu.dot_dimension_numbers<[1], [0], [0], [1], [0, 0, 1, 1], [], []>} : vector<16x6xf32>, vector<6x32xf32>, vector<16x32xf32> -> vector<16x32xf32>
    %42 = arith.addf %38, %41 : vector<16x32xf32>
    %c16_36 = arith.constant 16 : index
    %c0_37 = arith.constant 0 : index
    %43 = vector.load %arg26[%c16_36, %c0_37] : memref<48x25xf32, #tpu.memory_space<vmem>>, vector<16x6xf32>
    %c30 = arith.constant 30 : index
    %c0_38 = arith.constant 0 : index
    %44 = vector.load %arg6[%c30, %c0_38] : memref<66x32xf32, #tpu.memory_space<vmem>>, vector<6x32xf32>
    %cst_39 = arith.constant dense<0.000000e+00> : vector<16x32xf32>
    %45 = tpu.matmul %43, %44, %cst_39 {dimension_numbers = #tpu.dot_dimension_numbers<[1], [0], [0], [1], [0, 0, 1, 1], [], []>} : vector<16x6xf32>, vector<6x32xf32>, vector<16x32xf32> -> vector<16x32xf32>
    %46 = arith.addf %42, %45 : vector<16x32xf32>
    %c17 = arith.constant 17 : index
    %c0_40 = arith.constant 0 : index
    %47 = vector.load %arg26[%c17, %c0_40] : memref<48x25xf32, #tpu.memory_space<vmem>>, vector<16x6xf32>
    %c36 = arith.constant 36 : index
    %c0_41 = arith.constant 0 : index
    %48 = vector.load %arg6[%c36, %c0_41] : memref<66x32xf32, #tpu.memory_space<vmem>>, vector<6x32xf32>
    %cst_42 = arith.constant dense<0.000000e+00> : vector<16x32xf32>
    %49 = tpu.matmul %47, %48, %cst_42 {dimension_numbers = #tpu.dot_dimension_numbers<[1], [0], [0], [1], [0, 0, 1, 1], [], []>} : vector<16x6xf32>, vector<6x32xf32>, vector<16x32xf32> -> vector<16x32xf32>
    %50 = arith.addf %46, %49 : vector<16x32xf32>
    %c18_43 = arith.constant 18 : index
    %c0_44 = arith.constant 0 : index
    %51 = vector.load %arg26[%c18_43, %c0_44] : memref<48x25xf32, #tpu.memory_space<vmem>>, vector<16x6xf32>
    %c42 = arith.constant 42 : index
    %c0_45 = arith.constant 0 : index
    %52 = vector.load %arg6[%c42, %c0_45] : memref<66x32xf32, #tpu.memory_space<vmem>>, vector<6x32xf32>
    %cst_46 = arith.constant dense<0.000000e+00> : vector<16x32xf32>
    %53 = tpu.matmul %51, %52, %cst_46 {dimension_numbers = #tpu.dot_dimension_numbers<[1], [0], [0], [1], [0, 0, 1, 1], [], []>} : vector<16x6xf32>, vector<6x32xf32>, vector<16x32xf32> -> vector<16x32xf32>
    %54 = arith.addf %50, %53 : vector<16x32xf32>
    %c20 = arith.constant 20 : index
    %c0_47 = arith.constant 0 : index
    %55 = vector.load %arg26[%c20, %c0_47] : memref<48x25xf32, #tpu.memory_space<vmem>>, vector<16x6xf32>
    %c48 = arith.constant 48 : index
    %c0_48 = arith.constant 0 : index
    %56 = vector.load %arg6[%c48, %c0_48] : memref<66x32xf32, #tpu.memory_space<vmem>>, vector<6x32xf32>
    %cst_49 = arith.constant dense<0.000000e+00> : vector<16x32xf32>
    %57 = tpu.matmul %55, %56, %cst_49 {dimension_numbers = #tpu.dot_dimension_numbers<[1], [0], [0], [1], [0, 0, 1, 1], [], []>} : vector<16x6xf32>, vector<6x32xf32>, vector<16x32xf32> -> vector<16x32xf32>
    %58 = arith.addf %54, %57 : vector<16x32xf32>
    %c24_50 = arith.constant 24 : index
    %c0_51 = arith.constant 0 : index
    %59 = vector.load %arg26[%c24_50, %c0_51] : memref<48x25xf32, #tpu.memory_space<vmem>>, vector<16x6xf32>
    %c54 = arith.constant 54 : index
    %c0_52 = arith.constant 0 : index
    %60 = vector.load %arg6[%c54, %c0_52] : memref<66x32xf32, #tpu.memory_space<vmem>>, vector<6x32xf32>
    %cst_53 = arith.constant dense<0.000000e+00> : vector<16x32xf32>
    %61 = tpu.matmul %59, %60, %cst_53 {dimension_numbers = #tpu.dot_dimension_numbers<[1], [0], [0], [1], [0, 0, 1, 1], [], []>} : vector<16x6xf32>, vector<6x32xf32>, vector<16x32xf32> -> vector<16x32xf32>
    %62 = arith.addf %58, %61 : vector<16x32xf32>
    %c32 = arith.constant 32 : index
    %c0_54 = arith.constant 0 : index
    %63 = vector.load %arg26[%c32, %c0_54] : memref<48x25xf32, #tpu.memory_space<vmem>>, vector<16x6xf32>
    %c60 = arith.constant 60 : index
    %c0_55 = arith.constant 0 : index
    %64 = vector.load %arg6[%c60, %c0_55] : memref<66x32xf32, #tpu.memory_space<vmem>>, vector<6x32xf32>
    %cst_56 = arith.constant dense<0.000000e+00> : vector<16x32xf32>
    %65 = tpu.matmul %63, %64, %cst_56 {dimension_numbers = #tpu.dot_dimension_numbers<[1], [0], [0], [1], [0, 0, 1, 1], [], []>} : vector<16x6xf32>, vector<6x32xf32>, vector<16x32xf32> -> vector<16x32xf32>
    %66 = arith.addf %62, %65 : vector<16x32xf32>
    %c0_57 = arith.constant 0 : index
    %c0_58 = arith.constant 0 : index
    %67 = vector.load %arg7[%c0_57, %c0_58] : memref<1x32xf32, #tpu.memory_space<vmem>>, vector<1x32xf32>
    %68 = vector.broadcast %67 : vector<1x32xf32> to vector<16x32xf32>
    %69 = arith.mulf %66, %68 : vector<16x32xf32>
    %c0_59 = arith.constant 0 : index
    %c0_60 = arith.constant 0 : index
    %70 = vector.load %arg8[%c0_59, %c0_60] : memref<1x32xf32, #tpu.memory_space<vmem>>, vector<1x32xf32>
    %71 = vector.broadcast %70 : vector<1x32xf32> to vector<16x32xf32>
    %72 = arith.addf %69, %71 : vector<16x32xf32>
    %cst_61 = arith.constant 0.000000e+00 : f32
    %73 = vector.broadcast %cst_61 : f32 to vector<16x32xf32>
    %74 = arith.cmpf oge, %72, %73 : vector<16x32xf32>
    %75 = vector.broadcast %10 : f32 to vector<16x32xf32>
    %76 = arith.mulf %72, %75 : vector<16x32xf32>
    %77 = arith.select %74, %72, %76 : vector<16x32xi1>, vector<16x32xf32>
    %c2 = arith.constant 2 : index
    %78 = memref.load %arg24[%c2] : memref<8xf32, #tpu.memory_space<smem>>
    %c3 = arith.constant 3 : index
    %79 = memref.load %arg24[%c3] : memref<8xf32, #tpu.memory_space<smem>>
    %c0_62 = arith.constant 0 : index
    %c0_63 = arith.constant 0 : index
    %80 = vector.load %arg9[%c0_62, %c0_63] : memref<32x12xf32, #tpu.memory_space<vmem>>, vector<32x12xf32>
    %cst_64 = arith.constant dense<0.000000e+00> : vector<16x12xf32>
    %81 = tpu.matmul %77, %80, %cst_64 {dimension_numbers = #tpu.dot_dimension_numbers<[1], [0], [0], [1], [0, 0, 1, 1], [], []>} : vector<16x32xf32>, vector<32x12xf32>, vector<16x12xf32> -> vector<16x12xf32>
    %c0_65 = arith.constant 0 : index
    %c0_66 = arith.constant 0 : index
    %82 = vector.load %arg10[%c0_65, %c0_66] : memref<1x12xf32, #tpu.memory_space<vmem>>, vector<1x12xf32>
    %83 = vector.broadcast %82 : vector<1x12xf32> to vector<16x12xf32>
    %84 = arith.addf %81, %83 : vector<16x12xf32>
    %cst_67 = arith.constant 0.000000e+00 : f32
    %85 = vector.broadcast %cst_67 : f32 to vector<16x12xf32>
    %86 = arith.cmpf oge, %84, %85 : vector<16x12xf32>
    %87 = vector.broadcast %78 : f32 to vector<16x12xf32>
    %88 = arith.mulf %84, %87 : vector<16x12xf32>
    %89 = arith.select %86, %84, %88 : vector<16x12xi1>, vector<16x12xf32>
    %c16_68 = arith.constant 16 : index
    %c0_69 = arith.constant 0 : index
    %90 = vector.load %arg26[%c16_68, %c0_69] : memref<48x25xf32, #tpu.memory_space<vmem>>, vector<16x12xf32>
    tpu.vector_store %arg26[%c16_68, %c0_69], %89 {strides = array<i32>} : memref<48x25xf32, #tpu.memory_space<vmem>>, vector<16x12xf32>,
    %cst_70 = arith.constant 0.000000e+00 : f32
    %91 = vector.broadcast %cst_70 : f32 to vector<16x64xf32>
    %c0_71 = arith.constant 0 : index
    %c0_72 = arith.constant 0 : index
    %92 = vector.load %arg26[%c0_71, %c0_72] : memref<48x25xf32, #tpu.memory_space<vmem>>, vector<16x12xf32>
    %c0_73 = arith.constant 0 : index
    %c0_74 = arith.constant 0 : index
    %93 = vector.load %arg11[%c0_73, %c0_74] : memref<132x64xf32, #tpu.memory_space<vmem>>, vector<12x64xf32>
    %cst_75 = arith.constant dense<0.000000e+00> : vector<16x64xf32>
    %94 = tpu.matmul %92, %93, %cst_75 {dimension_numbers = #tpu.dot_dimension_numbers<[1], [0], [0], [1], [0, 0, 1, 1], [], []>} : vector<16x12xf32>, vector<12x64xf32>, vector<16x64xf32> -> vector<16x64xf32>
    %95 = arith.addf %91, %94 : vector<16x64xf32>
    %c8_76 = arith.constant 8 : index
    %c0_77 = arith.constant 0 : index
    %96 = vector.load %arg26[%c8_76, %c0_77] : memref<48x25xf32, #tpu.memory_space<vmem>>, vector<16x12xf32>
    %c12_78 = arith.constant 12 : index
    %c0_79 = arith.constant 0 : index
    %97 = vector.load %arg11[%c12_78, %c0_79] : memref<132x64xf32, #tpu.memory_space<vmem>>, vector<12x64xf32>
    %cst_80 = arith.constant dense<0.000000e+00> : vector<16x64xf32>
    %98 = tpu.matmul %96, %97, %cst_80 {dimension_numbers = #tpu.dot_dimension_numbers<[1], [0], [0], [1], [0, 0, 1, 1], [], []>} : vector<16x12xf32>, vector<12x64xf32>, vector<16x64xf32> -> vector<16x64xf32>
    %99 = arith.addf %95, %98 : vector<16x64xf32>
    %c12_81 = arith.constant 12 : index
    %c0_82 = arith.constant 0 : index
    %100 = vector.load %arg26[%c12_81, %c0_82] : memref<48x25xf32, #tpu.memory_space<vmem>>, vector<16x12xf32>
    %c24_83 = arith.constant 24 : index
    %c0_84 = arith.constant 0 : index
    %101 = vector.load %arg11[%c24_83, %c0_84] : memref<132x64xf32, #tpu.memory_space<vmem>>, vector<12x64xf32>
    %cst_85 = arith.constant dense<0.000000e+00> : vector<16x64xf32>
    %102 = tpu.matmul %100, %101, %cst_85 {dimension_numbers = #tpu.dot_dimension_numbers<[1], [0], [0], [1], [0, 0, 1, 1], [], []>} : vector<16x12xf32>, vector<12x64xf32>, vector<16x64xf32> -> vector<16x64xf32>
    %103 = arith.addf %99, %102 : vector<16x64xf32>
    %c14_86 = arith.constant 14 : index
    %c0_87 = arith.constant 0 : index
    %104 = vector.load %arg26[%c14_86, %c0_87] : memref<48x25xf32, #tpu.memory_space<vmem>>, vector<16x12xf32>
    %c36_88 = arith.constant 36 : index
    %c0_89 = arith.constant 0 : index
    %105 = vector.load %arg11[%c36_88, %c0_89] : memref<132x64xf32, #tpu.memory_space<vmem>>, vector<12x64xf32>
    %cst_90 = arith.constant dense<0.000000e+00> : vector<16x64xf32>
    %106 = tpu.matmul %104, %105, %cst_90 {dimension_numbers = #tpu.dot_dimension_numbers<[1], [0], [0], [1], [0, 0, 1, 1], [], []>} : vector<16x12xf32>, vector<12x64xf32>, vector<16x64xf32> -> vector<16x64xf32>
    %107 = arith.addf %103, %106 : vector<16x64xf32>
    %c15_91 = arith.constant 15 : index
    %c0_92 = arith.constant 0 : index
    %108 = vector.load %arg26[%c15_91, %c0_92] : memref<48x25xf32, #tpu.memory_space<vmem>>, vector<16x12xf32>
    %c48_93 = arith.constant 48 : index
    %c0_94 = arith.constant 0 : index
    %109 = vector.load %arg11[%c48_93, %c0_94] : memref<132x64xf32, #tpu.memory_space<vmem>>, vector<12x64xf32>
    %cst_95 = arith.constant dense<0.000000e+00> : vector<16x64xf32>
    %110 = tpu.matmul %108, %109, %cst_95 {dimension_numbers = #tpu.dot_dimension_numbers<[1], [0], [0], [1], [0, 0, 1, 1], [], []>} : vector<16x12xf32>, vector<12x64xf32>, vector<16x64xf32> -> vector<16x64xf32>
    %111 = arith.addf %107, %110 : vector<16x64xf32>
    %c16_96 = arith.constant 16 : index
    %c0_97 = arith.constant 0 : index
    %112 = vector.load %arg26[%c16_96, %c0_97] : memref<48x25xf32, #tpu.memory_space<vmem>>, vector<16x12xf32>
    %c60_98 = arith.constant 60 : index
    %c0_99 = arith.constant 0 : index
    %113 = vector.load %arg11[%c60_98, %c0_99] : memref<132x64xf32, #tpu.memory_space<vmem>>, vector<12x64xf32>
    %cst_100 = arith.constant dense<0.000000e+00> : vector<16x64xf32>
    %114 = tpu.matmul %112, %113, %cst_100 {dimension_numbers = #tpu.dot_dimension_numbers<[1], [0], [0], [1], [0, 0, 1, 1], [], []>} : vector<16x12xf32>, vector<12x64xf32>, vector<16x64xf32> -> vector<16x64xf32>
    %115 = arith.addf %111, %114 : vector<16x64xf32>
    %c17_101 = arith.constant 17 : index
    %c0_102 = arith.constant 0 : index
    %116 = vector.load %arg26[%c17_101, %c0_102] : memref<48x25xf32, #tpu.memory_space<vmem>>, vector<16x12xf32>
    %c72 = arith.constant 72 : index
    %c0_103 = arith.constant 0 : index
    %117 = vector.load %arg11[%c72, %c0_103] : memref<132x64xf32, #tpu.memory_space<vmem>>, vector<12x64xf32>
    %cst_104 = arith.constant dense<0.000000e+00> : vector<16x64xf32>
    %118 = tpu.matmul %116, %117, %cst_104 {dimension_numbers = #tpu.dot_dimension_numbers<[1], [0], [0], [1], [0, 0, 1, 1], [], []>} : vector<16x12xf32>, vector<12x64xf32>, vector<16x64xf32> -> vector<16x64xf32>
    %119 = arith.addf %115, %118 : vector<16x64xf32>
    %c18_105 = arith.constant 18 : index
    %c0_106 = arith.constant 0 : index
    %120 = vector.load %arg26[%c18_105, %c0_106] : memref<48x25xf32, #tpu.memory_space<vmem>>, vector<16x12xf32>
    %c84 = arith.constant 84 : index
    %c0_107 = arith.constant 0 : index
    %121 = vector.load %arg11[%c84, %c0_107] : memref<132x64xf32, #tpu.memory_space<vmem>>, vector<12x64xf32>
    %cst_108 = arith.constant dense<0.000000e+00> : vector<16x64xf32>
    %122 = tpu.matmul %120, %121, %cst_108 {dimension_numbers = #tpu.dot_dimension_numbers<[1], [0], [0], [1], [0, 0, 1, 1], [], []>} : vector<16x12xf32>, vector<12x64xf32>, vector<16x64xf32> -> vector<16x64xf32>
    %123 = arith.addf %119, %122 : vector<16x64xf32>
    %c20_109 = arith.constant 20 : index
    %c0_110 = arith.constant 0 : index
    %124 = vector.load %arg26[%c20_109, %c0_110] : memref<48x25xf32, #tpu.memory_space<vmem>>, vector<16x12xf32>
    %c96 = arith.constant 96 : index
    %c0_111 = arith.constant 0 : index
    %125 = vector.load %arg11[%c96, %c0_111] : memref<132x64xf32, #tpu.memory_space<vmem>>, vector<12x64xf32>
    %cst_112 = arith.constant dense<0.000000e+00> : vector<16x64xf32>
    %126 = tpu.matmul %124, %125, %cst_112 {dimension_numbers = #tpu.dot_dimension_numbers<[1], [0], [0], [1], [0, 0, 1, 1], [], []>} : vector<16x12xf32>, vector<12x64xf32>, vector<16x64xf32> -> vector<16x64xf32>
    %127 = arith.addf %123, %126 : vector<16x64xf32>
    %c24_113 = arith.constant 24 : index
    %c0_114 = arith.constant 0 : index
    %128 = vector.load %arg26[%c24_113, %c0_114] : memref<48x25xf32, #tpu.memory_space<vmem>>, vector<16x12xf32>
    %c108 = arith.constant 108 : index
    %c0_115 = arith.constant 0 : index
    %129 = vector.load %arg11[%c108, %c0_115] : memref<132x64xf32, #tpu.memory_space<vmem>>, vector<12x64xf32>
    %cst_116 = arith.constant dense<0.000000e+00> : vector<16x64xf32>
    %130 = tpu.matmul %128, %129, %cst_116 {dimension_numbers = #tpu.dot_dimension_numbers<[1], [0], [0], [1], [0, 0, 1, 1], [], []>} : vector<16x12xf32>, vector<12x64xf32>, vector<16x64xf32> -> vector<16x64xf32>
    %131 = arith.addf %127, %130 : vector<16x64xf32>
    %c32_117 = arith.constant 32 : index
    %c0_118 = arith.constant 0 : index
    %132 = vector.load %arg26[%c32_117, %c0_118] : memref<48x25xf32, #tpu.memory_space<vmem>>, vector<16x12xf32>
    %c120 = arith.constant 120 : index
    %c0_119 = arith.constant 0 : index
    %133 = vector.load %arg11[%c120, %c0_119] : memref<132x64xf32, #tpu.memory_space<vmem>>, vector<12x64xf32>
    %cst_120 = arith.constant dense<0.000000e+00> : vector<16x64xf32>
    %134 = tpu.matmul %132, %133, %cst_120 {dimension_numbers = #tpu.dot_dimension_numbers<[1], [0], [0], [1], [0, 0, 1, 1], [], []>} : vector<16x12xf32>, vector<12x64xf32>, vector<16x64xf32> -> vector<16x64xf32>
    %135 = arith.addf %131, %134 : vector<16x64xf32>
    %c0_121 = arith.constant 0 : index
    %c0_122 = arith.constant 0 : index
    %136 = vector.load %arg12[%c0_121, %c0_122] : memref<1x64xf32, #tpu.memory_space<vmem>>, vector<1x64xf32>
    %137 = vector.broadcast %136 : vector<1x64xf32> to vector<16x64xf32>
    %138 = arith.mulf %135, %137 : vector<16x64xf32>
    %c0_123 = arith.constant 0 : index
    %c0_124 = arith.constant 0 : index
    %139 = vector.load %arg13[%c0_123, %c0_124] : memref<1x64xf32, #tpu.memory_space<vmem>>, vector<1x64xf32>
    %140 = vector.broadcast %139 : vector<1x64xf32> to vector<16x64xf32>
    %141 = arith.addf %138, %140 : vector<16x64xf32>
    %cst_125 = arith.constant 0.000000e+00 : f32
    %142 = vector.broadcast %cst_125 : f32 to vector<16x64xf32>
    %143 = arith.cmpf oge, %141, %142 : vector<16x64xf32>
    %144 = vector.broadcast %79 : f32 to vector<16x64xf32>
    %145 = arith.mulf %141, %144 : vector<16x64xf32>
    %146 = arith.select %143, %141, %145 : vector<16x64xi1>, vector<16x64xf32>
    %c4 = arith.constant 4 : index
    %147 = memref.load %arg24[%c4] : memref<8xf32, #tpu.memory_space<smem>>
    %c5 = arith.constant 5 : index
    %148 = memref.load %arg24[%c5] : memref<8xf32, #tpu.memory_space<smem>>
    %c0_126 = arith.constant 0 : index
    %c0_127 = arith.constant 0 : index
    %149 = vector.load %arg14[%c0_126, %c0_127] : memref<64x12xf32, #tpu.memory_space<vmem>>, vector<64x12xf32>
    %cst_128 = arith.constant dense<0.000000e+00> : vector<16x12xf32>
    %150 = tpu.matmul %146, %149, %cst_128 {dimension_numbers = #tpu.dot_dimension_numbers<[1], [0], [0], [1], [0, 0, 1, 1], [], []>} : vector<16x64xf32>, vector<64x12xf32>, vector<16x12xf32> -> vector<16x12xf32>
    %c0_129 = arith.constant 0 : index
    %c0_130 = arith.constant 0 : index
    %151 = vector.load %arg15[%c0_129, %c0_130] : memref<1x12xf32, #tpu.memory_space<vmem>>, vector<1x12xf32>
    %152 = vector.broadcast %151 : vector<1x12xf32> to vector<16x12xf32>
    %153 = arith.addf %150, %152 : vector<16x12xf32>
    %cst_131 = arith.constant 0.000000e+00 : f32
    %154 = vector.broadcast %cst_131 : f32 to vector<16x12xf32>
    %155 = arith.cmpf oge, %153, %154 : vector<16x12xf32>
    %156 = vector.broadcast %147 : f32 to vector<16x12xf32>
    %157 = arith.mulf %153, %156 : vector<16x12xf32>
    %158 = arith.select %155, %153, %157 : vector<16x12xi1>, vector<16x12xf32>
    %c16_132 = arith.constant 16 : index
    %c0_133 = arith.constant 0 : index
    %159 = vector.load %arg26[%c16_132, %c0_133] : memref<48x25xf32, #tpu.memory_space<vmem>>, vector<16x12xf32>
    tpu.vector_store %arg26[%c16_132, %c0_133], %158 {strides = array<i32>} : memref<48x25xf32, #tpu.memory_space<vmem>>, vector<16x12xf32>,
    %cst_134 = arith.constant 0.000000e+00 : f32
    %160 = vector.broadcast %cst_134 : f32 to vector<16x64xf32>
    %c0_135 = arith.constant 0 : index
    %c0_136 = arith.constant 0 : index
    %161 = vector.load %arg26[%c0_135, %c0_136] : memref<48x25xf32, #tpu.memory_space<vmem>>, vector<16x12xf32>
    %c0_137 = arith.constant 0 : index
    %c0_138 = arith.constant 0 : index
    %162 = vector.load %arg16[%c0_137, %c0_138] : memref<132x64xf32, #tpu.memory_space<vmem>>, vector<12x64xf32>
    %cst_139 = arith.constant dense<0.000000e+00> : vector<16x64xf32>
    %163 = tpu.matmul %161, %162, %cst_139 {dimension_numbers = #tpu.dot_dimension_numbers<[1], [0], [0], [1], [0, 0, 1, 1], [], []>} : vector<16x12xf32>, vector<12x64xf32>, vector<16x64xf32> -> vector<16x64xf32>
    %164 = arith.addf %160, %163 : vector<16x64xf32>
    %c8_140 = arith.constant 8 : index
    %c0_141 = arith.constant 0 : index
    %165 = vector.load %arg26[%c8_140, %c0_141] : memref<48x25xf32, #tpu.memory_space<vmem>>, vector<16x12xf32>
    %c12_142 = arith.constant 12 : index
    %c0_143 = arith.constant 0 : index
    %166 = vector.load %arg16[%c12_142, %c0_143] : memref<132x64xf32, #tpu.memory_space<vmem>>, vector<12x64xf32>
    %cst_144 = arith.constant dense<0.000000e+00> : vector<16x64xf32>
    %167 = tpu.matmul %165, %166, %cst_144 {dimension_numbers = #tpu.dot_dimension_numbers<[1], [0], [0], [1], [0, 0, 1, 1], [], []>} : vector<16x12xf32>, vector<12x64xf32>, vector<16x64xf32> -> vector<16x64xf32>
    %168 = arith.addf %164, %167 : vector<16x64xf32>
    %c12_145 = arith.constant 12 : index
    %c0_146 = arith.constant 0 : index
    %169 = vector.load %arg26[%c12_145, %c0_146] : memref<48x25xf32, #tpu.memory_space<vmem>>, vector<16x12xf32>
    %c24_147 = arith.constant 24 : index
    %c0_148 = arith.constant 0 : index
    %170 = vector.load %arg16[%c24_147, %c0_148] : memref<132x64xf32, #tpu.memory_space<vmem>>, vector<12x64xf32>
    %cst_149 = arith.constant dense<0.000000e+00> : vector<16x64xf32>
    %171 = tpu.matmul %169, %170, %cst_149 {dimension_numbers = #tpu.dot_dimension_numbers<[1], [0], [0], [1], [0, 0, 1, 1], [], []>} : vector<16x12xf32>, vector<12x64xf32>, vector<16x64xf32> -> vector<16x64xf32>
    %172 = arith.addf %168, %171 : vector<16x64xf32>
    %c14_150 = arith.constant 14 : index
    %c0_151 = arith.constant 0 : index
    %173 = vector.load %arg26[%c14_150, %c0_151] : memref<48x25xf32, #tpu.memory_space<vmem>>, vector<16x12xf32>
    %c36_152 = arith.constant 36 : index
    %c0_153 = arith.constant 0 : index
    %174 = vector.load %arg16[%c36_152, %c0_153] : memref<132x64xf32, #tpu.memory_space<vmem>>, vector<12x64xf32>
    %cst_154 = arith.constant dense<0.000000e+00> : vector<16x64xf32>
    %175 = tpu.matmul %173, %174, %cst_154 {dimension_numbers = #tpu.dot_dimension_numbers<[1], [0], [0], [1], [0, 0, 1, 1], [], []>} : vector<16x12xf32>, vector<12x64xf32>, vector<16x64xf32> -> vector<16x64xf32>
    %176 = arith.addf %172, %175 : vector<16x64xf32>
    %c15_155 = arith.constant 15 : index
    %c0_156 = arith.constant 0 : index
    %177 = vector.load %arg26[%c15_155, %c0_156] : memref<48x25xf32, #tpu.memory_space<vmem>>, vector<16x12xf32>
    %c48_157 = arith.constant 48 : index
    %c0_158 = arith.constant 0 : index
    %178 = vector.load %arg16[%c48_157, %c0_158] : memref<132x64xf32, #tpu.memory_space<vmem>>, vector<12x64xf32>
    %cst_159 = arith.constant dense<0.000000e+00> : vector<16x64xf32>
    %179 = tpu.matmul %177, %178, %cst_159 {dimension_numbers = #tpu.dot_dimension_numbers<[1], [0], [0], [1], [0, 0, 1, 1], [], []>} : vector<16x12xf32>, vector<12x64xf32>, vector<16x64xf32> -> vector<16x64xf32>
    %180 = arith.addf %176, %179 : vector<16x64xf32>
    %c16_160 = arith.constant 16 : index
    %c0_161 = arith.constant 0 : index
    %181 = vector.load %arg26[%c16_160, %c0_161] : memref<48x25xf32, #tpu.memory_space<vmem>>, vector<16x12xf32>
    %c60_162 = arith.constant 60 : index
    %c0_163 = arith.constant 0 : index
    %182 = vector.load %arg16[%c60_162, %c0_163] : memref<132x64xf32, #tpu.memory_space<vmem>>, vector<12x64xf32>
    %cst_164 = arith.constant dense<0.000000e+00> : vector<16x64xf32>
    %183 = tpu.matmul %181, %182, %cst_164 {dimension_numbers = #tpu.dot_dimension_numbers<[1], [0], [0], [1], [0, 0, 1, 1], [], []>} : vector<16x12xf32>, vector<12x64xf32>, vector<16x64xf32> -> vector<16x64xf32>
    %184 = arith.addf %180, %183 : vector<16x64xf32>
    %c17_165 = arith.constant 17 : index
    %c0_166 = arith.constant 0 : index
    %185 = vector.load %arg26[%c17_165, %c0_166] : memref<48x25xf32, #tpu.memory_space<vmem>>, vector<16x12xf32>
    %c72_167 = arith.constant 72 : index
    %c0_168 = arith.constant 0 : index
    %186 = vector.load %arg16[%c72_167, %c0_168] : memref<132x64xf32, #tpu.memory_space<vmem>>, vector<12x64xf32>
    %cst_169 = arith.constant dense<0.000000e+00> : vector<16x64xf32>
    %187 = tpu.matmul %185, %186, %cst_169 {dimension_numbers = #tpu.dot_dimension_numbers<[1], [0], [0], [1], [0, 0, 1, 1], [], []>} : vector<16x12xf32>, vector<12x64xf32>, vector<16x64xf32> -> vector<16x64xf32>
    %188 = arith.addf %184, %187 : vector<16x64xf32>
    %c18_170 = arith.constant 18 : index
    %c0_171 = arith.constant 0 : index
    %189 = vector.load %arg26[%c18_170, %c0_171] : memref<48x25xf32, #tpu.memory_space<vmem>>, vector<16x12xf32>
    %c84_172 = arith.constant 84 : index
    %c0_173 = arith.constant 0 : index
    %190 = vector.load %arg16[%c84_172, %c0_173] : memref<132x64xf32, #tpu.memory_space<vmem>>, vector<12x64xf32>
    %cst_174 = arith.constant dense<0.000000e+00> : vector<16x64xf32>
    %191 = tpu.matmul %189, %190, %cst_174 {dimension_numbers = #tpu.dot_dimension_numbers<[1], [0], [0], [1], [0, 0, 1, 1], [], []>} : vector<16x12xf32>, vector<12x64xf32>, vector<16x64xf32> -> vector<16x64xf32>
    %192 = arith.addf %188, %191 : vector<16x64xf32>
    %c20_175 = arith.constant 20 : index
    %c0_176 = arith.constant 0 : index
    %193 = vector.load %arg26[%c20_175, %c0_176] : memref<48x25xf32, #tpu.memory_space<vmem>>, vector<16x12xf32>
    %c96_177 = arith.constant 96 : index
    %c0_178 = arith.constant 0 : index
    %194 = vector.load %arg16[%c96_177, %c0_178] : memref<132x64xf32, #tpu.memory_space<vmem>>, vector<12x64xf32>
    %cst_179 = arith.constant dense<0.000000e+00> : vector<16x64xf32>
    %195 = tpu.matmul %193, %194, %cst_179 {dimension_numbers = #tpu.dot_dimension_numbers<[1], [0], [0], [1], [0, 0, 1, 1], [], []>} : vector<16x12xf32>, vector<12x64xf32>, vector<16x64xf32> -> vector<16x64xf32>
    %196 = arith.addf %192, %195 : vector<16x64xf32>
    %c24_180 = arith.constant 24 : index
    %c0_181 = arith.constant 0 : index
    %197 = vector.load %arg26[%c24_180, %c0_181] : memref<48x25xf32, #tpu.memory_space<vmem>>, vector<16x12xf32>
    %c108_182 = arith.constant 108 : index
    %c0_183 = arith.constant 0 : index
    %198 = vector.load %arg16[%c108_182, %c0_183] : memref<132x64xf32, #tpu.memory_space<vmem>>, vector<12x64xf32>
    %cst_184 = arith.constant dense<0.000000e+00> : vector<16x64xf32>
    %199 = tpu.matmul %197, %198, %cst_184 {dimension_numbers = #tpu.dot_dimension_numbers<[1], [0], [0], [1], [0, 0, 1, 1], [], []>} : vector<16x12xf32>, vector<12x64xf32>, vector<16x64xf32> -> vector<16x64xf32>
    %200 = arith.addf %196, %199 : vector<16x64xf32>
    %c32_185 = arith.constant 32 : index
    %c0_186 = arith.constant 0 : index
    %201 = vector.load %arg26[%c32_185, %c0_186] : memref<48x25xf32, #tpu.memory_space<vmem>>, vector<16x12xf32>
    %c120_187 = arith.constant 120 : index
    %c0_188 = arith.constant 0 : index
    %202 = vector.load %arg16[%c120_187, %c0_188] : memref<132x64xf32, #tpu.memory_space<vmem>>, vector<12x64xf32>
    %cst_189 = arith.constant dense<0.000000e+00> : vector<16x64xf32>
    %203 = tpu.matmul %201, %202, %cst_189 {dimension_numbers = #tpu.dot_dimension_numbers<[1], [0], [0], [1], [0, 0, 1, 1], [], []>} : vector<16x12xf32>, vector<12x64xf32>, vector<16x64xf32> -> vector<16x64xf32>
    %204 = arith.addf %200, %203 : vector<16x64xf32>
    %205 = arith.addf %204, %146 : vector<16x64xf32>
    %c0_190 = arith.constant 0 : index
    %c0_191 = arith.constant 0 : index
    %206 = vector.load %arg17[%c0_190, %c0_191] : memref<1x64xf32, #tpu.memory_space<vmem>>, vector<1x64xf32>
    %207 = vector.broadcast %206 : vector<1x64xf32> to vector<16x64xf32>
    %208 = arith.mulf %205, %207 : vector<16x64xf32>
    %c0_192 = arith.constant 0 : index
    %c0_193 = arith.constant 0 : index
    %209 = vector.load %arg18[%c0_192, %c0_193] : memref<1x64xf32, #tpu.memory_space<vmem>>, vector<1x64xf32>
    %210 = vector.broadcast %209 : vector<1x64xf32> to vector<16x64xf32>
    %211 = arith.addf %208, %210 : vector<16x64xf32>
    %cst_194 = arith.constant 0.000000e+00 : f32
    %212 = vector.broadcast %cst_194 : f32 to vector<16x64xf32>
    %213 = arith.cmpf oge, %211, %212 : vector<16x64xf32>
    %214 = vector.broadcast %148 : f32 to vector<16x64xf32>
    %215 = arith.mulf %211, %214 : vector<16x64xf32>
    %216 = arith.select %213, %211, %215 : vector<16x64xi1>, vector<16x64xf32>
    %c6_195 = arith.constant 6 : index
    %217 = memref.load %arg24[%c6_195] : memref<8xf32, #tpu.memory_space<smem>>
    %c7 = arith.constant 7 : index
    %218 = memref.load %arg24[%c7] : memref<8xf32, #tpu.memory_space<smem>>
    %c0_196 = arith.constant 0 : index
    %c0_197 = arith.constant 0 : index
    %219 = vector.load %arg19[%c0_196, %c0_197] : memref<64x25xf32, #tpu.memory_space<vmem>>, vector<64x25xf32>
    %cst_198 = arith.constant dense<0.000000e+00> : vector<16x25xf32>
    %220 = tpu.matmul %216, %219, %cst_198 {dimension_numbers = #tpu.dot_dimension_numbers<[1], [0], [0], [1], [0, 0, 1, 1], [], []>} : vector<16x64xf32>, vector<64x25xf32>, vector<16x25xf32> -> vector<16x25xf32>
    %c0_199 = arith.constant 0 : index
    %c0_200 = arith.constant 0 : index
    %221 = vector.load %arg20[%c0_199, %c0_200] : memref<1x25xf32, #tpu.memory_space<vmem>>, vector<1x25xf32>
    %222 = vector.broadcast %221 : vector<1x25xf32> to vector<16x25xf32>
    %223 = arith.addf %220, %222 : vector<16x25xf32>
    %cst_201 = arith.constant 0.000000e+00 : f32
    %224 = vector.broadcast %cst_201 : f32 to vector<16x25xf32>
    %225 = arith.cmpf oge, %223, %224 : vector<16x25xf32>
    %226 = vector.broadcast %217 : f32 to vector<16x25xf32>
    %227 = arith.mulf %223, %226 : vector<16x25xf32>
    %228 = arith.select %225, %223, %227 : vector<16x25xi1>, vector<16x25xf32>
    %c16_202 = arith.constant 16 : index
    %c0_203 = arith.constant 0 : index
    %229 = vector.load %arg26[%c16_202, %c0_203] : memref<48x25xf32, #tpu.memory_space<vmem>>, vector<16x25xf32>
    tpu.vector_store %arg26[%c16_202, %c0_203], %228 {strides = array<i32>} : memref<48x25xf32, #tpu.memory_space<vmem>>, vector<16x25xf32>,
    %cst_204 = arith.constant 0.000000e+00 : f32
    %230 = vector.broadcast %cst_204 : f32 to vector<16x128xf32>
    %c0_205 = arith.constant 0 : index
    %c0_206 = arith.constant 0 : index
    %231 = vector.load %arg26[%c0_205, %c0_206] : memref<48x25xf32, #tpu.memory_space<vmem>>, vector<16x25xf32>
    %c0_207 = arith.constant 0 : index
    %c0_208 = arith.constant 0 : index
    %232 = vector.load %arg21[%c0_207, %c0_208] : memref<275x128xf32, #tpu.memory_space<vmem>>, vector<25x128xf32>
    %cst_209 = arith.constant dense<0.000000e+00> : vector<16x128xf32>
    %233 = tpu.matmul %231, %232, %cst_209 {dimension_numbers = #tpu.dot_dimension_numbers<[1], [0], [0], [1], [0, 0, 1, 1], [], []>} : vector<16x25xf32>, vector<25x128xf32>, vector<16x128xf32> -> vector<16x128xf32>
    %234 = arith.addf %230, %233 : vector<16x128xf32>
    %c8_210 = arith.constant 8 : index
    %c0_211 = arith.constant 0 : index
    %235 = vector.load %arg26[%c8_210, %c0_211] : memref<48x25xf32, #tpu.memory_space<vmem>>, vector<16x25xf32>
    %c25 = arith.constant 25 : index
    %c0_212 = arith.constant 0 : index
    %236 = vector.load %arg21[%c25, %c0_212] : memref<275x128xf32, #tpu.memory_space<vmem>>, vector<25x128xf32>
    %cst_213 = arith.constant dense<0.000000e+00> : vector<16x128xf32>
    %237 = tpu.matmul %235, %236, %cst_213 {dimension_numbers = #tpu.dot_dimension_numbers<[1], [0], [0], [1], [0, 0, 1, 1], [], []>} : vector<16x25xf32>, vector<25x128xf32>, vector<16x128xf32> -> vector<16x128xf32>
    %238 = arith.addf %234, %237 : vector<16x128xf32>
    %c12_214 = arith.constant 12 : index
    %c0_215 = arith.constant 0 : index
    %239 = vector.load %arg26[%c12_214, %c0_215] : memref<48x25xf32, #tpu.memory_space<vmem>>, vector<16x25xf32>
    %c50 = arith.constant 50 : index
    %c0_216 = arith.constant 0 : index
    %240 = vector.load %arg21[%c50, %c0_216] : memref<275x128xf32, #tpu.memory_space<vmem>>, vector<25x128xf32>
    %cst_217 = arith.constant dense<0.000000e+00> : vector<16x128xf32>
    %241 = tpu.matmul %239, %240, %cst_217 {dimension_numbers = #tpu.dot_dimension_numbers<[1], [0], [0], [1], [0, 0, 1, 1], [], []>} : vector<16x25xf32>, vector<25x128xf32>, vector<16x128xf32> -> vector<16x128xf32>
    %242 = arith.addf %238, %241 : vector<16x128xf32>
    %c14_218 = arith.constant 14 : index
    %c0_219 = arith.constant 0 : index
    %243 = vector.load %arg26[%c14_218, %c0_219] : memref<48x25xf32, #tpu.memory_space<vmem>>, vector<16x25xf32>
    %c75 = arith.constant 75 : index
    %c0_220 = arith.constant 0 : index
    %244 = vector.load %arg21[%c75, %c0_220] : memref<275x128xf32, #tpu.memory_space<vmem>>, vector<25x128xf32>
    %cst_221 = arith.constant dense<0.000000e+00> : vector<16x128xf32>
    %245 = tpu.matmul %243, %244, %cst_221 {dimension_numbers = #tpu.dot_dimension_numbers<[1], [0], [0], [1], [0, 0, 1, 1], [], []>} : vector<16x25xf32>, vector<25x128xf32>, vector<16x128xf32> -> vector<16x128xf32>
    %246 = arith.addf %242, %245 : vector<16x128xf32>
    %c15_222 = arith.constant 15 : index
    %c0_223 = arith.constant 0 : index
    %247 = vector.load %arg26[%c15_222, %c0_223] : memref<48x25xf32, #tpu.memory_space<vmem>>, vector<16x25xf32>
    %c100 = arith.constant 100 : index
    %c0_224 = arith.constant 0 : index
    %248 = vector.load %arg21[%c100, %c0_224] : memref<275x128xf32, #tpu.memory_space<vmem>>, vector<25x128xf32>
    %cst_225 = arith.constant dense<0.000000e+00> : vector<16x128xf32>
    %249 = tpu.matmul %247, %248, %cst_225 {dimension_numbers = #tpu.dot_dimension_numbers<[1], [0], [0], [1], [0, 0, 1, 1], [], []>} : vector<16x25xf32>, vector<25x128xf32>, vector<16x128xf32> -> vector<16x128xf32>
    %250 = arith.addf %246, %249 : vector<16x128xf32>
    %c16_226 = arith.constant 16 : index
    %c0_227 = arith.constant 0 : index
    %251 = vector.load %arg26[%c16_226, %c0_227] : memref<48x25xf32, #tpu.memory_space<vmem>>, vector<16x25xf32>
    %c125 = arith.constant 125 : index
    %c0_228 = arith.constant 0 : index
    %252 = vector.load %arg21[%c125, %c0_228] : memref<275x128xf32, #tpu.memory_space<vmem>>, vector<25x128xf32>
    %cst_229 = arith.constant dense<0.000000e+00> : vector<16x128xf32>
    %253 = tpu.matmul %251, %252, %cst_229 {dimension_numbers = #tpu.dot_dimension_numbers<[1], [0], [0], [1], [0, 0, 1, 1], [], []>} : vector<16x25xf32>, vector<25x128xf32>, vector<16x128xf32> -> vector<16x128xf32>
    %254 = arith.addf %250, %253 : vector<16x128xf32>
    %c17_230 = arith.constant 17 : index
    %c0_231 = arith.constant 0 : index
    %255 = vector.load %arg26[%c17_230, %c0_231] : memref<48x25xf32, #tpu.memory_space<vmem>>, vector<16x25xf32>
    %c150 = arith.constant 150 : index
    %c0_232 = arith.constant 0 : index
    %256 = vector.load %arg21[%c150, %c0_232] : memref<275x128xf32, #tpu.memory_space<vmem>>, vector<25x128xf32>
    %cst_233 = arith.constant dense<0.000000e+00> : vector<16x128xf32>
    %257 = tpu.matmul %255, %256, %cst_233 {dimension_numbers = #tpu.dot_dimension_numbers<[1], [0], [0], [1], [0, 0, 1, 1], [], []>} : vector<16x25xf32>, vector<25x128xf32>, vector<16x128xf32> -> vector<16x128xf32>
    %258 = arith.addf %254, %257 : vector<16x128xf32>
    %c18_234 = arith.constant 18 : index
    %c0_235 = arith.constant 0 : index
    %259 = vector.load %arg26[%c18_234, %c0_235] : memref<48x25xf32, #tpu.memory_space<vmem>>, vector<16x25xf32>
    %c175 = arith.constant 175 : index
    %c0_236 = arith.constant 0 : index
    %260 = vector.load %arg21[%c175, %c0_236] : memref<275x128xf32, #tpu.memory_space<vmem>>, vector<25x128xf32>
    %cst_237 = arith.constant dense<0.000000e+00> : vector<16x128xf32>
    %261 = tpu.matmul %259, %260, %cst_237 {dimension_numbers = #tpu.dot_dimension_numbers<[1], [0], [0], [1], [0, 0, 1, 1], [], []>} : vector<16x25xf32>, vector<25x128xf32>, vector<16x128xf32> -> vector<16x128xf32>
    %262 = arith.addf %258, %261 : vector<16x128xf32>
    %c20_238 = arith.constant 20 : index
    %c0_239 = arith.constant 0 : index
    %263 = vector.load %arg26[%c20_238, %c0_239] : memref<48x25xf32, #tpu.memory_space<vmem>>, vector<16x25xf32>
    %c200 = arith.constant 200 : index
    %c0_240 = arith.constant 0 : index
    %264 = vector.load %arg21[%c200, %c0_240] : memref<275x128xf32, #tpu.memory_space<vmem>>, vector<25x128xf32>
    %cst_241 = arith.constant dense<0.000000e+00> : vector<16x128xf32>
    %265 = tpu.matmul %263, %264, %cst_241 {dimension_numbers = #tpu.dot_dimension_numbers<[1], [0], [0], [1], [0, 0, 1, 1], [], []>} : vector<16x25xf32>, vector<25x128xf32>, vector<16x128xf32> -> vector<16x128xf32>
    %266 = arith.addf %262, %265 : vector<16x128xf32>
    %c24_242 = arith.constant 24 : index
    %c0_243 = arith.constant 0 : index
    %267 = vector.load %arg26[%c24_242, %c0_243] : memref<48x25xf32, #tpu.memory_space<vmem>>, vector<16x25xf32>
    %c225 = arith.constant 225 : index
    %c0_244 = arith.constant 0 : index
    %268 = vector.load %arg21[%c225, %c0_244] : memref<275x128xf32, #tpu.memory_space<vmem>>, vector<25x128xf32>
    %cst_245 = arith.constant dense<0.000000e+00> : vector<16x128xf32>
    %269 = tpu.matmul %267, %268, %cst_245 {dimension_numbers = #tpu.dot_dimension_numbers<[1], [0], [0], [1], [0, 0, 1, 1], [], []>} : vector<16x25xf32>, vector<25x128xf32>, vector<16x128xf32> -> vector<16x128xf32>
    %270 = arith.addf %266, %269 : vector<16x128xf32>
    %c32_246 = arith.constant 32 : index
    %c0_247 = arith.constant 0 : index
    %271 = vector.load %arg26[%c32_246, %c0_247] : memref<48x25xf32, #tpu.memory_space<vmem>>, vector<16x25xf32>
    %c250 = arith.constant 250 : index
    %c0_248 = arith.constant 0 : index
    %272 = vector.load %arg21[%c250, %c0_248] : memref<275x128xf32, #tpu.memory_space<vmem>>, vector<25x128xf32>
    %cst_249 = arith.constant dense<0.000000e+00> : vector<16x128xf32>
    %273 = tpu.matmul %271, %272, %cst_249 {dimension_numbers = #tpu.dot_dimension_numbers<[1], [0], [0], [1], [0, 0, 1, 1], [], []>} : vector<16x25xf32>, vector<25x128xf32>, vector<16x128xf32> -> vector<16x128xf32>
    %274 = arith.addf %270, %273 : vector<16x128xf32>
    %c0_250 = arith.constant 0 : index
    %c0_251 = arith.constant 0 : index
    %275 = vector.load %arg22[%c0_250, %c0_251] : memref<1x128xf32, #tpu.memory_space<vmem>>, vector<1x128xf32>
    %276 = vector.broadcast %275 : vector<1x128xf32> to vector<16x128xf32>
    %277 = arith.mulf %274, %276 : vector<16x128xf32>
    %c0_252 = arith.constant 0 : index
    %c0_253 = arith.constant 0 : index
    %278 = vector.load %arg23[%c0_252, %c0_253] : memref<1x128xf32, #tpu.memory_space<vmem>>, vector<1x128xf32>
    %279 = vector.broadcast %278 : vector<1x128xf32> to vector<16x128xf32>
    %280 = arith.addf %277, %279 : vector<16x128xf32>
    %cst_254 = arith.constant 0.000000e+00 : f32
    %281 = vector.broadcast %cst_254 : f32 to vector<16x128xf32>
    %282 = arith.cmpf oge, %280, %281 : vector<16x128xf32>
    %283 = vector.broadcast %218 : f32 to vector<16x128xf32>
    %284 = arith.mulf %280, %283 : vector<16x128xf32>
    %285 = arith.select %282, %280, %284 : vector<16x128xi1>, vector<16x128xf32>
    %cst_255 = arith.constant dense<0xFF800000> : vector<128xf32>
    %286 = vector.multi_reduction <maximumf>, %285, %cst_255 [0] : vector<16x128xf32> to vector<128xf32>
    %287 = vector.shape_cast %286 : vector<128xf32> to vector<1x128xf32>
    %c0_256 = arith.constant 0 : index
    %c0_257 = arith.constant 0 : index
    %c0_258 = arith.constant 0 : index
    %288 = vector.load %arg25[%c0_256, %c0_257, %c0_258] : memref<1x1x128xf32, #tpu.memory_space<vmem>>, vector<1x1x128xf32>
    %289 = vector.shape_cast %288 : vector<1x1x128xf32> to vector<1x128xf32>
    %290 = vector.shape_cast %287 : vector<1x128xf32> to vector<1x1x128xf32>
    tpu.vector_store %arg25[%c0_256, %c0_257, %c0_258], %290 {strides = array<i32>} : memref<1x1x128xf32, #tpu.memory_space<vmem>>, vector<1x1x128xf32>,
    return
  }
  func.func @transform_0(%arg0: i32) -> (i32, i32, i32) {
    %c0_i32 = arith.constant 0 : i32
    %c0_i32_0 = arith.constant 0 : i32
    %c0_i32_1 = arith.constant 0 : i32
    return %arg0, %c0_i32, %c0_i32_0 : i32, i32, i32
  }
  func.func @transform_1(%arg0: i32) -> (i32, i32) {
    %c0_i32 = arith.constant 0 : i32
    %c0_i32_0 = arith.constant 0 : i32
    %c0_i32_1 = arith.constant 0 : i32
    return %c0_i32, %c0_i32_0 : i32, i32
  }
  func.func @transform_2(%arg0: i32) -> (i32, i32) {
    %c0_i32 = arith.constant 0 : i32
    %c0_i32_0 = arith.constant 0 : i32
    %c0_i32_1 = arith.constant 0 : i32
    return %c0_i32, %c0_i32_0 : i32, i32
  }
  func.func @transform_3(%arg0: i32) -> (i32, i32) {
    %c0_i32 = arith.constant 0 : i32
    %c0_i32_0 = arith.constant 0 : i32
    %c0_i32_1 = arith.constant 0 : i32
    return %c0_i32, %c0_i32_0 : i32, i32
  }
  func.func @transform_4(%arg0: i32) -> (i32, i32) {
    %c0_i32 = arith.constant 0 : i32
    %c0_i32_0 = arith.constant 0 : i32
    %c0_i32_1 = arith.constant 0 : i32
    return %c0_i32, %c0_i32_0 : i32, i32
  }
  func.func @transform_5(%arg0: i32) -> (i32, i32) {
    %c0_i32 = arith.constant 0 : i32
    %c0_i32_0 = arith.constant 0 : i32
    %c0_i32_1 = arith.constant 0 : i32
    return %c0_i32, %c0_i32_0 : i32, i32
  }
  func.func @transform_6(%arg0: i32) -> (i32, i32) {
    %c0_i32 = arith.constant 0 : i32
    %c0_i32_0 = arith.constant 0 : i32
    %c0_i32_1 = arith.constant 0 : i32
    return %c0_i32, %c0_i32_0 : i32, i32
  }
  func.func @transform_7(%arg0: i32) -> (i32, i32) {
    %c0_i32 = arith.constant 0 : i32
    %c0_i32_0 = arith.constant 0 : i32
    %c0_i32_1 = arith.constant 0 : i32
    return %c0_i32, %c0_i32_0 : i32, i32
  }
  func.func @transform_8(%arg0: i32) -> (i32, i32) {
    %c0_i32 = arith.constant 0 : i32
    %c0_i32_0 = arith.constant 0 : i32
    %c0_i32_1 = arith.constant 0 : i32
    return %c0_i32, %c0_i32_0 : i32, i32
  }
  func.func @transform_9(%arg0: i32) -> (i32, i32) {
    %c0_i32 = arith.constant 0 : i32
    %c0_i32_0 = arith.constant 0 : i32
    %c0_i32_1 = arith.constant 0 : i32
    return %c0_i32, %c0_i32_0 : i32, i32
  }
  func.func @transform_10(%arg0: i32) -> (i32, i32) {
    %c0_i32 = arith.constant 0 : i32
    %c0_i32_0 = arith.constant 0 : i32
    %c0_i32_1 = arith.constant 0 : i32
    return %c0_i32, %c0_i32_0 : i32, i32
  }
  func.func @transform_11(%arg0: i32) -> (i32, i32) {
    %c0_i32 = arith.constant 0 : i32
    %c0_i32_0 = arith.constant 0 : i32
    %c0_i32_1 = arith.constant 0 : i32
    return %c0_i32, %c0_i32_0 : i32, i32
  }
  func.func @transform_12(%arg0: i32) -> (i32, i32) {
    %c0_i32 = arith.constant 0 : i32
    %c0_i32_0 = arith.constant 0 : i32
    %c0_i32_1 = arith.constant 0 : i32
    return %c0_i32, %c0_i32_0 : i32, i32
  }
  func.func @transform_13(%arg0: i32) -> (i32, i32) {
    %c0_i32 = arith.constant 0 : i32
    %c0_i32_0 = arith.constant 0 : i32
    %c0_i32_1 = arith.constant 0 : i32
    return %c0_i32, %c0_i32_0 : i32, i32
  }
  func.func @transform_14(%arg0: i32) -> (i32, i32) {
    %c0_i32 = arith.constant 0 : i32
    %c0_i32_0 = arith.constant 0 : i32
    %c0_i32_1 = arith.constant 0 : i32
    return %c0_i32, %c0_i32_0 : i32, i32
  }
  func.func @transform_15(%arg0: i32) -> (i32, i32) {
    %c0_i32 = arith.constant 0 : i32
    %c0_i32_0 = arith.constant 0 : i32
    %c0_i32_1 = arith.constant 0 : i32
    return %c0_i32, %c0_i32_0 : i32, i32
  }
  func.func @transform_16(%arg0: i32) -> (i32, i32) {
    %c0_i32 = arith.constant 0 : i32
    %c0_i32_0 = arith.constant 0 : i32
    %c0_i32_1 = arith.constant 0 : i32
    return %c0_i32, %c0_i32_0 : i32, i32
  }
  func.func @transform_17(%arg0: i32) -> (i32, i32) {
    %c0_i32 = arith.constant 0 : i32
    %c0_i32_0 = arith.constant 0 : i32
    %c0_i32_1 = arith.constant 0 : i32
    return %c0_i32, %c0_i32_0 : i32, i32
  }
  func.func @transform_18(%arg0: i32) -> (i32, i32) {
    %c0_i32 = arith.constant 0 : i32
    %c0_i32_0 = arith.constant 0 : i32
    %c0_i32_1 = arith.constant 0 : i32
    return %c0_i32, %c0_i32_0 : i32, i32
  }
  func.func @transform_19(%arg0: i32) -> (i32, i32) {
    %c0_i32 = arith.constant 0 : i32
    %c0_i32_0 = arith.constant 0 : i32
    %c0_i32_1 = arith.constant 0 : i32
    return %c0_i32, %c0_i32_0 : i32, i32
  }
  func.func @transform_20(%arg0: i32) -> (i32, i32) {
    %c0_i32 = arith.constant 0 : i32
    %c0_i32_0 = arith.constant 0 : i32
    %c0_i32_1 = arith.constant 0 : i32
    return %c0_i32, %c0_i32_0 : i32, i32
  }
  func.func @transform_21(%arg0: i32) -> (i32, i32) {
    %c0_i32 = arith.constant 0 : i32
    %c0_i32_0 = arith.constant 0 : i32
    %c0_i32_1 = arith.constant 0 : i32
    return %c0_i32, %c0_i32_0 : i32, i32
  }
  func.func @transform_22(%arg0: i32) -> (i32, i32) {
    %c0_i32 = arith.constant 0 : i32
    %c0_i32_0 = arith.constant 0 : i32
    %c0_i32_1 = arith.constant 0 : i32
    return %c0_i32, %c0_i32_0 : i32, i32
  }
  func.func @transform_23(%arg0: i32) -> i32 {
    %c0_i32 = arith.constant 0 : i32
    %c0_i32_0 = arith.constant 0 : i32
    return %c0_i32 : i32
  }
  func.func @transform_24(%arg0: i32) -> (i32, i32, i32) {
    %c0_i32 = arith.constant 0 : i32
    %c0_i32_0 = arith.constant 0 : i32
    %c0_i32_1 = arith.constant 0 : i32
    return %arg0, %c0_i32, %c0_i32_0 : i32, i32, i32
  }
}

module attributes {stable_mosaic.version = 11 : i64} {
  func.func @_residual_branch_kernel(%arg0: i32, %arg1: memref<1x16x128xf32, #tpu.memory_space<vmem>>, %arg2: memref<128x8xf32, #tpu.memory_space<vmem>>, %arg3: memref<1x8xf32, #tpu.memory_space<vmem>>, %arg4: memref<72x32xf32, #tpu.memory_space<vmem>>, %arg5: memref<1x32xf32, #tpu.memory_space<vmem>>, %arg6: memref<1x32xf32, #tpu.memory_space<vmem>>, %arg7: memref<32x16xf32, #tpu.memory_space<vmem>>, %arg8: memref<1x16xf32, #tpu.memory_space<vmem>>, %arg9: memref<144x64xf32, #tpu.memory_space<vmem>>, %arg10: memref<1x64xf32, #tpu.memory_space<vmem>>, %arg11: memref<1x64xf32, #tpu.memory_space<vmem>>, %arg12: memref<64x32xf32, #tpu.memory_space<vmem>>, %arg13: memref<1x32xf32, #tpu.memory_space<vmem>>, %arg14: memref<288x128xf32, #tpu.memory_space<vmem>>, %arg15: memref<1x128xf32, #tpu.memory_space<vmem>>, %arg16: memref<1x128xf32, #tpu.memory_space<vmem>>, %arg17: memref<6xf32, #tpu.memory_space<smem>>, %arg18: memref<1x1x128xf32, #tpu.memory_space<vmem>>, %arg19: memref<32x32xf32, #tpu.memory_space<vmem>>) attributes {dimension_semantics = [#tpu.dimension_semantics<parallel>], iteration_bounds = array<i64: 2>, scalar_prefetch = 0 : i64, scratch_operands = 1 : i64, tpu.core_type = #tpu.core_type<tc>, window_params = [{transform_indices = @transform_0, window_bounds = array<i64: 1, 16, 128>}, {pipeline_mode = #tpu.pipeline_mode<synchronous>, transform_indices = @transform_1, window_bounds = array<i64: 128, 8>}, {pipeline_mode = #tpu.pipeline_mode<synchronous>, transform_indices = @transform_2, window_bounds = array<i64: 1, 8>}, {pipeline_mode = #tpu.pipeline_mode<synchronous>, transform_indices = @transform_3, window_bounds = array<i64: 72, 32>}, {pipeline_mode = #tpu.pipeline_mode<synchronous>, transform_indices = @transform_4, window_bounds = array<i64: 1, 32>}, {pipeline_mode = #tpu.pipeline_mode<synchronous>, transform_indices = @transform_5, window_bounds = array<i64: 1, 32>}, {pipeline_mode = #tpu.pipeline_mode<synchronous>, transform_indices = @transform_6, window_bounds = array<i64: 32, 16>}, {pipeline_mode = #tpu.pipeline_mode<synchronous>, transform_indices = @transform_7, window_bounds = array<i64: 1, 16>}, {pipeline_mode = #tpu.pipeline_mode<synchronous>, transform_indices = @transform_8, window_bounds = array<i64: 144, 64>}, {pipeline_mode = #tpu.pipeline_mode<synchronous>, transform_indices = @transform_9, window_bounds = array<i64: 1, 64>}, {pipeline_mode = #tpu.pipeline_mode<synchronous>, transform_indices = @transform_10, window_bounds = array<i64: 1, 64>}, {pipeline_mode = #tpu.pipeline_mode<synchronous>, transform_indices = @transform_11, window_bounds = array<i64: 64, 32>}, {pipeline_mode = #tpu.pipeline_mode<synchronous>, transform_indices = @transform_12, window_bounds = array<i64: 1, 32>}, {pipeline_mode = #tpu.pipeline_mode<synchronous>, transform_indices = @transform_13, window_bounds = array<i64: 288, 128>}, {pipeline_mode = #tpu.pipeline_mode<synchronous>, transform_indices = @transform_14, window_bounds = array<i64: 1, 128>}, {pipeline_mode = #tpu.pipeline_mode<synchronous>, transform_indices = @transform_15, window_bounds = array<i64: 1, 128>}, {transform_indices = @transform_16, window_bounds = array<i64: 6>}, {transform_indices = @transform_17, window_bounds = array<i64: 1, 1, 128>}]} {
    %c0 = arith.constant 0 : index
    %c0_0 = arith.constant 0 : index
    %c0_1 = arith.constant 0 : index
    %0 = vector.load %arg1[%c0, %c0_0, %c0_1] : memref<1x16x128xf32, #tpu.memory_space<vmem>>, vector<1x16x128xf32>
    %1 = vector.shape_cast %0 : vector<1x16x128xf32> to vector<16x128xf32>
    %cst = arith.constant 0.000000e+00 : f32
    %2 = vector.broadcast %cst : f32 to vector<32x32xf32>
    %c0_2 = arith.constant 0 : index
    %c0_3 = arith.constant 0 : index
    %3 = vector.load %arg19[%c0_2, %c0_3] : memref<32x32xf32, #tpu.memory_space<vmem>>, vector<32x32xf32>
    tpu.vector_store %arg19[%c0_2, %c0_3], %2 {strides = array<i32>} : memref<32x32xf32, #tpu.memory_space<vmem>>, vector<32x32xf32>,
    %c0_4 = arith.constant 0 : index
    %4 = memref.load %arg17[%c0_4] : memref<6xf32, #tpu.memory_space<smem>>
    %c1 = arith.constant 1 : index
    %5 = memref.load %arg17[%c1] : memref<6xf32, #tpu.memory_space<smem>>
    %c0_5 = arith.constant 0 : index
    %c0_6 = arith.constant 0 : index
    %6 = vector.load %arg2[%c0_5, %c0_6] : memref<128x8xf32, #tpu.memory_space<vmem>>, vector<128x8xf32>
    %cst_7 = arith.constant dense<0.000000e+00> : vector<16x8xf32>
    %7 = tpu.matmul %1, %6, %cst_7 {dimension_numbers = #tpu.dot_dimension_numbers<[1], [0], [0], [1], [0, 0, 1, 1], [], []>} : vector<16x128xf32>, vector<128x8xf32>, vector<16x8xf32> -> vector<16x8xf32>
    %c0_8 = arith.constant 0 : index
    %c0_9 = arith.constant 0 : index
    %8 = vector.load %arg3[%c0_8, %c0_9] : memref<1x8xf32, #tpu.memory_space<vmem>>, vector<1x8xf32>
    %9 = vector.broadcast %8 : vector<1x8xf32> to vector<16x8xf32>
    %10 = arith.addf %7, %9 : vector<16x8xf32>
    %cst_10 = arith.constant 0.000000e+00 : f32
    %11 = vector.broadcast %cst_10 : f32 to vector<16x8xf32>
    %12 = arith.cmpf oge, %10, %11 : vector<16x8xf32>
    %13 = vector.broadcast %4 : f32 to vector<16x8xf32>
    %14 = arith.mulf %10, %13 : vector<16x8xf32>
    %15 = arith.select %12, %10, %14 : vector<16x8xi1>, vector<16x8xf32>
    %c8 = arith.constant 8 : index
    %c0_11 = arith.constant 0 : index
    %16 = vector.load %arg19[%c8, %c0_11] : memref<32x32xf32, #tpu.memory_space<vmem>>, vector<16x8xf32>
    tpu.vector_store %arg19[%c8, %c0_11], %15 {strides = array<i32>} : memref<32x32xf32, #tpu.memory_space<vmem>>, vector<16x8xf32>,
    %cst_12 = arith.constant 0.000000e+00 : f32
    %17 = vector.broadcast %cst_12 : f32 to vector<16x32xf32>
    %c0_13 = arith.constant 0 : index
    %c0_14 = arith.constant 0 : index
    %18 = vector.load %arg19[%c0_13, %c0_14] : memref<32x32xf32, #tpu.memory_space<vmem>>, vector<16x8xf32>
    %c0_15 = arith.constant 0 : index
    %c0_16 = arith.constant 0 : index
    %19 = vector.load %arg4[%c0_15, %c0_16] : memref<72x32xf32, #tpu.memory_space<vmem>>, vector<8x32xf32>
    %cst_17 = arith.constant dense<0.000000e+00> : vector<16x32xf32>
    %20 = tpu.matmul %18, %19, %cst_17 {dimension_numbers = #tpu.dot_dimension_numbers<[1], [0], [0], [1], [0, 0, 1, 1], [], []>} : vector<16x8xf32>, vector<8x32xf32>, vector<16x32xf32> -> vector<16x32xf32>
    %21 = arith.addf %17, %20 : vector<16x32xf32>
    %c4 = arith.constant 4 : index
    %c0_18 = arith.constant 0 : index
    %22 = vector.load %arg19[%c4, %c0_18] : memref<32x32xf32, #tpu.memory_space<vmem>>, vector<16x8xf32>
    %c8_19 = arith.constant 8 : index
    %c0_20 = arith.constant 0 : index
    %23 = vector.load %arg4[%c8_19, %c0_20] : memref<72x32xf32, #tpu.memory_space<vmem>>, vector<8x32xf32>
    %cst_21 = arith.constant dense<0.000000e+00> : vector<16x32xf32>
    %24 = tpu.matmul %22, %23, %cst_21 {dimension_numbers = #tpu.dot_dimension_numbers<[1], [0], [0], [1], [0, 0, 1, 1], [], []>} : vector<16x8xf32>, vector<8x32xf32>, vector<16x32xf32> -> vector<16x32xf32>
    %25 = arith.addf %21, %24 : vector<16x32xf32>
    %c6 = arith.constant 6 : index
    %c0_22 = arith.constant 0 : index
    %26 = vector.load %arg19[%c6, %c0_22] : memref<32x32xf32, #tpu.memory_space<vmem>>, vector<16x8xf32>
    %c16 = arith.constant 16 : index
    %c0_23 = arith.constant 0 : index
    %27 = vector.load %arg4[%c16, %c0_23] : memref<72x32xf32, #tpu.memory_space<vmem>>, vector<8x32xf32>
    %cst_24 = arith.constant dense<0.000000e+00> : vector<16x32xf32>
    %28 = tpu.matmul %26, %27, %cst_24 {dimension_numbers = #tpu.dot_dimension_numbers<[1], [0], [0], [1], [0, 0, 1, 1], [], []>} : vector<16x8xf32>, vector<8x32xf32>, vector<16x32xf32> -> vector<16x32xf32>
    %29 = arith.addf %25, %28 : vector<16x32xf32>
    %c7 = arith.constant 7 : index
    %c0_25 = arith.constant 0 : index
    %30 = vector.load %arg19[%c7, %c0_25] : memref<32x32xf32, #tpu.memory_space<vmem>>, vector<16x8xf32>
    %c24 = arith.constant 24 : index
    %c0_26 = arith.constant 0 : index
    %31 = vector.load %arg4[%c24, %c0_26] : memref<72x32xf32, #tpu.memory_space<vmem>>, vector<8x32xf32>
    %cst_27 = arith.constant dense<0.000000e+00> : vector<16x32xf32>
    %32 = tpu.matmul %30, %31, %cst_27 {dimension_numbers = #tpu.dot_dimension_numbers<[1], [0], [0], [1], [0, 0, 1, 1], [], []>} : vector<16x8xf32>, vector<8x32xf32>, vector<16x32xf32> -> vector<16x32xf32>
    %33 = arith.addf %29, %32 : vector<16x32xf32>
    %c8_28 = arith.constant 8 : index
    %c0_29 = arith.constant 0 : index
    %34 = vector.load %arg19[%c8_28, %c0_29] : memref<32x32xf32, #tpu.memory_space<vmem>>, vector<16x8xf32>
    %c32 = arith.constant 32 : index
    %c0_30 = arith.constant 0 : index
    %35 = vector.load %arg4[%c32, %c0_30] : memref<72x32xf32, #tpu.memory_space<vmem>>, vector<8x32xf32>
    %cst_31 = arith.constant dense<0.000000e+00> : vector<16x32xf32>
    %36 = tpu.matmul %34, %35, %cst_31 {dimension_numbers = #tpu.dot_dimension_numbers<[1], [0], [0], [1], [0, 0, 1, 1], [], []>} : vector<16x8xf32>, vector<8x32xf32>, vector<16x32xf32> -> vector<16x32xf32>
    %37 = arith.addf %33, %36 : vector<16x32xf32>
    %c9 = arith.constant 9 : index
    %c0_32 = arith.constant 0 : index
    %38 = vector.load %arg19[%c9, %c0_32] : memref<32x32xf32, #tpu.memory_space<vmem>>, vector<16x8xf32>
    %c40 = arith.constant 40 : index
    %c0_33 = arith.constant 0 : index
    %39 = vector.load %arg4[%c40, %c0_33] : memref<72x32xf32, #tpu.memory_space<vmem>>, vector<8x32xf32>
    %cst_34 = arith.constant dense<0.000000e+00> : vector<16x32xf32>
    %40 = tpu.matmul %38, %39, %cst_34 {dimension_numbers = #tpu.dot_dimension_numbers<[1], [0], [0], [1], [0, 0, 1, 1], [], []>} : vector<16x8xf32>, vector<8x32xf32>, vector<16x32xf32> -> vector<16x32xf32>
    %41 = arith.addf %37, %40 : vector<16x32xf32>
    %c10 = arith.constant 10 : index
    %c0_35 = arith.constant 0 : index
    %42 = vector.load %arg19[%c10, %c0_35] : memref<32x32xf32, #tpu.memory_space<vmem>>, vector<16x8xf32>
    %c48 = arith.constant 48 : index
    %c0_36 = arith.constant 0 : index
    %43 = vector.load %arg4[%c48, %c0_36] : memref<72x32xf32, #tpu.memory_space<vmem>>, vector<8x32xf32>
    %cst_37 = arith.constant dense<0.000000e+00> : vector<16x32xf32>
    %44 = tpu.matmul %42, %43, %cst_37 {dimension_numbers = #tpu.dot_dimension_numbers<[1], [0], [0], [1], [0, 0, 1, 1], [], []>} : vector<16x8xf32>, vector<8x32xf32>, vector<16x32xf32> -> vector<16x32xf32>
    %45 = arith.addf %41, %44 : vector<16x32xf32>
    %c12 = arith.constant 12 : index
    %c0_38 = arith.constant 0 : index
    %46 = vector.load %arg19[%c12, %c0_38] : memref<32x32xf32, #tpu.memory_space<vmem>>, vector<16x8xf32>
    %c56 = arith.constant 56 : index
    %c0_39 = arith.constant 0 : index
    %47 = vector.load %arg4[%c56, %c0_39] : memref<72x32xf32, #tpu.memory_space<vmem>>, vector<8x32xf32>
    %cst_40 = arith.constant dense<0.000000e+00> : vector<16x32xf32>
    %48 = tpu.matmul %46, %47, %cst_40 {dimension_numbers = #tpu.dot_dimension_numbers<[1], [0], [0], [1], [0, 0, 1, 1], [], []>} : vector<16x8xf32>, vector<8x32xf32>, vector<16x32xf32> -> vector<16x32xf32>
    %49 = arith.addf %45, %48 : vector<16x32xf32>
    %c16_41 = arith.constant 16 : index
    %c0_42 = arith.constant 0 : index
    %50 = vector.load %arg19[%c16_41, %c0_42] : memref<32x32xf32, #tpu.memory_space<vmem>>, vector<16x8xf32>
    %c64 = arith.constant 64 : index
    %c0_43 = arith.constant 0 : index
    %51 = vector.load %arg4[%c64, %c0_43] : memref<72x32xf32, #tpu.memory_space<vmem>>, vector<8x32xf32>
    %cst_44 = arith.constant dense<0.000000e+00> : vector<16x32xf32>
    %52 = tpu.matmul %50, %51, %cst_44 {dimension_numbers = #tpu.dot_dimension_numbers<[1], [0], [0], [1], [0, 0, 1, 1], [], []>} : vector<16x8xf32>, vector<8x32xf32>, vector<16x32xf32> -> vector<16x32xf32>
    %53 = arith.addf %49, %52 : vector<16x32xf32>
    %c0_45 = arith.constant 0 : index
    %c0_46 = arith.constant 0 : index
    %54 = vector.load %arg5[%c0_45, %c0_46] : memref<1x32xf32, #tpu.memory_space<vmem>>, vector<1x32xf32>
    %55 = vector.broadcast %54 : vector<1x32xf32> to vector<16x32xf32>
    %56 = arith.mulf %53, %55 : vector<16x32xf32>
    %c0_47 = arith.constant 0 : index
    %c0_48 = arith.constant 0 : index
    %57 = vector.load %arg6[%c0_47, %c0_48] : memref<1x32xf32, #tpu.memory_space<vmem>>, vector<1x32xf32>
    %58 = vector.broadcast %57 : vector<1x32xf32> to vector<16x32xf32>
    %59 = arith.addf %56, %58 : vector<16x32xf32>
    %cst_49 = arith.constant 0.000000e+00 : f32
    %60 = vector.broadcast %cst_49 : f32 to vector<16x32xf32>
    %61 = arith.cmpf oge, %59, %60 : vector<16x32xf32>
    %62 = vector.broadcast %5 : f32 to vector<16x32xf32>
    %63 = arith.mulf %59, %62 : vector<16x32xf32>
    %64 = arith.select %61, %59, %63 : vector<16x32xi1>, vector<16x32xf32>
    %c2 = arith.constant 2 : index
    %65 = memref.load %arg17[%c2] : memref<6xf32, #tpu.memory_space<smem>>
    %c3 = arith.constant 3 : index
    %66 = memref.load %arg17[%c3] : memref<6xf32, #tpu.memory_space<smem>>
    %c0_50 = arith.constant 0 : index
    %c0_51 = arith.constant 0 : index
    %67 = vector.load %arg7[%c0_50, %c0_51] : memref<32x16xf32, #tpu.memory_space<vmem>>, vector<32x16xf32>
    %cst_52 = arith.constant dense<0.000000e+00> : vector<16x16xf32>
    %68 = tpu.matmul %64, %67, %cst_52 {dimension_numbers = #tpu.dot_dimension_numbers<[1], [0], [0], [1], [0, 0, 1, 1], [], []>} : vector<16x32xf32>, vector<32x16xf32>, vector<16x16xf32> -> vector<16x16xf32>
    %c0_53 = arith.constant 0 : index
    %c0_54 = arith.constant 0 : index
    %69 = vector.load %arg8[%c0_53, %c0_54] : memref<1x16xf32, #tpu.memory_space<vmem>>, vector<1x16xf32>
    %70 = vector.broadcast %69 : vector<1x16xf32> to vector<16x16xf32>
    %71 = arith.addf %68, %70 : vector<16x16xf32>
    %cst_55 = arith.constant 0.000000e+00 : f32
    %72 = vector.broadcast %cst_55 : f32 to vector<16x16xf32>
    %73 = arith.cmpf oge, %71, %72 : vector<16x16xf32>
    %74 = vector.broadcast %65 : f32 to vector<16x16xf32>
    %75 = arith.mulf %71, %74 : vector<16x16xf32>
    %76 = arith.select %73, %71, %75 : vector<16x16xi1>, vector<16x16xf32>
    %c8_56 = arith.constant 8 : index
    %c0_57 = arith.constant 0 : index
    %77 = vector.load %arg19[%c8_56, %c0_57] : memref<32x32xf32, #tpu.memory_space<vmem>>, vector<16x16xf32>
    tpu.vector_store %arg19[%c8_56, %c0_57], %76 {strides = array<i32>} : memref<32x32xf32, #tpu.memory_space<vmem>>, vector<16x16xf32>,
    %cst_58 = arith.constant 0.000000e+00 : f32
    %78 = vector.broadcast %cst_58 : f32 to vector<16x64xf32>
    %c0_59 = arith.constant 0 : index
    %c0_60 = arith.constant 0 : index
    %79 = vector.load %arg19[%c0_59, %c0_60] : memref<32x32xf32, #tpu.memory_space<vmem>>, vector<16x16xf32>
    %c0_61 = arith.constant 0 : index
    %c0_62 = arith.constant 0 : index
    %80 = vector.load %arg9[%c0_61, %c0_62] : memref<144x64xf32, #tpu.memory_space<vmem>>, vector<16x64xf32>
    %cst_63 = arith.constant dense<0.000000e+00> : vector<16x64xf32>
    %81 = tpu.matmul %79, %80, %cst_63 {dimension_numbers = #tpu.dot_dimension_numbers<[1], [0], [0], [1], [0, 0, 1, 1], [], []>} : vector<16x16xf32>, vector<16x64xf32>, vector<16x64xf32> -> vector<16x64xf32>
    %82 = arith.addf %78, %81 : vector<16x64xf32>
    %c4_64 = arith.constant 4 : index
    %c0_65 = arith.constant 0 : index
    %83 = vector.load %arg19[%c4_64, %c0_65] : memref<32x32xf32, #tpu.memory_space<vmem>>, vector<16x16xf32>
    %c16_66 = arith.constant 16 : index
    %c0_67 = arith.constant 0 : index
    %84 = vector.load %arg9[%c16_66, %c0_67] : memref<144x64xf32, #tpu.memory_space<vmem>>, vector<16x64xf32>
    %cst_68 = arith.constant dense<0.000000e+00> : vector<16x64xf32>
    %85 = tpu.matmul %83, %84, %cst_68 {dimension_numbers = #tpu.dot_dimension_numbers<[1], [0], [0], [1], [0, 0, 1, 1], [], []>} : vector<16x16xf32>, vector<16x64xf32>, vector<16x64xf32> -> vector<16x64xf32>
    %86 = arith.addf %82, %85 : vector<16x64xf32>
    %c6_69 = arith.constant 6 : index
    %c0_70 = arith.constant 0 : index
    %87 = vector.load %arg19[%c6_69, %c0_70] : memref<32x32xf32, #tpu.memory_space<vmem>>, vector<16x16xf32>
    %c32_71 = arith.constant 32 : index
    %c0_72 = arith.constant 0 : index
    %88 = vector.load %arg9[%c32_71, %c0_72] : memref<144x64xf32, #tpu.memory_space<vmem>>, vector<16x64xf32>
    %cst_73 = arith.constant dense<0.000000e+00> : vector<16x64xf32>
    %89 = tpu.matmul %87, %88, %cst_73 {dimension_numbers = #tpu.dot_dimension_numbers<[1], [0], [0], [1], [0, 0, 1, 1], [], []>} : vector<16x16xf32>, vector<16x64xf32>, vector<16x64xf32> -> vector<16x64xf32>
    %90 = arith.addf %86, %89 : vector<16x64xf32>
    %c7_74 = arith.constant 7 : index
    %c0_75 = arith.constant 0 : index
    %91 = vector.load %arg19[%c7_74, %c0_75] : memref<32x32xf32, #tpu.memory_space<vmem>>, vector<16x16xf32>
    %c48_76 = arith.constant 48 : index
    %c0_77 = arith.constant 0 : index
    %92 = vector.load %arg9[%c48_76, %c0_77] : memref<144x64xf32, #tpu.memory_space<vmem>>, vector<16x64xf32>
    %cst_78 = arith.constant dense<0.000000e+00> : vector<16x64xf32>
    %93 = tpu.matmul %91, %92, %cst_78 {dimension_numbers = #tpu.dot_dimension_numbers<[1], [0], [0], [1], [0, 0, 1, 1], [], []>} : vector<16x16xf32>, vector<16x64xf32>, vector<16x64xf32> -> vector<16x64xf32>
    %94 = arith.addf %90, %93 : vector<16x64xf32>
    %c8_79 = arith.constant 8 : index
    %c0_80 = arith.constant 0 : index
    %95 = vector.load %arg19[%c8_79, %c0_80] : memref<32x32xf32, #tpu.memory_space<vmem>>, vector<16x16xf32>
    %c64_81 = arith.constant 64 : index
    %c0_82 = arith.constant 0 : index
    %96 = vector.load %arg9[%c64_81, %c0_82] : memref<144x64xf32, #tpu.memory_space<vmem>>, vector<16x64xf32>
    %cst_83 = arith.constant dense<0.000000e+00> : vector<16x64xf32>
    %97 = tpu.matmul %95, %96, %cst_83 {dimension_numbers = #tpu.dot_dimension_numbers<[1], [0], [0], [1], [0, 0, 1, 1], [], []>} : vector<16x16xf32>, vector<16x64xf32>, vector<16x64xf32> -> vector<16x64xf32>
    %98 = arith.addf %94, %97 : vector<16x64xf32>
    %c9_84 = arith.constant 9 : index
    %c0_85 = arith.constant 0 : index
    %99 = vector.load %arg19[%c9_84, %c0_85] : memref<32x32xf32, #tpu.memory_space<vmem>>, vector<16x16xf32>
    %c80 = arith.constant 80 : index
    %c0_86 = arith.constant 0 : index
    %100 = vector.load %arg9[%c80, %c0_86] : memref<144x64xf32, #tpu.memory_space<vmem>>, vector<16x64xf32>
    %cst_87 = arith.constant dense<0.000000e+00> : vector<16x64xf32>
    %101 = tpu.matmul %99, %100, %cst_87 {dimension_numbers = #tpu.dot_dimension_numbers<[1], [0], [0], [1], [0, 0, 1, 1], [], []>} : vector<16x16xf32>, vector<16x64xf32>, vector<16x64xf32> -> vector<16x64xf32>
    %102 = arith.addf %98, %101 : vector<16x64xf32>
    %c10_88 = arith.constant 10 : index
    %c0_89 = arith.constant 0 : index
    %103 = vector.load %arg19[%c10_88, %c0_89] : memref<32x32xf32, #tpu.memory_space<vmem>>, vector<16x16xf32>
    %c96 = arith.constant 96 : index
    %c0_90 = arith.constant 0 : index
    %104 = vector.load %arg9[%c96, %c0_90] : memref<144x64xf32, #tpu.memory_space<vmem>>, vector<16x64xf32>
    %cst_91 = arith.constant dense<0.000000e+00> : vector<16x64xf32>
    %105 = tpu.matmul %103, %104, %cst_91 {dimension_numbers = #tpu.dot_dimension_numbers<[1], [0], [0], [1], [0, 0, 1, 1], [], []>} : vector<16x16xf32>, vector<16x64xf32>, vector<16x64xf32> -> vector<16x64xf32>
    %106 = arith.addf %102, %105 : vector<16x64xf32>
    %c12_92 = arith.constant 12 : index
    %c0_93 = arith.constant 0 : index
    %107 = vector.load %arg19[%c12_92, %c0_93] : memref<32x32xf32, #tpu.memory_space<vmem>>, vector<16x16xf32>
    %c112 = arith.constant 112 : index
    %c0_94 = arith.constant 0 : index
    %108 = vector.load %arg9[%c112, %c0_94] : memref<144x64xf32, #tpu.memory_space<vmem>>, vector<16x64xf32>
    %cst_95 = arith.constant dense<0.000000e+00> : vector<16x64xf32>
    %109 = tpu.matmul %107, %108, %cst_95 {dimension_numbers = #tpu.dot_dimension_numbers<[1], [0], [0], [1], [0, 0, 1, 1], [], []>} : vector<16x16xf32>, vector<16x64xf32>, vector<16x64xf32> -> vector<16x64xf32>
    %110 = arith.addf %106, %109 : vector<16x64xf32>
    %c16_96 = arith.constant 16 : index
    %c0_97 = arith.constant 0 : index
    %111 = vector.load %arg19[%c16_96, %c0_97] : memref<32x32xf32, #tpu.memory_space<vmem>>, vector<16x16xf32>
    %c128 = arith.constant 128 : index
    %c0_98 = arith.constant 0 : index
    %112 = vector.load %arg9[%c128, %c0_98] : memref<144x64xf32, #tpu.memory_space<vmem>>, vector<16x64xf32>
    %cst_99 = arith.constant dense<0.000000e+00> : vector<16x64xf32>
    %113 = tpu.matmul %111, %112, %cst_99 {dimension_numbers = #tpu.dot_dimension_numbers<[1], [0], [0], [1], [0, 0, 1, 1], [], []>} : vector<16x16xf32>, vector<16x64xf32>, vector<16x64xf32> -> vector<16x64xf32>
    %114 = arith.addf %110, %113 : vector<16x64xf32>
    %c0_100 = arith.constant 0 : index
    %c0_101 = arith.constant 0 : index
    %115 = vector.load %arg10[%c0_100, %c0_101] : memref<1x64xf32, #tpu.memory_space<vmem>>, vector<1x64xf32>
    %116 = vector.broadcast %115 : vector<1x64xf32> to vector<16x64xf32>
    %117 = arith.mulf %114, %116 : vector<16x64xf32>
    %c0_102 = arith.constant 0 : index
    %c0_103 = arith.constant 0 : index
    %118 = vector.load %arg11[%c0_102, %c0_103] : memref<1x64xf32, #tpu.memory_space<vmem>>, vector<1x64xf32>
    %119 = vector.broadcast %118 : vector<1x64xf32> to vector<16x64xf32>
    %120 = arith.addf %117, %119 : vector<16x64xf32>
    %cst_104 = arith.constant 0.000000e+00 : f32
    %121 = vector.broadcast %cst_104 : f32 to vector<16x64xf32>
    %122 = arith.cmpf oge, %120, %121 : vector<16x64xf32>
    %123 = vector.broadcast %66 : f32 to vector<16x64xf32>
    %124 = arith.mulf %120, %123 : vector<16x64xf32>
    %125 = arith.select %122, %120, %124 : vector<16x64xi1>, vector<16x64xf32>
    %c4_105 = arith.constant 4 : index
    %126 = memref.load %arg17[%c4_105] : memref<6xf32, #tpu.memory_space<smem>>
    %c5 = arith.constant 5 : index
    %127 = memref.load %arg17[%c5] : memref<6xf32, #tpu.memory_space<smem>>
    %c0_106 = arith.constant 0 : index
    %c0_107 = arith.constant 0 : index
    %128 = vector.load %arg12[%c0_106, %c0_107] : memref<64x32xf32, #tpu.memory_space<vmem>>, vector<64x32xf32>
    %cst_108 = arith.constant dense<0.000000e+00> : vector<16x32xf32>
    %129 = tpu.matmul %125, %128, %cst_108 {dimension_numbers = #tpu.dot_dimension_numbers<[1], [0], [0], [1], [0, 0, 1, 1], [], []>} : vector<16x64xf32>, vector<64x32xf32>, vector<16x32xf32> -> vector<16x32xf32>
    %c0_109 = arith.constant 0 : index
    %c0_110 = arith.constant 0 : index
    %130 = vector.load %arg13[%c0_109, %c0_110] : memref<1x32xf32, #tpu.memory_space<vmem>>, vector<1x32xf32>
    %131 = vector.broadcast %130 : vector<1x32xf32> to vector<16x32xf32>
    %132 = arith.addf %129, %131 : vector<16x32xf32>
    %cst_111 = arith.constant 0.000000e+00 : f32
    %133 = vector.broadcast %cst_111 : f32 to vector<16x32xf32>
    %134 = arith.cmpf oge, %132, %133 : vector<16x32xf32>
    %135 = vector.broadcast %126 : f32 to vector<16x32xf32>
    %136 = arith.mulf %132, %135 : vector<16x32xf32>
    %137 = arith.select %134, %132, %136 : vector<16x32xi1>, vector<16x32xf32>
    %c8_112 = arith.constant 8 : index
    %c0_113 = arith.constant 0 : index
    %138 = vector.load %arg19[%c8_112, %c0_113] : memref<32x32xf32, #tpu.memory_space<vmem>>, vector<16x32xf32>
    tpu.vector_store %arg19[%c8_112, %c0_113], %137 {strides = array<i32>} : memref<32x32xf32, #tpu.memory_space<vmem>>, vector<16x32xf32>,
    %cst_114 = arith.constant 0.000000e+00 : f32
    %139 = vector.broadcast %cst_114 : f32 to vector<16x128xf32>
    %c0_115 = arith.constant 0 : index
    %c0_116 = arith.constant 0 : index
    %140 = vector.load %arg19[%c0_115, %c0_116] : memref<32x32xf32, #tpu.memory_space<vmem>>, vector<16x32xf32>
    %c0_117 = arith.constant 0 : index
    %c0_118 = arith.constant 0 : index
    %141 = vector.load %arg14[%c0_117, %c0_118] : memref<288x128xf32, #tpu.memory_space<vmem>>, vector<32x128xf32>
    %cst_119 = arith.constant dense<0.000000e+00> : vector<16x128xf32>
    %142 = tpu.matmul %140, %141, %cst_119 {dimension_numbers = #tpu.dot_dimension_numbers<[1], [0], [0], [1], [0, 0, 1, 1], [], []>} : vector<16x32xf32>, vector<32x128xf32>, vector<16x128xf32> -> vector<16x128xf32>
    %143 = arith.addf %139, %142 : vector<16x128xf32>
    %c4_120 = arith.constant 4 : index
    %c0_121 = arith.constant 0 : index
    %144 = vector.load %arg19[%c4_120, %c0_121] : memref<32x32xf32, #tpu.memory_space<vmem>>, vector<16x32xf32>
    %c32_122 = arith.constant 32 : index
    %c0_123 = arith.constant 0 : index
    %145 = vector.load %arg14[%c32_122, %c0_123] : memref<288x128xf32, #tpu.memory_space<vmem>>, vector<32x128xf32>
    %cst_124 = arith.constant dense<0.000000e+00> : vector<16x128xf32>
    %146 = tpu.matmul %144, %145, %cst_124 {dimension_numbers = #tpu.dot_dimension_numbers<[1], [0], [0], [1], [0, 0, 1, 1], [], []>} : vector<16x32xf32>, vector<32x128xf32>, vector<16x128xf32> -> vector<16x128xf32>
    %147 = arith.addf %143, %146 : vector<16x128xf32>
    %c6_125 = arith.constant 6 : index
    %c0_126 = arith.constant 0 : index
    %148 = vector.load %arg19[%c6_125, %c0_126] : memref<32x32xf32, #tpu.memory_space<vmem>>, vector<16x32xf32>
    %c64_127 = arith.constant 64 : index
    %c0_128 = arith.constant 0 : index
    %149 = vector.load %arg14[%c64_127, %c0_128] : memref<288x128xf32, #tpu.memory_space<vmem>>, vector<32x128xf32>
    %cst_129 = arith.constant dense<0.000000e+00> : vector<16x128xf32>
    %150 = tpu.matmul %148, %149, %cst_129 {dimension_numbers = #tpu.dot_dimension_numbers<[1], [0], [0], [1], [0, 0, 1, 1], [], []>} : vector<16x32xf32>, vector<32x128xf32>, vector<16x128xf32> -> vector<16x128xf32>
    %151 = arith.addf %147, %150 : vector<16x128xf32>
    %c7_130 = arith.constant 7 : index
    %c0_131 = arith.constant 0 : index
    %152 = vector.load %arg19[%c7_130, %c0_131] : memref<32x32xf32, #tpu.memory_space<vmem>>, vector<16x32xf32>
    %c96_132 = arith.constant 96 : index
    %c0_133 = arith.constant 0 : index
    %153 = vector.load %arg14[%c96_132, %c0_133] : memref<288x128xf32, #tpu.memory_space<vmem>>, vector<32x128xf32>
    %cst_134 = arith.constant dense<0.000000e+00> : vector<16x128xf32>
    %154 = tpu.matmul %152, %153, %cst_134 {dimension_numbers = #tpu.dot_dimension_numbers<[1], [0], [0], [1], [0, 0, 1, 1], [], []>} : vector<16x32xf32>, vector<32x128xf32>, vector<16x128xf32> -> vector<16x128xf32>
    %155 = arith.addf %151, %154 : vector<16x128xf32>
    %c8_135 = arith.constant 8 : index
    %c0_136 = arith.constant 0 : index
    %156 = vector.load %arg19[%c8_135, %c0_136] : memref<32x32xf32, #tpu.memory_space<vmem>>, vector<16x32xf32>
    %c128_137 = arith.constant 128 : index
    %c0_138 = arith.constant 0 : index
    %157 = vector.load %arg14[%c128_137, %c0_138] : memref<288x128xf32, #tpu.memory_space<vmem>>, vector<32x128xf32>
    %cst_139 = arith.constant dense<0.000000e+00> : vector<16x128xf32>
    %158 = tpu.matmul %156, %157, %cst_139 {dimension_numbers = #tpu.dot_dimension_numbers<[1], [0], [0], [1], [0, 0, 1, 1], [], []>} : vector<16x32xf32>, vector<32x128xf32>, vector<16x128xf32> -> vector<16x128xf32>
    %159 = arith.addf %155, %158 : vector<16x128xf32>
    %c9_140 = arith.constant 9 : index
    %c0_141 = arith.constant 0 : index
    %160 = vector.load %arg19[%c9_140, %c0_141] : memref<32x32xf32, #tpu.memory_space<vmem>>, vector<16x32xf32>
    %c160 = arith.constant 160 : index
    %c0_142 = arith.constant 0 : index
    %161 = vector.load %arg14[%c160, %c0_142] : memref<288x128xf32, #tpu.memory_space<vmem>>, vector<32x128xf32>
    %cst_143 = arith.constant dense<0.000000e+00> : vector<16x128xf32>
    %162 = tpu.matmul %160, %161, %cst_143 {dimension_numbers = #tpu.dot_dimension_numbers<[1], [0], [0], [1], [0, 0, 1, 1], [], []>} : vector<16x32xf32>, vector<32x128xf32>, vector<16x128xf32> -> vector<16x128xf32>
    %163 = arith.addf %159, %162 : vector<16x128xf32>
    %c10_144 = arith.constant 10 : index
    %c0_145 = arith.constant 0 : index
    %164 = vector.load %arg19[%c10_144, %c0_145] : memref<32x32xf32, #tpu.memory_space<vmem>>, vector<16x32xf32>
    %c192 = arith.constant 192 : index
    %c0_146 = arith.constant 0 : index
    %165 = vector.load %arg14[%c192, %c0_146] : memref<288x128xf32, #tpu.memory_space<vmem>>, vector<32x128xf32>
    %cst_147 = arith.constant dense<0.000000e+00> : vector<16x128xf32>
    %166 = tpu.matmul %164, %165, %cst_147 {dimension_numbers = #tpu.dot_dimension_numbers<[1], [0], [0], [1], [0, 0, 1, 1], [], []>} : vector<16x32xf32>, vector<32x128xf32>, vector<16x128xf32> -> vector<16x128xf32>
    %167 = arith.addf %163, %166 : vector<16x128xf32>
    %c12_148 = arith.constant 12 : index
    %c0_149 = arith.constant 0 : index
    %168 = vector.load %arg19[%c12_148, %c0_149] : memref<32x32xf32, #tpu.memory_space<vmem>>, vector<16x32xf32>
    %c224 = arith.constant 224 : index
    %c0_150 = arith.constant 0 : index
    %169 = vector.load %arg14[%c224, %c0_150] : memref<288x128xf32, #tpu.memory_space<vmem>>, vector<32x128xf32>
    %cst_151 = arith.constant dense<0.000000e+00> : vector<16x128xf32>
    %170 = tpu.matmul %168, %169, %cst_151 {dimension_numbers = #tpu.dot_dimension_numbers<[1], [0], [0], [1], [0, 0, 1, 1], [], []>} : vector<16x32xf32>, vector<32x128xf32>, vector<16x128xf32> -> vector<16x128xf32>
    %171 = arith.addf %167, %170 : vector<16x128xf32>
    %c16_152 = arith.constant 16 : index
    %c0_153 = arith.constant 0 : index
    %172 = vector.load %arg19[%c16_152, %c0_153] : memref<32x32xf32, #tpu.memory_space<vmem>>, vector<16x32xf32>
    %c256 = arith.constant 256 : index
    %c0_154 = arith.constant 0 : index
    %173 = vector.load %arg14[%c256, %c0_154] : memref<288x128xf32, #tpu.memory_space<vmem>>, vector<32x128xf32>
    %cst_155 = arith.constant dense<0.000000e+00> : vector<16x128xf32>
    %174 = tpu.matmul %172, %173, %cst_155 {dimension_numbers = #tpu.dot_dimension_numbers<[1], [0], [0], [1], [0, 0, 1, 1], [], []>} : vector<16x32xf32>, vector<32x128xf32>, vector<16x128xf32> -> vector<16x128xf32>
    %175 = arith.addf %171, %174 : vector<16x128xf32>
    %c0_156 = arith.constant 0 : index
    %c0_157 = arith.constant 0 : index
    %176 = vector.load %arg15[%c0_156, %c0_157] : memref<1x128xf32, #tpu.memory_space<vmem>>, vector<1x128xf32>
    %177 = vector.broadcast %176 : vector<1x128xf32> to vector<16x128xf32>
    %178 = arith.mulf %175, %177 : vector<16x128xf32>
    %c0_158 = arith.constant 0 : index
    %c0_159 = arith.constant 0 : index
    %179 = vector.load %arg16[%c0_158, %c0_159] : memref<1x128xf32, #tpu.memory_space<vmem>>, vector<1x128xf32>
    %180 = vector.broadcast %179 : vector<1x128xf32> to vector<16x128xf32>
    %181 = arith.addf %178, %180 : vector<16x128xf32>
    %cst_160 = arith.constant 0.000000e+00 : f32
    %182 = vector.broadcast %cst_160 : f32 to vector<16x128xf32>
    %183 = arith.cmpf oge, %181, %182 : vector<16x128xf32>
    %184 = vector.broadcast %127 : f32 to vector<16x128xf32>
    %185 = arith.mulf %181, %184 : vector<16x128xf32>
    %186 = arith.select %183, %181, %185 : vector<16x128xi1>, vector<16x128xf32>
    %cst_161 = arith.constant dense<0xFF800000> : vector<128xf32>
    %187 = vector.multi_reduction <maximumf>, %186, %cst_161 [0] : vector<16x128xf32> to vector<128xf32>
    %188 = vector.shape_cast %187 : vector<128xf32> to vector<1x128xf32>
    %c0_162 = arith.constant 0 : index
    %c0_163 = arith.constant 0 : index
    %c0_164 = arith.constant 0 : index
    %189 = vector.load %arg18[%c0_162, %c0_163, %c0_164] : memref<1x1x128xf32, #tpu.memory_space<vmem>>, vector<1x1x128xf32>
    %190 = vector.shape_cast %189 : vector<1x1x128xf32> to vector<1x128xf32>
    %191 = vector.shape_cast %188 : vector<1x128xf32> to vector<1x1x128xf32>
    tpu.vector_store %arg18[%c0_162, %c0_163, %c0_164], %191 {strides = array<i32>} : memref<1x1x128xf32, #tpu.memory_space<vmem>>, vector<1x1x128xf32>,
    return
  }
  func.func @transform_0(%arg0: i32) -> (i32, i32, i32) {
    %c0_i32 = arith.constant 0 : i32
    %c0_i32_0 = arith.constant 0 : i32
    %c0_i32_1 = arith.constant 0 : i32
    return %arg0, %c0_i32, %c0_i32_0 : i32, i32, i32
  }
  func.func @transform_1(%arg0: i32) -> (i32, i32) {
    %c0_i32 = arith.constant 0 : i32
    %c0_i32_0 = arith.constant 0 : i32
    %c0_i32_1 = arith.constant 0 : i32
    return %c0_i32, %c0_i32_0 : i32, i32
  }
  func.func @transform_2(%arg0: i32) -> (i32, i32) {
    %c0_i32 = arith.constant 0 : i32
    %c0_i32_0 = arith.constant 0 : i32
    %c0_i32_1 = arith.constant 0 : i32
    return %c0_i32, %c0_i32_0 : i32, i32
  }
  func.func @transform_3(%arg0: i32) -> (i32, i32) {
    %c0_i32 = arith.constant 0 : i32
    %c0_i32_0 = arith.constant 0 : i32
    %c0_i32_1 = arith.constant 0 : i32
    return %c0_i32, %c0_i32_0 : i32, i32
  }
  func.func @transform_4(%arg0: i32) -> (i32, i32) {
    %c0_i32 = arith.constant 0 : i32
    %c0_i32_0 = arith.constant 0 : i32
    %c0_i32_1 = arith.constant 0 : i32
    return %c0_i32, %c0_i32_0 : i32, i32
  }
  func.func @transform_5(%arg0: i32) -> (i32, i32) {
    %c0_i32 = arith.constant 0 : i32
    %c0_i32_0 = arith.constant 0 : i32
    %c0_i32_1 = arith.constant 0 : i32
    return %c0_i32, %c0_i32_0 : i32, i32
  }
  func.func @transform_6(%arg0: i32) -> (i32, i32) {
    %c0_i32 = arith.constant 0 : i32
    %c0_i32_0 = arith.constant 0 : i32
    %c0_i32_1 = arith.constant 0 : i32
    return %c0_i32, %c0_i32_0 : i32, i32
  }
  func.func @transform_7(%arg0: i32) -> (i32, i32) {
    %c0_i32 = arith.constant 0 : i32
    %c0_i32_0 = arith.constant 0 : i32
    %c0_i32_1 = arith.constant 0 : i32
    return %c0_i32, %c0_i32_0 : i32, i32
  }
  func.func @transform_8(%arg0: i32) -> (i32, i32) {
    %c0_i32 = arith.constant 0 : i32
    %c0_i32_0 = arith.constant 0 : i32
    %c0_i32_1 = arith.constant 0 : i32
    return %c0_i32, %c0_i32_0 : i32, i32
  }
  func.func @transform_9(%arg0: i32) -> (i32, i32) {
    %c0_i32 = arith.constant 0 : i32
    %c0_i32_0 = arith.constant 0 : i32
    %c0_i32_1 = arith.constant 0 : i32
    return %c0_i32, %c0_i32_0 : i32, i32
  }
  func.func @transform_10(%arg0: i32) -> (i32, i32) {
    %c0_i32 = arith.constant 0 : i32
    %c0_i32_0 = arith.constant 0 : i32
    %c0_i32_1 = arith.constant 0 : i32
    return %c0_i32, %c0_i32_0 : i32, i32
  }
  func.func @transform_11(%arg0: i32) -> (i32, i32) {
    %c0_i32 = arith.constant 0 : i32
    %c0_i32_0 = arith.constant 0 : i32
    %c0_i32_1 = arith.constant 0 : i32
    return %c0_i32, %c0_i32_0 : i32, i32
  }
  func.func @transform_12(%arg0: i32) -> (i32, i32) {
    %c0_i32 = arith.constant 0 : i32
    %c0_i32_0 = arith.constant 0 : i32
    %c0_i32_1 = arith.constant 0 : i32
    return %c0_i32, %c0_i32_0 : i32, i32
  }
  func.func @transform_13(%arg0: i32) -> (i32, i32) {
    %c0_i32 = arith.constant 0 : i32
    %c0_i32_0 = arith.constant 0 : i32
    %c0_i32_1 = arith.constant 0 : i32
    return %c0_i32, %c0_i32_0 : i32, i32
  }
  func.func @transform_14(%arg0: i32) -> (i32, i32) {
    %c0_i32 = arith.constant 0 : i32
    %c0_i32_0 = arith.constant 0 : i32
    %c0_i32_1 = arith.constant 0 : i32
    return %c0_i32, %c0_i32_0 : i32, i32
  }
  func.func @transform_15(%arg0: i32) -> (i32, i32) {
    %c0_i32 = arith.constant 0 : i32
    %c0_i32_0 = arith.constant 0 : i32
    %c0_i32_1 = arith.constant 0 : i32
    return %c0_i32, %c0_i32_0 : i32, i32
  }
  func.func @transform_16(%arg0: i32) -> i32 {
    %c0_i32 = arith.constant 0 : i32
    %c0_i32_0 = arith.constant 0 : i32
    return %c0_i32 : i32
  }
  func.func @transform_17(%arg0: i32) -> (i32, i32, i32) {
    %c0_i32 = arith.constant 0 : i32
    %c0_i32_0 = arith.constant 0 : i32
    %c0_i32_1 = arith.constant 0 : i32
    return %arg0, %c0_i32, %c0_i32_0 : i32, i32, i32
  }
}

</mosaic_0001>

<bundles_post_ra>
// kernel: deepdtaf_forward.5
= control target key start
LH: loop header
LB: loop body
LE: loop exit
PB: predicated region body
PF: predicated region fallthrough
CT: control target
= control target key end

     0   :  { %15 = vsyncpa [#allocation3], 0  ;;  %s2396_s0 = inlined_call_operand.hbm [shape: f32[2,16,32], index: 0, kind: input, shape index: {}]   ;;  %s2397_s1 = inlined_call_operand.vmem [shape: f32[32,128], index: 1, kind: input, shape index: {}]   ;;  %s2398_s2 = inlined_call_operand.vmem [shape: f32[1,128], index: 2, kind: input, shape index: {}]   ;;  %s2399_s3 = inlined_call_operand.hbm [shape: f32[384,32], index: 3, kind: input, shape index: {}]   ;;  %s2400_s4 = inlined_call_operand.vmem [shape: f32[1,32], index: 4, kind: input, shape index: {}]   ;;  %s2401_s5 = inlined_call_operand.hbm [shape: f32[96,64], index: 5, kind: input, shape index: {}]   ;;  %s2402_s6 = inlined_call_operand.vmem [shape: f32[1,64], index: 6, kind: input, shape index: {}]   ;;  %s2403_s7 = inlined_call_operand.hbm [shape: f32[192,128], index: 7, kind: input, shape index: {}]   ;;  %s2404_s8 = inlined_call_operand.vmem [shape: f32[1,128], index: 8, kind: input, shape index: {}]   ;;  %s2405_s9 = inlined_call_operand.vmem [shape: f32[3], index: 9, kind: input, shape index: {}]   ;;  %s2406_s10 = inlined_call_operand.vmem [shape: f32[2,1,128], index: 10, kind: output, shape index: {}]  }
   0x1   :  { %17 = vsyncpa [#allocation3 + $0x1], 0 }
   0x2   :  { %18 = vsyncpa [#allocation6], 0 }
   0x3   :  { %19 = vsyncpa [#allocation9], 0 }
   0x4   :  { %20 = vsyncpa [#allocation4], 0  ;;  %s2176_s13 = smov 0   ;;  %s2178_s14 = smov 0  }
   0x5   :  { %s2180_s15 = smov 0   ;;  %s2182_s16 = smov 0  }
   0x6 LB: > { %s2195_s17 = sadd.s32 4294967295, %s2112_s16   ;;  %p46_p0 = scmp.ne.s32.totalorder %s2104_s14, %s2100_s13  ;;  %s2112_s16 = sphi %s2182_s16, %s2429_s16   ;;  %s2108_s15 = sphi %s2180_s15, %s2428_s15   ;;  %s2104_s14 = sphi %s2178_s14, %s2427_s14   ;;  %s2100_s13 = sphi %s2176_s13, %s2426_s13  }
   0x7   : > { %p2409_p1 = scmp.eq.s32.totalorder %s2195_s17, 0  ;;  %p1511_p2 = scmp.ge.s32.totalorder %s2112_s16, 1 }
   0x8   : > { %p272_p3 = scmp.lt.s32.totalorder %s2112_s16, 3  ;;  %s2114_s20 = smov [#allocation5]  }
   0x9   : > { %p2203_p4 = por %p2409_p1, %p46_p0  ;;  %s290_s21 = sshll.u32 %s2114_s20, 4  ;;  %s291_s21 = int_to_ptr.vmem [resolvable:$true] %s290_s21 }
   0xa   : > { %p2207_p5 = pnand %p1511_p2, %p272_p3  ;;  %s2115_s23 = smov [#allocation7]  }
   0xb   : > { %s2412_s18 = scalar_select %p2203_p4, 1, 0 }
   0xc   : > { %s2413_s19 = scalar_select %p2207_p5, 1, 0 }
   0xd   : > { %p1881_p6 = pneg %p2207_p5  ;;  %s306_s24 = sshll.u32 %s2115_s23, 4  ;;  %s307_s24 = int_to_ptr.vmem [resolvable:$true] %s306_s24 }
   0xe   : > { %s2116_s25 = smov [#allocation8]   ;;  %s1956_s27 = scalar_lea.vmem %s291_s21, 6144 }
   0xf   : > { %p2215_p7 = pnand %p1881_p6, %p2409_p1  ;;  %s322_s26 = sshll.u32 %s2116_s25, 4  ;;  %s323_s26 = int_to_ptr.vmem [resolvable:$true] %s322_s26 }
  0x10   : > { %p1957_p9 = scmp.ne.s32.totalorder %s291_s21, %s1956_s27  ;;  %p1964_p12 = scmp.lt.s32.totalorder %s291_s21, %s291_s21 }
  0x11   : > { %p1947_p8 = pneg %p2215_p7  ;;  %p1965_p13 = scmp.lt.s32.totalorder %s1956_s27, %s1956_s27 }
  0x13   : > { %p1959_p10 = pnand %p1957_p9, %p1947_p8  ;;  %p1966_p0 = por %p1965_p13, %p1964_p12 }
  0x15   : > { %p1960_p11 = pneg %p1959_p10 }
  0x17   : > { %p1967_p2 = pnand %p1966_p0, %p1960_p11 }
  0x19   : > { %1970 = shalt.err (!%p1967_p2)
}
  0x1a   : > { %s2407_s28 = smov 128   ;;  %s2408_s29 = smov 8  }
  0x1b   : > { %1884 = dma.hbm_to_vmem [thread:$0]  (!%p2215_p7), %s2399_s3, 6144, %s291_s21, [#allocation6], %s2407_s28, %s2407_s28, %s2408_s29  }
  0x1c   : > { %s1982_s12 = scalar_lea.vmem %s307_s24, 1536  ;;  %p1990_p10 = scmp.lt.s32.totalorder %s307_s24, %s307_s24 }
  0x1d   : > { %p1983_p3 = scmp.ne.s32.totalorder %s307_s24, %s1982_s12  ;;  %p1991_p11 = scmp.lt.s32.totalorder %s1982_s12, %s1982_s12 }
  0x1f   : > { %p1985_p6 = pnand %p1983_p3, %p1947_p8  ;;  %p1992_p12 = por %p1991_p11, %p1990_p10 }
  0x21   : > { %p1986_p9 = pneg %p1985_p6 }
  0x23   : > { %p1993_p13 = pnand %p1992_p12, %p1986_p9 }
  0x25   : > { %1996 = shalt.err (!%p1993_p13)
}
  0x26   : > { %1887 = dma.hbm_to_vmem [thread:$0]  (!%p2215_p7), %s2401_s5, 1536, %s307_s24, [#allocation6], %s2407_s28, %s2407_s28, %s2408_s29  }
  0x27   : > { %s339_s25 = sshll.u32 %s2405_s9, 4  ;;  %s2008_s27 = scalar_lea.vmem %s323_s26, 3072  ;;  %s340_s25 = int_to_ptr.vmem [resolvable:$true] %s339_s25 }
  0x28   : > { %p2009_p0 = scmp.ne.s32.totalorder %s323_s26, %s2008_s27  ;;  %p2016_p6 = scmp.lt.s32.totalorder %s323_s26, %s323_s26 }
  0x29   : > { %p2017_p9 = scmp.lt.s32.totalorder %s2008_s27, %s2008_s27 }
  0x2a   : > { %p2011_p2 = pnand %p2009_p0, %p1947_p8 }
  0x2b   : > { %p2018_p10 = por %p2017_p9, %p2016_p6 }
  0x2c   : > { %p2012_p3 = pneg %p2011_p2 }
  0x2e   : > { %p2019_p11 = pnand %p2018_p10, %p2012_p3 }
  0x30   : > { %2022 = shalt.err (!%p2019_p11)
}
  0x31   : > { %1890 = dma.hbm_to_vmem [thread:$0]  (!%p2215_p7), %s2403_s7, 3072, %s323_s26, [#allocation9], %s2407_s28, %s2407_s28, %s2408_s29  }
  0x32   : > { %s2023_s11 = scalar_lea.vmem %s340_s25, 16  ;;  %p2031_p2 = scmp.lt.s32.totalorder %s340_s25, %s340_s25 }
  0x33   : > { %p2024_p12 = scmp.ne.s32.totalorder %s340_s25, %s2023_s11  ;;  %p2032_p3 = scmp.lt.s32.totalorder %s2023_s11, %s2023_s11 }
  0x35   : > { %p2026_p13 = pnand %p2024_p12, %p1947_p8  ;;  %p2033_p6 = por %p2032_p3, %p2031_p2 }
  0x37   : > { %p2027_p0 = pneg %p2026_p13 }
  0x39   : > { %p2034_p9 = pnand %p2033_p6, %p2027_p0 }
  0x3b   : > { %2037 = shalt.err (!%p2034_p9)
}
  0x3c   : > { %s2119_s12 = smov [#allocation10]   ;;  %s2263_s26 = sadd.s32 1, %s2112_s16  }
  0x3d   : > { %1893 = dma.vmem_to_smem (!%p2215_p7), %s340_s25, 16, %s2119_s12, [#allocation4]  }
  0x3e   : > { %s30_s13 = ssub.s32 %s2112_s16, %s2263_s26  ;;  %s33_s20 = sadd.s32 1, %s2108_s15 }
  0x3f   : > { %p31_p8 = scmp.eq.s32.totalorder %s30_s13, 0  ;;  %p40_p10 = scmp.ne.s32.totalorder %s2108_s15, %s2104_s14 }
  0x40   : > { %p41_p11 = scmp.eq.s32.totalorder %s2112_s16, 0  ;;  %p1902_p13 = scmp.lt.s32.totalorder %s2112_s16, 2 }
  0x41   : > { %s2272_s22 = scalar_select %p31_p8, %s2108_s15, %s33_s20  }
  0x42   : > { %p42_p12 = por %p41_p11, %p40_p10  ;;  %s350_s21 = sand.u32 1, %s2108_s15  }
  0x43   : > { %s1548_s23 = sshll.u32 %s2112_s16, 8  ;;  %s1517_s27 = sshll.u32 %s350_s21, 4 }
  0x44   : > { %s2280_s11 = scalar_lea.hbm %s2396_s0, %s1548_s23  ;;  %s354_s25 = scalar_lea.vmem [#allocation2], %s1517_s27 }
  0x45   : > { %s361_s12 = sshll.u32 %s354_s25, 4  ;;  %p2282_p7 = pnand %p1902_p13, %p42_p12  ;;  %s2286_s12 = int_to_ptr.vmem [resolvable:$true] %s361_s12 }
  0x46   : > { %s2288_s20 = scalar_lea.sflag [#allocation3], %s350_s21  ;;  %s2038_s16 = scalar_lea.hbm %s2280_s11, 256 }
  0x47   : > { %p2039_p0 = scmp.ne.s32.totalorder %s2280_s11, %s2038_s16  ;;  %p2040_p2 = pneg %p2282_p7 }
  0x48   : > { %s2043_s27 = scalar_lea.hbm %s2396_s0, 512  ;;  %p2044_p9 = scmp.lt.s32.totalorder %s2280_s11, %s2396_s0 }
  0x49   : > { %p2041_p3 = pnand %p2040_p2, %p2039_p0  ;;  %p2045_p8 = scmp.lt.s32.totalorder %s2043_s27, %s2038_s16 }
  0x4b   : > { %p2042_p6 = pneg %p2041_p3  ;;  %p2046_p10 = por %p2045_p8, %p2044_p9 }
  0x4d   : > { %p2047_p11 = pnand %p2046_p10, %p2042_p6 }
  0x4f   : > { %2050 = shalt.err (!%p2047_p11)
}
  0x50   : > { %s2051_s21 = scalar_lea.vmem %s2286_s12, 256  ;;  %s2120_s28 = smov [#allocation2]  }
  0x51   : > { %p2052_p12 = scmp.ne.s32.totalorder %s2286_s12, %s2051_s21  ;;  %s2056_s29 = sshll.u32 %s2120_s28, 4  ;;  %s2057_s29 = int_to_ptr.vmem [resolvable:$false] %s2056_s29 }
  0x52   : > { %s2058_s23 = scalar_lea.vmem %s2057_s29, 512  ;;  %p2059_p3 = scmp.lt.s32.totalorder %s2286_s12, %s2057_s29 }
  0x53   : > { %p2054_p13 = pnand %p2052_p12, %p2040_p2  ;;  %p2060_p1 = scmp.lt.s32.totalorder %s2058_s23, %s2051_s21 }
  0x55   : > { %p2055_p0 = pneg %p2054_p13  ;;  %p2061_p4 = por %p2060_p1, %p2059_p3 }
  0x57   : > { %p2062_p5 = pnand %p2061_p4, %p2055_p0 }
  0x59   : > { %2065 = shalt.err (!%p2062_p5)
}
  0x5a   : > { %s2416_s16 = smov 8   ;;  %s2417_s24 = smov 128  }
  0x5b   : > { %1897 = dma.hbm_to_vmem [thread:$0]  (!%p2282_p7), %s2280_s11, 256, %s2286_s12, %s2288_s20, %s2417_s24, %s2417_s24, %s2416_s16  }
  0x5c   : > { %p2418_p2 = scmp.ne.s32.totalorder %s2413_s19, 0 }
  0x5d   : > { %s375_s28 = sand.u32 (!%p2418_p2), 1, %s2104_s14   ;;  %p2419_p1 = scmp.ne.s32.totalorder (!%p2418_p2), %s2412_s18, 0 }
  0x5e   : > { %373 = sbr.rel (%p2418_p2) target bundleno = 1015 (0x3f7), region = 60  ;;  %s2315_s29 = sshll.u32 (!%p2418_p2), %s375_s28, 4 }
  0x5f   : > { %s376_s27 = scalar_lea.sflag (!%p2418_p2), [#allocation3], %s375_s28  ;;  %s379_s30 = scalar_lea.vmem (!%p2418_p2), [#allocation2], %s2315_s29 }
  0x63   : > { %2083 = dma.done.wait (%p2419_p1), %s376_s27, 256  }
  0x64   : > { %2085 = vsyncadd (%p2419_p1), %s376_s27, 4294967040  ;;  %p2420_p4 = scmp.eq.s32.totalorder %s2195_s17, 0 }
  0x66   : > { %2087 = dma.done.wait (%p2420_p4), [#allocation6], 7680   ;;  %p2421_p5 = pmov %p2420_p4 }
  0x67   : > { %p2422_p7 = pmov %p2420_p4 }
  0x68   : > { %2089 = vsyncadd (%p2421_p5), [#allocation6], 4294959616 }
  0x69   : > { %2091 = dma.done.wait (%p2422_p7), [#allocation9], 3072   ;;  %p2423_p6 = pmov %p2420_p4 }
  0x6a   : > { %p2424_p9 = pmov %p2420_p4 }
  0x6b   : > { %2093 = vsyncadd (%p2423_p6), [#allocation9], 4294964224 }
  0x6c   : > { %2095 = dma.done.wait (%p2424_p9), [#allocation4], 16   ;;  %p2425_p8 = pmov %p2420_p4 }
  0x6e   : > { %2097 = vsyncadd (%p2425_p8), [#allocation4], 4294967280 }
  0x6f   : > { %400 = sfence }
  0x70   : > { %v439_v0 = vld [vmem:[%s2397_s1 + $0x18] sm:$0xff]  ;;  %v438_v1 = vld [vmem:[%s2397_s1 + $0x10] sm:$0xff]  ;;  %vm447_vm0 = vcmask 261120   ;;  %v437_v3 = vld [vmem:[%s2397_s1 + $0x8] sm:$0xff]  ;;  %vm563_vm1 = vcmask 1046528   ;;  %vm735_vm2 = vcmask 1045504  }
  0x71   : > { %1657 = vmatprep.subr.mxu1 %v439_v0  ;;  %v434_v2 = vld [vmem:[%s379_s30] sm:$0xff]  ;;  %v544_v4 = vld [vmem:[#allocation5 + $0x78] sm:$0xff]  ;;  %v542_v7 = vld [vmem:[#allocation5 + $0x68] sm:$0xff]  ;;  %s827_s24 = sld [smem:[#allocation10]]  ;;  %vm1132_vm7 = vcmask 523264   ;;  %vm1400_vm9 = vcmask 1041408  }
  0x72   : > { %1658 = vmatpush3.msra.mxu1 %v439_v0  ;;  %1665 = vmatprep.mubr.msk.f32.mxu1 %vm447_vm0, %v434_v2  ;;  %v543_v5 = vld [vmem:[#allocation5 + $0x70] sm:$0xff]  ;;  %v436_v6 = vld [vmem:[%s2397_s1] sm:$0xff]  ;;  %v435_v8 = vld [vmem:[%s379_s30 + $0x8] sm:$0xff]  ;;  %s1537_s27 = sld [smem:[#allocation10 + $0x1]]  ;;  %p431_p10 = scmp.lt.s32.totalorder %s2195_s17, 1 }
  0x73   : > { %1659 = vmatprep.subr.mxu1 %v438_v1  ;;  %1703 = vmatprep.subr.mxu0 %v544_v4  ;;  %v560_v9 = vld [vmem:[#allocation5 + $0xf8] sm:$0xff]  ;;  %v541_v10 = vld [vmem:[#allocation5 + $0x60] sm:$0xff]  ;;  %v559_v11 = vld [vmem:[#allocation5 + $0xf0] sm:$0xff]  ;;  %s1545_s19 = sld [smem:[#allocation10 + $0x2]] }
  0x74   : > { %1660 = vmatpush3.msra.mxu1 %v438_v1  ;;  %1704 = vmatpush3.msra.mxu0 %v544_v4  ;;  %v540_v12 = vld [vmem:[#allocation5 + $0x58] sm:$0xff]  ;;  %v558_v13 = vld [vmem:[#allocation5 + $0xe8] sm:$0xff]  ;;  %v539_v14 = vld [vmem:[#allocation5 + $0x50] sm:$0xff]  ;;  %s2431_s17 = smov (!%p431_p10, %s2195_s17), 1 }
  0x75   : > { %1661 = vmatprep.subr.mxu1 %v437_v3  ;;  %1705 = vmatprep.subr.mxu0 %v543_v5  ;;  %v557_v15 = vld [vmem:[#allocation5 + $0xe0] sm:$0xff]  ;;  %v538_v16 = vld [vmem:[#allocation5 + $0x48] sm:$0xff]  ;;  %v556_v17 = vld [vmem:[#allocation5 + $0xd8] sm:$0xff]  ;;  %s433_s25 = scalar_lea.vmem %s2406_s10, %s2431_s17 }
  0x76   : > { %1662 = vmatpush3.msra.mxu1 %v437_v3  ;;  %1706 = vmatpush3.msra.mxu0 %v543_v5  ;;  %v537_v18 = vld [vmem:[#allocation5 + $0x40] sm:$0xff]  ;;  %v555_v19 = vld [vmem:[#allocation5 + $0xd0] sm:$0xff]  ;;  %v536_v20 = vld [vmem:[#allocation5 + $0x38] sm:$0xff] }
  0x77   : > { %1663 = vmatprep.subr.mxu1 %v436_v6  ;;  %1707 = vmatprep.subr.mxu0 %v542_v7  ;;  %v554_v21 = vld [vmem:[#allocation5 + $0xc8] sm:$0xff]  ;;  %v535_v22 = vld [vmem:[#allocation5 + $0x30] sm:$0xff]  ;;  %v553_v23 = vld [vmem:[#allocation5 + $0xc0] sm:$0xff] }
  0x78   : > { %1664 = vmatpush3.msra.mxu1 %v436_v6  ;;  %1708 = vmatpush3.msra.mxu0 %v542_v7  ;;  %v534_v24 = vld [vmem:[#allocation5 + $0x28] sm:$0xff]  ;;  %v552_v25 = vld [vmem:[#allocation5 + $0xb8] sm:$0xff]  ;;  %v533_v26 = vld [vmem:[#allocation5 + $0x20] sm:$0xff] }
  0x79   : > { %1666 = vmatmul.mubr.msk.f32.vlgmr.msra.gmra.mxu1 %vm447_vm0, %v435_v8  ;;  %1668 = vmatprep.subr.mxu1 %v560_v9  ;;  %v551_v27 = vld [vmem:[#allocation5 + $0xb0] sm:$0xff]  ;;  %v532_v28 = vld [vmem:[#allocation5 + $0x18] sm:$0xff]  ;;  %v550_v29 = vld [vmem:[#allocation5 + $0xa8] sm:$0xff] }
  0x7a   : > { %1669 = vmatpush3.msra.mxu1 %v560_v9  ;;  %1709 = vmatprep.subr.mxu0 %v541_v10  ;;  %v549_v30 = vld [vmem:[#allocation5 + $0xa0] sm:$0xff]  ;;  %v548_v31 = vld [vmem:[#allocation5 + $0x98] sm:$0xff]  ;;  %v531_v32 = vld [vmem:[#allocation5 + $0x10] sm:$0xff] }
  0x7b   : > { %1670 = vmatprep.subr.mxu1 %v559_v11  ;;  %1710 = vmatpush3.msra.mxu0 %v541_v10  ;;  %v547_v33 = vld [vmem:[#allocation5 + $0x90] sm:$0xff]  ;;  %v530_v34 = vld [vmem:[#allocation5 + $0x8] sm:$0xff]  ;;  %v529_v36 = vld [vmem:[#allocation5] sm:$0xff] }
  0x7c   : > { %1671 = vmatpush3.msra.mxu1 %v559_v11  ;;  %1711 = vmatprep.subr.mxu0 %v540_v12  ;;  %v546_v35 = vld [vmem:[#allocation5 + $0x88] sm:$0xff]  ;;  %v545_v37 = vld [vmem:[#allocation5 + $0x80] sm:$0xff]  ;;  %v734_v38 = vld [vmem:[#allocation5 + $0x178] sm:$0xff] }
  0x7d   : > { %1672 = vmatprep.subr.mxu1 %v558_v13  ;;  %1712 = vmatpush3.msra.mxu0 %v540_v12  ;;  %v1526_v39 = vld [vmem:[%s2398_s2] ss:$0 sm:$0xff]  ;;  %v733_v49 = vld [vmem:[#allocation5 + $0x170] sm:$0xff]  ;;  %v732_v51 = vld [vmem:[#allocation5 + $0x168] sm:$0xff] }
  0x7e   : > { %1673 = vmatpush3.msra.mxu1 %v558_v13  ;;  %1713 = vmatprep.subr.mxu0 %v539_v14  ;;  %v731_v52 = vld [vmem:[#allocation5 + $0x160] sm:$0xff]  ;;  %v730_v53 = vld [vmem:[#allocation5 + $0x158] sm:$0xff]  ;;  %v729_v54 = vld [vmem:[#allocation5 + $0x150] sm:$0xff] }
  0x7f   : > { %1674 = vmatprep.subr.mxu1 %v557_v15  ;;  %1714 = vmatpush3.msra.mxu0 %v539_v14  ;;  %v728_v55 = vld [vmem:[#allocation5 + $0x148] sm:$0xff]  ;;  %v727_v56 = vld [vmem:[#allocation5 + $0x140] sm:$0xff]  ;;  %v726_v57 = vld [vmem:[#allocation5 + $0x138] sm:$0xff] }
  0x80   : > { %1675 = vmatpush3.msra.mxu1 %v557_v15  ;;  %1715 = vmatprep.subr.mxu0 %v538_v16  ;;  %v725_v58 = vld [vmem:[#allocation5 + $0x130] sm:$0xff]  ;;  %v724_v59 = vld [vmem:[#allocation5 + $0x128] sm:$0xff]  ;;  %v723_v60 = vld [vmem:[#allocation5 + $0x120] sm:$0xff]  ;;  %v830_v15 = vstv %s827_s24 }
  0x81   : > { %1676 = vmatprep.subr.mxu1 %v556_v17  ;;  %1716 = vmatpush3.msra.mxu0 %v538_v16  ;;  %v722_v61 = vld [vmem:[#allocation5 + $0x118] sm:$0xff]  ;;  %v721_v62 = vld [vmem:[#allocation5 + $0x110] sm:$0xff]  ;;  %v720_v63 = vld [vmem:[#allocation5 + $0x108] sm:$0xff] }
  0x82   : > { %1677 = vmatpush3.msra.mxu1 %v556_v17  ;;  %1717 = vmatprep.subr.mxu0 %v537_v18  ;;  %v719_v0 = vld [vmem:[#allocation5 + $0x100] sm:$0xff]  ;;  %v842_v1 = vld [vmem:[#allocation7 + $0x38] sm:$0xff]  ;;  %v841_v2 = vld [vmem:[#allocation7 + $0x30] sm:$0xff] }
  0x83   : > { %1678 = vmatprep.subr.mxu1 %v555_v19  ;;  %1718 = vmatpush3.msra.mxu0 %v537_v18  ;;  %v840_v3 = vld [vmem:[#allocation7 + $0x28] sm:$0xff]  ;;  %v839_v4 = vld [vmem:[#allocation7 + $0x20] sm:$0xff]  ;;  %v838_v5 = vld [vmem:[#allocation7 + $0x18] sm:$0xff] }
  0x84   : > { %1679 = vmatpush3.msra.mxu1 %v555_v19  ;;  %1719 = vmatprep.subr.mxu0 %v536_v20  ;;  %v1529_v12 = vld [vmem:[%s2400_s4] ss:$0 sm:$0xff] }
  0x85   : > { %1680 = vmatprep.subr.mxu1 %v554_v21  ;;  %1720 = vmatpush3.msra.mxu0 %v536_v20 }
  0x86   : > { %1681 = vmatpush3.msra.mxu1 %v554_v21  ;;  %1721 = vmatprep.subr.mxu0 %v535_v22 }
  0x87   : > { %1682 = vmatprep.subr.mxu1 %v553_v23  ;;  %1722 = vmatpush3.msra.mxu0 %v535_v22 }
  0x88   : > { %1683 = vmatpush3.msra.mxu1 %v553_v23  ;;  %1723 = vmatprep.subr.mxu0 %v534_v24 }
  0x89   : > { %1684 = vmatprep.subr.mxu1 %v552_v25  ;;  %1724 = vmatpush3.msra.mxu0 %v534_v24 }
  0x8a   : > { %1685 = vmatpush3.msra.mxu1 %v552_v25  ;;  %1725 = vmatprep.subr.mxu0 %v533_v26 }
  0x8b   : > { %1686 = vmatprep.subr.mxu1 %v551_v27  ;;  %1726 = vmatpush3.msra.mxu0 %v533_v26 }
  0x8c   : > { %1687 = vmatpush3.msra.mxu1 %v551_v27  ;;  %1727 = vmatprep.subr.mxu0 %v532_v28  ;;  %v837_v27 = vld [vmem:[#allocation7 + $0x10] sm:$0xff] }
  0x8d   : > { %1688 = vmatprep.subr.mxu1 %v550_v29  ;;  %1728 = vmatpush3.msra.mxu0 %v532_v28  ;;  %v836_v28 = vld [vmem:[#allocation7 + $0x8] sm:$0xff] }
  0x8e   : > { %1689 = vmatpush3.msra.mxu1 %v550_v29  ;;  %1729 = vmatprep.subr.mxu0 %v531_v32  ;;  %v835_v29 = vld [vmem:[#allocation7] sm:$0xff] }
  0x8f   : > { %1690 = vmatprep.subr.mxu1 %v549_v30  ;;  %1730 = vmatpush3.msra.mxu0 %v531_v32 }
  0x90   : > { %1691 = vmatpush3.msra.mxu1 %v549_v30  ;;  %1731 = vmatprep.subr.mxu0 %v530_v34 }
  0x91   : > { %1692 = vmatprep.subr.mxu1 %v548_v31  ;;  %1732 = vmatpush3.msra.mxu0 %v530_v34 }
  0x92   : > { %1693 = vmatpush3.msra.mxu1 %v548_v31  ;;  %1733 = vmatprep.subr.mxu0 %v529_v36  ;;  %v1009_v31 = vld [vmem:[#allocation7 + $0x58] sm:$0xff] }
  0x93   : > { %1694 = vmatprep.subr.mxu1 %v547_v33  ;;  %1734 = vmatpush3.msra.mxu0 %v529_v36  ;;  %v1006_v36 = vld [vmem:[#allocation7 + $0x40] sm:$0xff] }
  0x94   : > { %1695 = vmatpush3.msra.mxu1 %v547_v33  ;;  %1773 = vmatprep.subr.mxu0 %v842_v1  ;;  %v1008_v33 = vld [vmem:[#allocation7 + $0x50] sm:$0xff] }
  0x95   : > { %1696 = vmatprep.subr.mxu1 %v546_v35 }
  0x96   : > { %1697 = vmatpush3.msra.mxu1 %v546_v35  ;;  %v1007_v35 = vld [vmem:[#allocation7 + $0x48] sm:$0xff] }
  0x97   : > { %1698 = vmatprep.subr.mxu1 %v545_v37 }
  0x98   : > { %1699 = vmatpush3.msra.mxu1 %v545_v37  ;;  %v1118_v37 = vld [vmem:[#allocation8 + $0x38] sm:$0xff] }
  0x99   : > { %1738 = vmatprep.subr.mxu1 %v734_v38 }
 0x139   : > { %v1667_v40 = vpop.f32.mrf.mxu1 }
 0x13a   : > { %v526_v41 = vadd.f32 %v1667_v40, %v1526_v39  ;;  %v1125_v40 = vld [vmem:[#allocation8 + $0x70] sm:$0xff] }
 0x13b   : > { %v520_v42 = vpop.f32.mrf.mxu1 }
 0x13c   : > { %v521_v43 = vadd.f32 %v1526_v39, %v520_v42  ;;  %v565_v44 = vrot.slane %v526_v41, 1  ;;  %v737_v47 = vrot.slane %v526_v41, 2  ;;  %v1117_v39 = vld [vmem:[#allocation8 + $0x30] sm:$0xff]  ;;  %v1124_v42 = vld [vmem:[#allocation8 + $0x68] sm:$0xff] }
 0x13e   : > { %v564_v45 = vrot.slane %v521_v43, 1  ;;  %v736_v46 = vrot.slane %v521_v43, 2  ;;  %1735 = vmatprep.mubr.f32.mxu0 %v521_v43  ;;  %v1115_v43 = vld [vmem:[#allocation8 + $0x20] sm:$0xff] }
 0x13f   : > { %1736 = vmatmul.mubr.f32.vlgmr.msra.gmra.mxu0 %v526_v41  ;;  %v1116_v41 = vld [vmem:[#allocation8 + $0x28] sm:$0xff] }
 0x140   : > { %v566_v48 = vsel %vm563_vm1, %v564_v45, %v565_v44  ;;  %v738_v50 = vsel %vm735_vm2, %v736_v46, %v737_v47  ;;  %1774 = vmatpush3.msra.mxu0 %v842_v1  ;;  %v1114_v45 = vld [vmem:[#allocation8 + $0x18] sm:$0xff] }
 0x141   : > { %1700 = vmatprep.mubr.f32.mxu1 %v566_v48  ;;  %1775 = vmatprep.subr.mxu0 %v841_v2  ;;  %v1122_v46 = vld [vmem:[#allocation8 + $0x58] sm:$0xff]  ;;  %v1121_v48 = vld [vmem:[#allocation8 + $0x50] sm:$0xff] }
 0x142   : > { %1701 = vmatmul.mubr.f32.vlgmr.msra.gmra.mxu1 %v565_v44  ;;  %1776 = vmatpush3.msra.mxu0 %v841_v2  ;;  %v1123_v44 = vld [vmem:[#allocation8 + $0x60] sm:$0xff] }
 0x143   : > { %1739 = vmatpush3.msra.mxu1 %v734_v38  ;;  %1770 = vmatprep.mubr.f32.mxu1 %v738_v50  ;;  %v1126_v38 = vld [vmem:[#allocation8 + $0x78] sm:$0xff]  ;;  %v1120_v50 = vld [vmem:[#allocation8 + $0x48] sm:$0xff] }
 0x144   : > { %1740 = vmatprep.subr.mxu1 %v733_v49  ;;  %1777 = vmatprep.subr.mxu0 %v840_v3 }
 0x145   : > { %1741 = vmatpush3.msra.mxu1 %v733_v49  ;;  %1778 = vmatpush3.msra.mxu0 %v840_v3  ;;  %v1112_v49 = vld [vmem:[#allocation8 + $0x8] sm:$0xff] }
 0x146   : > { %1742 = vmatprep.subr.mxu1 %v732_v51  ;;  %1779 = vmatprep.subr.mxu0 %v839_v4 }
 0x147   : > { %1743 = vmatpush3.msra.mxu1 %v732_v51  ;;  %1780 = vmatpush3.msra.mxu0 %v839_v4  ;;  %v1111_v51 = vld [vmem:[#allocation8] sm:$0xff] }
 0x148   : > { %1744 = vmatprep.subr.mxu1 %v731_v52  ;;  %1784 = vmatprep.subr.mxu0 %v838_v5 }
 0x149   : > { %1745 = vmatpush3.msra.mxu1 %v731_v52  ;;  %v1119_v52 = vld [vmem:[#allocation8 + $0x40] sm:$0xff] }
 0x14a   : > { %1746 = vmatprep.subr.mxu1 %v730_v53 }
 0x14b   : > { %1747 = vmatpush3.msra.mxu1 %v730_v53  ;;  %v1298_v53 = vld [vmem:[#allocation8 + $0xb8] sm:$0xff] }
 0x14c   : > { %1748 = vmatprep.subr.mxu1 %v729_v54 }
 0x14d   : > { %1749 = vmatpush3.msra.mxu1 %v729_v54 }
 0x14e   : > { %1750 = vmatprep.subr.mxu1 %v728_v55 }
 0x14f   : > { %1751 = vmatpush3.msra.mxu1 %v728_v55 }
 0x150   : > { %1752 = vmatprep.subr.mxu1 %v727_v56 }
 0x151   : > { %1753 = vmatpush3.msra.mxu1 %v727_v56 }
 0x152   : > { %1754 = vmatprep.subr.mxu1 %v726_v57 }
 0x153   : > { %1755 = vmatpush3.msra.mxu1 %v726_v57 }
 0x154   : > { %1756 = vmatprep.subr.mxu1 %v725_v58 }
 0x155   : > { %1757 = vmatpush3.msra.mxu1 %v725_v58 }
 0x156   : > { %1758 = vmatprep.subr.mxu1 %v724_v59 }
 0x157   : > { %1759 = vmatpush3.msra.mxu1 %v724_v59 }
 0x158   : > { %1760 = vmatprep.subr.mxu1 %v723_v60 }
 0x159   : > { %1761 = vmatpush3.msra.mxu1 %v723_v60  ;;  %v1536_v60 = vld [vmem:[%s2402_s6] ss:$0 sm:$0xff] }
 0x15a   : > { %1762 = vmatprep.subr.mxu1 %v722_v61 }
 0x15b   : > { %1763 = vmatpush3.msra.mxu1 %v722_v61 }
 0x15c   : > { %1764 = vmatprep.subr.mxu1 %v721_v62 }
 0x15d   : > { %1765 = vmatpush3.msra.mxu1 %v721_v62 }
 0x15e   : > { %1766 = vmatprep.subr.mxu1 %v720_v63 }
 0x15f   : > { %1767 = vmatpush3.msra.mxu1 %v720_v63  ;;  %v1106_v63 = vstv %s1537_s27 }
 0x160   : > { %1768 = vmatprep.subr.mxu1 %v719_v0 }
 0x161   : > { %1769 = vmatpush3.msra.mxu1 %v719_v0 }
 0x162   : > { %1771 = vmatmul.mubr.f32.vlgmr.msra.gmra.mxu1 %v737_v47  ;;  %1825 = vmatprep.subr.mxu1 %v1118_v37  ;;  %v1113_v47 = vld [vmem:[#allocation8 + $0x10] sm:$0xff] }
 0x163   : > { %1826 = vmatpush3.msra.mxu1 %v1118_v37 }
 0x164   : > { %1827 = vmatprep.subr.mxu1 %v1117_v39 }
 0x165   : > { %1828 = vmatpush3.msra.mxu1 %v1117_v39 }
 0x166   : > { %1829 = vmatprep.subr.mxu1 %v1116_v41 }
 0x167   : > { %1830 = vmatpush3.msra.mxu1 %v1116_v41 }
 0x168   : > { %1831 = vmatprep.subr.mxu1 %v1115_v43 }
 0x169   : > { %1832 = vmatpush3.msra.mxu1 %v1115_v43 }
 0x16a   : > { %1833 = vmatprep.subr.mxu1 %v1114_v45 }
 0x16b   : > { %1834 = vmatpush3.msra.mxu1 %v1114_v45 }
 0x16c   : > { %1835 = vmatprep.subr.mxu1 %v1113_v47 }
 0x16d   : > { %1836 = vmatpush3.msra.mxu1 %v1113_v47 }
 0x16e   : > { %1837 = vmatprep.subr.mxu1 %v1112_v49 }
 0x16f   : > { %1838 = vmatpush3.msra.mxu1 %v1112_v49 }
 0x170   : > { %1839 = vmatprep.subr.mxu1 %v1111_v51 }
 0x171   : > { %1840 = vmatpush3.msra.mxu1 %v1111_v51 }
 0x1ff   : > { %v1737_v7 = vpop.f32.mrf.mxu0 }
 0x201   : > { %v710_v10 = vpop.f32.mrf.mxu0 }
 0x202   : > { %v1702_v6 = vpop.f32.mrf.mxu1 }
 0x203   : > { %v716_v9 = vadd.f32 %v1737_v7, %v1702_v6 }
 0x204   : > { %v635_v8 = vpop.f32.mrf.mxu1 }
 0x205   : > { %v711_v13 = vadd.f32 %v710_v10, %v635_v8 }
 0x222   : > { %v1772_v11 = vpop.f32.mrf.mxu1 }
 0x223   : > { %v817_v14 = vadd.f32 %v1772_v11, %v716_v9 }
 0x224   : > { %v807_v16 = vpop.f32.mrf.mxu1 }
 0x225   : > { %v826_v17 = vadd.f32 %v1529_v12, %v817_v14  ;;  %v816_v18 = vadd.f32 %v807_v16, %v711_v13  ;;  %v1297_v13 = vld [vmem:[#allocation8 + $0xb0] sm:$0xff]  ;;  %v1295_v16 = vld [vmem:[#allocation8 + $0xa0] sm:$0xff] }
 0x227   : > { %vm829_vm3 = vcmp.ge.f32.partialorder %v826_v17, 0.0  ;;  %v832_v19 = vmul.f32 %v830_v15, %v826_v17  ;;  %v825_v20 = vadd.f32 %v1529_v12, %v816_v18  ;;  %v1293_v18 = vld [vmem:[#allocation8 + $0x90] sm:$0xff] }
 0x229   : > { %v834_v21 = vsel %vm829_vm3, %v826_v17, %v832_v19  ;;  %vm828_vm4 = vcmp.ge.f32.partialorder %v825_v20, 0.0  ;;  %v831_v22 = vmul.f32 %v830_v15, %v825_v20  ;;  %v1296_v15 = vld [vmem:[#allocation8 + $0xa8] sm:$0xff]  ;;  %v1294_v17 = vld [vmem:[#allocation8 + $0x98] sm:$0xff] }
 0x22a   : > { %v846_v25 = vrot.slane %v834_v21, 1  ;;  %v1011_v32 = vrot.slane %v834_v21, 2  ;;  %v1292_v19 = vld [vmem:[#allocation8 + $0x88] sm:$0xff] }
 0x22b   : > { %v833_v23 = vsel %vm828_vm4, %v825_v20, %v831_v22  ;;  %v1291_v20 = vld [vmem:[#allocation8 + $0x80] sm:$0xff] }
 0x22c   : > { %v845_v24 = vrot.slane %v833_v23, 1  ;;  %v1010_v30 = vrot.slane %v833_v23, 2 }
 0x22e   : > { %v847_v26 = vsel %vm563_vm1, %v845_v24, %v846_v25  ;;  %v1012_v34 = vsel %vm735_vm2, %v1010_v30, %v1011_v32  ;;  %v1395_v30 = vstv %s1545_s19 }
 0x22f   : > { %1781 = vmatprep.mubr.msk.f32.mxu0 %vm447_vm0, %v847_v26 }
 0x230   : > { %1782 = vmatmul.mubr.msk.f32.vlgmr.msra.gmra.mxu0 %vm447_vm0, %v846_v25 }
 0x231   : > { %1785 = vmatpush3.msra.mxu0 %v838_v5  ;;  %1792 = vmatprep.mubr.msk.f32.mxu0 %vm447_vm0, %v833_v23 }
 0x232   : > { %1786 = vmatprep.subr.mxu0 %v837_v27 }
 0x233   : > { %1787 = vmatpush3.msra.mxu0 %v837_v27  ;;  %v1544_v27 = vld [vmem:[%s2404_s8] ss:$0 sm:$0xff] }
 0x234   : > { %1788 = vmatprep.subr.mxu0 %v836_v28 }
 0x235   : > { %1789 = vmatpush3.msra.mxu0 %v836_v28 }
 0x236   : > { %1790 = vmatprep.subr.mxu0 %v835_v29 }
 0x237   : > { %1791 = vmatpush3.msra.mxu0 %v835_v29 }
 0x238   : > { %1793 = vmatmul.mubr.msk.f32.vlgmr.msra.gmra.mxu0 %vm447_vm0, %v834_v21  ;;  %1795 = vmatprep.subr.mxu0 %v1009_v31 }
 0x239   : > { %1796 = vmatpush3.msra.mxu0 %v1009_v31  ;;  %1803 = vmatprep.mubr.msk.f32.mxu0 %vm447_vm0, %v1012_v34 }
 0x23a   : > { %1797 = vmatprep.subr.mxu0 %v1008_v33 }
 0x23b   : > { %1798 = vmatpush3.msra.mxu0 %v1008_v33 }
 0x23c   : > { %1799 = vmatprep.subr.mxu0 %v1007_v35 }
 0x23d   : > { %1800 = vmatpush3.msra.mxu0 %v1007_v35 }
 0x23e   : > { %1801 = vmatprep.subr.mxu0 %v1006_v36 }
 0x23f   : > { %1802 = vmatpush3.msra.mxu0 %v1006_v36 }
 0x240   : > { %1804 = vmatmul.mubr.msk.f32.vlgmr.msra.gmra.mxu0 %vm447_vm0, %v1011_v32  ;;  %1806 = vmatprep.subr.mxu0 %v1126_v38 }
 0x241   : > { %1807 = vmatpush3.msra.mxu0 %v1126_v38 }
 0x242   : > { %1808 = vmatprep.subr.mxu0 %v1125_v40 }
 0x243   : > { %1809 = vmatpush3.msra.mxu0 %v1125_v40 }
 0x244   : > { %1810 = vmatprep.subr.mxu0 %v1124_v42 }
 0x245   : > { %1811 = vmatpush3.msra.mxu0 %v1124_v42 }
 0x246   : > { %1812 = vmatprep.subr.mxu0 %v1123_v44 }
 0x247   : > { %1813 = vmatpush3.msra.mxu0 %v1123_v44 }
 0x248   : > { %1814 = vmatprep.subr.mxu0 %v1122_v46 }
 0x249   : > { %1815 = vmatpush3.msra.mxu0 %v1122_v46 }
 0x24a   : > { %1816 = vmatprep.subr.mxu0 %v1121_v48 }
 0x24b   : > { %1817 = vmatpush3.msra.mxu0 %v1121_v48 }
 0x24c   : > { %1818 = vmatprep.subr.mxu0 %v1120_v50 }
 0x24d   : > { %1819 = vmatpush3.msra.mxu0 %v1120_v50 }
 0x24e   : > { %1820 = vmatprep.subr.mxu0 %v1119_v52 }
 0x24f   : > { %1821 = vmatpush3.msra.mxu0 %v1119_v52 }
 0x250   : > { %1844 = vmatprep.subr.mxu0 %v1298_v53 }
 0x2f0   : > { %v1783_v54 = vpop.f32.mrf.mxu0 }
 0x2f2   : > { %v918_v55 = vpop.f32.mrf.mxu0 }
 0x2f8   : > { %v1794_v56 = vpop.f32.mrf.mxu0 }
 0x2f9   : > { %v1003_v58 = vadd.f32 %v1794_v56, %v1783_v54 }
 0x2fa   : > { %v997_v57 = vpop.f32.mrf.mxu0 }
 0x2fb   : > { %v998_v61 = vadd.f32 %v997_v57, %v918_v55 }
 0x300   : > { %v1805_v59 = vpop.f32.mrf.mxu0 }
 0x301   : > { %v1093_v62 = vadd.f32 %v1805_v59, %v1003_v58 }
 0x302   : > { %v1083_v0 = vpop.f32.mrf.mxu0 }
 0x303   : > { %v1102_v1 = vadd.f32 %v1536_v60, %v1093_v62  ;;  %v1092_v2 = vadd.f32 %v1083_v0, %v998_v61 }
 0x305   : > { %vm1105_vm5 = vcmp.ge.f32.partialorder %v1102_v1, 0.0  ;;  %v1108_v3 = vmul.f32 %v1106_v63, %v1102_v1  ;;  %v1101_v4 = vadd.f32 %v1536_v60, %v1092_v2 }
 0x307   : > { %v1107_v5 = vmul.f32 %v1106_v63, %v1101_v4  ;;  %vm1104_vm6 = vcmp.ge.f32.partialorder %v1101_v4, 0.0  ;;  %v1110_v6 = vsel %vm1105_vm5, %v1102_v1, %v1108_v3 }
 0x308   : > { %v1130_v10 = vrot.slane %v1110_v6, 1  ;;  %v1300_v12 = vrot.slane %v1110_v6, 2 }
 0x309   : > { %v1109_v7 = vsel %vm1104_vm6, %v1101_v4, %v1107_v5 }
 0x30a   : > { %v1129_v8 = vrot.slane %v1109_v7, 1  ;;  %1841 = vmatprep.mubr.msk.f32.mxu1 %vm1132_vm7, %v1109_v7  ;;  %v1299_v9 = vrot.slane %v1109_v7, 2 }
 0x30b   : > { %1842 = vmatmul.mubr.msk.f32.vlgmr.msra.gmra.mxu1 %vm1132_vm7, %v1110_v6 }
 0x30c   : > { %v1131_v11 = vsel %vm563_vm1, %v1129_v8, %v1130_v10  ;;  %v1301_v14 = vsel %vm735_vm2, %v1299_v9, %v1300_v12 }
 0x30d   : > { %1822 = vmatprep.mubr.msk.f32.mxu0 %vm1132_vm7, %v1131_v11 }
 0x30e   : > { %1823 = vmatmul.mubr.msk.f32.vlgmr.msra.gmra.mxu0 %vm1132_vm7, %v1130_v10 }
 0x30f   : > { %1845 = vmatpush3.msra.mxu0 %v1298_v53  ;;  %1860 = vmatprep.mubr.msk.f32.mxu0 %vm1132_vm7, %v1301_v14 }
 0x310   : > { %1846 = vmatprep.subr.mxu0 %v1297_v13 }
 0x311   : > { %1847 = vmatpush3.msra.mxu0 %v1297_v13 }
 0x312   : > { %1848 = vmatprep.subr.mxu0 %v1296_v15 }
 0x313   : > { %1849 = vmatpush3.msra.mxu0 %v1296_v15 }
 0x314   : > { %1850 = vmatprep.subr.mxu0 %v1295_v16 }
 0x315   : > { %1851 = vmatpush3.msra.mxu0 %v1295_v16 }
 0x316   : > { %1852 = vmatprep.subr.mxu0 %v1294_v17 }
 0x317   : > { %1853 = vmatpush3.msra.mxu0 %v1294_v17 }
 0x318   : > { %1854 = vmatprep.subr.mxu0 %v1293_v18 }
 0x319   : > { %1855 = vmatpush3.msra.mxu0 %v1293_v18 }
 0x31a   : > { %1856 = vmatprep.subr.mxu0 %v1292_v19 }
 0x31b   : > { %1857 = vmatpush3.msra.mxu0 %v1292_v19 }
 0x31c   : > { %1858 = vmatprep.subr.mxu0 %v1291_v20 }
 0x31d   : > { %1859 = vmatpush3.msra.mxu0 %v1291_v20 }
 0x31e   : > { %1861 = vmatmul.mubr.msk.f32.vlgmr.msra.gmra.mxu0 %vm1132_vm7, %v1300_v12 }
 0x3cb   : > { %v1843_v22 = vpop.f32.mrf.mxu1 }
 0x3cd   : > { %v1282_v25 = vpop.f32.mrf.mxu1 }
 0x3ce   : > { %v1824_v21 = vpop.f32.mrf.mxu0 }
 0x3cf   : > { %v1288_v24 = vadd.f32 %v1843_v22, %v1824_v21 }
 0x3d0   : > { %v1203_v23 = vpop.f32.mrf.mxu0 }
 0x3d1   : > { %v1283_v28 = vadd.f32 %v1282_v25, %v1203_v23 }
 0x3de   : > { %v1862_v26 = vpop.f32.mrf.mxu0 }
 0x3df   : > { %v1382_v29 = vadd.f32 %v1862_v26, %v1288_v24 }
 0x3e0   : > { %v1372_v31 = vpop.f32.mrf.mxu0 }
 0x3e1   : > { %v1391_v32 = vadd.f32 %v1544_v27, %v1382_v29  ;;  %v1381_v33 = vadd.f32 %v1372_v31, %v1283_v28 }
 0x3e3   : > { %vm1394_vm8 = vcmp.ge.f32.partialorder %v1391_v32, 0.0  ;;  %v1397_v34 = vmul.f32 %v1395_v30, %v1391_v32  ;;  %v1390_v35 = vadd.f32 %v1544_v27, %v1381_v33 }
 0x3e5   : > { %v1399_v36 = vsel %vm1394_vm8, %v1391_v32, %v1397_v34  ;;  %vm1393_vm10 = vcmp.ge.f32.partialorder %v1390_v35, 0.0  ;;  %v1396_v37 = vmul.f32 %v1395_v30, %v1390_v35 }
 0x3e6   : > { %v1401_v38 = vsel %vm1400_vm9, %v1399_v36, -inf }
 0x3e7   : > { %v1398_v39 = vsel %vm1393_vm10, %v1390_v35, %v1396_v37 }
 0x3e8   : > { %v1402_v40 = vmax.f32 %v1398_v39, %v1401_v38 }
 0x3ea   : > { %v1403_v41 = vrot.slane %v1402_v40, 4 }
 0x3ec   : > { %v1404_v42 = vmax.f32 %v1402_v40, %v1403_v41 }
 0x3ee   : > { %v1405_v43 = vrot.slane %v1404_v42, 2 }
 0x3f0   : > { %v1406_v44 = vmax.f32 %v1404_v42, %v1405_v43 }
 0x3f2   : > { %v1407_v45 = vrot.slane %v1406_v44, 1 }
 0x3f4   : > { %v1408_v46 = vmax.f32 %v1406_v44, %v1407_v45 }
 0x3f6   : > { %1409 = vst [vmem:[%s433_s25] sm:$0x1] %v1408_v46 }
 0x3f7 PF: > { %p23_p11 = scmp.ge.s32.totalorder %s2263_s26, 4   ;;  %s2426_s13 = smov %s2104_s14 }
 0x3f8   : > { %s2427_s14 = smov %s2108_s15  ;;  %s2428_s15 = smov %s2272_s22 }
 0x3f9   : > { %s2429_s16 = smov %s2263_s26  ;;  %25 = sbr.rel (!%p23_p11) target bundleno = 6 (0x6), region = 117 }
 0x3fe   :  { %1427 = vsyncpa [#allocation3], 1 }
 0x3ff   :  { %1429 = vsyncpa [#allocation3 + $0x1], 1 }
 0x400   :  { %1430 = vsyncpa [#allocation6], 1 }
 0x401   :  { %1431 = vsyncpa [#allocation9], 1 }
 0x402   :  { %1432 = vsyncpa [#allocation4], 1 }
 0x403   :  { %1434 = vsyncpa [#allocation4 + $0x1], 1 }

// kernel: deepdtaf_forward.7
= control target key start
LH: loop header
LB: loop body
LE: loop exit
PB: predicated region body
PF: predicated region fallthrough
CT: control target
= control target key end

     0   :  { %s1163_s0 = inlined_call_operand.vmem [shape: f32[2,128], index: 0, kind: input, shape index: {}]   ;;  %s1164_s1 = inlined_call_operand.vmem [shape: f32[2,128], index: 1, kind: input, shape index: {}]   ;;  %s1165_s2 = inlined_call_operand.vmem [shape: f32[2,128], index: 2, kind: input, shape index: {}]   ;;  %s1166_s3 = inlined_call_operand.vmem [shape: f32[384,128], index: 3, kind: input, shape index: {}]   ;;  %s1167_s4 = inlined_call_operand.vmem [shape: f32[1,128], index: 4, kind: input, shape index: {}]   ;;  %s1168_s5 = inlined_call_operand.vmem [shape: f32[128,64], index: 5, kind: input, shape index: {}]   ;;  %s1169_s6 = inlined_call_operand.vmem [shape: f32[1,64], index: 6, kind: input, shape index: {}]   ;;  %s1170_s7 = inlined_call_operand.vmem [shape: f32[64,1], index: 7, kind: input, shape index: {}]   ;;  %s1171_s8 = inlined_call_operand.<no memory space> [shape: f32[1,1], index: 8, kind: input, shape index: {}]   ;;  %s1172_s9 = inlined_call_operand.vmem [shape: f32[3], index: 9, kind: input, shape index: {}]   ;;  %s1173_s10 = inlined_call_operand.vmem [shape: f32[2,1], index: 10, kind: output, shape index: {}]  }
   0x1   :  { %v15_v0 = vstv %s1171_s8 }
   0x2   :  { %16 = vst [vmem:[#allocation2] sm:$0x1] %v15_v0 }
   0x3   :  { %17 = vsyncpa [#allocation4], 0  ;;  %s42_s17 = sshll.u32 %s1172_s9, 4  ;;  %s43_s17 = int_to_ptr.vmem [resolvable:$true] %s42_s17 }
   0x4   :  { %s769_s18 = scalar_lea.vmem %s43_s17, 16  ;;  %p774_p1 = scmp.lt.s32.totalorder %s43_s17, %s43_s17 }
   0x5   :  { %p770_p0 = scmp.ne.s32.totalorder %s43_s17, %s769_s18  ;;  %p775_p2 = scmp.lt.s32.totalorder %s769_s18, %s769_s18 }
   0x7   :  { %p776_p3 = por %p775_p2, %p774_p1 }
   0x9   :  { %p777_p4 = pnand %p776_p3, %p770_p0 }
   0xb   :  { %780 = shalt.err (!%p777_p4)
}
   0xc   :  { %s783_s19 = smov [#allocation3]  }
   0xd   :  { %45 = dma.vmem_to_smem %s43_s17, 16, %s783_s19, [#allocation4]  }
   0xe   :  { %781 = dma.done.wait [#allocation4], 16  }
   0xf   :  { %782 = vsyncadd [#allocation4], 4294967280 }
  0x10   :  { %49 = sfence }
  0x11   :  { %v83_v1 = vld [vmem:[%s1166_s3 + $0xf8] sm:$0xff]  ;;  %v784_v3 = vmov 0.0   ;;  %v82_v4 = vld [vmem:[%s1166_s3 + $0xf0] sm:$0xff]  ;;  %v81_v6 = vld [vmem:[%s1166_s3 + $0xe8] sm:$0xff]  ;;  %vm785_vm0 = vmmov 0   ;;  %s321_s20 = sld [smem:[#allocation3]] }
  0x12   :  { %v66_v2 = vld [vmem:[%s1166_s3 + $0x78] sm:$0xff]  ;;  %607 = vmatprep.subr.mxu0 %v784_v3  ;;  %642 = vmatprep.subr.mxu1 %v784_v3  ;;  %v65_v5 = vld [vmem:[%s1166_s3 + $0x70] sm:$0xff]  ;;  %v64_v7 = vld [vmem:[%s1166_s3 + $0x68] sm:$0xff]  ;;  %s526_s25 = sld [smem:[#allocation3 + $0x1]]  ;;  %vm438_vm3 = vcmask 523264   ;;  %vm517_vm5 = vcmask 1024  }
  0x13   :  { %608 = vmatpush3.msra.mxu0 %v83_v1  ;;  %643 = vmatpush3.msra.mxu1 %v66_v2  ;;  %v80_v8 = vld [vmem:[%s1166_s3 + $0xe0] sm:$0xff]  ;;  %v79_v10 = vld [vmem:[%s1166_s3 + $0xd8] sm:$0xff]  ;;  %v78_v12 = vld [vmem:[%s1166_s3 + $0xd0] sm:$0xff]  ;;  %s529_s28 = sld [smem:[#allocation3 + $0x2]] }
  0x14   :  { %609 = vmatprep.subr.mxu0 %v784_v3  ;;  %644 = vmatprep.subr.mxu1 %v784_v3  ;;  %v63_v9 = vld [vmem:[%s1166_s3 + $0x60] sm:$0xff]  ;;  %v62_v11 = vld [vmem:[%s1166_s3 + $0x58] sm:$0xff]  ;;  %v61_v13 = vld [vmem:[%s1166_s3 + $0x50] sm:$0xff] }
  0x15   :  { %610 = vmatpush3.msra.mxu0 %v82_v4  ;;  %645 = vmatpush3.msra.mxu1 %v65_v5  ;;  %v77_v14 = vld [vmem:[%s1166_s3 + $0xc8] sm:$0xff]  ;;  %v76_v16 = vld [vmem:[%s1166_s3 + $0xc0] sm:$0xff]  ;;  %v75_v18 = vld [vmem:[%s1166_s3 + $0xb8] sm:$0xff] }
  0x16   :  { %611 = vmatprep.subr.mxu0 %v784_v3  ;;  %646 = vmatprep.subr.mxu1 %v784_v3  ;;  %v60_v15 = vld [vmem:[%s1166_s3 + $0x48] sm:$0xff]  ;;  %v59_v17 = vld [vmem:[%s1166_s3 + $0x40] sm:$0xff]  ;;  %v58_v19 = vld [vmem:[%s1166_s3 + $0x38] sm:$0xff] }
  0x17   :  { %612 = vmatpush3.msra.mxu0 %v81_v6  ;;  %647 = vmatpush3.msra.mxu1 %v64_v7  ;;  %v74_v20 = vld [vmem:[%s1166_s3 + $0xb0] sm:$0xff]  ;;  %v73_v22 = vld [vmem:[%s1166_s3 + $0xa8] sm:$0xff]  ;;  %v72_v24 = vld [vmem:[%s1166_s3 + $0xa0] sm:$0xff] }
  0x18   :  { %613 = vmatprep.subr.mxu0 %v784_v3  ;;  %648 = vmatprep.subr.mxu1 %v784_v3  ;;  %v57_v21 = vld [vmem:[%s1166_s3 + $0x30] sm:$0xff]  ;;  %v56_v23 = vld [vmem:[%s1166_s3 + $0x28] sm:$0xff]  ;;  %v55_v25 = vld [vmem:[%s1166_s3 + $0x20] sm:$0xff] }
  0x19   :  { %614 = vmatpush3.msra.mxu0 %v80_v8  ;;  %649 = vmatpush3.msra.mxu1 %v63_v9  ;;  %v71_v26 = vld [vmem:[%s1166_s3 + $0x98] sm:$0xff]  ;;  %v70_v28 = vld [vmem:[%s1166_s3 + $0x90] sm:$0xff]  ;;  %v69_v30 = vld [vmem:[%s1166_s3 + $0x88] sm:$0xff] }
  0x1a   :  { %615 = vmatprep.subr.mxu0 %v784_v3  ;;  %650 = vmatprep.subr.mxu1 %v784_v3  ;;  %v54_v27 = vld [vmem:[%s1166_s3 + $0x18] sm:$0xff]  ;;  %v53_v29 = vld [vmem:[%s1166_s3 + $0x10] sm:$0xff]  ;;  %v52_v31 = vld [vmem:[%s1166_s3 + $0x8] sm:$0xff] }
  0x1b   :  { %616 = vmatpush3.msra.mxu0 %v79_v10  ;;  %651 = vmatpush3.msra.mxu1 %v62_v11  ;;  %v68_v32 = vld [vmem:[%s1166_s3 + $0x80] sm:$0xff]  ;;  %v240_v36 = vld [vmem:[%s1166_s3 + $0x178] sm:$0xff]  ;;  %v239_v37 = vld [vmem:[%s1166_s3 + $0x170] sm:$0xff] }
  0x1c   :  { %617 = vmatprep.subr.mxu0 %v784_v3  ;;  %652 = vmatprep.subr.mxu1 %v784_v3  ;;  %v67_v33 = vld [vmem:[%s1164_s1] sm:$0x3]  ;;  %v238_v38 = vld [vmem:[%s1166_s3 + $0x168] sm:$0xff]  ;;  %v236_v40 = vld [vmem:[%s1166_s3 + $0x158] sm:$0xff] }
  0x1d   :  { %618 = vmatpush3.msra.mxu0 %v78_v12  ;;  %653 = vmatpush3.msra.mxu1 %v61_v13  ;;  %v51_v34 = vld [vmem:[%s1166_s3] sm:$0xff]  ;;  %v235_v41 = vld [vmem:[%s1166_s3 + $0x150] sm:$0xff]  ;;  %v234_v42 = vld [vmem:[%s1166_s3 + $0x148] sm:$0xff] }
  0x1e   :  { %619 = vmatprep.subr.mxu0 %v784_v3  ;;  %654 = vmatprep.subr.mxu1 %v784_v3  ;;  %v50_v35 = vld [vmem:[%s1163_s0] sm:$0x3]  ;;  %v232_v44 = vld [vmem:[%s1166_s3 + $0x138] sm:$0xff]  ;;  %v231_v45 = vld [vmem:[%s1166_s3 + $0x130] sm:$0xff] }
  0x1f   :  { %620 = vmatpush3.msra.mxu0 %v77_v14  ;;  %655 = vmatpush3.msra.mxu1 %v60_v15  ;;  %v237_v39 = vld [vmem:[%s1166_s3 + $0x160] sm:$0xff]  ;;  %v230_v46 = vld [vmem:[%s1166_s3 + $0x128] sm:$0xff]  ;;  %v228_v48 = vld [vmem:[%s1166_s3 + $0x118] sm:$0xff] }
  0x20   :  { %621 = vmatprep.subr.mxu0 %v784_v3  ;;  %656 = vmatprep.subr.mxu1 %v784_v3  ;;  %v233_v43 = vld [vmem:[%s1166_s3 + $0x140] sm:$0xff]  ;;  %v227_v49 = vld [vmem:[%s1166_s3 + $0x110] sm:$0xff]  ;;  %v226_v50 = vld [vmem:[%s1166_s3 + $0x108] sm:$0xff] }
  0x21   :  { %622 = vmatpush3.msra.mxu0 %v76_v16  ;;  %657 = vmatpush3.msra.mxu1 %v59_v17  ;;  %v229_v47 = vld [vmem:[%s1166_s3 + $0x120] sm:$0xff]  ;;  %v340_v53 = vld [vmem:[%s1168_s5 + $0x78] sm:$0xff]  ;;  %v339_v54 = vld [vmem:[%s1168_s5 + $0x70] sm:$0xff] }
  0x22   :  { %623 = vmatprep.subr.mxu0 %v784_v3  ;;  %658 = vmatprep.subr.mxu1 %v784_v3  ;;  %v225_v51 = vld [vmem:[%s1166_s3 + $0x100] sm:$0xff]  ;;  %v338_v55 = vld [vmem:[%s1168_s5 + $0x68] sm:$0xff]  ;;  %v336_v57 = vld [vmem:[%s1168_s5 + $0x58] sm:$0xff] }
  0x23   :  { %624 = vmatpush3.msra.mxu0 %v75_v18  ;;  %659 = vmatpush3.msra.mxu1 %v58_v19  ;;  %v224_v52 = vld [vmem:[%s1165_s2] sm:$0x3]  ;;  %v335_v58 = vld [vmem:[%s1168_s5 + $0x50] sm:$0xff]  ;;  %v334_v59 = vld [vmem:[%s1168_s5 + $0x48] sm:$0xff]  ;;  %v322_v19 = vstv %s321_s20 }
  0x24   :  { %625 = vmatprep.subr.mxu0 %v784_v3  ;;  %660 = vmatprep.subr.mxu1 %v784_v3  ;;  %v337_v56 = vld [vmem:[%s1168_s5 + $0x60] sm:$0xff]  ;;  %v332_v61 = vld [vmem:[%s1168_s5 + $0x38] sm:$0xff]  ;;  %v331_v62 = vld [vmem:[%s1168_s5 + $0x30] sm:$0xff] }
  0x25   :  { %626 = vmatpush3.msra.mxu0 %v74_v20  ;;  %661 = vmatpush3.msra.mxu1 %v57_v21  ;;  %v333_v60 = vld [vmem:[%s1168_s5 + $0x40] sm:$0xff]  ;;  %v330_v63 = vld [vmem:[%s1168_s5 + $0x28] sm:$0xff]  ;;  %v328_v1 = vld [vmem:[%s1168_s5 + $0x18] sm:$0xff] }
  0x26   :  { %627 = vmatprep.subr.mxu0 %v784_v3  ;;  %662 = vmatprep.subr.mxu1 %v784_v3  ;;  %v329_v0 = vld [vmem:[%s1168_s5 + $0x20] sm:$0xff]  ;;  %v327_v2 = vld [vmem:[%s1168_s5 + $0x10] sm:$0xff]  ;;  %v326_v4 = vld [vmem:[%s1168_s5 + $0x8] sm:$0xff] }
  0x27   :  { %628 = vmatpush3.msra.mxu0 %v73_v22  ;;  %663 = vmatpush3.msra.mxu1 %v56_v23  ;;  %v325_v5 = vld [vmem:[%s1168_s5] sm:$0xff]  ;;  %v430_v6 = vld [vmem:[%s1170_s7 + $0x38] sm:$0xff]  ;;  %v429_v7 = vld [vmem:[%s1170_s7 + $0x30] sm:$0xff] }
  0x28   :  { %629 = vmatprep.subr.mxu0 %v784_v3  ;;  %664 = vmatprep.subr.mxu1 %v784_v3  ;;  %v428_v8 = vld [vmem:[%s1170_s7 + $0x28] sm:$0xff]  ;;  %v427_v9 = vld [vmem:[%s1170_s7 + $0x20] sm:$0xff]  ;;  %v426_v10 = vld [vmem:[%s1170_s7 + $0x18] sm:$0xff] }
  0x29   :  { %630 = vmatpush3.msra.mxu0 %v72_v24  ;;  %665 = vmatpush3.msra.mxu1 %v55_v25  ;;  %v524_v17 = vld [vmem:[%s1167_s4] ss:$0 sm:$0xff]  ;;  %v425_v24 = vld [vmem:[%s1170_s7 + $0x10] sm:$0xff]  ;;  %v424_v25 = vld [vmem:[%s1170_s7 + $0x8] sm:$0xff] }
  0x2a   :  { %631 = vmatprep.subr.mxu0 %v784_v3  ;;  %666 = vmatprep.subr.mxu1 %v784_v3 }
  0x2b   :  { %632 = vmatpush3.msra.mxu0 %v71_v26  ;;  %667 = vmatpush3.msra.mxu1 %v54_v27  ;;  %v423_v26 = vld [vmem:[%s1170_s7] sm:$0xff] }
  0x2c   :  { %633 = vmatprep.subr.mxu0 %v784_v3  ;;  %668 = vmatprep.subr.mxu1 %v784_v3  ;;  %v525_v27 = vld [vmem:[%s1169_s6] ss:$0 sm:$0xff] }
  0x2d   :  { %634 = vmatpush3.msra.mxu0 %v70_v28  ;;  %669 = vmatpush3.msra.mxu1 %v53_v29  ;;  %v420_v29 = vstv %s526_s25 }
  0x2e   :  { %635 = vmatprep.subr.mxu0 %v784_v3  ;;  %670 = vmatprep.subr.mxu1 %v784_v3 }
  0x2f   :  { %636 = vmatpush3.msra.mxu0 %v69_v30  ;;  %671 = vmatpush3.msra.mxu1 %v52_v31 }
  0x30   :  { %637 = vmatprep.subr.mxu0 %v784_v3  ;;  %639 = vmatprep.mubr.msk.f32.mxu0 %vm785_vm0, %v784_v3 }
  0x31   :  { %638 = vmatpush3.msra.mxu0 %v68_v32  ;;  %672 = vmatprep.subr.mxu1 %v784_v3 }
  0x32   :  { %640 = vmatmul.mubr.f32.vlgmr.msra.gmra.mxu0 %v67_v33  ;;  %673 = vmatpush3.msra.mxu1 %v51_v34 }
  0x33   :  { %674 = vmatprep.mubr.msk.f32.mxu1 %vm785_vm0, %v784_v3  ;;  %677 = vmatprep.subr.mxu0 %v784_v3 }
  0x34   :  { %675 = vmatmul.mubr.f32.vlgmr.msra.gmra.mxu1 %v50_v35  ;;  %678 = vmatpush3.msra.mxu0 %v240_v36  ;;  %v514_v35 = vstv %s529_s28 }
  0x35   :  { %679 = vmatprep.subr.mxu0 %v784_v3  ;;  %709 = vmatprep.mubr.msk.f32.mxu0 %vm785_vm0, %v784_v3 }
  0x36   :  { %680 = vmatpush3.msra.mxu0 %v239_v37  ;;  %712 = vmatprep.subr.mxu1 %v784_v3 }
  0x37   :  { %681 = vmatprep.subr.mxu0 %v784_v3  ;;  %744 = vmatprep.mubr.msk.f32.mxu1 %vm785_vm0, %v784_v3 }
  0x38   :  { %682 = vmatpush3.msra.mxu0 %v238_v38  ;;  %713 = vmatpush3.msra.mxu1 %v340_v53 }
  0x39   :  { %683 = vmatprep.subr.mxu0 %v784_v3  ;;  %714 = vmatprep.subr.mxu1 %v784_v3 }
  0x3a   :  { %684 = vmatpush3.msra.mxu0 %v237_v39  ;;  %715 = vmatpush3.msra.mxu1 %v339_v54 }
  0x3b   :  { %685 = vmatprep.subr.mxu0 %v784_v3  ;;  %716 = vmatprep.subr.mxu1 %v784_v3 }
  0x3c   :  { %686 = vmatpush3.msra.mxu0 %v236_v40  ;;  %717 = vmatpush3.msra.mxu1 %v338_v55 }
  0x3d   :  { %687 = vmatprep.subr.mxu0 %v784_v3  ;;  %718 = vmatprep.subr.mxu1 %v784_v3 }
  0x3e   :  { %688 = vmatpush3.msra.mxu0 %v235_v41  ;;  %719 = vmatpush3.msra.mxu1 %v337_v56 }
  0x3f   :  { %689 = vmatprep.subr.mxu0 %v784_v3  ;;  %720 = vmatprep.subr.mxu1 %v784_v3 }
  0x40   :  { %690 = vmatpush3.msra.mxu0 %v234_v42  ;;  %721 = vmatpush3.msra.mxu1 %v336_v57 }
  0x41   :  { %691 = vmatprep.subr.mxu0 %v784_v3  ;;  %722 = vmatprep.subr.mxu1 %v784_v3 }
  0x42   :  { %692 = vmatpush3.msra.mxu0 %v233_v43  ;;  %723 = vmatpush3.msra.mxu1 %v335_v58 }
  0x43   :  { %693 = vmatprep.subr.mxu0 %v784_v3  ;;  %724 = vmatprep.subr.mxu1 %v784_v3 }
  0x44   :  { %694 = vmatpush3.msra.mxu0 %v232_v44  ;;  %725 = vmatpush3.msra.mxu1 %v334_v59 }
  0x45   :  { %695 = vmatprep.subr.mxu0 %v784_v3  ;;  %726 = vmatprep.subr.mxu1 %v784_v3 }
  0x46   :  { %696 = vmatpush3.msra.mxu0 %v231_v45  ;;  %727 = vmatpush3.msra.mxu1 %v333_v60 }
  0x47   :  { %697 = vmatprep.subr.mxu0 %v784_v3  ;;  %728 = vmatprep.subr.mxu1 %v784_v3 }
  0x48   :  { %698 = vmatpush3.msra.mxu0 %v230_v46  ;;  %729 = vmatpush3.msra.mxu1 %v332_v61 }
  0x49   :  { %699 = vmatprep.subr.mxu0 %v784_v3  ;;  %730 = vmatprep.subr.mxu1 %v784_v3 }
  0x4a   :  { %700 = vmatpush3.msra.mxu0 %v229_v47  ;;  %731 = vmatpush3.msra.mxu1 %v331_v62 }
  0x4b   :  { %701 = vmatprep.subr.mxu0 %v784_v3  ;;  %732 = vmatprep.subr.mxu1 %v784_v3 }
  0x4c   :  { %702 = vmatpush3.msra.mxu0 %v228_v48  ;;  %733 = vmatpush3.msra.mxu1 %v330_v63 }
  0x4d   :  { %703 = vmatprep.subr.mxu0 %v784_v3  ;;  %734 = vmatprep.subr.mxu1 %v784_v3 }
  0x4e   :  { %704 = vmatpush3.msra.mxu0 %v227_v49  ;;  %735 = vmatpush3.msra.mxu1 %v329_v0 }
  0x4f   :  { %705 = vmatprep.subr.mxu0 %v784_v3  ;;  %736 = vmatprep.subr.mxu1 %v784_v3 }
  0x50   :  { %706 = vmatpush3.msra.mxu0 %v226_v50  ;;  %737 = vmatpush3.msra.mxu1 %v328_v1 }
  0x51   :  { %707 = vmatprep.subr.mxu0 %v784_v3  ;;  %738 = vmatprep.subr.mxu1 %v784_v3 }
  0x52   :  { %708 = vmatpush3.msra.mxu0 %v225_v51  ;;  %739 = vmatpush3.msra.mxu1 %v327_v2 }
  0x53   :  { %710 = vmatmul.mubr.f32.vlgmr.msra.gmra.mxu0 %v224_v52  ;;  %747 = vmatprep.subr.mxu0 %v784_v3 }
  0x54   :  { %763 = vmatprep.mubr.msk.f32.mxu0 %vm785_vm0, %v784_v3  ;;  %740 = vmatprep.subr.mxu1 %v784_v3 }
  0x55   :  { %741 = vmatpush3.msra.mxu1 %v326_v4  ;;  %748 = vmatpush3.msra.mxu0 %v430_v6 }
  0x56   :  { %742 = vmatprep.subr.mxu1 %v784_v3  ;;  %749 = vmatprep.subr.mxu0 %v784_v3 }
  0x57   :  { %743 = vmatpush3.msra.mxu1 %v325_v5  ;;  %750 = vmatpush3.msra.mxu0 %v429_v7 }
  0x58   :  { %751 = vmatprep.subr.mxu0 %v784_v3 }
  0x59   :  { %752 = vmatpush3.msra.mxu0 %v428_v8 }
  0x5a   :  { %753 = vmatprep.subr.mxu0 %v784_v3 }
  0x5b   :  { %754 = vmatpush3.msra.mxu0 %v427_v9 }
  0x5c   :  { %755 = vmatprep.subr.mxu0 %v784_v3 }
  0x5d   :  { %756 = vmatpush3.msra.mxu0 %v426_v10 }
  0x5e   :  { %757 = vmatprep.subr.mxu0 %v784_v3 }
  0x5f   :  { %758 = vmatpush3.msra.mxu0 %v425_v24 }
  0x60   :  { %759 = vmatprep.subr.mxu0 %v784_v3 }
  0x61   :  { %760 = vmatpush3.msra.mxu0 %v424_v25 }
  0x62   :  { %761 = vmatprep.subr.mxu0 %v784_v3  ;;  %v527_v3 = vld [vmem:[#allocation2] ss:$0 sm:$0xff] }
  0x63   :  { %762 = vmatpush3.msra.mxu0 %v423_v26 }
  0xf2   :  { %v150_v11 = vpop.f32.mrf.mxu0 }
  0xf4   :  { %v220_v12 = vpop.f32.mrf.mxu1  ;;  %v641_v13 = vpop.f32.mrf.mxu0 }
  0xf5   :  { %v221_v15 = vadd.f32 %v220_v12, %v150_v11 }
  0xf6   :  { %v676_v14 = vpop.f32.mrf.mxu1 }
 0x113   :  { %v307_v16 = vpop.f32.mrf.mxu0 }
 0x114   :  { %v311_v18 = vadd.f32 %v307_v16, %v221_v15 }
 0x115   :  { %v711_v20 = vpop.f32.mrf.mxu0 }
 0x116   :  { %v319_v21 = vadd.f32 %v524_v17, %v311_v18 }
 0x118   :  { %v323_v22 = vmul.f32 %v322_v19, %v319_v21  ;;  %vm320_vm1 = vcmp.ge.f32.partialorder %v319_v21, 0.0 }
 0x11a   :  { %v324_v23 = vsel %vm320_vm1, %v319_v21, %v323_v22 }
 0x11b   :  { %745 = vmatmul.mubr.f32.vlgmr.msra.gmra.mxu1 %v324_v23 }
 0x1db   :  { %v414_v28 = vpop.f32.mrf.mxu1 }
 0x1dc   :  { %v415_v30 = vadd.f32 %v525_v27, %v414_v28 }
 0x1dd   :  { %v746_v31 = vpop.f32.mrf.mxu1 }
 0x1de   :  { %vm418_vm2 = vcmp.ge.f32.partialorder %v415_v30, 0.0  ;;  %v421_v32 = vmul.f32 %v420_v29, %v415_v30 }
 0x1e0   :  { %v422_v33 = vsel %vm418_vm2, %v415_v30, %v421_v32 }
 0x1e1   :  { %764 = vmatmul.mubr.msk.f32.vlgmr.msra.gmra.mxu0 %vm438_vm3, %v422_v33 }
 0x2a1   :  { %v508_v34 = vpop.f32.mrf.mxu0 }
 0x2a2   :  { %v509_v36 = vadd.f32 %v527_v3, %v508_v34 }
 0x2a3   :  { %v765_v37 = vpop.f32.mrf.mxu0 }
 0x2a4   :  { %vm512_vm4 = vcmp.ge.f32.partialorder %v509_v36, 0.0  ;;  %v515_v38 = vmul.f32 %v514_v35, %v509_v36 }
 0x2a6   :  { %v516_v39 = vsel %vm512_vm4, %v509_v36, %v515_v38 }
 0x2a7   :  { %518 = vst.msk [vmem:[%s1173_s10] sm:$0x3] %vm517_vm5, %v516_v39 }
 0x2a8   :  { %523 = vsyncpa [#allocation4], 1 }

// kernel: deepdtaf_forward.6
= control target key start
LH: loop header
LB: loop body
LE: loop exit
PB: predicated region body
PF: predicated region fallthrough
CT: control target
= control target key end

     0   :  { %s4449_s0 = inlined_call_operand.vmem [shape: f32[2,16,128], index: 0, kind: input, shape index: {}]   ;;  %s4450_s1 = inlined_call_operand.vmem [shape: f32[128,8], index: 1, kind: input, shape index: {}]   ;;  %s4451_s2 = inlined_call_operand.vmem [shape: f32[1,8], index: 2, kind: input, shape index: {}]   ;;  %s4452_s3 = inlined_call_operand.vmem [shape: f32[72,32], index: 3, kind: input, shape index: {}]   ;;  %s4453_s4 = inlined_call_operand.vmem [shape: f32[1,32], index: 4, kind: input, shape index: {}]   ;;  %s4454_s5 = inlined_call_operand.vmem [shape: f32[1,32], index: 5, kind: input, shape index: {}]   ;;  %s4455_s6 = inlined_call_operand.vmem [shape: f32[32,16], index: 6, kind: input, shape index: {}]   ;;  %s4456_s7 = inlined_call_operand.vmem [shape: f32[1,16], index: 7, kind: input, shape index: {}]   ;;  %s4457_s8 = inlined_call_operand.vmem [shape: f32[144,64], index: 8, kind: input, shape index: {}]   ;;  %s4458_s9 = inlined_call_operand.vmem [shape: f32[1,64], index: 9, kind: input, shape index: {}]   ;;  %s4459_s10 = inlined_call_operand.vmem [shape: f32[1,64], index: 10, kind: input, shape index: {}]   ;;  %s4460_s11 = inlined_call_operand.vmem [shape: f32[64,32], index: 11, kind: input, shape index: {}]   ;;  %s4461_s12 = inlined_call_operand.vmem [shape: f32[1,32], index: 12, kind: input, shape index: {}]   ;;  %s4462_s13 = inlined_call_operand.vmem [shape: f32[288,128], index: 13, kind: input, shape index: {}]   ;;  %s4463_s14 = inlined_call_operand.vmem [shape: f32[1,128], index: 14, kind: input, shape index: {}]   ;;  %s4464_s15 = inlined_call_operand.vmem [shape: f32[1,128], index: 15, kind: input, shape index: {}]   ;;  %s4465_s16 = inlined_call_operand.vmem [shape: f32[6], index: 16, kind: input, shape index: {}]   ;;  %s4466_s17 = inlined_call_operand.vmem [shape: f32[2,1,128], index: 17, kind: output, shape index: {}]  }
   0x1   :  { %4468 = sst [smem:[#allocation6_spill]] %s4449_s0 }
   0x2   :  { %4469 = sst [smem:[#allocation7_spill]] %s4450_s1 }
   0x3   :  { %22 = vsyncpa [#allocation4], 0  ;;  %s4022_s24 = smov 0  }
   0x4 LB: > { %s4028_s25 = sadd.s32 4294967295, %s3928_s24   ;;  %p3378_p0 = scmp.ge.s32.totalorder %s3928_s24, 1  ;;  %s3928_s24 = sphi %s4022_s24, %s28_s24  }
   0x5   : > { %p421_p1 = scmp.lt.s32.totalorder %s3928_s24, 3  ;;  %s479_s28 = sshll.u32 %s4465_s16, 4  ;;  %s480_s28 = int_to_ptr.vmem [resolvable:$true] %s479_s28 }
   0x6   : > { %p3891_p3 = scmp.eq.s32.totalorder %s4028_s25, 0  ;;  %s3903_s0 = scalar_lea.vmem %s480_s28, 16 }
   0x7   : > { %p4035_p2 = pnand %p3378_p0, %p421_p1  ;;  %p3904_p6 = scmp.ne.s32.totalorder %s480_s28, %s3903_s0 }
   0x8   : > { %p3911_p10 = scmp.lt.s32.totalorder %s480_s28, %s480_s28  ;;  %p3912_p11 = scmp.lt.s32.totalorder %s3903_s0, %s3903_s0 }
   0x9   : > { %p3887_p4 = pneg %p4035_p2 }
   0xa   : > { %p3913_p12 = por %p3912_p11, %p3911_p10 }
   0xb   : > { %p3888_p5 = pnand %p3891_p3, %p3887_p4 }
   0xd   : > { %p3905_p7 = pneg %p3888_p5 }
   0xf   : > { %p3906_p8 = pnand %p3905_p7, %p3904_p6 }
  0x11   : > { %p3907_p9 = pneg %p3906_p8 }
  0x13   : > { %p3914_p13 = pnand %p3913_p12, %p3907_p9 }
  0x15   : > { %3917 = shalt.err (!%p3914_p13)
}
  0x16   : > { %s3930_s30 = smov [#allocation3]   ;;  %500 = sbr.rel (%p4035_p2) target bundleno = 1414 (0x586), region = 88 }
  0x17   : > { %3890 = dma.vmem_to_smem (!%p3888_p5), %s480_s28, 16, %s3930_s30, [#allocation4]  }
  0x1b   : > { %3923 = dma.done.wait (%p3891_p3), [#allocation4], 16  }
  0x1c   : > { %3925 = vsyncadd (%p3891_p3), [#allocation4], 4294967280 }
  0x1d   : > { %506 = sfence }
  0x1e   : > { %s4471_s1 = sld [smem:[#allocation7_spill]]  ;;  %p551_p0 = scmp.lt.s32.totalorder %s4028_s25, 1  ;;  %vm561_vm0 = vcmask 261120   ;;  %v3931_v2 = vmov 0.0   ;;  %v678_v19 = vld [vmem:[%s4452_s3] sm:$0xff]  ;;  %v681_v20 = vld [vmem:[%s4452_s3 + $0x8] sm:$0xff] }
  0x1f   : > { %562 = vst.msk [vmem:[#allocation2] sm:$0xff] %vm561_vm0, %v3931_v2  ;;  %564 = vst.msk [vmem:[#allocation2 + $0x10] sm:$0xff] %vm561_vm0, %v3931_v2  ;;  %s4472_s30 = sld [smem:[#allocation6_spill]]  ;;  %vm673_vm1 = vcmask 64512   ;;  %3651 = vmatprep.subr.mxu1 %v678_v19  ;;  %v846_v22 = vld [vmem:[%s4452_s3 + $0x10] sm:$0xff]  ;;  %v932_v33 = vld [vmem:[%s4452_s3 + $0x18] sm:$0xff] }
  0x20   : > { %565 = vst.msk [vmem:[#allocation2 + $0x18] sm:$0xff] %vm561_vm0, %v3931_v2  ;;  %563 = vst.msk [vmem:[#allocation2 + $0x8] sm:$0xff] %vm561_vm0, %v3931_v2  ;;  %s4474_s25 = smov (!%p551_p0, %s4028_s25), 1  ;;  %3652 = vmatpush3.msra.mxu1 %v678_v19  ;;  %v3386_v23 = vld [vmem:[%s4451_s2] ss:$0 sm:$0xff]  ;;  %v1104_v42 = vld [vmem:[%s4452_s3 + $0x28] sm:$0xff] }
  0x21   : > { %s3459_s28 = sshll.u32 %s4474_s25, 4  ;;  %3656 = vmatprep.subr.mxu1 %v846_v22  ;;  %v1018_v39 = vld [vmem:[%s4452_s3 + $0x20] sm:$0xff]  ;;  %v1190_v44 = vld [vmem:[%s4452_s3 + $0x30] sm:$0xff]  ;;  %v1276_v47 = vld [vmem:[%s4452_s3 + $0x38] sm:$0xff]  ;;  %s3407_s19 = sld [smem:[#allocation3 + $0x2]]  ;;  %vm1572_vm7 = vcmask 130048  }
  0x22   : > { %v1362_v50 = vld [vmem:[%s4452_s3 + $0x40] sm:$0xff]  ;;  %v1476_v53 = vld [vmem:[%s4455_s6 + $0x18] sm:$0xff]  ;;  %v1475_v54 = vld [vmem:[%s4455_s6 + $0x10] sm:$0xff]  ;;  %vm2396_vm10 = vcmask 523264   ;;  %s3433_s22 = sld [smem:[#allocation3 + $0x5]]  ;;  %s558_s0 = scalar_lea.vmem %s4466_s17, %s4474_s25 }
  0x23   : > { %v1474_v55 = vld [vmem:[%s4455_s6 + $0x8] sm:$0xff]  ;;  %v1473_v56 = vld [vmem:[%s4455_s6] sm:$0xff] }
  0x24   : > { %v583_v0 = vld [vmem:[%s4471_s1 + $0x78] sm:$0xff]  ;;  %v582_v1 = vld [vmem:[%s4471_s1 + $0x70] sm:$0xff]  ;;  %v581_v3 = vld [vmem:[%s4471_s1 + $0x68] sm:$0xff] }
  0x25   : > { %3611 = vmatprep.subr.mxu0 %v583_v0  ;;  %v580_v4 = vld [vmem:[%s4471_s1 + $0x60] sm:$0xff]  ;;  %s4074_s18 = scalar_lea.vmem %s4472_s30, %s3459_s28  ;;  %v579_v5 = vld [vmem:[%s4471_s1 + $0x58] sm:$0xff]  ;;  %v578_v7 = vld [vmem:[%s4471_s1 + $0x50] sm:$0xff]  ;;  %s3385_s28 = sld [smem:[#allocation3 + $0x1]] }
  0x26   : > { %3612 = vmatpush3.msra.mxu0 %v583_v0  ;;  %v559_v6 = vld [vmem:[%s4074_s18] sm:$0xff]  ;;  %v577_v8 = vld [vmem:[%s4471_s1 + $0x48] sm:$0xff]  ;;  %v575_v10 = vld [vmem:[%s4471_s1 + $0x38] sm:$0xff] }
  0x27   : > { %3613 = vmatprep.subr.mxu0 %v582_v1  ;;  %3643 = vmatprep.mubr.f32.mxu0 %v559_v6  ;;  %v576_v9 = vld [vmem:[%s4471_s1 + $0x40] sm:$0xff]  ;;  %v574_v11 = vld [vmem:[%s4471_s1 + $0x30] sm:$0xff]  ;;  %v573_v12 = vld [vmem:[%s4471_s1 + $0x28] sm:$0xff] }
  0x28   : > { %3614 = vmatpush3.msra.mxu0 %v582_v1  ;;  %v572_v13 = vld [vmem:[%s4471_s1 + $0x20] sm:$0xff]  ;;  %v571_v14 = vld [vmem:[%s4471_s1 + $0x18] sm:$0xff]  ;;  %v570_v15 = vld [vmem:[%s4471_s1 + $0x10] sm:$0xff] }
  0x29   : > { %3615 = vmatprep.subr.mxu0 %v581_v3  ;;  %v569_v16 = vld [vmem:[%s4471_s1 + $0x8] sm:$0xff]  ;;  %v568_v17 = vld [vmem:[%s4471_s1] sm:$0xff]  ;;  %v4166_v52 = vld [vmem:[#allocation2 + $0x18] sm:$0xff] }
  0x2a   : > { %3616 = vmatpush3.msra.mxu0 %v581_v3  ;;  %v560_v18 = vld [vmem:[%s4074_s18 + $0x8] sm:$0xff]  ;;  %v4120_v21 = vld [vmem:[#allocation2] sm:$0xff]  ;;  %s566_s18 = sld [smem:[#allocation3]] }
  0x2b   : > { %3617 = vmatprep.subr.mxu0 %v580_v4  ;;  %3653 = vmatprep.mubr.msk.f32.mxu1 %vm673_vm1, %v4120_v21 }
  0x2c   : > { %3618 = vmatpush3.msra.mxu0 %v580_v4 }
  0x2d   : > { %3619 = vmatprep.subr.mxu0 %v579_v5 }
  0x2e   : > { %3620 = vmatpush3.msra.mxu0 %v579_v5 }
  0x2f   : > { %3621 = vmatprep.subr.mxu0 %v578_v7 }
  0x30   : > { %3622 = vmatpush3.msra.mxu0 %v578_v7  ;;  %v668_v25 = vstv %s566_s18  ;;  %s3432_s18 = sld [smem:[#allocation3 + $0x4]] }
  0x31   : > { %3623 = vmatprep.subr.mxu0 %v577_v8 }
  0x32   : > { %3624 = vmatpush3.msra.mxu0 %v577_v8 }
  0x33   : > { %3625 = vmatprep.subr.mxu0 %v576_v9 }
  0x34   : > { %3626 = vmatpush3.msra.mxu0 %v576_v9 }
  0x35   : > { %3627 = vmatprep.subr.mxu0 %v575_v10 }
  0x36   : > { %3628 = vmatpush3.msra.mxu0 %v575_v10 }
  0x37   : > { %3629 = vmatprep.subr.mxu0 %v574_v11 }
  0x38   : > { %3630 = vmatpush3.msra.mxu0 %v574_v11 }
  0x39   : > { %3631 = vmatprep.subr.mxu0 %v573_v12 }
  0x3a   : > { %3632 = vmatpush3.msra.mxu0 %v573_v12 }
  0x3b   : > { %3633 = vmatprep.subr.mxu0 %v572_v13 }
  0x3c   : > { %3634 = vmatpush3.msra.mxu0 %v572_v13 }
  0x3d   : > { %3635 = vmatprep.subr.mxu0 %v571_v14 }
  0x3e   : > { %3636 = vmatpush3.msra.mxu0 %v571_v14 }
  0x3f   : > { %3637 = vmatprep.subr.mxu0 %v570_v15 }
  0x40   : > { %3638 = vmatpush3.msra.mxu0 %v570_v15 }
  0x41   : > { %3639 = vmatprep.subr.mxu0 %v569_v16 }
  0x42   : > { %3640 = vmatpush3.msra.mxu0 %v569_v16 }
  0x43   : > { %3641 = vmatprep.subr.mxu0 %v568_v17 }
  0x44   : > { %3642 = vmatpush3.msra.mxu0 %v568_v17 }
  0x45   : > { %3644 = vmatmul.mubr.f32.vlgmr.msra.gmra.mxu0 %v560_v18  ;;  %3646 = vmatprep.subr.mxu0 %v681_v20 }
  0x46   : > { %3647 = vmatpush3.msra.mxu0 %v681_v20 }
  0x47   : > { %3691 = vmatprep.subr.mxu0 %v1476_v53 }
 0x105   : > { %v3645_v24 = vpop.f32.mrf.mxu0 }
 0x106   : > { %v663_v26 = vadd.f32 %v3645_v24, %v3386_v23  ;;  %v3405_v24 = vld [vmem:[%s4453_s4] ss:$0 sm:$0xff] }
 0x107   : > { %v657_v27 = vpop.f32.mrf.mxu0 }
 0x108   : > { %vm667_vm2 = vcmp.ge.f32.partialorder %v663_v26, 0.0  ;;  %v670_v28 = vmul.f32 %v668_v25, %v663_v26  ;;  %v658_v29 = vadd.f32 %v3386_v23, %v657_v27  ;;  %v3406_v27 = vld [vmem:[%s4454_s5] ss:$0 sm:$0xff] }
 0x10a   : > { %v672_v30 = vsel %vm667_vm2, %v663_v26, %v670_v28  ;;  %vm666_vm3 = vcmp.ge.f32.partialorder %v658_v29, 0.0  ;;  %v669_v31 = vmul.f32 %v668_v25, %v658_v29 }
 0x10b   : > { %675 = vst.msk [vmem:[#allocation2 + $0x10] sm:$0xff] %vm673_vm1, %v672_v30 }
 0x10c   : > { %v671_v32 = vsel %vm666_vm3, %v658_v29, %v669_v31 }
 0x10d   : > { %674 = vst.msk [vmem:[#allocation2 + $0x8] sm:$0xff] %vm673_vm1, %v671_v32  ;;  %v1466_v32 = vstv %s3385_s28  ;;  %s3408_s28 = sld [smem:[#allocation3 + $0x3]] }
 0x112   : > { %v1017_v43 = vld [vmem:[#allocation2 + $0x10] sm:$0xff] }
 0x113   : > { %v1103_v46 = vld [vmem:[#allocation2 + $0x11] sm:$0xff] }
 0x114   : > { %v679_v34 = vld [vmem:[#allocation2 + $0x4] sm:$0xff]  ;;  %v680_v36 = vld [vmem:[#allocation2 + $0xc] sm:$0xff]  ;;  %v1275_v51 = vld [vmem:[#allocation2 + $0x14] sm:$0xff] }
 0x115   : > { %v677_v35 = vld [vmem:[#allocation2 + $0x8] sm:$0xff]  ;;  %3648 = vmatprep.mubr.msk.f32.mxu0 %vm673_vm1, %v679_v34  ;;  %v1189_v49 = vld [vmem:[#allocation2 + $0x12] sm:$0xff] }
 0x116   : > { %3654 = vmatmul.mubr.msk.f32.vlgmr.msra.gmra.mxu1 %vm673_vm1, %v677_v35  ;;  %v844_v37 = vld [vmem:[#allocation2 + $0x6] sm:$0xff]  ;;  %3649 = vmatmul.mubr.msk.f32.vlgmr.msra.gmra.mxu0 %vm673_vm1, %v680_v36  ;;  %v845_v38 = vld [vmem:[#allocation2 + $0xe] sm:$0xff] }
 0x117   : > { %3657 = vmatpush3.msra.mxu1 %v846_v22  ;;  %3658 = vmatprep.mubr.msk.f32.mxu1 %vm673_vm1, %v844_v37  ;;  %v930_v40 = vld [vmem:[#allocation2 + $0x7] sm:$0xff]  ;;  %v931_v41 = vld [vmem:[#allocation2 + $0xf] sm:$0xff] }
 0x118   : > { %3661 = vmatprep.subr.mxu1 %v932_v33  ;;  %v1102_v45 = vld [vmem:[#allocation2 + $0x9] sm:$0xff]  ;;  %3692 = vmatpush3.msra.mxu0 %v1476_v53 }
 0x119   : > { %v1188_v48 = vld [vmem:[#allocation2 + $0xa] sm:$0xff]  ;;  %3693 = vmatprep.subr.mxu0 %v1475_v54 }
 0x11a   : > { %3659 = vmatmul.mubr.msk.f32.vlgmr.msra.gmra.mxu1 %vm673_vm1, %v845_v38  ;;  %3694 = vmatpush3.msra.mxu0 %v1475_v54 }
 0x11b   : > { %3662 = vmatpush3.msra.mxu1 %v932_v33  ;;  %3663 = vmatprep.mubr.msk.f32.mxu1 %vm673_vm1, %v930_v40  ;;  %v1748_v40 = vld [vmem:[%s4457_s8 + $0x28] sm:$0xff] }
 0x11c   : > { %3666 = vmatprep.subr.mxu1 %v1018_v39  ;;  %3695 = vmatprep.subr.mxu0 %v1474_v55 }
 0x11d   : > { %3696 = vmatpush3.msra.mxu0 %v1474_v55 }
 0x11e   : > { %3664 = vmatmul.mubr.msk.f32.vlgmr.msra.gmra.mxu1 %vm673_vm1, %v931_v41  ;;  %3697 = vmatprep.subr.mxu0 %v1473_v56  ;;  %v1581_v41 = vld [vmem:[%s4457_s8 + $0x10] sm:$0xff] }
 0x11f   : > { %3667 = vmatpush3.msra.mxu1 %v1018_v39  ;;  %3668 = vmatprep.mubr.msk.f32.mxu1 %vm673_vm1, %v677_v35  ;;  %v1582_v39 = vld [vmem:[%s4457_s8 + $0x18] sm:$0xff] }
 0x120   : > { %3671 = vmatprep.subr.mxu1 %v1104_v42  ;;  %3698 = vmatpush3.msra.mxu0 %v1473_v56 }
 0x121   : > { %3716 = vmatprep.subr.mxu0 %v1748_v40 }
 0x122   : > { %3669 = vmatmul.mubr.msk.f32.vlgmr.msra.gmra.mxu1 %vm673_vm1, %v1017_v43 }
 0x123   : > { %3672 = vmatpush3.msra.mxu1 %v1104_v42  ;;  %3673 = vmatprep.mubr.msk.f32.mxu1 %vm673_vm1, %v1102_v45  ;;  %v1747_v42 = vld [vmem:[%s4457_s8 + $0x20] sm:$0xff] }
 0x124   : > { %3676 = vmatprep.subr.mxu1 %v1190_v44  ;;  %v3409_v45 = vld [vmem:[%s4456_s7] ss:$0 sm:$0xff] }
 0x126   : > { %3674 = vmatmul.mubr.msk.f32.vlgmr.msra.gmra.mxu1 %vm673_vm1, %v1103_v46 }
 0x127   : > { %3677 = vmatpush3.msra.mxu1 %v1190_v44  ;;  %3678 = vmatprep.mubr.msk.f32.mxu1 %vm673_vm1, %v1188_v48  ;;  %v1922_v44 = vld [vmem:[%s4457_s8 + $0x48] sm:$0xff] }
 0x128   : > { %3681 = vmatprep.subr.mxu1 %v1276_v47 }
 0x12a   : > { %3679 = vmatmul.mubr.msk.f32.vlgmr.msra.gmra.mxu1 %vm673_vm1, %v1189_v49 }
 0x12b   : > { %3682 = vmatpush3.msra.mxu1 %v1276_v47  ;;  %3683 = vmatprep.mubr.msk.f32.mxu1 %vm673_vm1, %v680_v36  ;;  %v1567_v47 = vstv %s3407_s19 }
 0x12c   : > { %3686 = vmatprep.subr.mxu1 %v1362_v50 }
 0x12e   : > { %3684 = vmatmul.mubr.msk.f32.vlgmr.msra.gmra.mxu1 %vm673_vm1, %v1275_v51 }
 0x12f   : > { %3687 = vmatpush3.msra.mxu1 %v1362_v50  ;;  %3688 = vmatprep.mubr.msk.f32.mxu1 %vm673_vm1, %v1017_v43  ;;  %v1578_v43 = vld [vmem:[%s4457_s8 + $0x8] sm:$0xff] }
 0x130   : > { %3702 = vmatprep.subr.mxu1 %v1582_v39 }
 0x132   : > { %3689 = vmatmul.mubr.msk.f32.vlgmr.msra.gmra.mxu1 %vm673_vm1, %v4166_v52 }
 0x133   : > { %3703 = vmatpush3.msra.mxu1 %v1582_v39 }
 0x134   : > { %3704 = vmatprep.subr.mxu1 %v1581_v41 }
 0x135   : > { %3705 = vmatpush3.msra.mxu1 %v1581_v41 }
 0x136   : > { %3709 = vmatprep.subr.mxu1 %v1578_v43 }
 0x1d6   : > { %v3655_v57 = vpop.f32.mrf.mxu1  ;;  %v3650_v61 = vpop.f32.mrf.mxu0 }
 0x1d7   : > { %v841_v2 = vadd.f32 %v3655_v57, %v3650_v61  ;;  %v1921_v61 = vld [vmem:[%s4457_s8 + $0x40] sm:$0xff] }
 0x1d8   : > { %v835_v58 = vpop.f32.mrf.mxu1  ;;  %v754_v0 = vpop.f32.mrf.mxu0 }
 0x1d9   : > { %v836_v4 = vadd.f32 %v835_v58, %v754_v0  ;;  %v2096_v0 = vld [vmem:[%s4457_s8 + $0x68] sm:$0xff] }
 0x1da   : > { %v3660_v59 = vpop.f32.mrf.mxu1 }
 0x1db   : > { %v929_v6 = vadd.f32 %v3660_v59, %v841_v2 }
 0x1dc   : > { %v919_v60 = vpop.f32.mrf.mxu1 }
 0x1dd   : > { %v928_v8 = vadd.f32 %v919_v60, %v836_v4  ;;  %v1577_v60 = vld [vmem:[%s4457_s8] sm:$0xff] }
 0x1de   : > { %v3665_v62 = vpop.f32.mrf.mxu1  ;;  %v2095_v4 = vld [vmem:[%s4457_s8 + $0x60] sm:$0xff] }
 0x1df   : > { %v1015_v9 = vadd.f32 %v3665_v62, %v929_v6 }
 0x1e0   : > { %v1005_v63 = vpop.f32.mrf.mxu1 }
 0x1e1   : > { %v1014_v11 = vadd.f32 %v1005_v63, %v928_v8  ;;  %v1835_v63 = vld [vmem:[%s4457_s8 + $0x38] sm:$0xff]  ;;  %v2008_v8 = vld [vmem:[%s4457_s8 + $0x50] sm:$0xff] }
 0x1e2   : > { %v3670_v1 = vpop.f32.mrf.mxu1 }
 0x1e3   : > { %v1101_v12 = vadd.f32 %v3670_v1, %v1015_v9  ;;  %v1834_v1 = vld [vmem:[%s4457_s8 + $0x30] sm:$0xff] }
 0x1e4   : > { %v1091_v3 = vpop.f32.mrf.mxu1 }
 0x1e5   : > { %v1100_v14 = vadd.f32 %v1091_v3, %v1014_v11  ;;  %v2183_v11 = vld [vmem:[%s4457_s8 + $0x78] sm:$0xff] }
 0x1e6   : > { %v3675_v5 = vpop.f32.mrf.mxu1 }
 0x1e7   : > { %v1187_v15 = vadd.f32 %v3675_v5, %v1101_v12  ;;  %v2009_v5 = vld [vmem:[%s4457_s8 + $0x58] sm:$0xff]  ;;  %v2270_v12 = vld [vmem:[%s4457_s8 + $0x88] sm:$0xff] }
 0x1e8   : > { %v1177_v7 = vpop.f32.mrf.mxu1 }
 0x1e9   : > { %v1186_v17 = vadd.f32 %v1177_v7, %v1100_v14  ;;  %v2182_v14 = vld [vmem:[%s4457_s8 + $0x70] sm:$0xff] }
 0x1ea   : > { %v3680_v10 = vpop.f32.mrf.mxu1 }
 0x1eb   : > { %v1273_v18 = vadd.f32 %v3680_v10, %v1187_v15  ;;  %v2269_v15 = vld [vmem:[%s4457_s8 + $0x80] sm:$0xff] }
 0x1ec   : > { %v1263_v13 = vpop.f32.mrf.mxu1 }
 0x1ed   : > { %v1272_v20 = vadd.f32 %v1263_v13, %v1186_v17  ;;  %v2388_v17 = vld [vmem:[%s4460_s11 + $0x38] sm:$0xff] }
 0x1ee   : > { %v3685_v16 = vpop.f32.mrf.mxu1 }
 0x1ef   : > { %v1359_v22 = vadd.f32 %v3685_v16, %v1273_v18  ;;  %v2387_v18 = vld [vmem:[%s4460_s11 + $0x30] sm:$0xff] }
 0x1f0   : > { %v1349_v19 = vpop.f32.mrf.mxu1 }
 0x1f1   : > { %v1358_v25 = vadd.f32 %v1349_v19, %v1272_v20  ;;  %v2386_v19 = vld [vmem:[%s4460_s11 + $0x28] sm:$0xff]  ;;  %v2385_v20 = vld [vmem:[%s4460_s11 + $0x20] sm:$0xff] }
 0x1f2   : > { %v3690_v23 = vpop.f32.mrf.mxu1 }
 0x1f3   : > { %v1445_v26 = vadd.f32 %v3690_v23, %v1359_v22  ;;  %v2384_v22 = vld [vmem:[%s4460_s11 + $0x18] sm:$0xff]  ;;  %v2383_v23 = vld [vmem:[%s4460_s11 + $0x10] sm:$0xff] }
 0x1f4   : > { %v1435_v28 = vpop.f32.mrf.mxu1 }
 0x1f5   : > { %v1454_v29 = vmul.f32 %v3405_v24, %v1445_v26  ;;  %v1444_v30 = vadd.f32 %v1435_v28, %v1358_v25  ;;  %v2381_v25 = vld [vmem:[%s4460_s11] sm:$0xff] }
 0x1f7   : > { %v1463_v31 = vadd.f32 %v3406_v27, %v1454_v29  ;;  %v1453_v33 = vmul.f32 %v3405_v24, %v1444_v30  ;;  %v2382_v24 = vld [vmem:[%s4460_s11 + $0x8] sm:$0xff] }
 0x1f9   : > { %v1462_v34 = vadd.f32 %v3406_v27, %v1453_v33  ;;  %v1468_v35 = vmul.f32 %v1466_v32, %v1463_v31  ;;  %vm1465_vm5 = vcmp.ge.f32.partialorder %v1463_v31, 0.0 }
 0x1fb   : > { %vm1464_vm4 = vcmp.ge.f32.partialorder %v1462_v34, 0.0  ;;  %v1467_v36 = vmul.f32 %v1466_v32, %v1462_v34  ;;  %v1470_v38 = vsel %vm1465_vm5, %v1463_v31, %v1468_v35 }
 0x1fd   : > { %v1469_v37 = vsel %vm1464_vm4, %v1462_v34, %v1467_v36 }
 0x1fe   : > { %3699 = vmatprep.mubr.msk.f32.mxu0 %vm561_vm0, %v1469_v37 }
 0x1ff   : > { %3700 = vmatmul.mubr.msk.f32.vlgmr.msra.gmra.mxu0 %vm561_vm0, %v1470_v38 }
 0x200   : > { %3717 = vmatpush3.msra.mxu0 %v1748_v40 }
 0x201   : > { %3718 = vmatprep.subr.mxu0 %v1747_v42 }
 0x202   : > { %3719 = vmatpush3.msra.mxu0 %v1747_v42 }
 0x203   : > { %3730 = vmatprep.subr.mxu0 %v1922_v44 }
 0x2bf   : > { %v3701_v46 = vpop.f32.mrf.mxu0 }
 0x2c0   : > { %v1562_v48 = vadd.f32 %v3701_v46, %v3409_v45 }
 0x2c1   : > { %v1556_v49 = vpop.f32.mrf.mxu0 }
 0x2c2   : > { %vm1566_vm6 = vcmp.ge.f32.partialorder %v1562_v48, 0.0  ;;  %v1569_v50 = vmul.f32 %v1567_v47, %v1562_v48  ;;  %v1557_v51 = vadd.f32 %v3409_v45, %v1556_v49 }
 0x2c4   : > { %v1571_v53 = vsel %vm1566_vm6, %v1562_v48, %v1569_v50  ;;  %vm1565_vm8 = vcmp.ge.f32.partialorder %v1557_v51, 0.0  ;;  %v1568_v54 = vmul.f32 %v1567_v47, %v1557_v51 }
 0x2c5   : > { %1574 = vst.msk [vmem:[#allocation2 + $0x10] sm:$0xff] %vm1572_vm7, %v1571_v53 }
 0x2c6   : > { %v1570_v55 = vsel %vm1565_vm8, %v1557_v51, %v1568_v54 }
 0x2c7   : > { %1573 = vst.msk [vmem:[#allocation2 + $0x8] sm:$0xff] %vm1572_vm7, %v1570_v55 }
 0x2cc   : > { %v1920_v2 = vld [vmem:[#allocation2 + $0x10] sm:$0xff] }
 0x2cd   : > { %v2094_v9 = vld [vmem:[#allocation2 + $0x12] sm:$0xff] }
 0x2ce   : > { %v1579_v56 = vld [vmem:[#allocation2 + $0x4] sm:$0xff]  ;;  %v1580_v58 = vld [vmem:[#allocation2 + $0xc] sm:$0xff]  ;;  %v2181_v16 = vld [vmem:[#allocation2 + $0x14] sm:$0xff] }
 0x2cf   : > { %v1745_v57 = vld [vmem:[#allocation2 + $0x6] sm:$0xff]  ;;  %3706 = vmatprep.mubr.msk.f32.mxu1 %vm1572_vm7, %v1579_v56  ;;  %v1746_v59 = vld [vmem:[#allocation2 + $0xe] sm:$0xff]  ;;  %v3430_v56 = vld [vmem:[%s4458_s9] ss:$0 sm:$0xff] }
 0x2d0   : > { %3720 = vmatprep.mubr.msk.f32.mxu0 %vm1572_vm7, %v1745_v57  ;;  %3707 = vmatmul.mubr.msk.f32.vlgmr.msra.gmra.mxu1 %vm1572_vm7, %v1580_v58  ;;  %v1919_v62 = vld [vmem:[#allocation2 + $0x8] sm:$0xff]  ;;  %v2007_v13 = vld [vmem:[#allocation2 + $0x11] sm:$0xff] }
 0x2d1   : > { %3721 = vmatmul.mubr.msk.f32.vlgmr.msra.gmra.mxu0 %vm1572_vm7, %v1746_v59  ;;  %3710 = vmatpush3.msra.mxu1 %v1578_v43  ;;  %v1832_v3 = vld [vmem:[#allocation2 + $0x7] sm:$0xff]  ;;  %v1833_v7 = vld [vmem:[#allocation2 + $0xf] sm:$0xff] }
 0x2d2   : > { %3731 = vmatpush3.msra.mxu0 %v1922_v44  ;;  %3711 = vmatprep.subr.mxu1 %v1577_v60  ;;  %v2093_v6 = vld [vmem:[#allocation2 + $0xa] sm:$0xff] }
 0x2d3   : > { %3734 = vmatprep.mubr.msk.f32.mxu0 %vm1572_vm7, %v1919_v62  ;;  %3712 = vmatpush3.msra.mxu1 %v1577_v60  ;;  %v2006_v10 = vld [vmem:[#allocation2 + $0x9] sm:$0xff]  ;;  %v3431_v60 = vld [vmem:[%s4459_s10] ss:$0 sm:$0xff] }
 0x2d4   : > { %3732 = vmatprep.subr.mxu0 %v1921_v61  ;;  %3713 = vmatprep.mubr.msk.f32.mxu1 %vm1572_vm7, %v4120_v21 }
 0x2d5   : > { %3723 = vmatprep.subr.mxu1 %v1835_v63  ;;  %3733 = vmatpush3.msra.mxu0 %v1921_v61 }
 0x2d6   : > { %3714 = vmatmul.mubr.msk.f32.vlgmr.msra.gmra.mxu1 %vm1572_vm7, %v1919_v62  ;;  %3735 = vmatmul.mubr.msk.f32.vlgmr.msra.gmra.mxu0 %vm1572_vm7, %v1920_v2 }
 0x2d7   : > { %3724 = vmatpush3.msra.mxu1 %v1835_v63  ;;  %3744 = vmatprep.subr.mxu0 %v2096_v0 }
 0x2d8   : > { %3725 = vmatprep.subr.mxu1 %v1834_v1  ;;  %3727 = vmatprep.mubr.msk.f32.mxu1 %vm1572_vm7, %v1832_v3 }
 0x2d9   : > { %3745 = vmatpush3.msra.mxu0 %v2096_v0  ;;  %3748 = vmatprep.mubr.msk.f32.mxu0 %vm1572_vm7, %v2093_v6 }
 0x2da   : > { %3726 = vmatpush3.msra.mxu1 %v1834_v1  ;;  %3746 = vmatprep.subr.mxu0 %v2095_v4  ;;  %v2374_v1 = vstv %s3408_s28 }
 0x2db   : > { %3737 = vmatprep.subr.mxu1 %v2009_v5  ;;  %3747 = vmatpush3.msra.mxu0 %v2095_v4 }
 0x2dc   : > { %3728 = vmatmul.mubr.msk.f32.vlgmr.msra.gmra.mxu1 %vm1572_vm7, %v1833_v7  ;;  %3749 = vmatmul.mubr.msk.f32.vlgmr.msra.gmra.mxu0 %vm1572_vm7, %v2094_v9  ;;  %v2666_v9 = vld [vmem:[%s4462_s13 + $0x58] sm:$0xff] }
 0x2dd   : > { %3738 = vmatpush3.msra.mxu1 %v2009_v5  ;;  %3741 = vmatprep.mubr.msk.f32.mxu1 %vm1572_vm7, %v2006_v10  ;;  %v2497_v10 = vld [vmem:[%s4462_s13 + $0x30] sm:$0xff] }
 0x2de   : > { %3739 = vmatprep.subr.mxu1 %v2008_v8  ;;  %3762 = vmatprep.mubr.msk.f32.mxu0 %vm1572_vm7, %v1920_v2 }
 0x2df   : > { %3740 = vmatpush3.msra.mxu1 %v2008_v8  ;;  %3758 = vmatprep.subr.mxu0 %v2270_v12  ;;  %v2498_v8 = vld [vmem:[%s4462_s13 + $0x38] sm:$0xff] }
 0x2e0   : > { %3751 = vmatprep.subr.mxu1 %v2183_v11  ;;  %3742 = vmatmul.mubr.msk.f32.vlgmr.msra.gmra.mxu1 %vm1572_vm7, %v2007_v13  ;;  %v2664_v13 = vld [vmem:[%s4462_s13 + $0x48] sm:$0xff] }
 0x2e1   : > { %3752 = vmatpush3.msra.mxu1 %v2183_v11  ;;  %3755 = vmatprep.mubr.msk.f32.mxu1 %vm1572_vm7, %v1580_v58  ;;  %v2665_v11 = vld [vmem:[%s4462_s13 + $0x50] sm:$0xff] }
 0x2e2   : > { %3753 = vmatprep.subr.mxu1 %v2182_v14  ;;  %3759 = vmatpush3.msra.mxu0 %v2270_v12  ;;  %v2496_v12 = vld [vmem:[%s4462_s13 + $0x28] sm:$0xff] }
 0x2e3   : > { %3754 = vmatpush3.msra.mxu1 %v2182_v14  ;;  %3760 = vmatprep.subr.mxu0 %v2269_v15  ;;  %v2495_v14 = vld [vmem:[%s4462_s13 + $0x20] sm:$0xff] }
 0x2e4   : > { %3756 = vmatmul.mubr.msk.f32.vlgmr.msra.gmra.mxu1 %vm1572_vm7, %v2181_v16  ;;  %3761 = vmatpush3.msra.mxu0 %v2269_v15  ;;  %v2663_v15 = vld [vmem:[%s4462_s13 + $0x40] sm:$0xff]  ;;  %v2492_v16 = vld [vmem:[%s4462_s13 + $0x18] sm:$0xff] }
 0x2e5   : > { %3763 = vmatmul.mubr.msk.f32.vlgmr.msra.gmra.mxu0 %vm1572_vm7, %v4166_v52  ;;  %3765 = vmatprep.subr.mxu1 %v2388_v17 }
 0x2e6   : > { %3766 = vmatpush3.msra.mxu1 %v2388_v17  ;;  %3784 = vmatprep.subr.mxu0 %v2498_v8  ;;  %v2844_v17 = vld [vmem:[%s4462_s13 + $0x98] sm:$0xff] }
 0x2e7   : > { %3767 = vmatprep.subr.mxu1 %v2387_v18  ;;  %3785 = vmatpush3.msra.mxu0 %v2498_v8 }
 0x2e8   : > { %3768 = vmatpush3.msra.mxu1 %v2387_v18  ;;  %3786 = vmatprep.subr.mxu0 %v2497_v10  ;;  %v3434_v18 = vld [vmem:[%s4461_s12] ss:$0 sm:$0xff] }
 0x2e9   : > { %3769 = vmatprep.subr.mxu1 %v2386_v19  ;;  %3787 = vmatpush3.msra.mxu0 %v2497_v10 }
 0x2ea   : > { %3770 = vmatpush3.msra.mxu1 %v2386_v19  ;;  %3788 = vmatprep.subr.mxu0 %v2496_v12 }
 0x2eb   : > { %3771 = vmatprep.subr.mxu1 %v2385_v20  ;;  %3789 = vmatpush3.msra.mxu0 %v2496_v12 }
 0x2ec   : > { %3772 = vmatpush3.msra.mxu1 %v2385_v20  ;;  %3790 = vmatprep.subr.mxu0 %v2495_v14  ;;  %v2480_v20 = vstv %s3432_s18 }
 0x2ed   : > { %3773 = vmatprep.subr.mxu1 %v2384_v22  ;;  %3791 = vmatpush3.msra.mxu0 %v2495_v14 }
 0x2ee   : > { %3774 = vmatpush3.msra.mxu1 %v2384_v22  ;;  %3795 = vmatprep.subr.mxu0 %v2492_v16 }
 0x2ef   : > { %3775 = vmatprep.subr.mxu1 %v2383_v23 }
 0x2f0   : > { %3776 = vmatpush3.msra.mxu1 %v2383_v23 }
 0x2f1   : > { %3777 = vmatprep.subr.mxu1 %v2382_v24 }
 0x2f2   : > { %3778 = vmatpush3.msra.mxu1 %v2382_v24 }
 0x2f3   : > { %3779 = vmatprep.subr.mxu1 %v2381_v25 }
 0x2f4   : > { %3780 = vmatpush3.msra.mxu1 %v2381_v25 }
 0x2f5   : > { %3806 = vmatprep.subr.mxu1 %v2666_v9 }
 0x390   : > { %v3708_v26 = vpop.f32.mrf.mxu1 }
 0x391   : > { %v3722_v27 = vpop.f32.mrf.mxu0 }
 0x392   : > { %v1655_v28 = vpop.f32.mrf.mxu1 }
 0x393   : > { %v1821_v29 = vpop.f32.mrf.mxu0 }
 0x396   : > { %v3715_v30 = vpop.f32.mrf.mxu1  ;;  %v3736_v32 = vpop.f32.mrf.mxu0 }
 0x397   : > { %v1742_v31 = vadd.f32 %v3715_v30, %v3708_v26 }
 0x398   : > { %v1736_v33 = vpop.f32.mrf.mxu1  ;;  %v1995_v37 = vpop.f32.mrf.mxu0 }
 0x399   : > { %v1737_v34 = vadd.f32 %v1736_v33, %v1655_v28  ;;  %v1831_v35 = vadd.f32 %v3722_v27, %v1742_v31  ;;  %v2491_v33 = vld [vmem:[%s4462_s13 + $0x10] sm:$0xff] }
 0x39b   : > { %v1830_v36 = vadd.f32 %v1821_v29, %v1737_v34  ;;  %v2843_v34 = vld [vmem:[%s4462_s13 + $0x90] sm:$0xff] }
 0x39c   : > { %v3729_v38 = vpop.f32.mrf.mxu1  ;;  %v3750_v43 = vpop.f32.mrf.mxu0 }
 0x39d   : > { %v1918_v39 = vadd.f32 %v3729_v38, %v1831_v35  ;;  %v2490_v35 = vld [vmem:[%s4462_s13 + $0x8] sm:$0xff]  ;;  %v2489_v38 = vld [vmem:[%s4462_s13] sm:$0xff] }
 0x39e   : > { %v1908_v40 = vpop.f32.mrf.mxu1  ;;  %v2169_v50 = vpop.f32.mrf.mxu0 }
 0x39f   : > { %v1917_v41 = vadd.f32 %v1908_v40, %v1830_v36  ;;  %v2005_v42 = vadd.f32 %v3736_v32, %v1918_v39  ;;  %v2841_v39 = vld [vmem:[%s4462_s13 + $0x80] sm:$0xff]  ;;  %v2755_v40 = vld [vmem:[%s4462_s13 + $0x78] sm:$0xff] }
 0x3a0   : > { %v3743_v44 = vpop.f32.mrf.mxu1 }
 0x3a1   : > { %v2092_v45 = vadd.f32 %v3743_v44, %v2005_v42  ;;  %v2004_v46 = vadd.f32 %v1995_v37, %v1917_v41  ;;  %v2842_v37 = vld [vmem:[%s4462_s13 + $0x88] sm:$0xff]  ;;  %v3022_v41 = vld [vmem:[%s4462_s13 + $0xd8] sm:$0xff]  ;;  %v2754_v44 = vld [vmem:[%s4462_s13 + $0x70] sm:$0xff] }
 0x3a2   : > { %v2082_v47 = vpop.f32.mrf.mxu1 }
 0x3a3   : > { %v2091_v48 = vadd.f32 %v2082_v47, %v2004_v46  ;;  %v2179_v49 = vadd.f32 %v3750_v43, %v2092_v45  ;;  %v3021_v45 = vld [vmem:[%s4462_s13 + $0xd0] sm:$0xff]  ;;  %v2753_v46 = vld [vmem:[%s4462_s13 + $0x68] sm:$0xff] }
 0x3a4   : > { %v3757_v51 = vpop.f32.mrf.mxu1  ;;  %v3020_v47 = vld [vmem:[%s4462_s13 + $0xc8] sm:$0xff] }
 0x3a5   : > { %v2266_v53 = vadd.f32 %v3757_v51, %v2179_v49  ;;  %v2178_v54 = vadd.f32 %v2169_v50, %v2091_v48  ;;  %v3764_v55 = vpop.f32.mrf.mxu0  ;;  %v2752_v48 = vld [vmem:[%s4462_s13 + $0x60] sm:$0xff]  ;;  %v2933_v50 = vld [vmem:[%s4462_s13 + $0xb8] sm:$0xff] }
 0x3a6   : > { %v2256_v57 = vpop.f32.mrf.mxu1  ;;  %v3019_v49 = vld [vmem:[%s4462_s13 + $0xc0] sm:$0xff] }
 0x3a7   : > { %v2353_v58 = vadd.f32 %v3764_v55, %v2266_v53  ;;  %v2265_v59 = vadd.f32 %v2256_v57, %v2178_v54  ;;  %v2343_v61 = vpop.f32.mrf.mxu0  ;;  %v2932_v54 = vld [vmem:[%s4462_s13 + $0xb0] sm:$0xff]  ;;  %v3200_v55 = vld [vmem:[%s4462_s13 + $0x118] sm:$0xff]  ;;  %v2931_v57 = vld [vmem:[%s4462_s13 + $0xa8] sm:$0xff] }
 0x3a9   : > { %v2362_v62 = vmul.f32 %v3430_v56, %v2353_v58  ;;  %v2352_v63 = vadd.f32 %v2343_v61, %v2265_v59  ;;  %v3199_v58 = vld [vmem:[%s4462_s13 + $0x110] sm:$0xff]  ;;  %v2930_v59 = vld [vmem:[%s4462_s13 + $0xa0] sm:$0xff]  ;;  %v3111_v61 = vld [vmem:[%s4462_s13 + $0xf8] sm:$0xff] }
 0x3ab   : > { %v2371_v0 = vadd.f32 %v3431_v60, %v2362_v62  ;;  %v2361_v2 = vmul.f32 %v3430_v56, %v2352_v63  ;;  %v3110_v63 = vld [vmem:[%s4462_s13 + $0xf0] sm:$0xff] }
 0x3ad   : > { %v2370_v3 = vadd.f32 %v3431_v60, %v2361_v2  ;;  %v2376_v4 = vmul.f32 %v2374_v1, %v2371_v0  ;;  %vm2373_vm11 = vcmp.ge.f32.partialorder %v2371_v0, 0.0  ;;  %v3198_v60 = vld [vmem:[%s4462_s13 + $0x108] sm:$0xff]  ;;  %v3108_v2 = vld [vmem:[%s4462_s13 + $0xe0] sm:$0xff] }
 0x3af   : > { %vm2372_vm9 = vcmp.ge.f32.partialorder %v2370_v3, 0.0  ;;  %v2375_v5 = vmul.f32 %v2374_v1, %v2370_v3  ;;  %v2378_v7 = vsel %vm2373_vm11, %v2371_v0, %v2376_v4  ;;  %v3197_v0 = vld [vmem:[%s4462_s13 + $0x100] sm:$0xff]  ;;  %v3109_v1 = vld [vmem:[%s4462_s13 + $0xe8] sm:$0xff] }
 0x3b1   : > { %v2377_v6 = vsel %vm2372_vm9, %v2370_v3, %v2375_v5 }
 0x3b2   : > { %3781 = vmatprep.mubr.msk.f32.mxu1 %vm2396_vm10, %v2377_v6 }
 0x3b3   : > { %3782 = vmatmul.mubr.msk.f32.vlgmr.msra.gmra.mxu1 %vm2396_vm10, %v2378_v7 }
 0x3b4   : > { %3807 = vmatpush3.msra.mxu1 %v2666_v9 }
 0x3b5   : > { %3808 = vmatprep.subr.mxu1 %v2665_v11 }
 0x3b6   : > { %3809 = vmatpush3.msra.mxu1 %v2665_v11 }
 0x3b7   : > { %3810 = vmatprep.subr.mxu1 %v2664_v13 }
 0x3b8   : > { %3811 = vmatpush3.msra.mxu1 %v2664_v13 }
 0x3b9   : > { %3812 = vmatprep.subr.mxu1 %v2663_v15 }
 0x3ba   : > { %3813 = vmatpush3.msra.mxu1 %v2663_v15 }
 0x3bb   : > { %3828 = vmatprep.subr.mxu1 %v2844_v17 }
 0x473   : > { %v3783_v19 = vpop.f32.mrf.mxu1 }
 0x474   : > { %v2475_v22 = vadd.f32 %v3783_v19, %v3434_v18 }
 0x475   : > { %v2469_v23 = vpop.f32.mrf.mxu1 }
 0x476   : > { %vm2479_vm12 = vcmp.ge.f32.partialorder %v2475_v22, 0.0  ;;  %v2482_v24 = vmul.f32 %v2480_v20, %v2475_v22  ;;  %v2470_v25 = vadd.f32 %v3434_v18, %v2469_v23 }
 0x478   : > { %v2484_v26 = vsel %vm2479_vm12, %v2475_v22, %v2482_v24  ;;  %vm2478_vm13 = vcmp.ge.f32.partialorder %v2470_v25, 0.0  ;;  %v2481_v27 = vmul.f32 %v2480_v20, %v2470_v25 }
 0x479   : > { %2486 = vst.msk [vmem:[#allocation2 + $0x10] sm:$0xff] %vm561_vm0, %v2484_v26 }
 0x47a   : > { %v2483_v28 = vsel %vm2478_vm13, %v2470_v25, %v2481_v27 }
 0x47b   : > { %2485 = vst.msk [vmem:[#allocation2 + $0x8] sm:$0xff] %vm561_vm0, %v2483_v28 }
 0x480   : > { %v2840_v42 = vld [vmem:[#allocation2 + $0x10] sm:$0xff] }
 0x481   : > { %v3018_v53 = vld [vmem:[#allocation2 + $0x12] sm:$0xff] }
 0x482   : > { %v2493_v29 = vld [vmem:[#allocation2 + $0x4] sm:$0xff]  ;;  %v4334_v31 = vld [vmem:[#allocation2 + $0xc] sm:$0xff]  ;;  %v3107_v3 = vld [vmem:[#allocation2 + $0x14] sm:$0xff] }
 0x483   : > { %v2661_v30 = vld [vmem:[#allocation2 + $0x6] sm:$0xff]  ;;  %3792 = vmatprep.mubr.msk.f32.mxu0 %vm561_vm0, %v2493_v29  ;;  %v2662_v32 = vld [vmem:[#allocation2 + $0xe] sm:$0xff] }
 0x484   : > { %3814 = vmatprep.mubr.msk.f32.mxu1 %vm561_vm0, %v2661_v30  ;;  %3793 = vmatmul.mubr.msk.f32.vlgmr.msra.gmra.mxu0 %vm561_vm0, %v4334_v31  ;;  %v2839_v36 = vld [vmem:[#allocation2 + $0x8] sm:$0xff]  ;;  %v2929_v62 = vld [vmem:[#allocation2 + $0x11] sm:$0xff] }
 0x485   : > { %3815 = vmatmul.mubr.msk.f32.vlgmr.msra.gmra.mxu1 %vm561_vm0, %v2662_v32  ;;  %3796 = vmatpush3.msra.mxu0 %v2492_v16  ;;  %v2750_v43 = vld [vmem:[#allocation2 + $0x7] sm:$0xff]  ;;  %v2751_v51 = vld [vmem:[#allocation2 + $0xf] sm:$0xff] }
 0x486   : > { %3829 = vmatpush3.msra.mxu1 %v2844_v17  ;;  %3797 = vmatprep.subr.mxu0 %v2491_v33  ;;  %v2928_v56 = vld [vmem:[#allocation2 + $0x9] sm:$0xff] }
 0x487   : > { %3830 = vmatprep.subr.mxu1 %v2843_v34  ;;  %3836 = vmatprep.mubr.msk.f32.mxu1 %vm561_vm0, %v2839_v36 }
 0x488   : > { %3798 = vmatpush3.msra.mxu0 %v2491_v33  ;;  %3831 = vmatpush3.msra.mxu1 %v2843_v34  ;;  %v3455_v33 = vld [vmem:[%s4463_s14] ss:$0 sm:$0xff] }
 0x489   : > { %3799 = vmatprep.subr.mxu0 %v2490_v35  ;;  %3832 = vmatprep.subr.mxu1 %v2842_v37 }
 0x48a   : > { %3800 = vmatpush3.msra.mxu0 %v2490_v35  ;;  %3833 = vmatpush3.msra.mxu1 %v2842_v37  ;;  %v3456_v37 = vld [vmem:[%s4464_s15] ss:$0 sm:$0xff] }
 0x48b   : > { %3801 = vmatprep.subr.mxu0 %v2489_v38  ;;  %3834 = vmatprep.subr.mxu1 %v2841_v39 }
 0x48c   : > { %3802 = vmatpush3.msra.mxu0 %v2489_v38  ;;  %3803 = vmatprep.mubr.msk.f32.mxu0 %vm561_vm0, %v4120_v21  ;;  %v3017_v21 = vld [vmem:[#allocation2 + $0xa] sm:$0xff] }
 0x48d   : > { %3835 = vmatpush3.msra.mxu1 %v2841_v39  ;;  %3804 = vmatmul.mubr.msk.f32.vlgmr.msra.gmra.mxu0 %vm561_vm0, %v2839_v36 }
 0x48e   : > { %3817 = vmatprep.subr.mxu0 %v2755_v40  ;;  %3837 = vmatmul.mubr.msk.f32.vlgmr.msra.gmra.mxu1 %vm561_vm0, %v2840_v42 }
 0x48f   : > { %3850 = vmatprep.subr.mxu1 %v3022_v41  ;;  %3818 = vmatpush3.msra.mxu0 %v2755_v40 }
 0x490   : > { %3825 = vmatprep.mubr.msk.f32.mxu0 %vm561_vm0, %v2750_v43  ;;  %3851 = vmatpush3.msra.mxu1 %v3022_v41  ;;  %v3304_v41 = vstv %s3433_s22 }
 0x491   : > { %3858 = vmatprep.mubr.msk.f32.mxu1 %vm561_vm0, %v3017_v21  ;;  %3819 = vmatprep.subr.mxu0 %v2754_v44 }
 0x492   : > { %3852 = vmatprep.subr.mxu1 %v3021_v45  ;;  %3820 = vmatpush3.msra.mxu0 %v2754_v44 }
 0x493   : > { %3853 = vmatpush3.msra.mxu1 %v3021_v45  ;;  %3821 = vmatprep.subr.mxu0 %v2753_v46 }
 0x494   : > { %3854 = vmatprep.subr.mxu1 %v3020_v47  ;;  %3822 = vmatpush3.msra.mxu0 %v2753_v46 }
 0x495   : > { %3855 = vmatpush3.msra.mxu1 %v3020_v47  ;;  %3823 = vmatprep.subr.mxu0 %v2752_v48 }
 0x496   : > { %3856 = vmatprep.subr.mxu1 %v3019_v49  ;;  %3824 = vmatpush3.msra.mxu0 %v2752_v48 }
 0x497   : > { %3857 = vmatpush3.msra.mxu1 %v3019_v49  ;;  %3826 = vmatmul.mubr.msk.f32.vlgmr.msra.gmra.mxu0 %vm561_vm0, %v2751_v51 }
 0x498   : > { %3839 = vmatprep.subr.mxu0 %v2933_v50  ;;  %3859 = vmatmul.mubr.msk.f32.vlgmr.msra.gmra.mxu1 %vm561_vm0, %v3018_v53 }
 0x499   : > { %3840 = vmatpush3.msra.mxu0 %v2933_v50  ;;  %3847 = vmatprep.mubr.msk.f32.mxu0 %vm561_vm0, %v2928_v56 }
 0x49a   : > { %3880 = vmatprep.mubr.msk.f32.mxu1 %vm561_vm0, %v2840_v42  ;;  %3841 = vmatprep.subr.mxu0 %v2932_v54 }
 0x49b   : > { %3872 = vmatprep.subr.mxu1 %v3200_v55  ;;  %3842 = vmatpush3.msra.mxu0 %v2932_v54 }
 0x49c   : > { %3873 = vmatpush3.msra.mxu1 %v3200_v55  ;;  %3843 = vmatprep.subr.mxu0 %v2931_v57 }
 0x49d   : > { %3874 = vmatprep.subr.mxu1 %v3199_v58  ;;  %3844 = vmatpush3.msra.mxu0 %v2931_v57 }
 0x49e   : > { %3875 = vmatpush3.msra.mxu1 %v3199_v58  ;;  %3845 = vmatprep.subr.mxu0 %v2930_v59 }
 0x49f   : > { %3876 = vmatprep.subr.mxu1 %v3198_v60  ;;  %3846 = vmatpush3.msra.mxu0 %v2930_v59 }
 0x4a0   : > { %3877 = vmatpush3.msra.mxu1 %v3198_v60  ;;  %3848 = vmatmul.mubr.msk.f32.vlgmr.msra.gmra.mxu0 %vm561_vm0, %v2929_v62 }
 0x4a1   : > { %3861 = vmatprep.subr.mxu0 %v3111_v61  ;;  %3869 = vmatprep.mubr.msk.f32.mxu0 %vm561_vm0, %v4334_v31 }
 0x4a2   : > { %3862 = vmatpush3.msra.mxu0 %v3111_v61  ;;  %3878 = vmatprep.subr.mxu1 %v3197_v0 }
 0x4a3   : > { %3863 = vmatprep.subr.mxu0 %v3110_v63  ;;  %3879 = vmatpush3.msra.mxu1 %v3197_v0 }
 0x4a4   : > { %3864 = vmatpush3.msra.mxu0 %v3110_v63  ;;  %3881 = vmatmul.mubr.msk.f32.vlgmr.msra.gmra.mxu1 %vm561_vm0, %v4166_v52 }
 0x4a5   : > { %3865 = vmatprep.subr.mxu0 %v3109_v1 }
 0x4a6   : > { %3866 = vmatpush3.msra.mxu0 %v3109_v1 }
 0x4a7   : > { %3867 = vmatprep.subr.mxu0 %v3108_v2 }
 0x4a8   : > { %3868 = vmatpush3.msra.mxu0 %v3108_v2 }
 0x4a9   : > { %3870 = vmatmul.mubr.msk.f32.vlgmr.msra.gmra.mxu0 %vm561_vm0, %v3107_v3 }
 0x544   : > { %v3794_v4 = vpop.f32.mrf.mxu0 }
 0x545   : > { %v3816_v7 = vpop.f32.mrf.mxu1 }
 0x546   : > { %v2571_v5 = vpop.f32.mrf.mxu0 }
 0x547   : > { %v2739_v12 = vpop.f32.mrf.mxu1 }
 0x54d   : > { %v3805_v6 = vpop.f32.mrf.mxu0 }
 0x54e   : > { %v2658_v9 = vadd.f32 %v3805_v6, %v3794_v4  ;;  %v3838_v14 = vpop.f32.mrf.mxu1 }
 0x54f   : > { %v2652_v8 = vpop.f32.mrf.mxu0 }
 0x550   : > { %v2653_v11 = vadd.f32 %v2652_v8, %v2571_v5  ;;  %v2749_v13 = vadd.f32 %v3816_v7, %v2658_v9  ;;  %v2917_v18 = vpop.f32.mrf.mxu1 }
 0x552   : > { %v2748_v52 = vadd.f32 %v2739_v12, %v2653_v11 }
 0x557   : > { %v3827_v10 = vpop.f32.mrf.mxu0 }
 0x558   : > { %v2838_v16 = vadd.f32 %v3827_v10, %v2749_v13  ;;  %v3860_v22 = vpop.f32.mrf.mxu1 }
 0x559   : > { %v2828_v15 = vpop.f32.mrf.mxu0 }
 0x55a   : > { %v2837_v17 = vadd.f32 %v2828_v15, %v2748_v52  ;;  %v2927_v20 = vadd.f32 %v3838_v14, %v2838_v16  ;;  %v3095_v27 = vpop.f32.mrf.mxu1 }
 0x55c   : > { %v2926_v25 = vadd.f32 %v2917_v18, %v2837_v17 }
 0x560   : > { %v3849_v19 = vpop.f32.mrf.mxu0 }
 0x561   : > { %v3016_v24 = vadd.f32 %v3849_v19, %v2927_v20 }
 0x562   : > { %v3006_v23 = vpop.f32.mrf.mxu0 }
 0x563   : > { %v3015_v26 = vadd.f32 %v3006_v23, %v2926_v25  ;;  %v3105_v28 = vadd.f32 %v3860_v22, %v3016_v24 }
 0x564   : > { %v3882_v30 = vpop.f32.mrf.mxu1 }
 0x565   : > { %v3104_v32 = vadd.f32 %v3095_v27, %v3015_v26 }
 0x566   : > { %v3273_v38 = vpop.f32.mrf.mxu1 }
 0x569   : > { %v3871_v29 = vpop.f32.mrf.mxu0 }
 0x56a   : > { %v3194_v31 = vadd.f32 %v3871_v29, %v3105_v28 }
 0x56b   : > { %v3184_v34 = vpop.f32.mrf.mxu0 }
 0x56c   : > { %v3283_v35 = vadd.f32 %v3882_v30, %v3194_v31  ;;  %v3193_v36 = vadd.f32 %v3184_v34, %v3104_v32 }
 0x56e   : > { %v3292_v39 = vmul.f32 %v3455_v33, %v3283_v35  ;;  %v3282_v40 = vadd.f32 %v3273_v38, %v3193_v36 }
 0x570   : > { %v3301_v42 = vadd.f32 %v3456_v37, %v3292_v39  ;;  %v3291_v43 = vmul.f32 %v3455_v33, %v3282_v40 }
 0x572   : > { %v3306_v44 = vmul.f32 %v3304_v41, %v3301_v42  ;;  %v3300_v45 = vadd.f32 %v3456_v37, %v3291_v43  ;;  %vm3303_vm14 = vcmp.ge.f32.partialorder %v3301_v42, 0.0 }
 0x574   : > { %vm3302_vm15 = vcmp.ge.f32.partialorder %v3300_v45, 0.0  ;;  %v3305_v21 = vmul.f32 %v3304_v41, %v3300_v45  ;;  %v3308_v46 = vsel %vm3303_vm14, %v3301_v42, %v3306_v44 }
 0x576   : > { %v3307_v47 = vsel %vm3302_vm15, %v3300_v45, %v3305_v21 }
 0x577   : > { %v3309_v48 = vmax.f32 %v3307_v47, %v3308_v46 }
 0x579   : > { %v3310_v49 = vrot.slane %v3309_v48, 4 }
 0x57b   : > { %v3311_v50 = vmax.f32 %v3309_v48, %v3310_v49 }
 0x57d   : > { %v3312_v51 = vrot.slane %v3311_v50, 2 }
 0x57f   : > { %v3313_v53 = vmax.f32 %v3311_v50, %v3312_v51 }
 0x581   : > { %v3314_v54 = vrot.slane %v3313_v53, 1 }
 0x583   : > { %v3315_v55 = vmax.f32 %v3313_v53, %v3314_v54 }
 0x585   : > { %3316 = vst [vmem:[%s558_s0] sm:$0x1] %v3315_v55 }
 0x586 PF: > { %s28_s24 = sadd.s32 1, %s3928_s24  }
 0x587   : > { %p25_p1 = scmp.ge.s32.totalorder %s28_s24, 4  }
 0x589   :  { %27 = sbr.rel (!%p25_p1) target bundleno = 4 (0x4), region = 123 }
 0x58e   :  { %3334 = vsyncpa [#allocation4], 1 }
 0x58f   :  { %3336 = vsyncpa [#allocation4 + $0x1], 1 }

// kernel: deepdtaf_forward.4
= control target key start
LH: loop header
LB: loop body
LE: loop exit
PB: predicated region body
PF: predicated region fallthrough
CT: control target
= control target key end

     0   :  { %s7137_s0 = inlined_call_operand.vmem [shape: f32[2,16,32], index: 0, kind: input, shape index: {}]   ;;  %s7138_s1 = inlined_call_operand.vmem [shape: f32[32,128], index: 1, kind: input, shape index: {}]   ;;  %s7139_s2 = inlined_call_operand.vmem [shape: f32[1,128], index: 2, kind: input, shape index: {}]   ;;  %s7140_s3 = inlined_call_operand.vmem [shape: f32[128,6], index: 3, kind: input, shape index: {}]   ;;  %s7141_s4 = inlined_call_operand.vmem [shape: f32[1,6], index: 4, kind: input, shape index: {}]   ;;  %s7142_s5 = inlined_call_operand.vmem [shape: f32[66,32], index: 5, kind: input, shape index: {}]   ;;  %s7143_s6 = inlined_call_operand.vmem [shape: f32[1,32], index: 6, kind: input, shape index: {}]   ;;  %s7144_s7 = inlined_call_operand.vmem [shape: f32[1,32], index: 7, kind: input, shape index: {}]   ;;  %s7145_s8 = inlined_call_operand.vmem [shape: f32[32,12], index: 8, kind: input, shape index: {}]   ;;  %s7146_s9 = inlined_call_operand.vmem [shape: f32[1,12], index: 9, kind: input, shape index: {}]   ;;  %s7147_s10 = inlined_call_operand.vmem [shape: f32[132,64], index: 10, kind: input, shape index: {}]   ;;  %s7148_s11 = inlined_call_operand.vmem [shape: f32[1,64], index: 11, kind: input, shape index: {}]   ;;  %s7149_s12 = inlined_call_operand.vmem [shape: f32[1,64], index: 12, kind: input, shape index: {}]   ;;  %s7150_s13 = inlined_call_operand.vmem [shape: f32[64,12], index: 13, kind: input, shape index: {}]   ;;  %s7151_s14 = inlined_call_operand.vmem [shape: f32[1,12], index: 14, kind: input, shape index: {}]   ;;  %s7152_s15 = inlined_call_operand.vmem [shape: f32[132,64], index: 15, kind: input, shape index: {}]   ;;  %s7153_s16 = inlined_call_operand.vmem [shape: f32[1,64], index: 16, kind: input, shape index: {}]   ;;  %s7154_s17 = inlined_call_operand.vmem [shape: f32[1,64], index: 17, kind: input, shape index: {}]   ;;  %s7155_s18 = inlined_call_operand.vmem [shape: f32[64,25], index: 18, kind: input, shape index: {}]   ;;  %s7156_s19 = inlined_call_operand.vmem [shape: f32[1,25], index: 19, kind: input, shape index: {}]   ;;  %s7157_s20 = inlined_call_operand.vmem [shape: f32[275,128], index: 20, kind: input, shape index: {}]   ;;  %s7158_s21 = inlined_call_operand.vmem [shape: f32[1,128], index: 21, kind: input, shape index: {}]   ;;  %s7159_s22 = inlined_call_operand.vmem [shape: f32[1,128], index: 22, kind: input, shape index: {}]   ;;  %s7160_s23 = inlined_call_operand.vmem [shape: f32[8], index: 23, kind: input, shape index: {}]   ;;  %s7161_s24 = inlined_call_operand.vmem [shape: f32[2,1,128], index: 24, kind: output, shape index: {}]  }
   0x1   :  { %7166 = sst [smem:[#allocation6_spill]] %s7137_s0 }
   0x2   :  { %7167 = sst [smem:[#allocation7_spill]] %s7138_s1 }
   0x3   :  { %7168 = sst [smem:[#allocation8_spill]] %s7139_s2 }
   0x4   :  { %7169 = sst [smem:[#allocation9_spill]] %s7140_s3 }
   0x5   :  { %7170 = sst [smem:[#allocation10_spill]] %s7141_s4 }
   0x6   :  { %7171 = sst [smem:[#allocation11_spill]] %s7142_s5 }
   0x7   :  { %7172 = sst [smem:[#allocation12_spill]] %s7143_s6 }
   0x8   :  { %7173 = sst [smem:[#allocation13_spill]] %s7144_s7 }
   0x9   :  { %7174 = sst [smem:[#allocation14_spill]] %s7145_s8 }
   0xa   :  { %29 = vsyncpa [#allocation4], 0  ;;  %s6398_s5 = smov 0  }
   0xb LB: > { %s6404_s26 = sadd.s32 4294967295, %s6269_s5   ;;  %p5392_p0 = scmp.ge.s32.totalorder %s6269_s5, 1  ;;  %s6269_s5 = sphi %s6398_s5, %s35_s5  }
   0xc   : > { %p575_p1 = scmp.lt.s32.totalorder %s6269_s5, 3  ;;  %s654_s6 = sshll.u32 %s7160_s23, 4  ;;  %s655_s6 = int_to_ptr.vmem [resolvable:$true] %s654_s6 }
   0xd   : > { %p6232_p3 = scmp.eq.s32.totalorder %s6404_s26, 0  ;;  %s6244_s29 = scalar_lea.vmem %s655_s6, 16 }
   0xe   : > { %p6411_p2 = pnand %p5392_p0, %p575_p1  ;;  %p6245_p6 = scmp.ne.s32.totalorder %s655_s6, %s6244_s29 }
   0xf   : > { %p6252_p10 = scmp.lt.s32.totalorder %s655_s6, %s655_s6  ;;  %p6253_p11 = scmp.lt.s32.totalorder %s6244_s29, %s6244_s29 }
  0x10   : > { %p6228_p4 = pneg %p6411_p2 }
  0x11   : > { %p6254_p12 = por %p6253_p11, %p6252_p10 }
  0x12   : > { %p6229_p5 = pnand %p6232_p3, %p6228_p4 }
  0x14   : > { %p6246_p7 = pneg %p6229_p5 }
  0x16   : > { %p6247_p8 = pnand %p6246_p7, %p6245_p6 }
  0x18   : > { %p6248_p9 = pneg %p6247_p8 }
  0x1a   : > { %p6255_p13 = pnand %p6254_p12, %p6248_p9 }
  0x1c   : > { %6258 = shalt.err (!%p6255_p13)
}
  0x1d   : > { %s6271_s0 = smov [#allocation3]   ;;  %675 = sbr.rel (%p6411_p2) target bundleno = 2058 (0x80a), region = 116 }
  0x1e   : > { %6231 = dma.vmem_to_smem (!%p6229_p5), %s655_s6, 16, %s6271_s0, [#allocation4]  }
  0x22   : > { %6264 = dma.done.wait (%p6232_p3), [#allocation4], 16  }
  0x23   : > { %6266 = vsyncadd (%p6232_p3), [#allocation4], 4294967280 }
  0x24   : > { %681 = sfence }
  0x25   : > { %s7176_s3 = sld [smem:[#allocation7_spill]]  ;;  %p740_p0 = scmp.lt.s32.totalorder %s6404_s26, 1  ;;  %vm761_vm0 = vcmask 261120   ;;  %vm843_vm1 = vcmask 203776   ;;  %v6272_v22 = vmov 0.0   ;;  %vm957_vm2 = vcmask 48128  }
  0x26   : > { %s7177_s27 = sld [smem:[#allocation9_spill]]  ;;  %844 = vst.msk [vmem:[#allocation2] sm:$0xff] %vm843_vm1, %v6272_v22  ;;  %845 = vst.msk [vmem:[#allocation2 + $0x8] sm:$0xff] %vm843_vm1, %v6272_v22  ;;  %vm971_vm3 = vcmask 1045504   ;;  %vm2074_vm8 = vcmask 1043456   ;;  %vm2058_vm9 = vcmask 97280  }
  0x27   : > { %s7186_s26 = smov (!%p740_p0, %s6404_s26), 1  ;;  %s7178_s28 = sld [smem:[#allocation6_spill]]  ;;  %847 = vst.msk [vmem:[#allocation2 + $0x18] sm:$0xff] %vm843_vm1, %v6272_v22  ;;  %848 = vst.msk [vmem:[#allocation2 + $0x20] sm:$0xff] %vm843_vm1, %v6272_v22  ;;  %vm3086_vm13 = vcmask 523264  }
  0x28   : > { %s5561_s8 = sshll.u32 %s7186_s26, 4  ;;  %849 = vst.msk [vmem:[#allocation2 + $0x28] sm:$0xff] %vm843_vm1, %v6272_v22  ;;  %846 = vst.msk [vmem:[#allocation2 + $0x10] sm:$0xff] %vm843_vm1, %v6272_v22  ;;  %s850_s25 = sld [smem:[#allocation3]] }
  0x29   : > { %s7181_s1 = sld [smem:[#allocation10_spill]] }
  0x2a   : > { %s5402_s0 = sld [smem:[#allocation3 + $0x1]] }
  0x2b   : > { %v753_v0 = vld [vmem:[%s7176_s3 + $0x18] sm:$0xff]  ;;  %v752_v1 = vld [vmem:[%s7176_s3 + $0x10] sm:$0xff]  ;;  %v751_v4 = vld [vmem:[%s7176_s3 + $0x8] sm:$0xff]  ;;  %s5439_s30 = sld [smem:[#allocation3 + $0x2]] }
  0x2c   : > { %5799 = vmatprep.subr.mxu0 %v753_v0  ;;  %v867_v2 = vld [vmem:[%s7177_s27 + $0x78] sm:$0xff]  ;;  %v866_v3 = vld [vmem:[%s7177_s27 + $0x70] sm:$0xff]  ;;  %v865_v5 = vld [vmem:[%s7177_s27 + $0x68] sm:$0xff]  ;;  %s5440_s2 = sld [smem:[#allocation3 + $0x3]] }
  0x2d   : > { %5800 = vmatpush3.msra.mxu0 %v753_v0  ;;  %5810 = vmatprep.subr.mxu1 %v867_v2  ;;  %v750_v6 = vld [vmem:[%s7176_s3] sm:$0xff]  ;;  %s744_s6 = scalar_lea.vmem %s7178_s28, %s5561_s8  ;;  %v863_v10 = vld [vmem:[%s7177_s27 + $0x58] sm:$0xff]  ;;  %v862_v11 = vld [vmem:[%s7177_s27 + $0x50] sm:$0xff]  ;;  %s7179_s8 = sld [smem:[#allocation8_spill]] }
  0x2e   : > { %5801 = vmatprep.subr.mxu0 %v752_v1  ;;  %5811 = vmatpush3.msra.mxu1 %v867_v2  ;;  %v748_v7 = vld [vmem:[%s744_s6] sm:$0xff]  ;;  %v749_v8 = vld [vmem:[%s744_s6 + $0x8] sm:$0xff]  ;;  %v859_v14 = vld [vmem:[%s7177_s27 + $0x38] sm:$0xff]  ;;  %s7180_s28 = sld [smem:[#allocation11_spill]]  ;;  %v952_v35 = vstv %s850_s25 }
  0x2f   : > { %5802 = vmatpush3.msra.mxu0 %v752_v1  ;;  %5812 = vmatprep.subr.mxu1 %v866_v3  ;;  %v864_v9 = vld [vmem:[%s7177_s27 + $0x60] sm:$0xff]  ;;  %v861_v12 = vld [vmem:[%s7177_s27 + $0x48] sm:$0xff]  ;;  %v858_v15 = vld [vmem:[%s7177_s27 + $0x30] sm:$0xff]  ;;  %s7182_s25 = sld [smem:[#allocation14_spill]] }
  0x30   : > { %5803 = vmatprep.subr.mxu0 %v751_v4  ;;  %5813 = vmatpush3.msra.mxu1 %v866_v3  ;;  %v860_v13 = vld [vmem:[%s7177_s27 + $0x40] sm:$0xff]  ;;  %v857_v16 = vld [vmem:[%s7177_s27 + $0x28] sm:$0xff]  ;;  %v855_v18 = vld [vmem:[%s7177_s27 + $0x18] sm:$0xff]  ;;  %s7184_s6 = sld [smem:[#allocation13_spill]] }
  0x31   : > { %5804 = vmatpush3.msra.mxu0 %v751_v4  ;;  %5814 = vmatprep.subr.mxu1 %v865_v5  ;;  %v856_v17 = vld [vmem:[%s7177_s27 + $0x20] sm:$0xff]  ;;  %v854_v19 = vld [vmem:[%s7177_s27 + $0x10] sm:$0xff]  ;;  %v853_v20 = vld [vmem:[%s7177_s27 + $0x8] sm:$0xff]  ;;  %s5520_s7 = sld [smem:[#allocation3 + $0x7]] }
  0x32   : > { %5805 = vmatprep.subr.mxu0 %v750_v6  ;;  %5807 = vmatprep.mubr.msk.f32.mxu0 %vm761_vm0, %v748_v7  ;;  %v852_v21 = vld [vmem:[%s7177_s27] sm:$0xff]  ;;  %v6508_v29 = vld [vmem:[#allocation2 + $0x8] sm:$0xff] }
  0x33   : > { %5806 = vmatpush3.msra.mxu0 %v750_v6  ;;  %5815 = vmatpush3.msra.mxu1 %v865_v5  ;;  %v5399_v24 = vld [vmem:[%s7179_s8] ss:$0 sm:$0xff]  ;;  %v6597_v1 = vld [vmem:[#allocation2 + $0x28] sm:$0xff]  ;;  %s7183_s8 = sld [smem:[#allocation12_spill]] }
  0x34   : > { %5808 = vmatmul.mubr.msk.f32.vlgmr.msra.gmra.mxu0 %vm761_vm0, %v749_v8  ;;  %5816 = vmatprep.subr.mxu1 %v864_v9  ;;  %v964_v28 = vld [vmem:[%s7180_s28 + $0x6] sm:$0x3f]  ;;  %v962_v30 = vld [vmem:[%s7180_s28] sm:$0x3f]  ;;  %v1756_v32 = vld [vmem:[%s7180_s28 + $0x36] sm:$0x3f] }
  0x35   : > { %5817 = vmatpush3.msra.mxu1 %v864_v9  ;;  %5845 = vmatprep.subr.msk.mxu0 %vm971_vm3, %v964_v28  ;;  %v1578_v31 = vld [vmem:[%s7180_s28 + $0x2a] sm:$0x3f]  ;;  %v5403_v33 = vld [vmem:[%s7181_s1] ss:$0 sm:$0xff]  ;;  %v1222_v49 = vld [vmem:[%s7180_s28 + $0x12] sm:$0x3f] }
  0x36   : > { %5818 = vmatprep.subr.mxu1 %v863_v10  ;;  %5847 = vmatprep.mubr.msk.f32.mxu0 %vm957_vm2, %v6508_v29  ;;  %v6532_v45 = vld [vmem:[#allocation2] sm:$0xff]  ;;  %v1133_v47 = vld [vmem:[%s7180_s28 + $0xc] sm:$0x3f]  ;;  %v1311_v53 = vld [vmem:[%s7180_s28 + $0x18] sm:$0x3f] }
  0x37   : > { %5819 = vmatpush3.msra.mxu1 %v863_v10  ;;  %5846 = vmatpush3.msk.msra.mxu0 %vm971_vm3, %v964_v28  ;;  %v6549_v50 = vld [vmem:[#allocation2 + $0x20] sm:$0xff]  ;;  %v1667_v60 = vld [vmem:[%s7180_s28 + $0x30] sm:$0x3f]  ;;  %v1962_v2 = vld [vmem:[%s7182_s25 + $0x18] sm:$0xff] }
  0x38   : > { %5820 = vmatprep.subr.mxu1 %v862_v11  ;;  %5850 = vmatprep.subr.msk.mxu0 %vm971_vm3, %v962_v30  ;;  %v1400_v56 = vld [vmem:[%s7180_s28 + $0x1e] sm:$0x3f]  ;;  %v1489_v59 = vld [vmem:[%s7180_s28 + $0x24] sm:$0x3f]  ;;  %v1961_v3 = vld [vmem:[%s7182_s25 + $0x10] sm:$0xff] }
  0x39   : > { %5821 = vmatpush3.msra.mxu1 %v862_v11  ;;  %v1845_v63 = vld [vmem:[%s7180_s28 + $0x3c] sm:$0x3f]  ;;  %v1960_v4 = vld [vmem:[%s7182_s25 + $0x8] sm:$0xff] }
  0x3a   : > { %5822 = vmatprep.subr.mxu1 %v861_v12  ;;  %v1959_v5 = vld [vmem:[%s7182_s25] sm:$0xff] }
  0x3b   : > { %5823 = vmatpush3.msra.mxu1 %v861_v12 }
  0x3c   : > { %5824 = vmatprep.subr.mxu1 %v860_v13 }
  0x3d   : > { %5825 = vmatpush3.msra.mxu1 %v860_v13 }
  0x3e   : > { %5826 = vmatprep.subr.mxu1 %v859_v14 }
  0x3f   : > { %5827 = vmatpush3.msra.mxu1 %v859_v14 }
  0x40   : > { %5828 = vmatprep.subr.mxu1 %v858_v15 }
  0x41   : > { %5829 = vmatpush3.msra.mxu1 %v858_v15 }
  0x42   : > { %5830 = vmatprep.subr.mxu1 %v857_v16 }
  0x43   : > { %5831 = vmatpush3.msra.mxu1 %v857_v16 }
  0x44   : > { %5832 = vmatprep.subr.mxu1 %v856_v17 }
  0x45   : > { %5833 = vmatpush3.msra.mxu1 %v856_v17 }
  0x46   : > { %5834 = vmatprep.subr.mxu1 %v855_v18 }
  0x47   : > { %5835 = vmatpush3.msra.mxu1 %v855_v18 }
  0x48   : > { %5836 = vmatprep.subr.mxu1 %v854_v19 }
  0x49   : > { %5837 = vmatpush3.msra.mxu1 %v854_v19 }
  0x4a   : > { %5838 = vmatprep.subr.mxu1 %v853_v20 }
  0x4b   : > { %5839 = vmatpush3.msra.mxu1 %v853_v20 }
  0x4c   : > { %5840 = vmatprep.subr.mxu1 %v852_v21 }
  0x4d   : > { %5841 = vmatpush3.msra.mxu1 %v852_v21 }
  0x4e   : > { %5880 = vmatprep.subr.msk.mxu1 %vm971_vm3, %v1578_v31 }
  0xf4   : > { %v5809_v23 = vpop.f32.mrf.mxu0 }
  0xf5   : > { %v840_v27 = vadd.f32 %v5809_v23, %v5399_v24 }
  0xf6   : > { %v834_v25 = vpop.f32.mrf.mxu0 }
  0xf7   : > { %v835_v26 = vadd.f32 %v5399_v24, %v834_v25 }
  0xf9   : > { %5842 = vmatprep.mubr.f32.mxu1 %v835_v26 }
  0xfa   : > { %5843 = vmatmul.mubr.f32.vlgmr.msra.gmra.mxu1 %v840_v27 }
  0xfb   : > { %5881 = vmatpush3.msk.msra.mxu1 %vm971_vm3, %v1578_v31 }
  0xfc   : > { %5890 = vmatprep.subr.msk.mxu1 %vm971_vm3, %v1756_v32 }
 0x1ba   : > { %v5844_v34 = vpop.f32.mrf.mxu1 }
 0x1bb   : > { %v947_v36 = vadd.f32 %v5844_v34, %v5403_v33 }
 0x1bc   : > { %v941_v37 = vpop.f32.mrf.mxu1 }
 0x1bd   : > { %vm951_vm4 = vcmp.ge.f32.partialorder %v947_v36, 0.0  ;;  %v954_v38 = vmul.f32 %v952_v35, %v947_v36  ;;  %v942_v39 = vadd.f32 %v5403_v33, %v941_v37 }
 0x1bf   : > { %v956_v40 = vsel %vm951_vm4, %v947_v36, %v954_v38  ;;  %vm950_vm5 = vcmp.ge.f32.partialorder %v942_v39, 0.0  ;;  %v953_v41 = vmul.f32 %v952_v35, %v942_v39  ;;  %vm4310_vm4 = vcmask 1040384  }
 0x1c0   : > { %959 = vst.msk [vmem:[#allocation2 + $0x18] sm:$0xff] %vm957_vm2, %v956_v40 }
 0x1c1   : > { %v955_v42 = vsel %vm950_vm5, %v942_v39, %v953_v41 }
 0x1c2   : > { %958 = vst.msk [vmem:[#allocation2 + $0x10] sm:$0xff] %vm957_vm2, %v955_v42 }
 0x1c7   : > { %v1577_v46 = vld [vmem:[#allocation2 + $0x1a] sm:$0xff] }
 0x1c8   : > { %v1754_v48 = vld [vmem:[#allocation2 + $0x18] sm:$0xff] }
 0x1c9   : > { %v963_v43 = vld [vmem:[#allocation2 + $0x10] sm:$0xff]  ;;  %v1488_v62 = vld [vmem:[#allocation2 + $0x19] sm:$0xff] }
 0x1ca   : > { %v1576_v44 = vld [vmem:[#allocation2 + $0x12] sm:$0xff]  ;;  %5848 = vmatmul.mubr.msk.f32.vlgmr.msra.gmra.mxu0 %vm957_vm2, %v963_v43  ;;  %v1666_v0 = vld [vmem:[#allocation2 + $0x1c] sm:$0xff] }
 0x1cb   : > { %5882 = vmatprep.mubr.msk.f32.mxu1 %vm957_vm2, %v1576_v44  ;;  %5851 = vmatpush3.msk.msra.mxu0 %vm971_vm3, %v962_v30  ;;  %v1131_v51 = vld [vmem:[#allocation2 + $0xc] sm:$0xff]  ;;  %v1132_v52 = vld [vmem:[#allocation2 + $0x14] sm:$0xff] }
 0x1cc   : > { %5883 = vmatmul.mubr.msk.f32.vlgmr.msra.gmra.mxu1 %vm957_vm2, %v1577_v46  ;;  %5852 = vmatprep.mubr.msk.f32.mxu0 %vm957_vm2, %v6532_v45  ;;  %v1220_v54 = vld [vmem:[#allocation2 + $0xe] sm:$0xff]  ;;  %v1221_v55 = vld [vmem:[#allocation2 + $0x16] sm:$0xff]  ;;  %v5437_v46 = vld [vmem:[%s7183_s8] ss:$0 sm:$0xff]  ;;  %s5480_s8 = sld [smem:[#allocation3 + $0x5]] }
 0x1cd   : > { %5892 = vmatprep.mubr.msk.f32.mxu1 %vm957_vm2, %v1754_v48  ;;  %5855 = vmatprep.subr.msk.mxu0 %vm971_vm3, %v1133_v47  ;;  %v1309_v57 = vld [vmem:[#allocation2 + $0xf] sm:$0xff]  ;;  %v1310_v58 = vld [vmem:[#allocation2 + $0x17] sm:$0xff] }
 0x1ce   : > { %5891 = vmatpush3.msk.msra.mxu1 %vm971_vm3, %v1756_v32  ;;  %5853 = vmatmul.mubr.msk.f32.vlgmr.msra.gmra.mxu0 %vm957_vm2, %v6508_v29  ;;  %v1487_v61 = vld [vmem:[#allocation2 + $0x11] sm:$0xff] }
 0x1cf   : > { %5856 = vmatpush3.msk.msra.mxu0 %vm971_vm3, %v1133_v47  ;;  %5857 = vmatprep.mubr.msk.f32.mxu0 %vm957_vm2, %v1131_v51 }
 0x1d0   : > { %5860 = vmatprep.subr.msk.mxu0 %vm971_vm3, %v1222_v49  ;;  %5893 = vmatmul.mubr.msk.f32.vlgmr.msra.gmra.mxu1 %vm957_vm2, %v6549_v50 }
 0x1d1   : > { %5900 = vmatprep.subr.mxu1 %v1962_v2 }
 0x1d2   : > { %5858 = vmatmul.mubr.msk.f32.vlgmr.msra.gmra.mxu0 %vm957_vm2, %v1132_v52  ;;  %5901 = vmatpush3.msra.mxu1 %v1962_v2  ;;  %v2236_v2 = vld [vmem:[%s7147_s10 + $0x18] sm:$0xff] }
 0x1d3   : > { %5861 = vmatpush3.msk.msra.mxu0 %vm971_vm3, %v1222_v49  ;;  %5862 = vmatprep.mubr.msk.f32.mxu0 %vm957_vm2, %v1220_v54  ;;  %v5438_v49 = vld [vmem:[%s7184_s6] ss:$0 sm:$0xff]  ;;  %s5479_s6 = sld [smem:[#allocation3 + $0x4]] }
 0x1d4   : > { %5865 = vmatprep.subr.msk.mxu0 %vm971_vm3, %v1311_v53  ;;  %5902 = vmatprep.subr.mxu1 %v1961_v3 }
 0x1d5   : > { %5903 = vmatpush3.msra.mxu1 %v1961_v3  ;;  %v2064_v3 = vld [vmem:[%s7147_s10 + $0x8] sm:$0xf] }
 0x1d6   : > { %5863 = vmatmul.mubr.msk.f32.vlgmr.msra.gmra.mxu0 %vm957_vm2, %v1221_v55  ;;  %5904 = vmatprep.subr.mxu1 %v1960_v4  ;;  %v1952_v55 = vstv %s5402_s0 }
 0x1d7   : > { %5866 = vmatpush3.msk.msra.mxu0 %vm971_vm3, %v1311_v53  ;;  %5867 = vmatprep.mubr.msk.f32.mxu0 %vm957_vm2, %v1309_v57 }
 0x1d8   : > { %5870 = vmatprep.subr.msk.mxu0 %vm971_vm3, %v1400_v56  ;;  %5905 = vmatpush3.msra.mxu1 %v1960_v4  ;;  %v2417_v4 = vld [vmem:[%s7147_s10 + $0x38] sm:$0xf] }
 0x1d9   : > { %5906 = vmatprep.subr.mxu1 %v1959_v5 }
 0x1da   : > { %5868 = vmatmul.mubr.msk.f32.vlgmr.msra.gmra.mxu0 %vm957_vm2, %v1310_v58  ;;  %5907 = vmatpush3.msra.mxu1 %v1959_v5  ;;  %v5441_v5 = vld [vmem:[%s7146_s9] ss:$0 sm:$0xff] }
 0x1db   : > { %5871 = vmatpush3.msk.msra.mxu0 %vm971_vm3, %v1400_v56  ;;  %5872 = vmatprep.mubr.msk.f32.mxu0 %vm957_vm2, %v963_v43 }
 0x1dc   : > { %5875 = vmatprep.subr.msk.mxu0 %vm971_vm3, %v1489_v59 }
 0x1de   : > { %5873 = vmatmul.mubr.msk.f32.vlgmr.msra.gmra.mxu0 %vm957_vm2, %v1754_v48 }
 0x1df   : > { %5876 = vmatpush3.msk.msra.mxu0 %vm971_vm3, %v1489_v59  ;;  %5877 = vmatprep.mubr.msk.f32.mxu0 %vm957_vm2, %v1487_v61 }
 0x1e0   : > { %5885 = vmatprep.subr.msk.mxu0 %vm971_vm3, %v1667_v60 }
 0x1e2   : > { %5878 = vmatmul.mubr.msk.f32.vlgmr.msra.gmra.mxu0 %vm957_vm2, %v1488_v62  ;;  %v2067_v62 = vld [vmem:[%s7147_s10 + $0x14] sm:$0xf] }
 0x1e3   : > { %5886 = vmatpush3.msk.msra.mxu0 %vm971_vm3, %v1667_v60  ;;  %5887 = vmatprep.mubr.msk.f32.mxu0 %vm957_vm2, %v1132_v52 }
 0x1e4   : > { %5895 = vmatprep.subr.msk.mxu0 %vm971_vm3, %v1845_v63 }
 0x1e6   : > { %5888 = vmatmul.mubr.msk.f32.vlgmr.msra.gmra.mxu0 %vm957_vm2, %v1666_v0  ;;  %v2237_v0 = vld [vmem:[%s7147_s10 + $0x20] sm:$0xf] }
 0x1e7   : > { %5896 = vmatpush3.msk.msra.mxu0 %vm971_vm3, %v1845_v63  ;;  %5897 = vmatprep.mubr.msk.f32.mxu0 %vm957_vm2, %v6549_v50  ;;  %v2066_v63 = vld [vmem:[%s7147_s10 + $0xc] sm:$0xff] }
 0x1e8   : > { %5911 = vmatprep.subr.msk.mxu0 %vm2074_vm8, %v2067_v62  ;;  %5925 = vmatprep.subr.msk.mxu1 %vm2074_vm8, %v2237_v0 }
 0x1ea   : > { %5898 = vmatmul.mubr.msk.f32.vlgmr.msra.gmra.mxu0 %vm957_vm2, %v6597_v1 }
 0x1eb   : > { %5912 = vmatpush3.msk.msra.mxu0 %vm2074_vm8, %v2067_v62  ;;  %5915 = vmatprep.mubr.msk.f32.mxu0 %vm2058_vm9, %v6508_v29 }
 0x1ec   : > { %5913 = vmatprep.subr.mxu0 %v2066_v63 }
 0x1ed   : > { %5914 = vmatpush3.msra.mxu0 %v2066_v63 }
 0x1ee   : > { %5918 = vmatprep.subr.msk.mxu0 %vm2074_vm8, %v2064_v3 }
 0x28a   : > { %v5849_v6 = vpop.f32.mrf.mxu0 }
 0x28c   : > { %v1041_v7 = vpop.f32.mrf.mxu0  ;;  %v5884_v24 = vpop.f32.mrf.mxu1 }
 0x28e   : > { %v5854_v8 = vpop.f32.mrf.mxu0  ;;  %v1654_v32 = vpop.f32.mrf.mxu1 }
 0x28f   : > { %v1128_v14 = vadd.f32 %v5854_v8, %v5849_v6 }
 0x290   : > { %v1122_v9 = vpop.f32.mrf.mxu0  ;;  %v5894_v37 = vpop.f32.mrf.mxu1 }
 0x291   : > { %v1123_v16 = vadd.f32 %v1122_v9, %v1041_v7  ;;  %v2053_v7 = vstv %s5439_s30  ;;  %s5519_s30 = sld [smem:[#allocation3 + $0x6]] }
 0x292   : > { %v5859_v10 = vpop.f32.mrf.mxu0  ;;  %v1832_v43 = vpop.f32.mrf.mxu1 }
 0x293   : > { %v1219_v17 = vadd.f32 %v5859_v10, %v1128_v14 }
 0x294   : > { %v1209_v11 = vpop.f32.mrf.mxu0 }
 0x295   : > { %v1218_v19 = vadd.f32 %v1209_v11, %v1123_v16 }
 0x296   : > { %v5864_v12 = vpop.f32.mrf.mxu0 }
 0x297   : > { %v1308_v20 = vadd.f32 %v5864_v12, %v1219_v17 }
 0x298   : > { %v1298_v13 = vpop.f32.mrf.mxu0 }
 0x299   : > { %v1307_v22 = vadd.f32 %v1298_v13, %v1218_v19  ;;  %v2327_v19 = vld [vmem:[%s7147_s10 + $0x2c] sm:$0xf] }
 0x29a   : > { %v5869_v15 = vpop.f32.mrf.mxu0 }
 0x29b   : > { %v1397_v23 = vadd.f32 %v5869_v15, %v1308_v20  ;;  %v2063_v15 = vld [vmem:[%s7147_s10] sm:$0xff] }
 0x29c   : > { %v1387_v18 = vpop.f32.mrf.mxu0 }
 0x29d   : > { %v1396_v26 = vadd.f32 %v1387_v18, %v1307_v22  ;;  %v2326_v22 = vld [vmem:[%s7147_s10 + $0x24] sm:$0xff] }
 0x29e   : > { %v5874_v21 = vpop.f32.mrf.mxu0 }
 0x29f   : > { %v1486_v27 = vadd.f32 %v5874_v21, %v1397_v23  ;;  %v2416_v21 = vld [vmem:[%s7147_s10 + $0x30] sm:$0xff] }
 0x2a0   : > { %v1476_v25 = vpop.f32.mrf.mxu0  ;;  %v2597_v23 = vld [vmem:[%s7147_s10 + $0x50] sm:$0xf] }
 0x2a1   : > { %v1485_v30 = vadd.f32 %v1476_v25, %v1396_v26  ;;  %v2507_v26 = vld [vmem:[%s7147_s10 + $0x44] sm:$0xf] }
 0x2a2   : > { %v5879_v28 = vpop.f32.mrf.mxu0 }
 0x2a3   : > { %v1575_v31 = vadd.f32 %v5879_v28, %v1486_v27  ;;  %v2596_v27 = vld [vmem:[%s7147_s10 + $0x48] sm:$0xff] }
 0x2a4   : > { %v1565_v33 = vpop.f32.mrf.mxu0 }
 0x2a5   : > { %v1574_v34 = vadd.f32 %v1565_v33, %v1485_v30  ;;  %v1664_v35 = vadd.f32 %v5884_v24, %v1575_v31  ;;  %v2506_v31 = vld [vmem:[%s7147_s10 + $0x3c] sm:$0xff] }
 0x2a6   : > { %v5889_v36 = vpop.f32.mrf.mxu0 }
 0x2a7   : > { %v1753_v38 = vadd.f32 %v5889_v36, %v1664_v35  ;;  %v1663_v39 = vadd.f32 %v1654_v32, %v1574_v34  ;;  %v2777_v32 = vld [vmem:[%s7147_s10 + $0x68] sm:$0xf]  ;;  %v2687_v34 = vld [vmem:[%s7147_s10 + $0x5c] sm:$0xf]  ;;  %v2776_v35 = vld [vmem:[%s7147_s10 + $0x60] sm:$0xff] }
 0x2a8   : > { %v1743_v40 = vpop.f32.mrf.mxu0 }
 0x2a9   : > { %v1842_v41 = vadd.f32 %v5894_v37, %v1753_v38  ;;  %v1752_v42 = vadd.f32 %v1743_v40, %v1663_v39  ;;  %v2686_v37 = vld [vmem:[%s7147_s10 + $0x54] sm:$0xff] }
 0x2aa   : > { %v5899_v44 = vpop.f32.mrf.mxu0  ;;  %v2867_v39 = vld [vmem:[%s7147_s10 + $0x74] sm:$0xf] }
 0x2ab   : > { %v1841_v47 = vadd.f32 %v1832_v43, %v1752_v42  ;;  %v1931_v48 = vadd.f32 %v5899_v44, %v1842_v41  ;;  %v2957_v41 = vld [vmem:[%s7147_s10 + $0x80] sm:$0xf]  ;;  %v2866_v43 = vld [vmem:[%s7147_s10 + $0x6c] sm:$0xff]  ;;  %v2956_v44 = vld [vmem:[%s7147_s10 + $0x78] sm:$0xff] }
 0x2ac   : > { %v1921_v51 = vpop.f32.mrf.mxu0 }
 0x2ad   : > { %v1940_v52 = vmul.f32 %v5437_v46, %v1931_v48  ;;  %v1930_v53 = vadd.f32 %v1921_v51, %v1841_v47  ;;  %v3077_v47 = vld [vmem:[%s7150_s13 + $0x30] sm:$0xff]  ;;  %v3076_v48 = vld [vmem:[%s7150_s13 + $0x28] sm:$0xff]  ;;  %v3074_v51 = vld [vmem:[%s7150_s13 + $0x18] sm:$0xff] }
 0x2af   : > { %v1949_v54 = vadd.f32 %v5438_v49, %v1940_v52  ;;  %v1939_v56 = vmul.f32 %v5437_v46, %v1930_v53  ;;  %v3078_v46 = vld [vmem:[%s7150_s13 + $0x38] sm:$0xff]  ;;  %v3073_v52 = vld [vmem:[%s7150_s13 + $0x10] sm:$0xff]  ;;  %v3072_v53 = vld [vmem:[%s7150_s13 + $0x8] sm:$0xff] }
 0x2b1   : > { %v1948_v57 = vadd.f32 %v5438_v49, %v1939_v56  ;;  %v1954_v58 = vmul.f32 %v1952_v55, %v1949_v54  ;;  %vm1951_vm7 = vcmp.ge.f32.partialorder %v1949_v54, 0.0  ;;  %v3075_v49 = vld [vmem:[%s7150_s13 + $0x20] sm:$0xff] }
 0x2b3   : > { %vm1950_vm6 = vcmp.ge.f32.partialorder %v1948_v57, 0.0  ;;  %v1953_v59 = vmul.f32 %v1952_v55, %v1948_v57  ;;  %v1956_v61 = vsel %vm1951_vm7, %v1949_v54, %v1954_v58  ;;  %v3071_v54 = vld [vmem:[%s7150_s13] sm:$0xff] }
 0x2b5   : > { %v1955_v60 = vsel %vm1950_vm6, %v1948_v57, %v1953_v59 }
 0x2b6   : > { %5908 = vmatprep.mubr.msk.f32.mxu1 %vm761_vm0, %v1955_v60 }
 0x2b7   : > { %5909 = vmatmul.mubr.msk.f32.vlgmr.msra.gmra.mxu1 %vm761_vm0, %v1956_v61 }
 0x2b8   : > { %5926 = vmatpush3.msk.msra.mxu1 %vm2074_vm8, %v2237_v0 }
 0x2b9   : > { %5927 = vmatprep.subr.mxu1 %v2236_v2 }
 0x2ba   : > { %5928 = vmatpush3.msra.mxu1 %v2236_v2 }
 0x2bb   : > { %5939 = vmatprep.subr.msk.mxu1 %vm2074_vm8, %v2417_v4 }
 0x377   : > { %v5910_v6 = vpop.f32.mrf.mxu1 }
 0x378   : > { %v2048_v8 = vadd.f32 %v5910_v6, %v5441_v5 }
 0x379   : > { %v2042_v9 = vpop.f32.mrf.mxu1 }
 0x37a   : > { %vm2052_vm10 = vcmp.ge.f32.partialorder %v2048_v8, 0.0  ;;  %v2055_v10 = vmul.f32 %v2053_v7, %v2048_v8  ;;  %v2043_v11 = vadd.f32 %v5441_v5, %v2042_v9 }
 0x37c   : > { %v2057_v12 = vsel %vm2052_vm10, %v2048_v8, %v2055_v10  ;;  %vm2051_vm11 = vcmp.ge.f32.partialorder %v2043_v11, 0.0  ;;  %v2054_v13 = vmul.f32 %v2053_v7, %v2043_v11 }
 0x37d   : > { %2060 = vst.msk [vmem:[#allocation2 + $0x18] sm:$0xff] %vm2058_vm9, %v2057_v12 }
 0x37e   : > { %v2056_v14 = vsel %vm2051_vm11, %v2043_v11, %v2054_v13 }
 0x37f   : > { %2059 = vst.msk [vmem:[#allocation2 + $0x10] sm:$0xff] %vm2058_vm9, %v2056_v14 }
 0x384   : > { %v2595_v33 = vld [vmem:[#allocation2 + $0x19] sm:$0xff] }
 0x385   : > { %v2505_v36 = vld [vmem:[#allocation2 + $0x18] sm:$0xff] }
 0x386   : > { %v2065_v16 = vld [vmem:[#allocation2 + $0x10] sm:$0xff]  ;;  %v2775_v40 = vld [vmem:[#allocation2 + $0x1c] sm:$0xff] }
 0x387   : > { %v2234_v17 = vld [vmem:[#allocation2 + $0xc] sm:$0xff]  ;;  %v2235_v18 = vld [vmem:[#allocation2 + $0x14] sm:$0xff]  ;;  %5916 = vmatmul.mubr.msk.f32.vlgmr.msra.gmra.mxu0 %vm2058_vm9, %v2065_v16 }
 0x388   : > { %5929 = vmatprep.mubr.msk.f32.mxu1 %vm2058_vm9, %v2234_v17  ;;  %5919 = vmatpush3.msk.msra.mxu0 %vm2074_vm8, %v2064_v3  ;;  %v2414_v20 = vld [vmem:[#allocation2 + $0xf] sm:$0xff]  ;;  %v2415_v25 = vld [vmem:[#allocation2 + $0x17] sm:$0xff] }
 0x389   : > { %5930 = vmatmul.mubr.msk.f32.vlgmr.msra.gmra.mxu1 %vm2058_vm9, %v2235_v18  ;;  %5920 = vmatprep.subr.mxu0 %v2063_v15  ;;  %v2324_v24 = vld [vmem:[#allocation2 + $0xe] sm:$0xff]  ;;  %v2325_v30 = vld [vmem:[#allocation2 + $0x16] sm:$0xff] }
 0x38a   : > { %5940 = vmatpush3.msk.msra.mxu1 %vm2074_vm8, %v2417_v4  ;;  %5921 = vmatpush3.msra.mxu0 %v2063_v15  ;;  %v2594_v28 = vld [vmem:[#allocation2 + $0x11] sm:$0xff]  ;;  %v2685_v42 = vld [vmem:[#allocation2 + $0x1a] sm:$0xff] }
 0x38b   : > { %5943 = vmatprep.mubr.msk.f32.mxu1 %vm2058_vm9, %v2414_v20  ;;  %5922 = vmatprep.mubr.msk.f32.mxu0 %vm2058_vm9, %v6532_v45  ;;  %v2684_v38 = vld [vmem:[#allocation2 + $0x12] sm:$0xff] }
 0x38c   : > { %5932 = vmatprep.subr.msk.mxu0 %vm2074_vm8, %v2327_v19  ;;  %5941 = vmatprep.subr.mxu1 %v2416_v21 }
 0x38d   : > { %5923 = vmatmul.mubr.msk.f32.vlgmr.msra.gmra.mxu0 %vm2058_vm9, %v6508_v29  ;;  %5942 = vmatpush3.msra.mxu1 %v2416_v21 }
 0x38e   : > { %5933 = vmatpush3.msk.msra.mxu0 %vm2074_vm8, %v2327_v19  ;;  %5936 = vmatprep.mubr.msk.f32.mxu0 %vm2058_vm9, %v2324_v24 }
 0x38f   : > { %5934 = vmatprep.subr.mxu0 %v2326_v22  ;;  %5944 = vmatmul.mubr.msk.f32.vlgmr.msra.gmra.mxu1 %vm2058_vm9, %v2415_v25 }
 0x390   : > { %5953 = vmatprep.subr.msk.mxu1 %vm2074_vm8, %v2597_v23  ;;  %5935 = vmatpush3.msra.mxu0 %v2326_v22 }
 0x391   : > { %5954 = vmatpush3.msk.msra.mxu1 %vm2074_vm8, %v2597_v23  ;;  %5957 = vmatprep.mubr.msk.f32.mxu1 %vm2058_vm9, %v2594_v28 }
 0x392   : > { %5946 = vmatprep.subr.msk.mxu0 %vm2074_vm8, %v2507_v26  ;;  %5955 = vmatprep.subr.mxu1 %v2596_v27 }
 0x393   : > { %5937 = vmatmul.mubr.msk.f32.vlgmr.msra.gmra.mxu0 %vm2058_vm9, %v2325_v30  ;;  %5956 = vmatpush3.msra.mxu1 %v2596_v27  ;;  %v5477_v30 = vld [vmem:[%s7148_s11] ss:$0 sm:$0xff] }
 0x394   : > { %5947 = vmatpush3.msk.msra.mxu0 %vm2074_vm8, %v2507_v26  ;;  %5950 = vmatprep.mubr.msk.f32.mxu0 %vm2058_vm9, %v2065_v16 }
 0x395   : > { %5948 = vmatprep.subr.mxu0 %v2506_v31  ;;  %5958 = vmatmul.mubr.msk.f32.vlgmr.msra.gmra.mxu1 %vm2058_vm9, %v2595_v33 }
 0x396   : > { %5967 = vmatprep.subr.msk.mxu1 %vm2074_vm8, %v2777_v32  ;;  %5949 = vmatpush3.msra.mxu0 %v2506_v31 }
 0x397   : > { %5968 = vmatpush3.msk.msra.mxu1 %vm2074_vm8, %v2777_v32  ;;  %5971 = vmatprep.mubr.msk.f32.mxu1 %vm2058_vm9, %v2235_v18 }
 0x398   : > { %5960 = vmatprep.subr.msk.mxu0 %vm2074_vm8, %v2687_v34  ;;  %5969 = vmatprep.subr.mxu1 %v2776_v35 }
 0x399   : > { %5951 = vmatmul.mubr.msk.f32.vlgmr.msra.gmra.mxu0 %vm2058_vm9, %v2505_v36  ;;  %5970 = vmatpush3.msra.mxu1 %v2776_v35 }
 0x39a   : > { %5961 = vmatpush3.msk.msra.mxu0 %vm2074_vm8, %v2687_v34  ;;  %5964 = vmatprep.mubr.msk.f32.mxu0 %vm2058_vm9, %v2684_v38  ;;  %v5478_v34 = vld [vmem:[%s7149_s12] ss:$0 sm:$0xff] }
 0x39b   : > { %5962 = vmatprep.subr.mxu0 %v2686_v37  ;;  %5972 = vmatmul.mubr.msk.f32.vlgmr.msra.gmra.mxu1 %vm2058_vm9, %v2775_v40 }
 0x39c   : > { %5963 = vmatpush3.msra.mxu0 %v2686_v37  ;;  %5981 = vmatprep.subr.msk.mxu1 %vm2074_vm8, %v2957_v41 }
 0x39d   : > { %5974 = vmatprep.subr.msk.mxu0 %vm2074_vm8, %v2867_v39  ;;  %5965 = vmatmul.mubr.msk.f32.vlgmr.msra.gmra.mxu0 %vm2058_vm9, %v2685_v42 }
 0x39e   : > { %5975 = vmatpush3.msk.msra.mxu0 %vm2074_vm8, %v2867_v39  ;;  %5978 = vmatprep.mubr.msk.f32.mxu0 %vm2058_vm9, %v2505_v36  ;;  %v3064_v39 = vstv %s5440_s2  ;;  %s747_s2 = scalar_lea.vmem %s7161_s24, %s7186_s26 }
 0x39f   : > { %5976 = vmatprep.subr.mxu0 %v2866_v43  ;;  %5982 = vmatpush3.msk.msra.mxu1 %vm2074_vm8, %v2957_v41 }
 0x3a0   : > { %5977 = vmatpush3.msra.mxu0 %v2866_v43  ;;  %5983 = vmatprep.subr.mxu1 %v2956_v44 }
 0x3a1   : > { %5985 = vmatprep.mubr.msk.f32.mxu1 %vm2058_vm9, %v6549_v50  ;;  %5984 = vmatpush3.msra.mxu1 %v2956_v44 }
 0x3a2   : > { %5979 = vmatmul.mubr.msk.f32.vlgmr.msra.gmra.mxu0 %vm2058_vm9, %v6549_v50  ;;  %5986 = vmatmul.mubr.msk.f32.vlgmr.msra.gmra.mxu1 %vm2058_vm9, %v6597_v1 }
 0x3a3   : > { %6011 = vmatprep.mubr.msk.f32.mxu1 %vm2058_vm9, %v6508_v29  ;;  %5988 = vmatprep.subr.mxu0 %v3078_v46 }
 0x3a4   : > { %5989 = vmatpush3.msra.mxu0 %v3078_v46 }
 0x3a5   : > { %5990 = vmatprep.subr.mxu0 %v3077_v47 }
 0x3a6   : > { %5991 = vmatpush3.msra.mxu0 %v3077_v47  ;;  %v3183_v47 = vld [vmem:[%s7152_s15 + $0x14] sm:$0xf] }
 0x3a7   : > { %5992 = vmatprep.subr.mxu0 %v3076_v48  ;;  %6007 = vmatprep.subr.msk.mxu1 %vm2074_vm8, %v3183_v47 }
 0x3a8   : > { %5993 = vmatpush3.msra.mxu0 %v3076_v48  ;;  %v3182_v48 = vld [vmem:[%s7152_s15 + $0xc] sm:$0xff]  ;;  %6008 = vmatpush3.msk.msra.mxu1 %vm2074_vm8, %v3183_v47 }
 0x3a9   : > { %5994 = vmatprep.subr.mxu0 %v3075_v49  ;;  %6009 = vmatprep.subr.mxu1 %v3182_v48 }
 0x3aa   : > { %5995 = vmatpush3.msra.mxu0 %v3075_v49  ;;  %v3532_v49 = vld [vmem:[%s7152_s15 + $0x38] sm:$0xf]  ;;  %6010 = vmatpush3.msra.mxu1 %v3182_v48 }
 0x3ab   : > { %5996 = vmatprep.subr.mxu0 %v3074_v51 }
 0x3ac   : > { %5997 = vmatpush3.msra.mxu0 %v3074_v51  ;;  %v3531_v51 = vld [vmem:[%s7152_s15 + $0x30] sm:$0xff] }
 0x3ad   : > { %5998 = vmatprep.subr.mxu0 %v3073_v52 }
 0x3ae   : > { %5999 = vmatpush3.msra.mxu0 %v3073_v52  ;;  %v3180_v52 = vld [vmem:[%s7152_s15 + $0x8] sm:$0xf] }
 0x3af   : > { %6000 = vmatprep.subr.mxu0 %v3072_v53  ;;  %6014 = vmatprep.subr.msk.mxu1 %vm2074_vm8, %v3180_v52 }
 0x3b0   : > { %6001 = vmatpush3.msra.mxu0 %v3072_v53  ;;  %v3712_v53 = vld [vmem:[%s7152_s15 + $0x50] sm:$0xf] }
 0x3b1   : > { %6002 = vmatprep.subr.mxu0 %v3071_v54 }
 0x3b2   : > { %6003 = vmatpush3.msra.mxu0 %v3071_v54  ;;  %v5481_v54 = vld [vmem:[%s7151_s14] ss:$0 sm:$0xff] }
 0x3b3   : > { %6035 = vmatprep.subr.msk.mxu0 %vm2074_vm8, %v3532_v49 }
 0x447   : > { %v5917_v55 = vpop.f32.mrf.mxu0 }
 0x449   : > { %v5931_v56 = vpop.f32.mrf.mxu1  ;;  %v2144_v57 = vpop.f32.mrf.mxu0 }
 0x44b   : > { %v2313_v58 = vpop.f32.mrf.mxu1 }
 0x44d   : > { %v5924_v59 = vpop.f32.mrf.mxu0 }
 0x44e   : > { %v2231_v60 = vadd.f32 %v5924_v59, %v5917_v55 }
 0x44f   : > { %v2225_v61 = vpop.f32.mrf.mxu0  ;;  %v5945_v62 = vpop.f32.mrf.mxu1 }
 0x450   : > { %v2226_v63 = vadd.f32 %v2225_v61, %v2144_v57  ;;  %v2323_v0 = vadd.f32 %v5931_v56, %v2231_v60  ;;  %v3170_v56 = vstv %s5479_s6 }
 0x451   : > { %v2493_v2 = vpop.f32.mrf.mxu1 }
 0x452   : > { %v2322_v3 = vadd.f32 %v2313_v58, %v2226_v63 }
 0x453   : > { %v5938_v4 = vpop.f32.mrf.mxu0 }
 0x454   : > { %v2413_v5 = vadd.f32 %v5938_v4, %v2323_v0  ;;  %v3179_v0 = vld [vmem:[%s7152_s15] sm:$0xff] }
 0x455   : > { %v2403_v6 = vpop.f32.mrf.mxu0  ;;  %v5959_v7 = vpop.f32.mrf.mxu1 }
 0x456   : > { %v2412_v8 = vadd.f32 %v2403_v6, %v2322_v3  ;;  %v2503_v9 = vadd.f32 %v5945_v62, %v2413_v5  ;;  %v3352_v5 = vld [vmem:[%s7152_s15 + $0x20] sm:$0xf] }
 0x457   : > { %v2673_v11 = vpop.f32.mrf.mxu1 }
 0x458   : > { %v2502_v10 = vadd.f32 %v2493_v2, %v2412_v8  ;;  %v3351_v8 = vld [vmem:[%s7152_s15 + $0x18] sm:$0xff] }
 0x459   : > { %v5952_v12 = vpop.f32.mrf.mxu0 }
 0x45a   : > { %v2593_v13 = vadd.f32 %v5952_v12, %v2503_v9  ;;  %v3892_v9 = vld [vmem:[%s7152_s15 + $0x68] sm:$0xf] }
 0x45b   : > { %v2583_v14 = vpop.f32.mrf.mxu0  ;;  %v5973_v17 = vpop.f32.mrf.mxu1 }
 0x45c   : > { %v2592_v15 = vadd.f32 %v2583_v14, %v2502_v10  ;;  %v2683_v16 = vadd.f32 %v5959_v7, %v2593_v13  ;;  %v3711_v7 = vld [vmem:[%s7152_s15 + $0x48] sm:$0xff] }
 0x45d   : > { %v5966_v18 = vpop.f32.mrf.mxu0  ;;  %v2853_v24 = vpop.f32.mrf.mxu1  ;;  %v3441_v13 = vld [vmem:[%s7152_s15 + $0x24] sm:$0xff] }
 0x45e   : > { %v2773_v19 = vadd.f32 %v5966_v18, %v2683_v16  ;;  %v2682_v20 = vadd.f32 %v2673_v11, %v2592_v15  ;;  %v3442_v11 = vld [vmem:[%s7152_s15 + $0x2c] sm:$0xf]  ;;  %v3622_v15 = vld [vmem:[%s7152_s15 + $0x44] sm:$0xf]  ;;  %v3621_v18 = vld [vmem:[%s7152_s15 + $0x3c] sm:$0xff] }
 0x45f   : > { %v2763_v21 = vpop.f32.mrf.mxu0 }
 0x460   : > { %v2772_v22 = vadd.f32 %v2763_v21, %v2682_v20  ;;  %v2863_v23 = vadd.f32 %v5973_v17, %v2773_v19  ;;  %v4072_v19 = vld [vmem:[%s7152_s15 + $0x80] sm:$0xf]  ;;  %v3802_v20 = vld [vmem:[%s7152_s15 + $0x5c] sm:$0xf] }
 0x462   : > { %v5980_v25 = vpop.f32.mrf.mxu0  ;;  %v2862_v26 = vadd.f32 %v2853_v24, %v2772_v22  ;;  %v5987_v28 = vpop.f32.mrf.mxu1  ;;  %v3801_v22 = vld [vmem:[%s7152_s15 + $0x54] sm:$0xff] }
 0x463   : > { %v2953_v27 = vadd.f32 %v5980_v25, %v2863_v23  ;;  %v4071_v23 = vld [vmem:[%s7152_s15 + $0x78] sm:$0xff]  ;;  %v3982_v25 = vld [vmem:[%s7152_s15 + $0x74] sm:$0xf] }
 0x464   : > { %v2943_v31 = vpop.f32.mrf.mxu0  ;;  %v3033_v35 = vpop.f32.mrf.mxu1 }
 0x465   : > { %v3043_v32 = vadd.f32 %v5987_v28, %v2953_v27  ;;  %v2952_v33 = vadd.f32 %v2943_v31, %v2862_v26  ;;  %v3981_v27 = vld [vmem:[%s7152_s15 + $0x6c] sm:$0xff]  ;;  %v4195_v28 = vld [vmem:[%s7155_s18 + $0x38] sm:$0xff] }
 0x466   : > { %v4193_v31 = vld [vmem:[%s7155_s18 + $0x28] sm:$0xff] }
 0x467   : > { %v3052_v36 = vmul.f32 %v5477_v30, %v3043_v32  ;;  %v3042_v37 = vadd.f32 %v3033_v35, %v2952_v33  ;;  %v4190_v32 = vld [vmem:[%s7155_s18 + $0x10] sm:$0xff]  ;;  %v4189_v33 = vld [vmem:[%s7155_s18 + $0x8] sm:$0xff] }
 0x469   : > { %v3061_v38 = vadd.f32 %v5478_v34, %v3052_v36  ;;  %v3051_v40 = vmul.f32 %v5477_v30, %v3042_v37  ;;  %v4194_v30 = vld [vmem:[%s7155_s18 + $0x30] sm:$0xff] }
 0x46b   : > { %v3060_v41 = vadd.f32 %v5478_v34, %v3051_v40  ;;  %v3066_v42 = vmul.f32 %v3064_v39, %v3061_v38  ;;  %vm3063_vm14 = vcmp.ge.f32.partialorder %v3061_v38, 0.0  ;;  %v4188_v34 = vld [vmem:[%s7155_s18] sm:$0xff] }
 0x46d   : > { %vm3062_vm12 = vcmp.ge.f32.partialorder %v3060_v41, 0.0  ;;  %v3065_v43 = vmul.f32 %v3064_v39, %v3060_v41  ;;  %v6778_v46 = vsel %vm3063_vm14, %v3061_v38, %v3066_v42 }
 0x46f   : > { %v6774_v44 = vsel %vm3062_vm12, %v3060_v41, %v3065_v43 }
 0x470   : > { %6004 = vmatprep.mubr.msk.f32.mxu0 %vm3086_vm13, %v6774_v44 }
 0x471   : > { %6005 = vmatmul.mubr.msk.f32.vlgmr.msra.gmra.mxu0 %vm3086_vm13, %v6778_v46 }
 0x472   : > { %6036 = vmatpush3.msk.msra.mxu0 %vm2074_vm8, %v3532_v49 }
 0x473   : > { %6037 = vmatprep.subr.mxu0 %v3531_v51 }
 0x474   : > { %6038 = vmatpush3.msra.mxu0 %v3531_v51 }
 0x475   : > { %6049 = vmatprep.subr.msk.mxu0 %vm2074_vm8, %v3712_v53 }
 0x531   : > { %v6006_v55 = vpop.f32.mrf.mxu0 }
 0x532   : > { %v3165_v57 = vadd.f32 %v6006_v55, %v5481_v54 }
 0x533   : > { %v3159_v58 = vpop.f32.mrf.mxu0 }
 0x534   : > { %vm3169_vm15 = vcmp.ge.f32.partialorder %v3165_v57, 0.0  ;;  %v3172_v59 = vmul.f32 %v3170_v56, %v3165_v57  ;;  %v3160_v60 = vadd.f32 %v5481_v54, %v3159_v58 }
 0x536   : > { %v3174_v61 = vsel %vm3169_vm15, %v3165_v57, %v3172_v59  ;;  %vm3168_vm0 = vcmp.ge.f32.partialorder %v3160_v60, 0.0  ;;  %v3171_v62 = vmul.f32 %v3170_v56, %v3160_v60 }
 0x537   : > { %3176 = vst.msk [vmem:[#allocation2 + $0x18] sm:$0xff] %vm2058_vm9, %v3174_v61 }
 0x538   : > { %v3173_v63 = vsel %vm3168_vm0, %v3160_v60, %v3171_v62 }
 0x539   : > { %3175 = vst.msk [vmem:[#allocation2 + $0x10] sm:$0xff] %vm2058_vm9, %v3173_v63 }
 0x53e   : > { %v3890_v16 = vld [vmem:[#allocation2 + $0x1c] sm:$0xff] }
 0x53f   : > { %v3620_v21 = vld [vmem:[#allocation2 + $0x18] sm:$0xff] }
 0x540   : > { %v3181_v2 = vld [vmem:[#allocation2 + $0x10] sm:$0xff]  ;;  %v3800_v26 = vld [vmem:[#allocation2 + $0x1a] sm:$0xff] }
 0x541   : > { %v3529_v3 = vld [vmem:[#allocation2 + $0xf] sm:$0xff]  ;;  %v3530_v4 = vld [vmem:[#allocation2 + $0x17] sm:$0xff]  ;;  %6012 = vmatmul.mubr.msk.f32.vlgmr.msra.gmra.mxu1 %vm2058_vm9, %v3181_v2 }
 0x542   : > { %6039 = vmatprep.mubr.msk.f32.mxu0 %vm2058_vm9, %v3529_v3  ;;  %6015 = vmatpush3.msk.msra.mxu1 %vm2074_vm8, %v3180_v52  ;;  %v3709_v6 = vld [vmem:[#allocation2 + $0x11] sm:$0xff] }
 0x543   : > { %6040 = vmatmul.mubr.msk.f32.vlgmr.msra.gmra.mxu0 %vm2058_vm9, %v3530_v4  ;;  %6016 = vmatprep.subr.mxu1 %v3179_v0  ;;  %v3349_v10 = vld [vmem:[#allocation2 + $0xc] sm:$0xff]  ;;  %v3889_v12 = vld [vmem:[#allocation2 + $0x14] sm:$0xff] }
 0x544   : > { %6050 = vmatpush3.msk.msra.mxu0 %vm2074_vm8, %v3712_v53  ;;  %6017 = vmatpush3.msra.mxu1 %v3179_v0  ;;  %v3439_v14 = vld [vmem:[#allocation2 + $0xe] sm:$0xff]  ;;  %v3440_v17 = vld [vmem:[#allocation2 + $0x16] sm:$0xff] }
 0x545   : > { %6053 = vmatprep.mubr.msk.f32.mxu0 %vm2058_vm9, %v3709_v6  ;;  %6018 = vmatprep.mubr.msk.f32.mxu1 %vm2058_vm9, %v6532_v45  ;;  %v3710_v45 = vld [vmem:[#allocation2 + $0x19] sm:$0xff] }
 0x546   : > { %6021 = vmatprep.subr.msk.mxu1 %vm2074_vm8, %v3352_v5  ;;  %6051 = vmatprep.subr.mxu0 %v3711_v7  ;;  %v3799_v24 = vld [vmem:[#allocation2 + $0x12] sm:$0xff] }
 0x547   : > { %6019 = vmatmul.mubr.msk.f32.vlgmr.msra.gmra.mxu1 %vm2058_vm9, %v6508_v29  ;;  %6052 = vmatpush3.msra.mxu0 %v3711_v7  ;;  %v3891_v29 = vld [vmem:[%s7152_s15 + $0x60] sm:$0xff] }
 0x548   : > { %6022 = vmatpush3.msk.msra.mxu1 %vm2074_vm8, %v3352_v5  ;;  %6025 = vmatprep.mubr.msk.f32.mxu1 %vm2058_vm9, %v3349_v10 }
 0x549   : > { %6023 = vmatprep.subr.mxu1 %v3351_v8  ;;  %6054 = vmatmul.mubr.msk.f32.vlgmr.msra.gmra.mxu0 %vm2058_vm9, %v3710_v45 }
 0x54a   : > { %6063 = vmatprep.subr.msk.mxu0 %vm2074_vm8, %v3892_v9  ;;  %6024 = vmatpush3.msra.mxu1 %v3351_v8 }
 0x54b   : > { %6064 = vmatpush3.msk.msra.mxu0 %vm2074_vm8, %v3892_v9  ;;  %6067 = vmatprep.mubr.msk.f32.mxu0 %vm2058_vm9, %v3889_v12 }
 0x54c   : > { %6028 = vmatprep.subr.msk.mxu1 %vm2074_vm8, %v3442_v11  ;;  %6065 = vmatprep.subr.mxu0 %v3891_v29 }
 0x54d   : > { %6026 = vmatmul.mubr.msk.f32.vlgmr.msra.gmra.mxu1 %vm2058_vm9, %v3889_v12  ;;  %6066 = vmatpush3.msra.mxu0 %v3891_v29 }
 0x54e   : > { %6029 = vmatpush3.msk.msra.mxu1 %vm2074_vm8, %v3442_v11  ;;  %6032 = vmatprep.mubr.msk.f32.mxu1 %vm2058_vm9, %v3439_v14  ;;  %v5517_v14 = vld [vmem:[%s7153_s16] ss:$0 sm:$0xff] }
 0x54f   : > { %6030 = vmatprep.subr.mxu1 %v3441_v13  ;;  %6068 = vmatmul.mubr.msk.f32.vlgmr.msra.gmra.mxu0 %vm2058_vm9, %v3890_v16 }
 0x550   : > { %6031 = vmatpush3.msra.mxu1 %v3441_v13  ;;  %6077 = vmatprep.subr.msk.mxu0 %vm2074_vm8, %v4072_v19 }
 0x551   : > { %6042 = vmatprep.subr.msk.mxu1 %vm2074_vm8, %v3622_v15  ;;  %6033 = vmatmul.mubr.msk.f32.vlgmr.msra.gmra.mxu1 %vm2058_vm9, %v3440_v17 }
 0x552   : > { %6043 = vmatpush3.msk.msra.mxu1 %vm2074_vm8, %v3622_v15  ;;  %6046 = vmatprep.mubr.msk.f32.mxu1 %vm2058_vm9, %v3181_v2 }
 0x553   : > { %6044 = vmatprep.subr.mxu1 %v3621_v18  ;;  %6078 = vmatpush3.msk.msra.mxu0 %vm2074_vm8, %v4072_v19 }
 0x554   : > { %6045 = vmatpush3.msra.mxu1 %v3621_v18  ;;  %6079 = vmatprep.subr.mxu0 %v4071_v23  ;;  %v5518_v18 = vld [vmem:[%s7154_s17] ss:$0 sm:$0xff] }
 0x555   : > { %6056 = vmatprep.subr.msk.mxu1 %vm2074_vm8, %v3802_v20  ;;  %6047 = vmatmul.mubr.msk.f32.vlgmr.msra.gmra.mxu1 %vm2058_vm9, %v3620_v21 }
 0x556   : > { %6057 = vmatpush3.msk.msra.mxu1 %vm2074_vm8, %v3802_v20  ;;  %6060 = vmatprep.mubr.msk.f32.mxu1 %vm2058_vm9, %v3799_v24 }
 0x557   : > { %6058 = vmatprep.subr.mxu1 %v3801_v22  ;;  %6080 = vmatpush3.msra.mxu0 %v4071_v23  ;;  %v4181_v23 = vstv %s5480_s8 }
 0x558   : > { %6059 = vmatpush3.msra.mxu1 %v3801_v22  ;;  %6081 = vmatprep.mubr.msk.f32.mxu0 %vm2058_vm9, %v6549_v50 }
 0x559   : > { %6070 = vmatprep.subr.msk.mxu1 %vm2074_vm8, %v3982_v25  ;;  %6061 = vmatmul.mubr.msk.f32.vlgmr.msra.gmra.mxu1 %vm2058_vm9, %v3800_v26 }
 0x55a   : > { %6071 = vmatpush3.msk.msra.mxu1 %vm2074_vm8, %v3982_v25  ;;  %6074 = vmatprep.mubr.msk.f32.mxu1 %vm2058_vm9, %v3620_v21 }
 0x55b   : > { %6072 = vmatprep.subr.mxu1 %v3981_v27  ;;  %6082 = vmatmul.mubr.msk.f32.vlgmr.msra.gmra.mxu0 %vm2058_vm9, %v6597_v1  ;;  %v4191_v1 = vld [vmem:[%s7155_s18 + $0x18] sm:$0xff] }
 0x55c   : > { %6073 = vmatpush3.msra.mxu1 %v3981_v27 }
 0x55d   : > { %6075 = vmatmul.mubr.msk.f32.vlgmr.msra.gmra.mxu1 %vm2058_vm9, %v6549_v50  ;;  %6084 = vmatprep.subr.mxu1 %v4195_v28  ;;  %v4192_v50 = vld [vmem:[%s7155_s18 + $0x20] sm:$0xff] }
 0x55e   : > { %6085 = vmatpush3.msra.mxu1 %v4195_v28  ;;  %v4303_v28 = vld [vmem:[%s7157_s20 + $0x31] sm:$0x1] }
 0x55f   : > { %6086 = vmatprep.subr.mxu1 %v4194_v30  ;;  %6103 = vmatprep.subr.msk.mxu0 %vm4310_vm4, %v4303_v28 }
 0x560   : > { %6087 = vmatpush3.msra.mxu1 %v4194_v30  ;;  %v4302_v30 = vld [vmem:[%s7157_s20 + $0x29] sm:$0xff]  ;;  %6104 = vmatpush3.msk.msra.mxu0 %vm4310_vm4, %v4303_v28 }
 0x561   : > { %6088 = vmatprep.subr.mxu1 %v4193_v31  ;;  %6105 = vmatprep.subr.mxu0 %v4302_v30 }
 0x562   : > { %6089 = vmatpush3.msra.mxu1 %v4193_v31  ;;  %v4474_v31 = vld [vmem:[%s7157_s20 + $0x42] sm:$0xff]  ;;  %6106 = vmatpush3.msra.mxu0 %v4302_v30  ;;  %v5208_v30 = vld [vmem:[%s7157_s20 + $0xfa] sm:$0xff] }
 0x563   : > { %6090 = vmatprep.subr.mxu1 %v4192_v50 }
 0x564   : > { %6091 = vmatpush3.msra.mxu1 %v4192_v50  ;;  %v4301_v50 = vld [vmem:[%s7157_s20 + $0x21] sm:$0xff] }
 0x565   : > { %6092 = vmatprep.subr.mxu1 %v4191_v1  ;;  %6107 = vmatprep.subr.mxu0 %v4301_v50 }
 0x566   : > { %6093 = vmatpush3.msra.mxu1 %v4191_v1  ;;  %v4473_v1 = vld [vmem:[%s7157_s20 + $0x3a] sm:$0xff]  ;;  %6108 = vmatpush3.msra.mxu0 %v4301_v50 }
 0x567   : > { %6094 = vmatprep.subr.mxu1 %v4190_v32  ;;  %v5206_v50 = vld [vmem:[#allocation2 + $0x20] sm:$0xff] }
 0x568   : > { %6095 = vmatpush3.msra.mxu1 %v4190_v32  ;;  %v4300_v32 = vld [vmem:[%s7157_s20 + $0x19] sm:$0xff] }
 0x569   : > { %6096 = vmatprep.subr.mxu1 %v4189_v33  ;;  %6109 = vmatprep.subr.mxu0 %v4300_v32 }
 0x56a   : > { %6097 = vmatpush3.msra.mxu1 %v4189_v33  ;;  %v4472_v33 = vld [vmem:[%s7157_s20 + $0x32] sm:$0xff]  ;;  %6110 = vmatpush3.msra.mxu0 %v4300_v32  ;;  %v5116_v32 = vld [vmem:[%s7157_s20 + $0xe1] sm:$0xff] }
 0x56b   : > { %6098 = vmatprep.subr.mxu1 %v4188_v34 }
 0x56c   : > { %6099 = vmatpush3.msra.mxu1 %v4188_v34  ;;  %v4294_v34 = vld [vmem:[#allocation2 + $0x8] sm:$0xff] }
 0x56d   : > { %6111 = vmatprep.mubr.msk.f32.mxu0 %vm843_vm1, %v4294_v34 }
 0x601   : > { %v6013_v35 = vpop.f32.mrf.mxu1 }
 0x603   : > { %v3259_v36 = vpop.f32.mrf.mxu1  ;;  %v6041_v37 = vpop.f32.mrf.mxu0 }
 0x605   : > { %v3608_v40 = vpop.f32.mrf.mxu0 }
 0x607   : > { %v6020_v38 = vpop.f32.mrf.mxu1 }
 0x608   : > { %v3346_v42 = vadd.f32 %v6020_v38, %v6013_v35  ;;  %v4298_v35 = vld [vmem:[%s7157_s20 + $0x18] sm:$0x1] }
 0x609   : > { %v3340_v39 = vpop.f32.mrf.mxu1  ;;  %v6055_v43 = vpop.f32.mrf.mxu0  ;;  %6114 = vmatprep.subr.msk.mxu0 %vm4310_vm4, %v4298_v35 }
 0x60a   : > { %v3341_v48 = vadd.f32 %v3340_v39, %v3259_v36  ;;  %v4659_v36 = vld [vmem:[%s7157_s20 + $0x7c] sm:$0x1]  ;;  %v4286_v39 = vstv %s5519_s30 }
 0x60b   : > { %v3788_v54 = vpop.f32.mrf.mxu0 }
 0x60d   : > { %v6027_v41 = vpop.f32.mrf.mxu1 }
 0x60e   : > { %v3438_v49 = vadd.f32 %v6027_v41, %v3346_v42 }
 0x60f   : > { %v3428_v47 = vpop.f32.mrf.mxu1  ;;  %v6069_v61 = vpop.f32.mrf.mxu0 }
 0x610   : > { %v3437_v52 = vadd.f32 %v3428_v47, %v3341_v48 }
 0x611   : > { %v6034_v51 = vpop.f32.mrf.mxu1  ;;  %v3968_v5 = vpop.f32.mrf.mxu0 }
 0x612   : > { %v3528_v53 = vadd.f32 %v6034_v51, %v3438_v49  ;;  %v4297_v51 = vld [vmem:[%s7157_s20 + $0x10] sm:$0xff] }
 0x613   : > { %v3518_v55 = vpop.f32.mrf.mxu1 }
 0x614   : > { %v3527_v56 = vadd.f32 %v3518_v55, %v3437_v52  ;;  %v3618_v57 = vadd.f32 %v6041_v37, %v3528_v53  ;;  %v5521_v37 = vld [vmem:[%s7156_s19] ss:$0 sm:$0xff]  ;;  %v4658_v55 = vld [vmem:[%s7157_s20 + $0x74] sm:$0xff] }
 0x615   : > { %v6048_v58 = vpop.f32.mrf.mxu1 }
 0x616   : > { %v3708_v59 = vadd.f32 %v6048_v58, %v3618_v57  ;;  %v3617_v60 = vadd.f32 %v3608_v40, %v3527_v56  ;;  %v4296_v56 = vld [vmem:[%s7157_s20 + $0x8] sm:$0xff] }
 0x617   : > { %v3698_v62 = vpop.f32.mrf.mxu1  ;;  %v4657_v58 = vld [vmem:[%s7157_s20 + $0x6c] sm:$0xff] }
 0x618   : > { %v3707_v63 = vadd.f32 %v3698_v62, %v3617_v60  ;;  %v3798_v0 = vadd.f32 %v6055_v43, %v3708_v59  ;;  %v4295_v59 = vld [vmem:[%s7157_s20] sm:$0xff] }
 0x619   : > { %v6062_v2 = vpop.f32.mrf.mxu1  ;;  %v4293_v60 = vld [vmem:[#allocation2] sm:$0xff] }
 0x61a   : > { %v3888_v3 = vadd.f32 %v6062_v2, %v3798_v0  ;;  %v3797_v4 = vadd.f32 %v3788_v54, %v3707_v63  ;;  %v4567_v62 = vld [vmem:[%s7157_s20 + $0x63] sm:$0x1]  ;;  %v4843_v63 = vld [vmem:[%s7157_s20 + $0xae] sm:$0x1]  ;;  %v4566_v0 = vld [vmem:[%s7157_s20 + $0x5b] sm:$0xff] }
 0x61b   : > { %v3878_v6 = vpop.f32.mrf.mxu1  ;;  %v6083_v10 = vpop.f32.mrf.mxu0 }
 0x61c   : > { %v3887_v7 = vadd.f32 %v3878_v6, %v3797_v4  ;;  %v3978_v8 = vadd.f32 %v6069_v61, %v3888_v3  ;;  %v4656_v61 = vld [vmem:[%s7157_s20 + $0x64] sm:$0xff]  ;;  %v4565_v6 = vld [vmem:[%s7157_s20 + $0x53] sm:$0xff] }
 0x61d   : > { %v6076_v9 = vpop.f32.mrf.mxu1  ;;  %v4148_v15 = vpop.f32.mrf.mxu0  ;;  %v4842_v4 = vld [vmem:[%s7157_s20 + $0xa6] sm:$0xff] }
 0x61e   : > { %v4068_v45 = vadd.f32 %v6076_v9, %v3978_v8  ;;  %v3977_v11 = vadd.f32 %v3968_v5, %v3887_v7  ;;  %v4841_v7 = vld [vmem:[%s7157_s20 + $0x9e] sm:$0xff]  ;;  %v4564_v8 = vld [vmem:[%s7157_s20 + $0x4b] sm:$0xff]  ;;  %v4840_v9 = vld [vmem:[%s7157_s20 + $0x96] sm:$0xff] }
 0x61f   : > { %v4058_v29 = vpop.f32.mrf.mxu1 }
 0x620   : > { %v4158_v12 = vadd.f32 %v6083_v10, %v4068_v45  ;;  %v4067_v13 = vadd.f32 %v4058_v29, %v3977_v11  ;;  %v4751_v10 = vld [vmem:[%s7157_s20 + $0x95] sm:$0x1]  ;;  %v5027_v11 = vld [vmem:[%s7157_s20 + $0xe0] sm:$0x1]  ;;  %v4750_v29 = vld [vmem:[%s7157_s20 + $0x8d] sm:$0xff] }
 0x622   : > { %v4160_v16 = vadd.f32 %v4158_v12, %v6778_v46  ;;  %v4157_v17 = vadd.f32 %v4148_v15, %v4067_v13  ;;  %v5026_v13 = vld [vmem:[%s7157_s20 + $0xd8] sm:$0xff]  ;;  %v5025_v15 = vld [vmem:[%s7157_s20 + $0xd0] sm:$0xff] }
 0x624   : > { %v4169_v19 = vmul.f32 %v5517_v14, %v4160_v16  ;;  %v4159_v20 = vadd.f32 %v4157_v17, %v6774_v44  ;;  %v4475_v44 = vld [vmem:[%s7157_s20 + $0x4a] sm:$0x1]  ;;  %v4748_v16 = vld [vmem:[%s7157_s20 + $0x7d] sm:$0xff] }
 0x625   : > { %6125 = vmatprep.subr.msk.mxu1 %vm4310_vm4, %v4475_v44  ;;  %v5024_v17 = vld [vmem:[%s7157_s20 + $0xc8] sm:$0xff] }
 0x626   : > { %v4178_v21 = vadd.f32 %v5518_v18, %v4169_v19  ;;  %v4168_v22 = vmul.f32 %v5517_v14, %v4159_v20  ;;  %v4749_v14 = vld [vmem:[%s7157_s20 + $0x85] sm:$0xff] }
 0x627   : > { %v4934_v20 = vld [vmem:[%s7157_s20 + $0xbf] sm:$0xff] }
 0x628   : > { %v4177_v24 = vadd.f32 %v5518_v18, %v4168_v22  ;;  %v4183_v25 = vmul.f32 %v4181_v23, %v4178_v21  ;;  %vm4180_vm3 = vcmp.ge.f32.partialorder %v4178_v21, 0.0  ;;  %v4935_v18 = vld [vmem:[%s7157_s20 + $0xc7] sm:$0x1] }
 0x62a   : > { %vm4179_vm2 = vcmp.ge.f32.partialorder %v4177_v24, 0.0  ;;  %v4182_v26 = vmul.f32 %v4181_v23, %v4177_v24  ;;  %v4185_v46 = vsel %vm4180_vm3, %v4178_v21, %v4183_v25  ;;  %v5211_v21 = vld [vmem:[%s7157_s20 + $0x112] sm:$0x1]  ;;  %v5210_v25 = vld [vmem:[%s7157_s20 + $0x10a] sm:$0xff] }
 0x62c   : > { %v4184_v27 = vsel %vm4179_vm2, %v4177_v24, %v4182_v26  ;;  %v4933_v24 = vld [vmem:[%s7157_s20 + $0xb7] sm:$0xff]  ;;  %v4932_v26 = vld [vmem:[%s7157_s20 + $0xaf] sm:$0xff] }
 0x62d   : > { %6100 = vmatprep.mubr.msk.f32.mxu1 %vm3086_vm13, %v4184_v27  ;;  %v5209_v27 = vld [vmem:[%s7157_s20 + $0x102] sm:$0xff] }
 0x62e   : > { %6101 = vmatmul.mubr.msk.f32.vlgmr.msra.gmra.mxu1 %vm3086_vm13, %v4185_v46  ;;  %v5119_v46 = vld [vmem:[%s7157_s20 + $0xf9] sm:$0x1] }
 0x62f   : > { %6126 = vmatpush3.msk.msra.mxu1 %vm4310_vm4, %v4475_v44  ;;  %v5118_v44 = vld [vmem:[%s7157_s20 + $0xf1] sm:$0xff] }
 0x630   : > { %6127 = vmatprep.subr.mxu1 %v4474_v31 }
 0x631   : > { %6128 = vmatpush3.msra.mxu1 %v4474_v31  ;;  %v5117_v31 = vld [vmem:[%s7157_s20 + $0xe9] sm:$0xff] }
 0x632   : > { %6129 = vmatprep.subr.mxu1 %v4473_v1 }
 0x633   : > { %6130 = vmatpush3.msra.mxu1 %v4473_v1  ;;  %v5207_v1 = vld [vmem:[#allocation2 + $0x28] sm:$0xff] }
 0x634   : > { %6131 = vmatprep.subr.mxu1 %v4472_v33 }
 0x635   : > { %6132 = vmatpush3.msra.mxu1 %v4472_v33 }
 0x636   : > { %6147 = vmatprep.subr.msk.mxu1 %vm4310_vm4, %v4659_v36 }
 0x6ee   : > { %v6102_v38 = vpop.f32.mrf.mxu1 }
 0x6ef   : > { %v4281_v40 = vadd.f32 %v6102_v38, %v5521_v37 }
 0x6f0   : > { %v4275_v41 = vpop.f32.mrf.mxu1 }
 0x6f1   : > { %vm4285_vm5 = vcmp.ge.f32.partialorder %v4281_v40, 0.0  ;;  %v4288_v42 = vmul.f32 %v4286_v39, %v4281_v40  ;;  %v4276_v43 = vadd.f32 %v5521_v37, %v4275_v41 }
 0x6f3   : > { %v4290_v47 = vsel %vm4285_vm5, %v4281_v40, %v4288_v42  ;;  %vm4284_vm6 = vcmp.ge.f32.partialorder %v4276_v43, 0.0  ;;  %v4287_v48 = vmul.f32 %v4286_v39, %v4276_v43 }
 0x6f4   : > { %4292 = vst.msk [vmem:[#allocation2 + $0x18] sm:$0xff] %vm843_vm1, %v4290_v47 }
 0x6f5   : > { %v4289_v49 = vsel %vm4284_vm6, %v4276_v43, %v4287_v48 }
 0x6f6   : > { %4291 = vst.msk [vmem:[#allocation2 + $0x10] sm:$0xff] %vm843_vm1, %v4289_v49 }
 0x6fb   : > { %v4839_v12 = vld [vmem:[#allocation2 + $0x19] sm:$0xff] }
 0x6fc   : > { %v4747_v19 = vld [vmem:[#allocation2 + $0x18] sm:$0xff] }
 0x6fd   : > { %v6980_v52 = vld [vmem:[#allocation2 + $0x10] sm:$0xff]  ;;  %v5023_v23 = vld [vmem:[#allocation2 + $0x1c] sm:$0xff] }
 0x6fe   : > { %v4470_v53 = vld [vmem:[#allocation2 + $0xc] sm:$0xff]  ;;  %v6982_v54 = vld [vmem:[#allocation2 + $0x14] sm:$0xff]  ;;  %6112 = vmatmul.mubr.msk.f32.vlgmr.msra.gmra.mxu0 %vm843_vm1, %v6980_v52 }
 0x6ff   : > { %6133 = vmatprep.mubr.msk.f32.mxu1 %vm843_vm1, %v4470_v53  ;;  %6115 = vmatpush3.msk.msra.mxu0 %vm4310_vm4, %v4298_v35  ;;  %v4654_v57 = vld [vmem:[#allocation2 + $0xf] sm:$0xff]  ;;  %v4655_v3 = vld [vmem:[#allocation2 + $0x17] sm:$0xff] }
 0x700   : > { %6134 = vmatmul.mubr.msk.f32.vlgmr.msra.gmra.mxu1 %vm843_vm1, %v6982_v54  ;;  %6116 = vmatprep.subr.mxu0 %v4297_v51  ;;  %v4562_v2 = vld [vmem:[#allocation2 + $0xe] sm:$0xff]  ;;  %v4563_v45 = vld [vmem:[#allocation2 + $0x16] sm:$0xff] }
 0x701   : > { %6148 = vmatpush3.msk.msra.mxu1 %vm4310_vm4, %v4659_v36  ;;  %6117 = vmatpush3.msra.mxu0 %v4297_v51  ;;  %v4838_v5 = vld [vmem:[#allocation2 + $0x11] sm:$0xff]  ;;  %v4931_v28 = vld [vmem:[#allocation2 + $0x1a] sm:$0xff] }
 0x702   : > { %6149 = vmatprep.subr.mxu1 %v4658_v55  ;;  %6155 = vmatprep.mubr.msk.f32.mxu1 %vm843_vm1, %v4654_v57  ;;  %v4930_v22 = vld [vmem:[#allocation2 + $0x12] sm:$0xff] }
 0x703   : > { %6118 = vmatprep.subr.mxu0 %v4296_v56  ;;  %6150 = vmatpush3.msra.mxu1 %v4658_v55 }
 0x704   : > { %6119 = vmatpush3.msra.mxu0 %v4296_v56  ;;  %6151 = vmatprep.subr.mxu1 %v4657_v58 }
 0x705   : > { %6120 = vmatprep.subr.mxu0 %v4295_v59  ;;  %6152 = vmatpush3.msra.mxu1 %v4657_v58 }
 0x706   : > { %6121 = vmatpush3.msra.mxu0 %v4295_v59  ;;  %6122 = vmatprep.mubr.msk.f32.mxu0 %vm843_vm1, %v4293_v60 }
 0x707   : > { %6153 = vmatprep.subr.mxu1 %v4656_v61  ;;  %6123 = vmatmul.mubr.msk.f32.vlgmr.msra.gmra.mxu0 %vm843_vm1, %v4294_v34 }
 0x708   : > { %6136 = vmatprep.subr.msk.mxu0 %vm4310_vm4, %v4567_v62  ;;  %6154 = vmatpush3.msra.mxu1 %v4656_v61 }
 0x709   : > { %6137 = vmatpush3.msk.msra.mxu0 %vm4310_vm4, %v4567_v62  ;;  %6144 = vmatprep.mubr.msk.f32.mxu0 %vm843_vm1, %v4562_v2 }
 0x70a   : > { %6156 = vmatmul.mubr.msk.f32.vlgmr.msra.gmra.mxu1 %vm843_vm1, %v4655_v3  ;;  %6169 = vmatprep.subr.msk.mxu1 %vm4310_vm4, %v4843_v63 }
 0x70b   : > { %6138 = vmatprep.subr.mxu0 %v4566_v0  ;;  %6170 = vmatpush3.msk.msra.mxu1 %vm4310_vm4, %v4843_v63 }
 0x70c   : > { %6177 = vmatprep.mubr.msk.f32.mxu1 %vm843_vm1, %v4838_v5  ;;  %6139 = vmatpush3.msra.mxu0 %v4566_v0 }
 0x70d   : > { %6171 = vmatprep.subr.mxu1 %v4842_v4  ;;  %6140 = vmatprep.subr.mxu0 %v4565_v6 }
 0x70e   : > { %6172 = vmatpush3.msra.mxu1 %v4842_v4  ;;  %6141 = vmatpush3.msra.mxu0 %v4565_v6 }
 0x70f   : > { %6173 = vmatprep.subr.mxu1 %v4841_v7  ;;  %6142 = vmatprep.subr.mxu0 %v4564_v8 }
 0x710   : > { %6174 = vmatpush3.msra.mxu1 %v4841_v7  ;;  %6143 = vmatpush3.msra.mxu0 %v4564_v8 }
 0x711   : > { %6175 = vmatprep.subr.mxu1 %v4840_v9  ;;  %6145 = vmatmul.mubr.msk.f32.vlgmr.msra.gmra.mxu0 %vm843_vm1, %v4563_v45  ;;  %v5557_v45 = vld [vmem:[%s7158_s21] ss:$0 sm:$0xff] }
 0x712   : > { %6158 = vmatprep.subr.msk.mxu0 %vm4310_vm4, %v4751_v10  ;;  %6176 = vmatpush3.msra.mxu1 %v4840_v9 }
 0x713   : > { %6159 = vmatpush3.msk.msra.mxu0 %vm4310_vm4, %v4751_v10  ;;  %6166 = vmatprep.mubr.msk.f32.mxu0 %vm843_vm1, %v6980_v52 }
 0x714   : > { %6178 = vmatmul.mubr.msk.f32.vlgmr.msra.gmra.mxu1 %vm843_vm1, %v4839_v12  ;;  %6191 = vmatprep.subr.msk.mxu1 %vm4310_vm4, %v5027_v11 }
 0x715   : > { %6160 = vmatprep.subr.mxu0 %v4750_v29  ;;  %6192 = vmatpush3.msk.msra.mxu1 %vm4310_vm4, %v5027_v11 }
 0x716   : > { %6199 = vmatprep.mubr.msk.f32.mxu1 %vm843_vm1, %v6982_v54  ;;  %6161 = vmatpush3.msra.mxu0 %v4750_v29 }
 0x717   : > { %6193 = vmatprep.subr.mxu1 %v5026_v13  ;;  %6162 = vmatprep.subr.mxu0 %v4749_v14 }
 0x718   : > { %6194 = vmatpush3.msra.mxu1 %v5026_v13  ;;  %6163 = vmatpush3.msra.mxu0 %v4749_v14  ;;  %v5558_v13 = vld [vmem:[%s7159_s22] ss:$0 sm:$0xff] }
 0x719   : > { %6195 = vmatprep.subr.mxu1 %v5025_v15  ;;  %6164 = vmatprep.subr.mxu0 %v4748_v16 }
 0x71a   : > { %6196 = vmatpush3.msra.mxu1 %v5025_v15  ;;  %6165 = vmatpush3.msra.mxu0 %v4748_v16 }
 0x71b   : > { %6197 = vmatprep.subr.mxu1 %v5024_v17  ;;  %6167 = vmatmul.mubr.msk.f32.vlgmr.msra.gmra.mxu0 %vm843_vm1, %v4747_v19 }
 0x71c   : > { %6180 = vmatprep.subr.msk.mxu0 %vm4310_vm4, %v4935_v18  ;;  %6198 = vmatpush3.msra.mxu1 %v5024_v17  ;;  %v5318_v17 = vstv %s5520_s7 }
 0x71d   : > { %6181 = vmatpush3.msk.msra.mxu0 %vm4310_vm4, %v4935_v18  ;;  %6188 = vmatprep.mubr.msk.f32.mxu0 %vm843_vm1, %v4930_v22 }
 0x71e   : > { %6200 = vmatmul.mubr.msk.f32.vlgmr.msra.gmra.mxu1 %vm843_vm1, %v5023_v23  ;;  %6182 = vmatprep.subr.mxu0 %v4934_v20 }
 0x71f   : > { %6213 = vmatprep.subr.msk.mxu1 %vm4310_vm4, %v5211_v21  ;;  %6183 = vmatpush3.msra.mxu0 %v4934_v20 }
 0x720   : > { %6214 = vmatpush3.msk.msra.mxu1 %vm4310_vm4, %v5211_v21  ;;  %6184 = vmatprep.subr.mxu0 %v4933_v24 }
 0x721   : > { %6215 = vmatprep.subr.mxu1 %v5210_v25  ;;  %6185 = vmatpush3.msra.mxu0 %v4933_v24 }
 0x722   : > { %6216 = vmatpush3.msra.mxu1 %v5210_v25  ;;  %6186 = vmatprep.subr.mxu0 %v4932_v26 }
 0x723   : > { %6217 = vmatprep.subr.mxu1 %v5209_v27  ;;  %6187 = vmatpush3.msra.mxu0 %v4932_v26 }
 0x724   : > { %6218 = vmatpush3.msra.mxu1 %v5209_v27  ;;  %6189 = vmatmul.mubr.msk.f32.vlgmr.msra.gmra.mxu0 %vm843_vm1, %v4931_v28 }
 0x725   : > { %6202 = vmatprep.subr.msk.mxu0 %vm4310_vm4, %v5119_v46  ;;  %6210 = vmatprep.mubr.msk.f32.mxu0 %vm843_vm1, %v4747_v19 }
 0x726   : > { %6203 = vmatpush3.msk.msra.mxu0 %vm4310_vm4, %v5119_v46  ;;  %6219 = vmatprep.subr.mxu1 %v5208_v30 }
 0x727   : > { %6204 = vmatprep.subr.mxu0 %v5118_v44  ;;  %6220 = vmatpush3.msra.mxu1 %v5208_v30 }
 0x728   : > { %6205 = vmatpush3.msra.mxu0 %v5118_v44  ;;  %6221 = vmatprep.mubr.msk.f32.mxu1 %vm843_vm1, %v5206_v50 }
 0x729   : > { %6206 = vmatprep.subr.mxu0 %v5117_v31  ;;  %6222 = vmatmul.mubr.msk.f32.vlgmr.msra.gmra.mxu1 %vm843_vm1, %v5207_v1 }
 0x72a   : > { %6207 = vmatpush3.msra.mxu0 %v5117_v31 }
 0x72b   : > { %6208 = vmatprep.subr.mxu0 %v5116_v32 }
 0x72c   : > { %6209 = vmatpush3.msra.mxu0 %v5116_v32 }
 0x72d   : > { %6211 = vmatmul.mubr.msk.f32.vlgmr.msra.gmra.mxu0 %vm843_vm1, %v5206_v50 }
 0x7be   : > { %v6113_v33 = vpop.f32.mrf.mxu0 }
 0x7c0   : > { %v4380_v34 = vpop.f32.mrf.mxu0  ;;  %v6135_v36 = vpop.f32.mrf.mxu1 }
 0x7c2   : > { %v4551_v41 = vpop.f32.mrf.mxu1 }
 0x7c7   : > { %v6124_v35 = vpop.f32.mrf.mxu0 }
 0x7c8   : > { %v4467_v38 = vadd.f32 %v6124_v35, %v6113_v33 }
 0x7c9   : > { %v4461_v37 = vpop.f32.mrf.mxu0 }
 0x7ca   : > { %v4462_v40 = vadd.f32 %v4461_v37, %v4380_v34  ;;  %v4561_v42 = vadd.f32 %v6135_v36, %v4467_v38  ;;  %v6157_v43 = vpop.f32.mrf.mxu1 }
 0x7cc   : > { %v4560_v49 = vadd.f32 %v4551_v41, %v4462_v40  ;;  %v4735_v53 = vpop.f32.mrf.mxu1 }
 0x7d1   : > { %v6146_v39 = vpop.f32.mrf.mxu0 }
 0x7d2   : > { %v4653_v48 = vadd.f32 %v6146_v39, %v4561_v42 }
 0x7d3   : > { %v4643_v47 = vpop.f32.mrf.mxu0 }
 0x7d4   : > { %v4652_v52 = vadd.f32 %v4643_v47, %v4560_v49  ;;  %v4745_v54 = vadd.f32 %v6157_v43, %v4653_v48  ;;  %v6179_v55 = vpop.f32.mrf.mxu1 }
 0x7d6   : > { %v4744_v58 = vadd.f32 %v4735_v53, %v4652_v52  ;;  %v4919_v60 = vpop.f32.mrf.mxu1 }
 0x7db   : > { %v6168_v51 = vpop.f32.mrf.mxu0 }
 0x7dc   : > { %v4837_v57 = vadd.f32 %v6168_v51, %v4745_v54 }
 0x7dd   : > { %v4827_v56 = vpop.f32.mrf.mxu0 }
 0x7de   : > { %v4836_v59 = vadd.f32 %v4827_v56, %v4744_v58  ;;  %v4929_v62 = vadd.f32 %v6179_v55, %v4837_v57  ;;  %v6201_v63 = vpop.f32.mrf.mxu1 }
 0x7e0   : > { %v4928_v3 = vadd.f32 %v4919_v60, %v4836_v59  ;;  %v5103_v5 = vpop.f32.mrf.mxu1 }
 0x7e4   : > { %v6190_v61 = vpop.f32.mrf.mxu0 }
 0x7e5   : > { %v5021_v2 = vadd.f32 %v6190_v61, %v4929_v62 }
 0x7e6   : > { %v5011_v0 = vpop.f32.mrf.mxu0 }
 0x7e7   : > { %v5020_v4 = vadd.f32 %v5011_v0, %v4928_v3  ;;  %v5113_v6 = vadd.f32 %v6201_v63, %v5021_v2 }
 0x7e9   : > { %v6223_v8 = vpop.f32.mrf.mxu1  ;;  %v5112_v10 = vadd.f32 %v5103_v5, %v5020_v4 }
 0x7eb   : > { %v5287_v14 = vpop.f32.mrf.mxu1 }
 0x7ed   : > { %v6212_v7 = vpop.f32.mrf.mxu0 }
 0x7ee   : > { %v5205_v9 = vadd.f32 %v6212_v7, %v5113_v6 }
 0x7ef   : > { %v5195_v11 = vpop.f32.mrf.mxu0 }
 0x7f0   : > { %v5297_v29 = vadd.f32 %v6223_v8, %v5205_v9  ;;  %v5204_v12 = vadd.f32 %v5195_v11, %v5112_v10 }
 0x7f2   : > { %v5306_v15 = vmul.f32 %v5557_v45, %v5297_v29  ;;  %v5296_v16 = vadd.f32 %v5287_v14, %v5204_v12 }
 0x7f4   : > { %v5315_v18 = vadd.f32 %v5558_v13, %v5306_v15  ;;  %v5305_v19 = vmul.f32 %v5557_v45, %v5296_v16 }
 0x7f6   : > { %v5320_v20 = vmul.f32 %v5318_v17, %v5315_v18  ;;  %v5314_v21 = vadd.f32 %v5558_v13, %v5305_v19  ;;  %vm5317_vm1 = vcmp.ge.f32.partialorder %v5315_v18, 0.0 }
 0x7f8   : > { %vm5316_vm7 = vcmp.ge.f32.partialorder %v5314_v21, 0.0  ;;  %v5319_v22 = vmul.f32 %v5318_v17, %v5314_v21  ;;  %v5322_v23 = vsel %vm5317_vm1, %v5315_v18, %v5320_v20 }
 0x7fa   : > { %v5321_v24 = vsel %vm5316_vm7, %v5314_v21, %v5319_v22 }
 0x7fb   : > { %v5323_v25 = vmax.f32 %v5321_v24, %v5322_v23 }
 0x7fd   : > { %v5324_v26 = vrot.slane %v5323_v25, 4 }
 0x7ff   : > { %v5325_v27 = vmax.f32 %v5323_v25, %v5324_v26 }
 0x801   : > { %v5326_v46 = vrot.slane %v5325_v27, 2 }
 0x803   : > { %v5327_v28 = vmax.f32 %v5325_v27, %v5326_v46 }
 0x805   : > { %v5328_v44 = vrot.slane %v5327_v28, 1 }
 0x807   : > { %v5329_v30 = vmax.f32 %v5327_v28, %v5328_v44 }
 0x809   : > { %5330 = vst [vmem:[%s747_s2] sm:$0x1] %v5329_v30 }
 0x80a PF: > { %s35_s5 = sadd.s32 1, %s6269_s5  }
 0x80b   : > { %p32_p1 = scmp.ge.s32.totalorder %s35_s5, 4  }
 0x80d   :  { %34 = sbr.rel (!%p32_p1) target bundleno = 11 (0xb), region = 151 }
 0x812   :  { %5348 = vsyncpa [#allocation4], 1 }
 0x813   :  { %5350 = vsyncpa [#allocation4 + $0x1], 1 }

</bundles_post_ra>
